<compile_context>
chip_gen: v7x
topology: tpu7x:2x2x1
jax: 0.10.0
libtpu: 0.0.40
codegen_flags: <defaults>
</compile_context>

<pallas_src>
import functools

import jax
import jax.numpy as jnp
from jax.experimental import pallas as pl
from jax.experimental.pallas import tpu as pltpu

# Small, module-consistent shapes.
B, S, H = 16, 16, 768         # batch, sequence length, BERT hidden size
TB = 8                        # batch rows per grid step (TB*S = 128 MXU rows,
                              # output blocks (8, 128) => sublane/lane aligned)
C = 128                       # conv out-channels
NUM_LABELS = 2
KS = (3, 4, 5)                # conv window sizes
NTAP = sum(KS)                # 12 fused conv weight taps
OUT_PAD = 128                 # lane-dense padded logits width

assert S % 8 == 0 and B % TB == 0 and (TB * S) % 32 == 0


def _pick_quant_mode():
    """int8 weights+activations where the MXU takes int8 natively (v5e/v6e);
    bf16 elsewhere.  TODO(synk): fp8(e4m3) weight path for v7x (no int MXU)."""
    try:
        kind = jax.devices()[0].device_kind.lower()
    except Exception:
        return "bf16"
    return "int8" if ("v5" in kind or "v6" in kind) else "bf16"


def cnn_classifier_kernel(use_int8, hid_ref, w_ref, ws_ref, bconv_ref,
                          fc1w_ref, fc1b_ref, fc2w_ref, fc2b_ref, out_ref):
    N = TB * S
    x = hid_ref[...].reshape(N, H)                    # f32, cast AFTER the DMA

    if use_int8:
        # Per-row (per-token) symmetric int8 activation quantization; the
        # dequant scale (absmax/127) folds into the f32 epilogue below.
        absmax = jnp.maximum(jnp.max(jnp.abs(x), axis=-1, keepdims=True), 1e-6)
        a_scale = absmax * (1.0 / 127.0)              # (N, 1) f32
        xq = jnp.clip(jnp.floor(x * (127.0 / absmax) + 0.5),
                      -127.0, 127.0).astype(jnp.int8)
    else:
        xb = x.astype(jnp.bfloat16)

    def tap_dot(tap_idx):
        c0 = tap_idx * C
        wt = w_ref[:, c0:c0 + C]                      # (H, C), lane-aligned view
        if use_int8:
            t32 = jnp.dot(xq, wt, preferred_element_type=jnp.int32)
            return t32.astype(jnp.float32) * a_scale * ws_ref[:, c0:c0 + C]
        return jnp.dot(xb, wt, preferred_element_type=jnp.float32)

    # Time index inside each sequence: zero conv windows that run off the
    # sequence end / wrap around the roll.  NOTE: zeroing is only valid because
    # ReLU makes every valid row >= 0 before the max-pool (would break for an
    # activation that can be negative, e.g. GELU).
    t_idx = jax.lax.broadcasted_iota(jnp.int32, (TB, S, C), 1)

    pooled = []
    tap = 0
    for ci, K in enumerate(KS):
        # conv_out[row t] = sum_k tap_k[row t + k]; roll by N-k realigns tap k
        # (XLU sublane rotate, overlaps the next tap's MXU dot).
        acc = tap_dot(tap)
        for k in range(1, K):
            acc = acc + pltpu.roll(tap_dot(tap + k), shift=N - k, axis=0)
        tap += K
        acc = jnp.maximum(acc + bconv_ref[:, ci * C:(ci + 1) * C], 0.0)  # bias+ReLU
        acc = jnp.where(t_idx <= S - K, acc.reshape(TB, S, C), 0.0)      # mask tail
        pooled.append(jnp.max(acc, axis=1))           # (TB, C): max_pool over time

    feat = jnp.concatenate(pooled, axis=1)            # (TB, 3*C), f32
    # dropout(0.5) -> identity at inference time.
    h = jnp.dot(feat.astype(jnp.bfloat16), fc1w_ref[...],
                preferred_element_type=jnp.float32)
    h = jnp.maximum(h + fc1b_ref[...], 0.0)           # (TB, C), f32
    logits = jnp.dot(h.astype(jnp.bfloat16), fc2w_ref[...],
                     preferred_element_type=jnp.float32) + fc2b_ref[...]
    out_ref[...] = logits                             # (TB, 128) lane-dense store


def pack_params(params, mode):
    """One-time repack: fuse the 12 conv taps column-wise, quantize/cast the
    matmul weights per `mode`, keep biases/scales f32, pad fc2 to 128 lanes."""
    w_all = jnp.concatenate(
        [params["w1"][k] for k in range(3)]
        + [params["w2"][k] for k in range(4)]
        + [params["w3"][k] for k in range(5)], axis=1)                 # (H, 12*C) f32
    if mode == "int8":
        w_scale = jnp.maximum(jnp.max(jnp.abs(w_all), axis=0, keepdims=True),
                              1e-12) / 127.0                           # (1, 12*C)
        w_q = jnp.clip(jnp.round(w_all / w_scale), -127, 127).astype(jnp.int8)
    else:
        w_scale = jnp.ones((1, NTAP * C), jnp.float32)                 # unused
        w_q = w_all.astype(jnp.bfloat16)
    b_all = jnp.concatenate([params["b1"], params["b2"], params["b3"]],
                            axis=1).astype(jnp.float32)                # (1, 3*C)
    fc2w = jnp.zeros((C, OUT_PAD), jnp.float32).at[:, :NUM_LABELS].set(params["fc2_w"])
    fc2b = jnp.zeros((1, OUT_PAD), jnp.float32).at[:, :NUM_LABELS].set(params["fc2_b"])
    return {
        "w_all": w_q,
        "w_scale": w_scale.astype(jnp.float32),
        "b_all": b_all,
        "fc1_w": params["fc1_w"].astype(jnp.bfloat16),
        "fc1_b": params["fc1_b"].astype(jnp.float32),
        "fc2_w": fc2w.astype(jnp.bfloat16),
        "fc2_b": fc2b,
    }


def cnn_classifier_forward(hidden, packed, mode):
    use_int8 = (mode == "int8")
    args = (hidden, packed["w_all"], packed["w_scale"], packed["b_all"],
            packed["fc1_w"], packed["fc1_b"], packed["fc2_w"], packed["fc2_b"])

    def resident(arr):
        # Full-array block + constant index_map: fetched once, stays in VMEM
        # across all grid steps (shared by every batch tile).
        return pl.BlockSpec(arr.shape, lambda b, nd=arr.ndim: (0,) * nd)

    in_specs = ([pl.BlockSpec((TB, S, H), lambda b: (b, 0, 0))]
                + [resident(a) for a in args[1:]])
    out_specs = pl.BlockSpec((TB, OUT_PAD), lambda b: (b, 0))

    flops = (2 * B * S * H * NTAP * C        # fused conv matmuls
             + 2 * B * (3 * C) * C           # fc1
             + 2 * B * C * OUT_PAD)          # fc2 (padded)
    bytes_accessed = (sum(int(a.size) * a.dtype.itemsize for a in args)
                      + B * OUT_PAD * 4)

    out = pl.pallas_call(
        functools.partial(cnn_classifier_kernel, use_int8),
        out_shape=jax.ShapeDtypeStruct((B, OUT_PAD), jnp.float32),
        grid=(B // TB,),
        in_specs=in_specs,
        out_specs=out_specs,
        compiler_params=pltpu.CompilerParams(dimension_semantics=("parallel",)),
        cost_estimate=pl.CostEstimate(flops=flops, transcendentals=0,
                                      bytes_accessed=bytes_accessed),
    )(*args)
    return out[:, :NUM_LABELS]


def make_params(key):
    """Deterministic PyTorch-style uniform(-1/sqrt(fan_in), +1/sqrt(fan_in)) init."""
    keys = jax.random.split(key, 10)

    def u(k, shape, fan_in):
        bound = 1.0 / float(fan_in) ** 0.5
        return jax.random.uniform(k, shape, jnp.float32, -bound, bound)

    return {
        # Conv2d(1, 128, (K, 768)) weights reshaped (C,1,K,H) -> (K, H, C)
        "w1": u(keys[0], (3, H, C), 3 * H), "b1": u(keys[1], (1, C), 3 * H),
        "w2": u(keys[2], (4, H, C), 4 * H), "b2": u(keys[3], (1, C), 4 * H),
        "w3": u(keys[4], (5, H, C), 5 * H), "b3": u(keys[5], (1, C), 5 * H),
        # Linear weights stored transposed: (in, out)
        "fc1_w": u(keys[6], (3 * C, C), 3 * C), "fc1_b": u(keys[7], (1, C), 3 * C),
        "fc2_w": u(keys[8], (C, NUM_LABELS), C), "fc2_b": u(keys[9], (1, NUM_LABELS), C),
    }


def reference_forward(hidden, p):
    """Pure-JAX f32 reference mirroring the PyTorch forward (eval mode)."""
    feats = []
    for K, wn, bn in ((3, "w1", "b1"), (4, "w2", "b2"), (5, "w3", "b3")):
        W, bias = p[wn], p[bn]
        t_out = S - K + 1
        conv = jnp.stack(
            [sum(hidden[:, t + k, :] @ W[k] for k in range(K)) + bias[0]
             for t in range(t_out)],
            axis=1)                                   # (B, t_out, C)
        feats.append(jnp.max(jax.nn.relu(conv), axis=1))
    x = jnp.concatenate(feats, axis=1)                # (B, 3*C)
    h = jax.nn.relu(x @ p["fc1_w"] + p["fc1_b"])
    return h @ p["fc2_w"] + p["fc2_b"]


if __name__ == "__main__":
    key = jax.random.PRNGKey(0)
    k_hidden, k_params = jax.random.split(key)
    # Synthetic BERT last_hidden_state (what self.bert(...) would produce).
    hidden = jax.random.normal(k_hidden, (B, S, H), jnp.float32)
    params = make_params(k_params)
    ref = reference_forward(hidden, params)

    mode = _pick_quant_mode()
    logits = None
    if mode == "int8":
        # int8 path (v5e/v6e).  Feature-detect: if the int8 MXU path fails to
        # lower or misses tolerance on this chip, fall back to bf16 below.
        try:
            packed = pack_params(params, "int8")
            cand = cnn_classifier_forward(hidden, packed, "int8")
            jax.block_until_ready(cand)
            # int8 weights+activations (per-channel / per-token scales) => a
            # looser tolerance vs the pure-f32 reference.
            if bool(jnp.allclose(cand, ref, atol=6e-2, rtol=6e-2)):
                logits = cand
        except Exception:
            logits = None

    if logits is None:
        packed = pack_params(params, "bf16")
        logits = cnn_classifier_forward(hidden, packed, "bf16")
        jax.block_until_ready(logits)
        max_err = jnp.max(jnp.abs(logits - ref))
        # bf16 matmul operands, f32 accumulation -> loosened tolerance vs f32 ref.
        assert jnp.allclose(logits, ref, atol=3e-2, rtol=3e-2), (
            f"mismatch vs reference, max abs err = {max_err}")

    assert logits.shape == (B, NUM_LABELS)
    print("KERNEL_OK")
</pallas_src>

<mosaic_0001>
module attributes {stable_mosaic.version = 11 : i64} {
  func.func @cnn_classifier_kernel(%arg0: i32, %arg1: memref<8x16x768xf32, #tpu.memory_space<vmem>>, %arg2: memref<768x1536xbf16, #tpu.memory_space<vmem>>, %arg3: memref<1x1536xf32, #tpu.memory_space<vmem>>, %arg4: memref<1x384xf32, #tpu.memory_space<vmem>>, %arg5: memref<384x128xbf16, #tpu.memory_space<vmem>>, %arg6: memref<1x128xf32, #tpu.memory_space<vmem>>, %arg7: memref<128x128xbf16, #tpu.memory_space<vmem>>, %arg8: memref<1x128xf32, #tpu.memory_space<vmem>>, %arg9: memref<8x128xf32, #tpu.memory_space<vmem>>) attributes {dimension_semantics = [#tpu.dimension_semantics<parallel>], iteration_bounds = array<i64: 2>, scalar_prefetch = 0 : i64, scratch_operands = 0 : i64, tpu.core_type = #tpu.core_type<tc>, window_params = [{transform_indices = @transform_0, window_bounds = array<i64: 8, 16, 768>}, {pipeline_mode = #tpu.pipeline_mode<synchronous>, transform_indices = @transform_1, window_bounds = array<i64: 768, 1536>}, {pipeline_mode = #tpu.pipeline_mode<synchronous>, transform_indices = @transform_2, window_bounds = array<i64: 1, 1536>}, {pipeline_mode = #tpu.pipeline_mode<synchronous>, transform_indices = @transform_3, window_bounds = array<i64: 1, 384>}, {pipeline_mode = #tpu.pipeline_mode<synchronous>, transform_indices = @transform_4, window_bounds = array<i64: 384, 128>}, {pipeline_mode = #tpu.pipeline_mode<synchronous>, transform_indices = @transform_5, window_bounds = array<i64: 1, 128>}, {pipeline_mode = #tpu.pipeline_mode<synchronous>, transform_indices = @transform_6, window_bounds = array<i64: 128, 128>}, {pipeline_mode = #tpu.pipeline_mode<synchronous>, transform_indices = @transform_7, window_bounds = array<i64: 1, 128>}, {transform_indices = @transform_8, window_bounds = array<i64: 8, 128>}]} {
    %c0 = arith.constant 0 : index
    %c0_0 = arith.constant 0 : index
    %c0_1 = arith.constant 0 : index
    %0 = vector.load %arg1[%c0, %c0_0, %c0_1] : memref<8x16x768xf32, #tpu.memory_space<vmem>>, vector<8x16x768xf32>
    %1 = vector.shape_cast %0 : vector<8x16x768xf32> to vector<128x768xf32>
    %2 = arith.truncf %1 : vector<128x768xf32> to vector<128x768xbf16>
    %3 = tpu.iota {dimensions = array<i32: 1>} : vector<8x16x128xi32>
    %c0_2 = arith.constant 0 : index
    %c0_3 = arith.constant 0 : index
    %4 = vector.load %arg2[%c0_2, %c0_3] : memref<768x1536xbf16, #tpu.memory_space<vmem>>, vector<768x128xbf16>
    %cst = arith.constant dense<0.000000e+00> : vector<128x128xf32>
    %5 = tpu.matmul %2, %4, %cst {dimension_numbers = #tpu.dot_dimension_numbers<[1], [0], [0], [1], [0, 0, 1, 1], [], []>} : vector<128x768xbf16>, vector<768x128xbf16>, vector<128x128xf32> -> vector<128x128xf32>
    %c0_4 = arith.constant 0 : index
    %c128 = arith.constant 128 : index
    %6 = vector.load %arg2[%c0_4, %c128] : memref<768x1536xbf16, #tpu.memory_space<vmem>>, vector<768x128xbf16>
    %cst_5 = arith.constant dense<0.000000e+00> : vector<128x128xf32>
    %7 = tpu.matmul %2, %6, %cst_5 {dimension_numbers = #tpu.dot_dimension_numbers<[1], [0], [0], [1], [0, 0, 1, 1], [], []>} : vector<128x768xbf16>, vector<768x128xbf16>, vector<128x128xf32> -> vector<128x128xf32>
    %c127_i32 = arith.constant 127 : i32
    %8 = tpu.dynamic_rotate %7 by %c127_i32 dim 0 : vector<128x128xf32>, i32 -> vector<128x128xf32>
    %9 = arith.addf %5, %8 : vector<128x128xf32>
    %c0_6 = arith.constant 0 : index
    %c256 = arith.constant 256 : index
    %10 = vector.load %arg2[%c0_6, %c256] : memref<768x1536xbf16, #tpu.memory_space<vmem>>, vector<768x128xbf16>
    %cst_7 = arith.constant dense<0.000000e+00> : vector<128x128xf32>
    %11 = tpu.matmul %2, %10, %cst_7 {dimension_numbers = #tpu.dot_dimension_numbers<[1], [0], [0], [1], [0, 0, 1, 1], [], []>} : vector<128x768xbf16>, vector<768x128xbf16>, vector<128x128xf32> -> vector<128x128xf32>
    %c126_i32 = arith.constant 126 : i32
    %12 = tpu.dynamic_rotate %11 by %c126_i32 dim 0 : vector<128x128xf32>, i32 -> vector<128x128xf32>
    %13 = arith.addf %9, %12 : vector<128x128xf32>
    %c0_8 = arith.constant 0 : index
    %c0_9 = arith.constant 0 : index
    %14 = vector.load %arg4[%c0_8, %c0_9] : memref<1x384xf32, #tpu.memory_space<vmem>>, vector<1x128xf32>
    %15 = vector.broadcast %14 : vector<1x128xf32> to vector<128x128xf32>
    %16 = arith.addf %13, %15 : vector<128x128xf32>
    %cst_10 = arith.constant 0.000000e+00 : f32
    %17 = vector.broadcast %cst_10 : f32 to vector<128x128xf32>
    %18 = arith.maximumf %16, %17 : vector<128x128xf32>
    %c13_i32 = arith.constant 13 : i32
    %19 = vector.broadcast %c13_i32 : i32 to vector<8x16x128xi32>
    %20 = arith.cmpi sle, %3, %19 : vector<8x16x128xi32>
    %21 = vector.shape_cast %18 : vector<128x128xf32> to vector<8x16x128xf32>
    %cst_11 = arith.constant 0.000000e+00 : f32
    %22 = vector.broadcast %cst_11 : f32 to vector<8x16x128xf32>
    %23 = arith.select %20, %21, %22 : vector<8x16x128xi1>, vector<8x16x128xf32>
    %cst_12 = arith.constant dense<0xFF800000> : vector<8x128xf32>
    %24 = vector.multi_reduction <maximumf>, %23, %cst_12 [1] : vector<8x16x128xf32> to vector<8x128xf32>
    %c0_13 = arith.constant 0 : index
    %c384 = arith.constant 384 : index
    %25 = vector.load %arg2[%c0_13, %c384] : memref<768x1536xbf16, #tpu.memory_space<vmem>>, vector<768x128xbf16>
    %cst_14 = arith.constant dense<0.000000e+00> : vector<128x128xf32>
    %26 = tpu.matmul %2, %25, %cst_14 {dimension_numbers = #tpu.dot_dimension_numbers<[1], [0], [0], [1], [0, 0, 1, 1], [], []>} : vector<128x768xbf16>, vector<768x128xbf16>, vector<128x128xf32> -> vector<128x128xf32>
    %c0_15 = arith.constant 0 : index
    %c512 = arith.constant 512 : index
    %27 = vector.load %arg2[%c0_15, %c512] : memref<768x1536xbf16, #tpu.memory_space<vmem>>, vector<768x128xbf16>
    %cst_16 = arith.constant dense<0.000000e+00> : vector<128x128xf32>
    %28 = tpu.matmul %2, %27, %cst_16 {dimension_numbers = #tpu.dot_dimension_numbers<[1], [0], [0], [1], [0, 0, 1, 1], [], []>} : vector<128x768xbf16>, vector<768x128xbf16>, vector<128x128xf32> -> vector<128x128xf32>
    %c127_i32_17 = arith.constant 127 : i32
    %29 = tpu.dynamic_rotate %28 by %c127_i32_17 dim 0 : vector<128x128xf32>, i32 -> vector<128x128xf32>
    %30 = arith.addf %26, %29 : vector<128x128xf32>
    %c0_18 = arith.constant 0 : index
    %c640 = arith.constant 640 : index
    %31 = vector.load %arg2[%c0_18, %c640] : memref<768x1536xbf16, #tpu.memory_space<vmem>>, vector<768x128xbf16>
    %cst_19 = arith.constant dense<0.000000e+00> : vector<128x128xf32>
    %32 = tpu.matmul %2, %31, %cst_19 {dimension_numbers = #tpu.dot_dimension_numbers<[1], [0], [0], [1], [0, 0, 1, 1], [], []>} : vector<128x768xbf16>, vector<768x128xbf16>, vector<128x128xf32> -> vector<128x128xf32>
    %c126_i32_20 = arith.constant 126 : i32
    %33 = tpu.dynamic_rotate %32 by %c126_i32_20 dim 0 : vector<128x128xf32>, i32 -> vector<128x128xf32>
    %34 = arith.addf %30, %33 : vector<128x128xf32>
    %c0_21 = arith.constant 0 : index
    %c768 = arith.constant 768 : index
    %35 = vector.load %arg2[%c0_21, %c768] : memref<768x1536xbf16, #tpu.memory_space<vmem>>, vector<768x128xbf16>
    %cst_22 = arith.constant dense<0.000000e+00> : vector<128x128xf32>
    %36 = tpu.matmul %2, %35, %cst_22 {dimension_numbers = #tpu.dot_dimension_numbers<[1], [0], [0], [1], [0, 0, 1, 1], [], []>} : vector<128x768xbf16>, vector<768x128xbf16>, vector<128x128xf32> -> vector<128x128xf32>
    %c125_i32 = arith.constant 125 : i32
    %37 = tpu.dynamic_rotate %36 by %c125_i32 dim 0 : vector<128x128xf32>, i32 -> vector<128x128xf32>
    %38 = arith.addf %34, %37 : vector<128x128xf32>
    %c0_23 = arith.constant 0 : index
    %c128_24 = arith.constant 128 : index
    %39 = vector.load %arg4[%c0_23, %c128_24] : memref<1x384xf32, #tpu.memory_space<vmem>>, vector<1x128xf32>
    %40 = vector.broadcast %39 : vector<1x128xf32> to vector<128x128xf32>
    %41 = arith.addf %38, %40 : vector<128x128xf32>
    %cst_25 = arith.constant 0.000000e+00 : f32
    %42 = vector.broadcast %cst_25 : f32 to vector<128x128xf32>
    %43 = arith.maximumf %41, %42 : vector<128x128xf32>
    %c12_i32 = arith.constant 12 : i32
    %44 = vector.broadcast %c12_i32 : i32 to vector<8x16x128xi32>
    %45 = arith.cmpi sle, %3, %44 : vector<8x16x128xi32>
    %46 = vector.shape_cast %43 : vector<128x128xf32> to vector<8x16x128xf32>
    %cst_26 = arith.constant 0.000000e+00 : f32
    %47 = vector.broadcast %cst_26 : f32 to vector<8x16x128xf32>
    %48 = arith.select %45, %46, %47 : vector<8x16x128xi1>, vector<8x16x128xf32>
    %cst_27 = arith.constant dense<0xFF800000> : vector<8x128xf32>
    %49 = vector.multi_reduction <maximumf>, %48, %cst_27 [1] : vector<8x16x128xf32> to vector<8x128xf32>
    %c0_28 = arith.constant 0 : index
    %c896 = arith.constant 896 : index
    %50 = vector.load %arg2[%c0_28, %c896] : memref<768x1536xbf16, #tpu.memory_space<vmem>>, vector<768x128xbf16>
    %cst_29 = arith.constant dense<0.000000e+00> : vector<128x128xf32>
    %51 = tpu.matmul %2, %50, %cst_29 {dimension_numbers = #tpu.dot_dimension_numbers<[1], [0], [0], [1], [0, 0, 1, 1], [], []>} : vector<128x768xbf16>, vector<768x128xbf16>, vector<128x128xf32> -> vector<128x128xf32>
    %c0_30 = arith.constant 0 : index
    %c1024 = arith.constant 1024 : index
    %52 = vector.load %arg2[%c0_30, %c1024] : memref<768x1536xbf16, #tpu.memory_space<vmem>>, vector<768x128xbf16>
    %cst_31 = arith.constant dense<0.000000e+00> : vector<128x128xf32>
    %53 = tpu.matmul %2, %52, %cst_31 {dimension_numbers = #tpu.dot_dimension_numbers<[1], [0], [0], [1], [0, 0, 1, 1], [], []>} : vector<128x768xbf16>, vector<768x128xbf16>, vector<128x128xf32> -> vector<128x128xf32>
    %c127_i32_32 = arith.constant 127 : i32
    %54 = tpu.dynamic_rotate %53 by %c127_i32_32 dim 0 : vector<128x128xf32>, i32 -> vector<128x128xf32>
    %55 = arith.addf %51, %54 : vector<128x128xf32>
    %c0_33 = arith.constant 0 : index
    %c1152 = arith.constant 1152 : index
    %56 = vector.load %arg2[%c0_33, %c1152] : memref<768x1536xbf16, #tpu.memory_space<vmem>>, vector<768x128xbf16>
    %cst_34 = arith.constant dense<0.000000e+00> : vector<128x128xf32>
    %57 = tpu.matmul %2, %56, %cst_34 {dimension_numbers = #tpu.dot_dimension_numbers<[1], [0], [0], [1], [0, 0, 1, 1], [], []>} : vector<128x768xbf16>, vector<768x128xbf16>, vector<128x128xf32> -> vector<128x128xf32>
    %c126_i32_35 = arith.constant 126 : i32
    %58 = tpu.dynamic_rotate %57 by %c126_i32_35 dim 0 : vector<128x128xf32>, i32 -> vector<128x128xf32>
    %59 = arith.addf %55, %58 : vector<128x128xf32>
    %c0_36 = arith.constant 0 : index
    %c1280 = arith.constant 1280 : index
    %60 = vector.load %arg2[%c0_36, %c1280] : memref<768x1536xbf16, #tpu.memory_space<vmem>>, vector<768x128xbf16>
    %cst_37 = arith.constant dense<0.000000e+00> : vector<128x128xf32>
    %61 = tpu.matmul %2, %60, %cst_37 {dimension_numbers = #tpu.dot_dimension_numbers<[1], [0], [0], [1], [0, 0, 1, 1], [], []>} : vector<128x768xbf16>, vector<768x128xbf16>, vector<128x128xf32> -> vector<128x128xf32>
    %c125_i32_38 = arith.constant 125 : i32
    %62 = tpu.dynamic_rotate %61 by %c125_i32_38 dim 0 : vector<128x128xf32>, i32 -> vector<128x128xf32>
    %63 = arith.addf %59, %62 : vector<128x128xf32>
    %c0_39 = arith.constant 0 : index
    %c1408 = arith.constant 1408 : index
    %64 = vector.load %arg2[%c0_39, %c1408] : memref<768x1536xbf16, #tpu.memory_space<vmem>>, vector<768x128xbf16>
    %cst_40 = arith.constant dense<0.000000e+00> : vector<128x128xf32>
    %65 = tpu.matmul %2, %64, %cst_40 {dimension_numbers = #tpu.dot_dimension_numbers<[1], [0], [0], [1], [0, 0, 1, 1], [], []>} : vector<128x768xbf16>, vector<768x128xbf16>, vector<128x128xf32> -> vector<128x128xf32>
    %c124_i32 = arith.constant 124 : i32
    %66 = tpu.dynamic_rotate %65 by %c124_i32 dim 0 : vector<128x128xf32>, i32 -> vector<128x128xf32>
    %67 = arith.addf %63, %66 : vector<128x128xf32>
    %c0_41 = arith.constant 0 : index
    %c256_42 = arith.constant 256 : index
    %68 = vector.load %arg4[%c0_41, %c256_42] : memref<1x384xf32, #tpu.memory_space<vmem>>, vector<1x128xf32>
    %69 = vector.broadcast %68 : vector<1x128xf32> to vector<128x128xf32>
    %70 = arith.addf %67, %69 : vector<128x128xf32>
    %cst_43 = arith.constant 0.000000e+00 : f32
    %71 = vector.broadcast %cst_43 : f32 to vector<128x128xf32>
    %72 = arith.maximumf %70, %71 : vector<128x128xf32>
    %c11_i32 = arith.constant 11 : i32
    %73 = vector.broadcast %c11_i32 : i32 to vector<8x16x128xi32>
    %74 = arith.cmpi sle, %3, %73 : vector<8x16x128xi32>
    %75 = vector.shape_cast %72 : vector<128x128xf32> to vector<8x16x128xf32>
    %cst_44 = arith.constant 0.000000e+00 : f32
    %76 = vector.broadcast %cst_44 : f32 to vector<8x16x128xf32>
    %77 = arith.select %74, %75, %76 : vector<8x16x128xi1>, vector<8x16x128xf32>
    %cst_45 = arith.constant dense<0xFF800000> : vector<8x128xf32>
    %78 = vector.multi_reduction <maximumf>, %77, %cst_45 [1] : vector<8x16x128xf32> to vector<8x128xf32>
    %79 = tpu.concatenate %24, %49, %78 in 1 : vector<8x128xf32>, vector<8x128xf32>, vector<8x128xf32> -> vector<8x384xf32>
    %80 = arith.truncf %79 : vector<8x384xf32> to vector<8x384xbf16>
    %c0_46 = arith.constant 0 : index
    %c0_47 = arith.constant 0 : index
    %81 = vector.load %arg5[%c0_46, %c0_47] : memref<384x128xbf16, #tpu.memory_space<vmem>>, vector<384x128xbf16>
    %cst_48 = arith.constant dense<0.000000e+00> : vector<8x128xf32>
    %82 = tpu.matmul %80, %81, %cst_48 {dimension_numbers = #tpu.dot_dimension_numbers<[1], [0], [0], [1], [0, 0, 1, 1], [], []>} : vector<8x384xbf16>, vector<384x128xbf16>, vector<8x128xf32> -> vector<8x128xf32>
    %c0_49 = arith.constant 0 : index
    %c0_50 = arith.constant 0 : index
    %83 = vector.load %arg6[%c0_49, %c0_50] : memref<1x128xf32, #tpu.memory_space<vmem>>, vector<1x128xf32>
    %84 = vector.broadcast %83 : vector<1x128xf32> to vector<8x128xf32>
    %85 = arith.addf %82, %84 : vector<8x128xf32>
    %cst_51 = arith.constant 0.000000e+00 : f32
    %86 = vector.broadcast %cst_51 : f32 to vector<8x128xf32>
    %87 = arith.maximumf %85, %86 : vector<8x128xf32>
    %88 = arith.truncf %87 : vector<8x128xf32> to vector<8x128xbf16>
    %c0_52 = arith.constant 0 : index
    %c0_53 = arith.constant 0 : index
    %89 = vector.load %arg7[%c0_52, %c0_53] : memref<128x128xbf16, #tpu.memory_space<vmem>>, vector<128x128xbf16>
    %cst_54 = arith.constant dense<0.000000e+00> : vector<8x128xf32>
    %90 = tpu.matmul %88, %89, %cst_54 {dimension_numbers = #tpu.dot_dimension_numbers<[1], [0], [0], [1], [0, 0, 1, 1], [], []>} : vector<8x128xbf16>, vector<128x128xbf16>, vector<8x128xf32> -> vector<8x128xf32>
    %c0_55 = arith.constant 0 : index
    %c0_56 = arith.constant 0 : index
    %91 = vector.load %arg8[%c0_55, %c0_56] : memref<1x128xf32, #tpu.memory_space<vmem>>, vector<1x128xf32>
    %92 = vector.broadcast %91 : vector<1x128xf32> to vector<8x128xf32>
    %93 = arith.addf %90, %92 : vector<8x128xf32>
    %c0_57 = arith.constant 0 : index
    %c0_58 = arith.constant 0 : index
    %94 = vector.load %arg9[%c0_57, %c0_58] : memref<8x128xf32, #tpu.memory_space<vmem>>, vector<8x128xf32>
    tpu.vector_store %arg9[%c0_57, %c0_58], %93 {strides = array<i32>} : memref<8x128xf32, #tpu.memory_space<vmem>>, vector<8x128xf32>,
    return
  }
  func.func @transform_0(%arg0: i32) -> (i32, i32, i32) {
    %c0_i32 = arith.constant 0 : i32
    %c0_i32_0 = arith.constant 0 : i32
    %c0_i32_1 = arith.constant 0 : i32
    return %arg0, %c0_i32, %c0_i32_0 : i32, i32, i32
  }
  func.func @transform_1(%arg0: i32) -> (i32, i32) {
    %c0_i32 = arith.constant 0 : i32
    %c0_i32_0 = arith.constant 0 : i32
    %c0_i32_1 = arith.constant 0 : i32
    return %c0_i32, %c0_i32_0 : i32, i32
  }
  func.func @transform_2(%arg0: i32) -> (i32, i32) {
    %c0_i32 = arith.constant 0 : i32
    %c0_i32_0 = arith.constant 0 : i32
    %c0_i32_1 = arith.constant 0 : i32
    return %c0_i32, %c0_i32_0 : i32, i32
  }
  func.func @transform_3(%arg0: i32) -> (i32, i32) {
    %c0_i32 = arith.constant 0 : i32
    %c0_i32_0 = arith.constant 0 : i32
    %c0_i32_1 = arith.constant 0 : i32
    return %c0_i32, %c0_i32_0 : i32, i32
  }
  func.func @transform_4(%arg0: i32) -> (i32, i32) {
    %c0_i32 = arith.constant 0 : i32
    %c0_i32_0 = arith.constant 0 : i32
    %c0_i32_1 = arith.constant 0 : i32
    return %c0_i32, %c0_i32_0 : i32, i32
  }
  func.func @transform_5(%arg0: i32) -> (i32, i32) {
    %c0_i32 = arith.constant 0 : i32
    %c0_i32_0 = arith.constant 0 : i32
    %c0_i32_1 = arith.constant 0 : i32
    return %c0_i32, %c0_i32_0 : i32, i32
  }
  func.func @transform_6(%arg0: i32) -> (i32, i32) {
    %c0_i32 = arith.constant 0 : i32
    %c0_i32_0 = arith.constant 0 : i32
    %c0_i32_1 = arith.constant 0 : i32
    return %c0_i32, %c0_i32_0 : i32, i32
  }
  func.func @transform_7(%arg0: i32) -> (i32, i32) {
    %c0_i32 = arith.constant 0 : i32
    %c0_i32_0 = arith.constant 0 : i32
    %c0_i32_1 = arith.constant 0 : i32
    return %c0_i32, %c0_i32_0 : i32, i32
  }
  func.func @transform_8(%arg0: i32) -> (i32, i32) {
    %c0_i32 = arith.constant 0 : i32
    %c0_i32_0 = arith.constant 0 : i32
    return %arg0, %c0_i32 : i32, i32
  }
}

</mosaic_0001>

<bundles_post_ra>
// kernel: tpu_custom_call.1
= control target key start
LH: loop header
LB: loop body
LE: loop exit
PB: predicated region body
PF: predicated region fallthrough
CT: control target
= control target key end

     0   :  { %s16739_s0 = inlined_call_operand.hbm [shape: f32[16,16,768], index: 0, kind: input, shape index: {}]   ;;  %s16740_s1 = inlined_call_operand.hbm [shape: bf16[768,1536], index: 1, kind: input, shape index: {}]   ;;  %s16741_s2 = inlined_call_operand.hbm [shape: f32[1,1536], index: 2, kind: input, shape index: {}]   ;;  %s16742_s3 = inlined_call_operand.hbm [shape: f32[1,384], index: 3, kind: input, shape index: {}]   ;;  %s16743_s4 = inlined_call_operand.hbm [shape: bf16[384,128], index: 4, kind: input, shape index: {}]   ;;  %s16744_s5 = inlined_call_operand.hbm [shape: f32[1,128], index: 5, kind: input, shape index: {}]   ;;  %s16745_s6 = inlined_call_operand.hbm [shape: bf16[128,128], index: 6, kind: input, shape index: {}]   ;;  %s16746_s7 = inlined_call_operand.hbm [shape: f32[1,128], index: 7, kind: input, shape index: {}]   ;;  %s16747_s8 = inlined_call_operand.hbm [shape: f32[16,128], index: 8, kind: output, shape index: {}]  }
   0x1   :  { %16955 = sst [smem:[#allocation79_spill]] %s16740_s1 }
   0x2   :  { %16956 = sst [smem:[#allocation80_spill]] %s16741_s2 }
   0x3   :  { %13 = vsyncpa [#allocation3], 0 }
   0x4   :  { %15 = vsyncpa [#allocation3 + $0x1], 0 }
   0x5   :  { %16 = vsyncpa [#allocation6], 0 }
   0x6   :  { %17 = vsyncpa [#allocation9], 0 }
   0x7   :  { %18 = vsyncpa [#allocation12], 0 }
   0x8   :  { %19 = vsyncpa [#allocation15], 0 }
   0x9   :  { %20 = vsyncpa [#allocation4], 0 }
   0xa   :  { %22 = vsyncpa [#allocation4 + $0x1], 0  ;;  %s14124_s27 = smov 0   ;;  %s14126_s28 = smov 0  }
   0xb   :  { %s14128_s29 = smov 0   ;;  %s14130_s30 = smov 0  }
   0xc LB: > { %s14064_s9 = smov [#allocation5]   ;;  %s14145_s11 = sadd.s32 4294967295, %s14062_s30   ;;  %s14062_s30 = sphi %s14130_s30, %s17282_s30   ;;  %s14058_s29 = sphi %s14128_s29, %s17281_s29   ;;  %s14054_s28 = sphi %s14126_s28, %s17280_s28   ;;  %s14050_s27 = sphi %s14124_s27, %s17279_s27  }
   0xd   : > { %s244_s10 = sshll.u32 %s14064_s9, 4  ;;  %p9998_p0 = scmp.ge.s32.totalorder %s14062_s30, 1  ;;  %s14150_s10 = int_to_ptr.vmem [resolvable:$true] %s244_s10 }
   0xe   : > { %p16749_p1 = scmp.eq.s32.totalorder %s14145_s11, 0  ;;  %p232_p2 = scmp.lt.s32.totalorder %s14062_s30, 3 }
   0xf   : > { %s14065_s13 = smov [#allocation8]   ;;  %s14066_s16 = smov [#allocation11]  }
  0x10   : > { %p14152_p3 = pnand %p9998_p0, %p232_p2  ;;  %s269_s14 = sshll.u32 %s14065_s13, 4  ;;  %s14165_s14 = int_to_ptr.vmem [resolvable:$true] %s269_s14 }
  0x11   : > { %s293_s17 = sshll.u32 %s14066_s16, 4  ;;  %s16959_s1 = sld [smem:[#allocation79_spill]]  ;;  %s14167_s17 = int_to_ptr.vmem [resolvable:$true] %s293_s17 }
  0x12   : > { %s16957_s12 = scalar_select %p14152_p3, 1, 0 }
  0x13   : > { %p13055_p5 = pneg %p14152_p3 }
  0x15   : > { %p14161_p6 = pnand %p13055_p5, %p16749_p1 }
  0x17   : > { %s13754_s20 = scalar_lea.hbm %s16959_s1, 73728  ;;  %p14177_p8 = pneg %p14161_p6 }
  0x18   : > { %p13755_p7 = scmp.ne.s32.totalorder %s16959_s1, %s13754_s20  ;;  %p13761_p11 = scmp.lt.u32.totalorder %s13754_s20, %s16959_s1 }
  0x1a   : > { %p13757_p9 = pnand %p14177_p8, %p13755_p7 }
  0x1c   : > { %p13758_p10 = pneg %p13757_p9 }
  0x1e   : > { %p13763_p12 = pnand %p13761_p11, %p13758_p10 }
  0x20   : > { %13766 = shalt.err (!%p13763_p12)
}
  0x21   : > { %s13767_s26 = scalar_lea.vmem %s14150_s10, 73728  ;;  %p13775_p5 = scmp.lt.s32.totalorder %s14150_s10, %s14150_s10 }
  0x22   : > { %p13768_p13 = scmp.ne.s32.totalorder %s14150_s10, %s13767_s26  ;;  %p13776_p4 = scmp.lt.s32.totalorder %s13767_s26, %s13767_s26 }
  0x24   : > { %p13770_p0 = pnand %p13768_p13, %p14177_p8  ;;  %p13777_p7 = por %p13776_p4, %p13775_p5 }
  0x26   : > { %p13771_p2 = pneg %p13770_p0 }
  0x28   : > { %p13778_p9 = pnand %p13777_p7, %p13771_p2 }
  0x2a   : > { %13781 = shalt.err (!%p13778_p9)
}
  0x2b   : > { %s16748_s9 = smov 768   ;;  %s16751_s13 = smov 48  }
  0x2c   : > { %13058 = dma.hbm_to_vmem [thread:$0]  (!%p14161_p6), %s16959_s1, 73728, %s14150_s10, [#allocation6], %s16748_s9, %s16748_s9, %s16751_s13  }
  0x2d   : > { %s13782_s21 = scalar_lea.hbm %s16742_s3, 48 }
  0x2e   : > { %p13783_p4 = scmp.ne.s32.totalorder %s16742_s3, %s13782_s21  ;;  %p13789_p12 = scmp.lt.u32.totalorder %s13782_s21, %s16742_s3 }
  0x30   : > { %p13785_p10 = pnand %p13783_p4, %p14177_p8 }
  0x32   : > { %p13786_p11 = pneg %p13785_p10 }
  0x34   : > { %p13791_p13 = pnand %p13789_p12, %p13786_p11 }
  0x36   : > { %13794 = shalt.err (!%p13791_p13)
}
  0x37   : > { %s13795_s10 = scalar_lea.vmem %s14165_s14, 48  ;;  %s13802_s16 = scalar_lea.vmem %s14165_s14, 64 }
  0x38   : > { %p13796_p0 = scmp.ne.s32.totalorder %s14165_s14, %s13795_s10  ;;  %p13803_p7 = scmp.lt.s32.totalorder %s14165_s14, %s14165_s14 }
  0x39   : > { %p13804_p9 = scmp.lt.s32.totalorder %s13802_s16, %s13795_s10 }
  0x3a   : > { %p13798_p2 = pnand %p13796_p0, %p14177_p8 }
  0x3b   : > { %p13805_p4 = por %p13804_p9, %p13803_p7 }
  0x3c   : > { %p13799_p5 = pneg %p13798_p2 }
  0x3e   : > { %p13806_p10 = pnand %p13805_p4, %p13799_p5 }
  0x40   : > { %13809 = shalt.err (!%p13806_p10)
}
  0x41   : > { %13064 = dma.hbm_to_vmem [thread:$0]  (!%p14161_p6), %s16742_s3, 48, %s14165_s14, [#allocation9]  }
  0x42   : > { %s13810_s22 = scalar_lea.hbm %s16744_s5, 16 }
  0x43   : > { %p13811_p11 = scmp.ne.s32.totalorder %s16744_s5, %s13810_s22  ;;  %p13817_p0 = scmp.lt.u32.totalorder %s13810_s22, %s16744_s5 }
  0x45   : > { %p13813_p12 = pnand %p13811_p11, %p14177_p8 }
  0x47   : > { %p13814_p13 = pneg %p13813_p12 }
  0x49   : > { %p13819_p2 = pnand %p13817_p0, %p13814_p13 }
  0x4b   : > { %13822 = shalt.err (!%p13819_p2)
}
  0x4c   : > { %s13823_s14 = scalar_lea.vmem %s14167_s17, 16  ;;  %s13830_s16 = scalar_lea.vmem %s14167_s17, 32 }
  0x4d   : > { %p13824_p5 = scmp.ne.s32.totalorder %s14167_s17, %s13823_s14  ;;  %p13831_p4 = scmp.lt.s32.totalorder %s14167_s17, %s14167_s17 }
  0x4e   : > { %p13832_p10 = scmp.lt.s32.totalorder %s13830_s16, %s13823_s14 }
  0x4f   : > { %p13826_p7 = pnand %p13824_p5, %p14177_p8 }
  0x50   : > { %p13833_p11 = por %p13832_p10, %p13831_p4 }
  0x51   : > { %p13827_p9 = pneg %p13826_p7 }
  0x53   : > { %p13834_p12 = pnand %p13833_p11, %p13827_p9 }
  0x55   : > { %13837 = shalt.err (!%p13834_p12)
}
  0x56   : > { %13070 = dma.hbm_to_vmem [thread:$0]  (!%p14161_p6), %s16744_s5, 16, %s14167_s17, [#allocation12]  }
  0x57   : > { %s14069_s20 = smov [#allocation7]   ;;  %s14070_s22 = smov [#allocation10]  }
  0x58   : > { %s258_s21 = sshll.u32 %s14069_s20, 4  ;;  %s279_s24 = sshll.u32 %s14070_s22, 4  ;;  %s259_s21 = int_to_ptr.vmem [resolvable:$true] %s258_s21  ;;  %s280_s24 = int_to_ptr.vmem [resolvable:$true] %s279_s24 }
  0x59   : > { %s16961_s2 = sld [smem:[#allocation80_spill]] }
  0x5f   : > { %s13838_s10 = scalar_lea.hbm %s16961_s2, 192 }
  0x60   : > { %p13839_p13 = scmp.ne.s32.totalorder %s16961_s2, %s13838_s10  ;;  %p13845_p5 = scmp.lt.u32.totalorder %s13838_s10, %s16961_s2 }
  0x62   : > { %p13841_p0 = pnand %p13839_p13, %p14177_p8 }
  0x64   : > { %p13842_p2 = pneg %p13841_p0 }
  0x66   : > { %p13847_p7 = pnand %p13845_p5, %p13842_p2 }
  0x68   : > { %13850 = shalt.err (!%p13847_p7)
}
  0x69   : > { %s13851_s17 = scalar_lea.vmem %s259_s21, 192  ;;  %p13859_p11 = scmp.lt.s32.totalorder %s259_s21, %s259_s21 }
  0x6a   : > { %p13852_p9 = scmp.ne.s32.totalorder %s259_s21, %s13851_s17  ;;  %p13860_p12 = scmp.lt.s32.totalorder %s13851_s17, %s13851_s17 }
  0x6c   : > { %p13854_p4 = pnand %p13852_p9, %p14177_p8  ;;  %p13861_p1 = por %p13860_p12, %p13859_p11 }
  0x6e   : > { %p13855_p10 = pneg %p13854_p4 }
  0x70   : > { %p13862_p3 = pnand %p13861_p1, %p13855_p10 }
  0x72   : > { %13865 = shalt.err (!%p13862_p3)
}
  0x73   : > { %13061 = dma.hbm_to_vmem [thread:$0]  (!%p14161_p6), %s16961_s2, 192, %s259_s21, [#allocation6]  }
  0x74   : > { %s13866_s25 = scalar_lea.hbm %s16743_s4, 3072 }
  0x75   : > { %p13867_p13 = scmp.ne.s32.totalorder %s16743_s4, %s13866_s25  ;;  %p13873_p3 = scmp.lt.u32.totalorder %s13866_s25, %s16743_s4 }
  0x77   : > { %p13869_p0 = pnand %p13867_p13, %p14177_p8 }
  0x79   : > { %p13870_p1 = pneg %p13869_p0 }
  0x7b   : > { %p13875_p2 = pnand %p13873_p3, %p13870_p1 }
  0x7d   : > { %13878 = shalt.err (!%p13875_p2)
}
  0x7e   : > { %s13879_s18 = scalar_lea.vmem %s280_s24, 3072  ;;  %p13887_p4 = scmp.lt.s32.totalorder %s280_s24, %s280_s24 }
  0x7f   : > { %p13880_p5 = scmp.ne.s32.totalorder %s280_s24, %s13879_s18  ;;  %p13888_p10 = scmp.lt.s32.totalorder %s13879_s18, %s13879_s18 }
  0x81   : > { %p13882_p7 = pnand %p13880_p5, %p14177_p8  ;;  %p13889_p11 = por %p13888_p10, %p13887_p4 }
  0x83   : > { %p13883_p9 = pneg %p13882_p7 }
  0x85   : > { %p13890_p12 = pnand %p13889_p11, %p13883_p9 }
  0x87   : > { %13893 = shalt.err (!%p13890_p12)
}
  0x88   : > { %s14071_s21 = smov 64   ;;  %s14072_s17 = smov 4  }
  0x89   : > { %13067 = dma.hbm_to_vmem [thread:$0]  (!%p14161_p6), %s16743_s4, 3072, %s280_s24, [#allocation9], %s14071_s21, %s14071_s21, %s14072_s17  }
  0x8a   : > { %s14073_s9 = smov [#allocation13]   ;;  %s14074_s25 = smov [#allocation14]  }
  0x8b   : > { %s303_s22 = sshll.u32 %s14073_s9, 4  ;;  %s317_s26 = sshll.u32 %s14074_s25, 4  ;;  %s304_s22 = int_to_ptr.vmem [resolvable:$true] %s303_s22  ;;  %s318_s26 = int_to_ptr.vmem [resolvable:$true] %s317_s26 }
  0x8c   : > { %s13894_s16 = scalar_lea.hbm %s16745_s6, 1024 }
  0x8d   : > { %p13895_p13 = scmp.ne.s32.totalorder %s16745_s6, %s13894_s16  ;;  %p13901_p3 = scmp.lt.u32.totalorder %s13894_s16, %s16745_s6 }
  0x8f   : > { %p13897_p0 = pnand %p13895_p13, %p14177_p8 }
  0x91   : > { %p13898_p1 = pneg %p13897_p0 }
  0x93   : > { %p13903_p2 = pnand %p13901_p3, %p13898_p1 }
  0x95   : > { %13906 = shalt.err (!%p13903_p2)
}
  0x96   : > { %s13907_s24 = scalar_lea.vmem %s304_s22, 1024  ;;  %p13915_p4 = scmp.lt.s32.totalorder %s304_s22, %s304_s22 }
  0x97   : > { %p13908_p5 = scmp.ne.s32.totalorder %s304_s22, %s13907_s24  ;;  %p13916_p10 = scmp.lt.s32.totalorder %s13907_s24, %s13907_s24 }
  0x99   : > { %p13910_p7 = pnand %p13908_p5, %p14177_p8  ;;  %p13917_p11 = por %p13916_p10, %p13915_p4 }
  0x9b   : > { %p13911_p9 = pneg %p13910_p7 }
  0x9d   : > { %p13918_p12 = pnand %p13917_p11, %p13911_p9 }
  0x9f   : > { %13921 = shalt.err (!%p13918_p12)
}
  0xa0   : > { %13073 = dma.hbm_to_vmem [thread:$0]  (!%p14161_p6), %s16745_s6, 1024, %s304_s22, [#allocation12], %s14071_s21, %s14071_s21, %s14072_s17  }
  0xa1   : > { %s13922_s20 = scalar_lea.hbm %s16746_s7, 16 }
  0xa2   : > { %p13923_p13 = scmp.ne.s32.totalorder %s16746_s7, %s13922_s20  ;;  %p13929_p3 = scmp.lt.u32.totalorder %s13922_s20, %s16746_s7 }
  0xa4   : > { %p13925_p0 = pnand %p13923_p13, %p14177_p8 }
  0xa6   : > { %p13926_p1 = pneg %p13925_p0 }
  0xa8   : > { %p13931_p2 = pnand %p13929_p3, %p13926_p1 }
  0xaa   : > { %13934 = shalt.err (!%p13931_p2)
}
  0xab   : > { %s13935_s16 = scalar_lea.vmem %s318_s26, 16  ;;  %s13942_s21 = scalar_lea.vmem %s318_s26, 32 }
  0xac   : > { %p13936_p5 = scmp.ne.s32.totalorder %s318_s26, %s13935_s16  ;;  %p13943_p4 = scmp.lt.s32.totalorder %s318_s26, %s318_s26 }
  0xad   : > { %p13944_p10 = scmp.lt.s32.totalorder %s13942_s21, %s13935_s16 }
  0xae   : > { %p13938_p7 = pnand %p13936_p5, %p14177_p8 }
  0xaf   : > { %p13945_p11 = por %p13944_p10, %p13943_p4 }
  0xb0   : > { %p13939_p9 = pneg %p13938_p7 }
  0xb2   : > { %p13946_p12 = pnand %p13945_p11, %p13939_p9 }
  0xb4   : > { %13949 = shalt.err (!%p13946_p12)
}
  0xb5   : > { %13076 = dma.hbm_to_vmem [thread:$0]  (!%p14161_p6), %s16746_s7, 16, %s318_s26, [#allocation15]  }
  0xb6   : > { %s9997_s23 = sadd.s32 4294967294, %s14062_s30   ;;  %s14323_s15 = sadd.s32 1, %s14062_s30  }
  0xb7   : > { %s35_s18 = sadd.s32 1, %s14058_s29  ;;  %s32_s24 = ssub.s32 %s14062_s30, %s14323_s15 }
  0xb8   : > { %p42_p8 = scmp.ne.s32.totalorder %s14058_s29, %s14054_s28  ;;  %p33_p13 = scmp.eq.s32.totalorder %s32_s24, 0 }
  0xb9   : > { %p43_p0 = scmp.eq.s32.totalorder %s14062_s30, 0  ;;  %p48_p1 = scmp.ne.s32.totalorder %s14054_s28, %s14050_s27 }
  0xba   : > { %p219_p3 = scmp.eq.s32.totalorder %s14145_s11, 1  ;;  %p16962_p5 = scmp.eq.s32.totalorder %s14145_s11, 0 }
  0xbb   : > { %s14335_s13 = scalar_select %p33_p13, %s14058_s29, %s35_s18  }
  0xbc   : > { %p44_p2 = por %p43_p0, %p42_p8  ;;  %p14339_p7 = por %p16962_p5, %p48_p1 }
  0xbd   : > { %p14343_p6 = por %p219_p3, %p42_p8  ;;  %p225_p9 = scmp.eq.s32.totalorder %s9997_s23, 1 }
  0xbe   : > { %p13092_p4 = scmp.lt.s32.totalorder %s14062_s30, 2  ;;  %s328_s1 = sand.u32 1, %s14058_s29  }
  0xbf   : > { %s16964_s26 = scalar_select %p14343_p6, 1, 0 }
  0xc0   : > { %p14349_p10 = por %p225_p9, %p48_p1  ;;  %s13020_s20 = smul.u32 768, %s328_s1 }
  0xc1   : > { %p14353_p11 = pnand %p13092_p4, %p44_p2  ;;  %s13021_s25 = smul.u32 12288, %s14062_s30 }
  0xc2   : > { %s16965_s2 = scalar_select %p14349_p10, 1, 0 }
  0xc3   : > { %s14361_s16 = scalar_lea.hbm %s16739_s0, %s13021_s25  ;;  %s332_s21 = scalar_lea.vmem [#allocation2], %s13020_s20 }
  0xc4   : > { %s340_s17 = sshll.u32 %s332_s21, 4  ;;  %s14365_s22 = scalar_lea.sflag [#allocation3], %s328_s1  ;;  %s14363_s17 = int_to_ptr.vmem [resolvable:$true] %s340_s17 }
  0xc5   : > { %s13950_s23 = scalar_lea.hbm %s14361_s16, 12288  ;;  %p13952_p8 = pneg %p14353_p11 }
  0xc6   : > { %p13951_p12 = scmp.ne.s32.totalorder %s14361_s16, %s13950_s23  ;;  %s13955_s25 = scalar_lea.hbm %s16739_s0, 24576 }
  0xc7   : > { %p13956_p1 = scmp.lt.u32.totalorder %s14361_s16, %s16739_s0  ;;  %p13957_p3 = scmp.lt.u32.totalorder %s13955_s25, %s13950_s23 }
  0xc8   : > { %p13953_p13 = pnand %p13952_p8, %p13951_p12  ;;  %p13959_p5 = scmp.lt.u32.totalorder %s13950_s23, %s14361_s16 }
  0xc9   : > { %p13958_p2 = por %p13957_p3, %p13956_p1 }
  0xca   : > { %p13954_p0 = pneg %p13953_p13 }
  0xcb   : > { %p13960_p9 = por %p13959_p5, %p13958_p2 }
  0xcd   : > { %p13961_p4 = pnand %p13960_p9, %p13954_p0 }
  0xcf   : > { %13964 = shalt.err (!%p13961_p4)
}
  0xd0   : > { %s13965_s1 = scalar_lea.vmem %s14363_s17, 12288  ;;  %s14075_s20 = smov [#allocation2]  }
  0xd1   : > { %p13966_p12 = scmp.ne.s32.totalorder %s14363_s17, %s13965_s1  ;;  %s13970_s21 = sshll.u32 %s14075_s20, 4  ;;  %s13971_s21 = int_to_ptr.vmem [resolvable:$false] %s13970_s21 }
  0xd2   : > { %s13972_s18 = scalar_lea.vmem %s13971_s21, 24576  ;;  %p13973_p6 = scmp.lt.s32.totalorder %s14363_s17, %s13971_s21 }
  0xd3   : > { %p13968_p13 = pnand %p13966_p12, %p13952_p8  ;;  %p13974_p1 = scmp.lt.s32.totalorder %s13972_s18, %s13965_s1 }
  0xd5   : > { %p13969_p10 = pneg %p13968_p13  ;;  %p13975_p3 = por %p13974_p1, %p13973_p6 }
  0xd7   : > { %p13976_p2 = pnand %p13975_p3, %p13969_p10 }
  0xd9   : > { %13979 = shalt.err (!%p13976_p2)
}
  0xda   : > { %s16967_s23 = smov 48   ;;  %s16968_s24 = smov 768  }
  0xdb   : > { %13080 = dma.hbm_to_vmem [thread:$0]  (!%p14353_p11), %s14361_s16, 12288, %s14363_s17, %s14365_s22, %s16968_s24, %s16968_s24, %s16967_s23  }
  0xdc   : > { %p16969_p8 = scmp.ne.s32.totalorder %s16957_s12, 0 }
  0xde   : > { %352 = sbr.rel (%p16969_p8) target bundleno = 2121 (0x849), region = 52 }
  0xe5   : > { %s14399_s25 = sand.u32 1, %s14054_s28  }
  0xe6   : > { %s13022_s10 = smul.u32 768, %s14399_s25  ;;  %s355_s14 = scalar_lea.sflag [#allocation3], %s14399_s25 }
  0xe8   : > { %s14403_s1 = scalar_lea.vmem [#allocation2], %s13022_s10 }
  0xe9   : > { %14025 = dma.done.wait (%p14339_p7), %s355_s14, 12288  }
  0xea   : > { %14027 = vsyncadd (%p14339_p7), %s355_s14, 4294955008  ;;  %p16970_p6 = scmp.eq.s32.totalorder %s14145_s11, 0 }
  0xec   : > { %14029 = dma.done.wait (%p16970_p6), [#allocation6], 73920   ;;  %p16971_p10 = pmov %p16970_p6 }
  0xed   : > { %p16972_p11 = pmov %p16970_p6 }
  0xee   : > { %14031 = vsyncadd (%p16971_p10), [#allocation6], 4294893376 }
  0xef   : > { %14033 = dma.done.wait (%p16972_p11), [#allocation9], 3120   ;;  %p16973_p0 = pmov %p16970_p6 }
  0xf1   : > { %14035 = vsyncadd (%p16973_p0), [#allocation9], 4294964176  ;;  %p16974_p5 = pmov %p16973_p0 }
  0xf2   : > { %p16975_p9 = pmov %p16973_p0 }
  0xf3   : > { %14037 = dma.done.wait (%p16974_p5), [#allocation12], 1040  }
  0xf4   : > { %14039 = vsyncadd (%p16975_p9), [#allocation12], 4294966256  ;;  %p16976_p7 = pmov %p16973_p0 }
  0xf5   : > { %p16977_p4 = pmov %p16973_p0 }
  0xf6   : > { %14041 = dma.done.wait (%p16976_p7), [#allocation15], 16  }
  0xf7   : > { %14043 = vsyncadd (%p16977_p4), [#allocation15], 4294967280  ;;  %v13146_v0 = vld [vmem:[#allocation5 + $0x304] ss:$48 sps:$4 sm:$0xff]   ;;  %v422_v32 = vld [vmem:[%s14403_s1 + $0x8] sm:$0xff]  ;;  %vm9403_vm3 = vcmask 1041409  }
  0xf8   : > { %v13147_v1 = vld [vmem:[#allocation5 + $0x904] ss:$48 sps:$4 sm:$0xff]   ;;  %10636 = vmatprep.subr.bf16.mxu0 %v13146_v0  ;;  %v428_v33 = vld [vmem:[%s14403_s1 + $0x38] sm:$0xff]  ;;  %v430_v36 = vld [vmem:[%s14403_s1 + $0x48] sm:$0xff]  ;;  %vm9405_vm4 = vcmask 1042434   ;;  %vm9407_vm5 = vcmask 1043459  }
  0xf9   : > { %v13148_v2 = vld [vmem:[#allocation5 + $0x4] ss:$48 sps:$4 sm:$0xff]   ;;  %10700 = vmatprep.subr.bf16.mxu1 %v13147_v1  ;;  %v424_v34 = vld [vmem:[%s14403_s1 + $0x18] sm:$0xff]  ;;  %v14428_v35 = vpack.c.bf16 %v428_v33, %v422_v32  ;;  %v13180_v46 = vld [vmem:[#allocation5 + $0x300] ss:$48 sps:$4 sm:$0xff]   ;;  %vm9409_vm6 = vcmask 1044484  }
  0xfa   : > { %v13149_v3 = vld [vmem:[#allocation5 + $0x604] ss:$48 sps:$4 sm:$0xff]   ;;  %10637 = vmatpush3.bf16.msra.mxu0 %v13148_v2  ;;  %v14433_v39 = vpack.c.bf16 %v430_v36, %v424_v34  ;;  %v13181_v47 = vld [vmem:[#allocation5] ss:$48 sps:$4 sm:$0xff]   ;;  %v434_v48 = vld [vmem:[%s14403_s1 + $0x68] sm:$0xff]  ;;  %vm9411_vm7 = vcmask 1045509  }
  0xfb   : > { %v13150_v4 = vld [vmem:[#allocation5 + $0x364] ss:$48 sps:$4 sm:$0xff]   ;;  %10701 = vmatpush3.bf16.msra.mxu1 %v13149_v3  ;;  %16978 = vst [vmem:[#allocation23_spill] sm:$0xff] %v14428_v35  ;;  %1080 = vmatprep.mubr.bf16.mxu0 %v14428_v35  ;;  %v440_v49 = vld [vmem:[%s14403_s1 + $0x98] sm:$0xff]  ;;  %v442_v51 = vld [vmem:[%s14403_s1 + $0xa8] sm:$0xff]  ;;  %vm9413_vm8 = vcmask 1046534  }
  0xfc   : > { %v13151_v5 = vld [vmem:[#allocation5 + $0x964] ss:$48 sps:$4 sm:$0xff]   ;;  %10638 = vmatprep.subr.bf16.mxu0 %v13150_v4  ;;  %16979 = vst [vmem:[#allocation24_spill] sm:$0xff] %v14433_v39  ;;  %1177 = vmatprep.mubr.bf16.mxu1 %v14433_v39  ;;  %v436_v50 = vld [vmem:[%s14403_s1 + $0x78] sm:$0xff]  ;;  %v14449_v52 = vpack.c.bf16 %v440_v49, %v434_v48  ;;  %v13184_v62 = vld [vmem:[#allocation5 + $0x360] ss:$48 sps:$4 sm:$0xff]  }
  0xfd   : > { %v13152_v6 = vld [vmem:[#allocation5 + $0x64] ss:$48 sps:$4 sm:$0xff]   ;;  %10702 = vmatprep.subr.bf16.mxu1 %v13151_v5  ;;  %v14451_v53 = vpack.c.bf16 %v442_v51, %v436_v50  ;;  %v13185_v63 = vld [vmem:[#allocation5 + $0x60] ss:$48 sps:$4 sm:$0xff]   ;;  %v446_v0 = vld [vmem:[%s14403_s1 + $0xc8] sm:$0xff]  ;;  %vm9415_vm9 = vcmask 1047559  }
  0xfe   : > { %v13153_v7 = vld [vmem:[#allocation5 + $0x664] ss:$48 sps:$4 sm:$0xff]   ;;  %10639 = vmatpush3.bf16.msra.mxu0 %v13152_v6  ;;  %16982 = vst [vmem:[#allocation27_spill] sm:$0xff] %v14449_v52  ;;  %v452_v1 = vld [vmem:[%s14403_s1 + $0xf8] sm:$0xff]  ;;  %v454_v4 = vld [vmem:[%s14403_s1 + $0x108] sm:$0xff]  ;;  %vm14077_vm12 = vmmov 0  }
  0xff   : > { %v13154_v8 = vld [vmem:[#allocation5 + $0x3c4] ss:$48 sps:$4 sm:$0xff]   ;;  %10703 = vmatpush3.bf16.msra.mxu1 %v13153_v7  ;;  %16983 = vst [vmem:[#allocation28_spill] sm:$0xff] %v14451_v53  ;;  %v14467_v2 = vpack.c.bf16 %v452_v1, %v446_v0  ;;  %v448_v3 = vld [vmem:[%s14403_s1 + $0xd8] sm:$0xff]  ;;  %v470_v32 = vld [vmem:[%s14403_s1 + $0x188] sm:$0xff]  ;;  %s10018_s12 = sshll.u32 %s14399_s25, 3 }
 0x100   : > { %v13155_v9 = vld [vmem:[#allocation5 + $0x9c4] ss:$48 sps:$4 sm:$0xff]   ;;  %10640 = vmatprep.subr.bf16.mxu0 %v13154_v8  ;;  %v14472_v6 = vpack.c.bf16 %v454_v4, %v448_v3  ;;  %v476_v33 = vld [vmem:[%s14403_s1 + $0x1b8] sm:$0xff]  ;;  %v478_v36 = vld [vmem:[%s14403_s1 + $0x1c8] sm:$0xff]  ;;  %s10633_s19 = sshll.u32 %s14145_s11, 7  ;;  %s418_s9 = scalar_lea.vmem [#allocation16], %s10018_s12 }
 0x101   : > { %v13156_v10 = vld [vmem:[#allocation5 + $0xc4] ss:$48 sps:$4 sm:$0xff]   ;;  %10704 = vmatprep.subr.bf16.mxu1 %v13155_v9  ;;  %16986 = vst [vmem:[#allocation31_spill] sm:$0xff] %v14467_v2  ;;  %v472_v34 = vld [vmem:[%s14403_s1 + $0x198] sm:$0xff]  ;;  %v13196_v49 = vld [vmem:[#allocation5 + $0x480] ss:$48 sps:$4 sm:$0xff]   ;;  %s16695_s20 = scalar_lea.hbm %s16747_s8, %s10633_s19 }
 0x102   : > { %v13157_v11 = vld [vmem:[#allocation5 + $0x6c4] ss:$48 sps:$4 sm:$0xff]   ;;  %10641 = vmatpush3.bf16.msra.mxu0 %v13156_v10  ;;  %16987 = vst [vmem:[#allocation32_spill] sm:$0xff] %v14472_v6  ;;  %v13197_v51 = vld [vmem:[#allocation5 + $0x180] ss:$48 sps:$4 sm:$0xff]   ;;  %s9860_s16 = sshll.u32 %s418_s9, 4  ;;  %s16697_s16 = int_to_ptr.vmem [resolvable:$true] %s9860_s16 }
 0x103   : > { %v13158_v12 = vld [vmem:[#allocation5 + $0x424] ss:$48 sps:$4 sm:$0xff]   ;;  %10705 = vmatpush3.bf16.msra.mxu1 %v13157_v11  ;;  %s9847_s21 = scalar_lea.sflag [#allocation4], %s14399_s25  ;;  %s13980_s11 = scalar_lea.vmem %s16697_s16, 128 }
 0x104   : > { %v13159_v13 = vld [vmem:[#allocation5 + $0xa24] ss:$48 sps:$4 sm:$0xff]   ;;  %10642 = vmatprep.subr.bf16.mxu0 %v13158_v12  ;;  %p13981_p12 = scmp.ne.s32.totalorder %s16697_s16, %s13980_s11  ;;  %p17276_p13 = scmp.ne.s32.totalorder %s16964_s26, 0 }
 0x105   : > { %v13160_v14 = vld [vmem:[#allocation5 + $0x124] ss:$48 sps:$4 sm:$0xff]   ;;  %10706 = vmatprep.subr.bf16.mxu1 %v13159_v13  ;;  %s14078_s18 = smov [#allocation16]  }
 0x106   : > { %v13161_v15 = vld [vmem:[#allocation5 + $0x724] ss:$48 sps:$4 sm:$0xff]   ;;  %10643 = vmatpush3.bf16.msra.mxu0 %v13160_v14  ;;  %v13188_v14 = vld [vmem:[#allocation5 + $0x3c0] ss:$48 sps:$4 sm:$0xff]   ;;  %p13982_p1 = pnand %p13981_p12, %p17276_p13  ;;  %s13984_s23 = sshll.u32 %s14078_s18, 4  ;;  %s13985_s23 = int_to_ptr.vmem [resolvable:$false] %s13984_s23 }
 0x107   : > { %v13162_v16 = vld [vmem:[#allocation5 + $0x484] ss:$48 sps:$4 sm:$0xff]   ;;  %10707 = vmatpush3.bf16.msra.mxu1 %v13161_v15  ;;  %v13189_v15 = vld [vmem:[#allocation5 + $0xc0] ss:$48 sps:$4 sm:$0xff]   ;;  %s13986_s24 = scalar_lea.vmem %s13985_s23, 256  ;;  %p13987_p2 = scmp.lt.s32.totalorder %s16697_s16, %s13985_s23 }
 0x108   : > { %v13163_v17 = vld [vmem:[#allocation5 + $0xa84] ss:$48 sps:$4 sm:$0xff]   ;;  %10644 = vmatprep.subr.bf16.mxu0 %v13162_v16  ;;  %v458_v16 = vld [vmem:[%s14403_s1 + $0x128] sm:$0xff]  ;;  %p13983_p3 = pneg %p13982_p1  ;;  %p13988_p8 = scmp.lt.s32.totalorder %s13986_s24, %s13980_s11 }
 0x109   : > { %v13164_v18 = vld [vmem:[#allocation5 + $0x184] ss:$48 sps:$4 sm:$0xff]   ;;  %10708 = vmatprep.subr.bf16.mxu1 %v13163_v17  ;;  %v464_v17 = vld [vmem:[%s14403_s1 + $0x158] sm:$0xff] }
 0x10a   : > { %v13165_v19 = vld [vmem:[#allocation5 + $0x784] ss:$48 sps:$4 sm:$0xff]   ;;  %10645 = vmatpush3.bf16.msra.mxu0 %v13164_v18  ;;  %v460_v18 = vld [vmem:[%s14403_s1 + $0x138] sm:$0xff]  ;;  %p13989_p6 = por %p13988_p8, %p13987_p2 }
 0x10b   : > { %v13166_v20 = vld [vmem:[#allocation5 + $0x4e4] ss:$48 sps:$4 sm:$0xff]   ;;  %10709 = vmatpush3.bf16.msra.mxu1 %v13165_v19  ;;  %v14488_v19 = vpack.c.bf16 %v464_v17, %v458_v16  ;;  %v502_v16 = vld [vmem:[%s14403_s1 + $0x288] sm:$0xff] }
 0x10c   : > { %v13167_v21 = vld [vmem:[#allocation5 + $0xae4] ss:$48 sps:$4 sm:$0xff]   ;;  %10646 = vmatprep.subr.bf16.mxu0 %v13166_v20  ;;  %v466_v20 = vld [vmem:[%s14403_s1 + $0x168] sm:$0xff]  ;;  %p13990_p10 = pnand %p13989_p6, %p13983_p3 }
 0x10d   : > { %v13168_v22 = vld [vmem:[#allocation5 + $0x1e4] ss:$48 sps:$4 sm:$0xff]   ;;  %10710 = vmatprep.subr.bf16.mxu1 %v13167_v21  ;;  %16990 = vst [vmem:[#allocation35_spill] sm:$0xff] %v14488_v19 }
 0x10e   : > { %v13169_v23 = vld [vmem:[#allocation5 + $0x7e4] ss:$48 sps:$4 sm:$0xff]   ;;  %10647 = vmatpush3.bf16.msra.mxu0 %v13168_v22 }
 0x10f   : > { %v13170_v24 = vld [vmem:[#allocation5 + $0x544] ss:$48 sps:$4 sm:$0xff]   ;;  %10711 = vmatpush3.bf16.msra.mxu1 %v13169_v23  ;;  %v14493_v23 = vpack.c.bf16 %v466_v20, %v460_v18 }
 0x110   : > { %v13171_v25 = vld [vmem:[#allocation5 + $0xb44] ss:$48 sps:$4 sm:$0xff]   ;;  %10648 = vmatprep.subr.bf16.mxu0 %v13170_v24 }
 0x111   : > { %v13172_v26 = vld [vmem:[#allocation5 + $0x244] ss:$48 sps:$4 sm:$0xff]   ;;  %10712 = vmatprep.subr.bf16.mxu1 %v13171_v25  ;;  %16991 = vst [vmem:[#allocation36_spill] sm:$0xff] %v14493_v23 }
 0x112   : > { %v13173_v27 = vld [vmem:[#allocation5 + $0x844] ss:$48 sps:$4 sm:$0xff]   ;;  %10649 = vmatpush3.bf16.msra.mxu0 %v13172_v26 }
 0x113   : > { %v13174_v28 = vld [vmem:[#allocation5 + $0x5a4] ss:$48 sps:$4 sm:$0xff]   ;;  %10713 = vmatpush3.bf16.msra.mxu1 %v13173_v27 }
 0x114   : > { %v13175_v29 = vld [vmem:[#allocation5 + $0xba4] ss:$48 sps:$4 sm:$0xff]   ;;  %10650 = vmatprep.subr.bf16.mxu0 %v13174_v28 }
 0x115   : > { %v13176_v30 = vld [vmem:[#allocation5 + $0x2a4] ss:$48 sps:$4 sm:$0xff]   ;;  %10714 = vmatprep.subr.bf16.mxu1 %v13175_v29 }
 0x116   : > { %v13177_v31 = vld [vmem:[#allocation5 + $0x8a4] ss:$48 sps:$4 sm:$0xff]   ;;  %10651 = vmatpush3.bf16.msra.mxu0 %v13176_v30  ;;  %v13192_v30 = vld [vmem:[#allocation5 + $0x420] ss:$48 sps:$4 sm:$0xff]  }
 0x117   : > { %10715 = vmatpush3.bf16.msra.mxu1 %v13177_v31  ;;  %v421_v37 = vld [vmem:[%s14403_s1] sm:$0xff]  ;;  %v427_v38 = vld [vmem:[%s14403_s1 + $0x30] sm:$0xff] }
 0x118   : > { %v14435_v40 = vpack.c.bf16 %v427_v38, %v421_v37  ;;  %v423_v41 = vld [vmem:[%s14403_s1 + $0x10] sm:$0xff]  ;;  %v429_v42 = vld [vmem:[%s14403_s1 + $0x40] sm:$0xff]  ;;  %10828 = vmatprep.subr.bf16.mxu1 %v13180_v46  ;;  %v14508_v37 = vpack.c.bf16 %v476_v33, %v470_v32  ;;  %v14510_v38 = vpack.c.bf16 %v478_v36, %v472_v34  ;;  %v508_v32 = vld [vmem:[%s14403_s1 + $0x2b8] sm:$0xff] }
 0x119   : > { %v14440_v43 = vpack.c.bf16 %v429_v42, %v423_v41  ;;  %v13178_v44 = vld [vmem:[#allocation5 + $0xf04] ss:$48 sps:$4 sm:$0xff]   ;;  %v13193_v31 = vld [vmem:[#allocation5 + $0x120] ss:$48 sps:$4 sm:$0xff]   ;;  %v514_v33 = vld [vmem:[%s14403_s1 + $0x2e8] sm:$0xff] }
 0x11a   : > { %16980 = vst [vmem:[#allocation25_spill] sm:$0xff] %v14435_v40  ;;  %1081 = vmatmul.mubr.bf16.vlgmr.msra.gmra.mrb[0].mxu0 %v14435_v40  ;;  %v13179_v45 = vld [vmem:[#allocation5 + $0xc04] ss:$48 sps:$4 sm:$0xff]   ;;  %10764 = vmatprep.subr.bf16.mxu0 %v13178_v44  ;;  %16994 = vst [vmem:[#allocation39_spill] sm:$0xff] %v14508_v37 }
 0x11b   : > { %16981 = vst [vmem:[#allocation26_spill] sm:$0xff] %v14440_v43  ;;  %1178 = vmatmul.mubr.bf16.vlgmr.msra.gmra.mrb[0].mxu1 %v14440_v43  ;;  %10765 = vmatpush3.bf16.msra.mxu0 %v13179_v45  ;;  %v433_v54 = vld [vmem:[%s14403_s1 + $0x60] sm:$0xff]  ;;  %v439_v55 = vld [vmem:[%s14403_s1 + $0x90] sm:$0xff]  ;;  %16995 = vst [vmem:[#allocation40_spill] sm:$0xff] %v14510_v38 }
 0x11c   : > { %10829 = vmatpush3.bf16.msra.mxu1 %v13181_v47  ;;  %v435_v56 = vld [vmem:[%s14403_s1 + $0x70] sm:$0xff]  ;;  %v14456_v57 = vpack.c.bf16 %v439_v55, %v433_v54  ;;  %v441_v58 = vld [vmem:[%s14403_s1 + $0xa0] sm:$0xff]  ;;  %1088 = vmatprep.mubr.bf16.mxu0 %v14449_v52  ;;  %v482_v54 = vld [vmem:[%s14403_s1 + $0x1e8] sm:$0xff] }
 0x11d   : > { %1185 = vmatprep.mubr.bf16.mxu1 %v14451_v53  ;;  %v14461_v59 = vpack.c.bf16 %v441_v58, %v435_v56  ;;  %v13182_v60 = vld [vmem:[#allocation5 + $0xf64] ss:$48 sps:$4 sm:$0xff]   ;;  %10830 = vmatprep.subr.bf16.mxu1 %v13184_v62  ;;  %v488_v55 = vld [vmem:[%s14403_s1 + $0x218] sm:$0xff] }
 0x11e   : > { %16984 = vst [vmem:[#allocation29_spill] sm:$0xff] %v14456_v57  ;;  %v13183_v61 = vld [vmem:[#allocation5 + $0xc64] ss:$48 sps:$4 sm:$0xff]   ;;  %10766 = vmatprep.subr.bf16.mxu0 %v13182_v60  ;;  %v14525_v56 = vpack.c.bf16 %v488_v55, %v482_v54  ;;  %v484_v58 = vld [vmem:[%s14403_s1 + $0x1f8] sm:$0xff]  ;;  %v490_v60 = vld [vmem:[%s14403_s1 + $0x228] sm:$0xff] }
 0x11f   : > { %16985 = vst [vmem:[#allocation30_spill] sm:$0xff] %v14461_v59  ;;  %10767 = vmatpush3.bf16.msra.mxu0 %v13183_v61  ;;  %v445_v5 = vld [vmem:[%s14403_s1 + $0xc0] sm:$0xff]  ;;  %v451_v7 = vld [vmem:[%s14403_s1 + $0xf0] sm:$0xff]  ;;  %v14529_v61 = vpack.c.bf16 %v490_v60, %v484_v58  ;;  %v426_v58 = vld [vmem:[%s14403_s1 + $0x28] sm:$0xff] }
 0x120   : > { %10831 = vmatpush3.bf16.msra.mxu1 %v13185_v63  ;;  %v447_v8 = vld [vmem:[%s14403_s1 + $0xd0] sm:$0xff]  ;;  %v453_v9 = vld [vmem:[%s14403_s1 + $0x100] sm:$0xff]  ;;  %v14478_v10 = vpack.c.bf16 %v451_v7, %v445_v5  ;;  %16998 = vst [vmem:[#allocation43_spill] sm:$0xff] %v14525_v56  ;;  %v432_v60 = vld [vmem:[%s14403_s1 + $0x58] sm:$0xff] }
 0x121   : > { %v13186_v11 = vld [vmem:[#allocation5 + $0xfc4] ss:$48 sps:$4 sm:$0xff]   ;;  %v14481_v12 = vpack.c.bf16 %v453_v9, %v447_v8  ;;  %10832 = vmatprep.subr.bf16.mxu1 %v13188_v14  ;;  %16999 = vst [vmem:[#allocation44_spill] sm:$0xff] %v14529_v61  ;;  %v13200_v5 = vld [vmem:[#allocation5 + $0x4e0] ss:$48 sps:$4 sm:$0xff]   ;;  %v494_v9 = vld [vmem:[%s14403_s1 + $0x248] sm:$0xff] }
 0x122   : > { %1089 = vmatmul.mubr.bf16.gmra.mrb[4].mxu0 %v14456_v57  ;;  %16988 = vst [vmem:[#allocation33_spill] sm:$0xff] %v14478_v10  ;;  %v13187_v13 = vld [vmem:[#allocation5 + $0xcc4] ss:$48 sps:$4 sm:$0xff]   ;;  %10768 = vmatprep.subr.bf16.mxu0 %v13186_v11  ;;  %v13201_v7 = vld [vmem:[#allocation5 + $0x1e0] ss:$48 sps:$4 sm:$0xff]   ;;  %v500_v11 = vld [vmem:[%s14403_s1 + $0x278] sm:$0xff] }
 0x123   : > { %1186 = vmatmul.mubr.bf16.gmra.mrb[4].mxu1 %v14461_v59  ;;  %1096 = vmatprep.mubr.bf16.mxu0 %v14467_v2  ;;  %16989 = vst [vmem:[#allocation34_spill] sm:$0xff] %v14481_v12  ;;  %v457_v21 = vld [vmem:[%s14403_s1 + $0x120] sm:$0xff]  ;;  %v463_v22 = vld [vmem:[%s14403_s1 + $0x150] sm:$0xff] }
 0x124   : > { %1193 = vmatprep.mubr.bf16.mxu1 %v14472_v6  ;;  %10769 = vmatpush3.bf16.msra.mxu0 %v13187_v13  ;;  %v459_v24 = vld [vmem:[%s14403_s1 + $0x130] sm:$0xff]  ;;  %v465_v25 = vld [vmem:[%s14403_s1 + $0x160] sm:$0xff]  ;;  %v14499_v27 = vpack.c.bf16 %v463_v22, %v457_v21  ;;  %v496_v13 = vld [vmem:[%s14403_s1 + $0x258] sm:$0xff] }
 0x125   : > { %10833 = vmatpush3.bf16.msra.mxu1 %v13189_v15  ;;  %v13190_v26 = vld [vmem:[#allocation5 + $0x1024] ss:$48 sps:$4 sm:$0xff]   ;;  %v14501_v29 = vpack.c.bf16 %v465_v25, %v459_v24  ;;  %v14546_v15 = vpack.c.bf16 %v500_v11, %v494_v9  ;;  %v14549_v17 = vpack.c.bf16 %v502_v16, %v496_v13  ;;  %v13209_v55 = vld [vmem:[#allocation5 + $0x2a0] ss:$48 sps:$4 sm:$0xff]   ;;  %v444_v9 = vld [vmem:[%s14403_s1 + $0xb8] sm:$0xff] }
 0x126   : > { %16992 = vst [vmem:[#allocation37_spill] sm:$0xff] %v14499_v27  ;;  %v13191_v28 = vld [vmem:[#allocation5 + $0xd24] ss:$48 sps:$4 sm:$0xff]   ;;  %10770 = vmatprep.subr.bf16.mxu0 %v13190_v26  ;;  %10834 = vmatprep.subr.bf16.mxu1 %v13192_v30  ;;  %v13204_v26 = vld [vmem:[#allocation5 + $0x540] ss:$48 sps:$4 sm:$0xff]   ;;  %v506_v30 = vld [vmem:[%s14403_s1 + $0x2a8] sm:$0xff] }
 0x127   : > { %16993 = vst [vmem:[#allocation38_spill] sm:$0xff] %v14501_v29  ;;  %v469_v41 = vld [vmem:[%s14403_s1 + $0x180] sm:$0xff]  ;;  %v475_v42 = vld [vmem:[%s14403_s1 + $0x1b0] sm:$0xff]  ;;  %17002 = vst [vmem:[#allocation47_spill] sm:$0xff] %v14546_v15 }
 0x128   : > { %10771 = vmatpush3.bf16.msra.mxu0 %v13191_v28  ;;  %v471_v44 = vld [vmem:[%s14403_s1 + $0x190] sm:$0xff]  ;;  %v477_v45 = vld [vmem:[%s14403_s1 + $0x1c0] sm:$0xff]  ;;  %v14519_v48 = vpack.c.bf16 %v475_v42, %v469_v41  ;;  %17003 = vst [vmem:[#allocation48_spill] sm:$0xff] %v14549_v17  ;;  %v14569_v42 = vpack.c.bf16 %v514_v33, %v508_v32 }
 0x129   : > { %10835 = vmatpush3.bf16.msra.mxu1 %v13193_v31  ;;  %v13194_v46 = vld [vmem:[#allocation5 + $0x1084] ss:$48 sps:$4 sm:$0xff]   ;;  %v14521_v50 = vpack.c.bf16 %v477_v45, %v471_v44  ;;  %v13205_v28 = vld [vmem:[#allocation5 + $0x240] ss:$48 sps:$4 sm:$0xff]   ;;  %v512_v31 = vld [vmem:[%s14403_s1 + $0x2d8] sm:$0xff] }
 0x12a   : > { %1097 = vmatmul.mubr.bf16.gmra.mrb[8].mxu0 %v14478_v10  ;;  %v13195_v47 = vld [vmem:[#allocation5 + $0xd84] ss:$48 sps:$4 sm:$0xff]   ;;  %16996 = vst [vmem:[#allocation41_spill] sm:$0xff] %v14519_v48  ;;  %10772 = vmatprep.subr.bf16.mxu0 %v13194_v46  ;;  %v14567_v41 = vpack.c.bf16 %v512_v31, %v506_v30  ;;  %17007 = vst [vmem:[#allocation52_spill] sm:$0xff] %v14569_v42  ;;  %v13211_v13 = vld [vmem:[#allocation5 + $0x600] ss:$48 sps:$4 sm:$0xff]  }
 0x12b   : > { %1194 = vmatmul.mubr.bf16.gmra.mrb[8].mxu1 %v14481_v12  ;;  %1104 = vmatprep.mubr.bf16.mxu0 %v14488_v19  ;;  %16997 = vst [vmem:[#allocation42_spill] sm:$0xff] %v14521_v50  ;;  %v481_v62 = vld [vmem:[%s14403_s1 + $0x1e0] sm:$0xff]  ;;  %v487_v63 = vld [vmem:[%s14403_s1 + $0x210] sm:$0xff]  ;;  %v456_v30 = vld [vmem:[%s14403_s1 + $0x118] sm:$0xff] }
 0x12c   : > { %1201 = vmatprep.mubr.bf16.mxu1 %v14493_v23  ;;  %10773 = vmatpush3.bf16.msra.mxu0 %v13195_v47  ;;  %v483_v0 = vld [vmem:[%s14403_s1 + $0x1f0] sm:$0xff]  ;;  %v489_v1 = vld [vmem:[%s14403_s1 + $0x220] sm:$0xff]  ;;  %v14539_v8 = vpack.c.bf16 %v487_v63, %v481_v62  ;;  %17006 = vst [vmem:[#allocation51_spill] sm:$0xff] %v14567_v41 }
 0x12d   : > { %10836 = vmatprep.subr.bf16.mxu1 %v13196_v49  ;;  %v13198_v3 = vld [vmem:[#allocation5 + $0x10e4] ss:$48 sps:$4 sm:$0xff]   ;;  %v14544_v14 = vpack.c.bf16 %v489_v1, %v483_v0  ;;  %v13208_v49 = vld [vmem:[#allocation5 + $0x5a0] ss:$48 sps:$4 sm:$0xff]   ;;  %v14585_v1 = vpack.c.bf16 %v432_v60, %v426_v58 }
 0x12e   : > { %10837 = vmatpush3.bf16.msra.mxu1 %v13197_v51  ;;  %v13199_v4 = vld [vmem:[#allocation5 + $0xde4] ss:$48 sps:$4 sm:$0xff]   ;;  %10774 = vmatprep.subr.bf16.mxu0 %v13198_v3  ;;  %17000 = vst [vmem:[#allocation45_spill] sm:$0xff] %v14539_v8  ;;  %v13210_v62 = vld [vmem:[#allocation5 + $0x900] ss:$48 sps:$4 sm:$0xff]  }
 0x12f   : > { %10838 = vmatprep.subr.bf16.mxu1 %v13200_v5  ;;  %17001 = vst [vmem:[#allocation46_spill] sm:$0xff] %v14544_v14  ;;  %v493_v18 = vld [vmem:[%s14403_s1 + $0x240] sm:$0xff]  ;;  %v499_v20 = vld [vmem:[%s14403_s1 + $0x270] sm:$0xff]  ;;  %17010 = vst [vmem:[#allocation55_spill] sm:$0xff] %v14585_v1 }
 0x130   : > { %10775 = vmatpush3.bf16.msra.mxu0 %v13199_v4  ;;  %v13202_v21 = vld [vmem:[#allocation5 + $0x1144] ss:$48 sps:$4 sm:$0xff]   ;;  %v14563_v34 = vpack.c.bf16 %v499_v20, %v493_v18  ;;  %v13212_v3 = vld [vmem:[#allocation5 + $0xf00] ss:$48 sps:$4 sm:$0xff]  }
 0x131   : > { %v495_v22 = vld [vmem:[%s14403_s1 + $0x250] sm:$0xff]  ;;  %v501_v24 = vld [vmem:[%s14403_s1 + $0x280] sm:$0xff]  ;;  %10776 = vmatprep.subr.bf16.mxu0 %v13202_v21 }
 0x132   : > { %1105 = vmatmul.mubr.bf16.gmra.mrb[12].mxu0 %v14499_v27  ;;  %10839 = vmatpush3.bf16.msra.mxu1 %v13201_v7  ;;  %v13203_v25 = vld [vmem:[#allocation5 + $0xe44] ss:$48 sps:$4 sm:$0xff]   ;;  %17004 = vst [vmem:[#allocation49_spill] sm:$0xff] %v14563_v34  ;;  %v14565_v36 = vpack.c.bf16 %v501_v24, %v495_v22  ;;  %v438_v7 = vld [vmem:[%s14403_s1 + $0x88] sm:$0xff]  ;;  %v13213_v16 = vld [vmem:[#allocation5 + $0xc00] ss:$48 sps:$4 sm:$0xff]  }
 0x133   : > { %1202 = vmatmul.mubr.bf16.gmra.mrb[12].mxu1 %v14501_v29  ;;  %1112 = vmatprep.mubr.bf16.mxu0 %v14508_v37  ;;  %v13206_v44 = vld [vmem:[#allocation5 + $0x11a4] ss:$48 sps:$4 sm:$0xff]   ;;  %v14597_v18 = vpack.c.bf16 %v444_v9, %v438_v7  ;;  %v13214_v22 = vld [vmem:[#allocation5 + $0x960] ss:$48 sps:$4 sm:$0xff]  }
 0x134   : > { %1209 = vmatprep.mubr.bf16.mxu1 %v14510_v38  ;;  %10777 = vmatpush3.bf16.msra.mxu0 %v13203_v25  ;;  %17005 = vst [vmem:[#allocation50_spill] sm:$0xff] %v14565_v36  ;;  %v505_v45 = vld [vmem:[%s14403_s1 + $0x2a0] sm:$0xff]  ;;  %v511_v46 = vld [vmem:[%s14403_s1 + $0x2d0] sm:$0xff] }
 0x135   : > { %10840 = vmatprep.subr.bf16.mxu1 %v13204_v26  ;;  %v13207_v47 = vld [vmem:[#allocation5 + $0xea4] ss:$48 sps:$4 sm:$0xff]   ;;  %10778 = vmatprep.subr.bf16.mxu0 %v13206_v44  ;;  %v14581_v63 = vpack.c.bf16 %v511_v46, %v505_v45  ;;  %17012 = vst [vmem:[#allocation57_spill] sm:$0xff] %v14597_v18  ;;  %v13216_v24 = vld [vmem:[#allocation5 + $0xf60] ss:$48 sps:$4 sm:$0xff]  }
 0x136   : > { %10841 = vmatpush3.bf16.msra.mxu1 %v13205_v28  ;;  %v507_v51 = vld [vmem:[%s14403_s1 + $0x2b0] sm:$0xff]  ;;  %v513_v54 = vld [vmem:[%s14403_s1 + $0x2e0] sm:$0xff]  ;;  %v450_v28 = vld [vmem:[%s14403_s1 + $0xe8] sm:$0xff] }
 0x137   : > { %10842 = vmatprep.subr.bf16.mxu1 %v13208_v49  ;;  %17008 = vst [vmem:[#allocation53_spill] sm:$0xff] %v14581_v63  ;;  %v14583_v0 = vpack.c.bf16 %v513_v54, %v507_v51  ;;  %v425_v4 = vld [vmem:[%s14403_s1 + $0x20] sm:$0xff]  ;;  %v431_v5 = vld [vmem:[%s14403_s1 + $0x50] sm:$0xff]  ;;  %v14609_v44 = vpack.c.bf16 %v456_v30, %v450_v28  ;;  %v462_v54 = vld [vmem:[%s14403_s1 + $0x148] sm:$0xff] }
 0x138   : > { %10779 = vmatpush3.bf16.msra.mxu0 %v13207_v47  ;;  %v14595_v11 = vpack.c.bf16 %v431_v5, %v425_v4  ;;  %v437_v20 = vld [vmem:[%s14403_s1 + $0x80] sm:$0xff]  ;;  %v443_v21 = vld [vmem:[%s14403_s1 + $0xb0] sm:$0xff] }
 0x139   : > { %17009 = vst [vmem:[#allocation54_spill] sm:$0xff] %v14583_v0  ;;  %10892 = vmatprep.subr.bf16.mxu0 %v13210_v62  ;;  %v13215_v25 = vld [vmem:[#allocation5 + $0x660] ss:$48 sps:$4 sm:$0xff]   ;;  %v14607_v33 = vpack.c.bf16 %v443_v21, %v437_v20  ;;  %17014 = vst [vmem:[#allocation59_spill] sm:$0xff] %v14609_v44 }
 0x13a   : > { %1113 = vmatmul.mubr.bf16.gmra.mrb[16].mxu0 %v14519_v48  ;;  %10843 = vmatpush3.bf16.msra.mxu1 %v13209_v55  ;;  %17011 = vst [vmem:[#allocation56_spill] sm:$0xff] %v14595_v11  ;;  %v13217_v26 = vld [vmem:[#allocation5 + $0xc60] ss:$48 sps:$4 sm:$0xff]   ;;  %v468_v55 = vld [vmem:[%s14403_s1 + $0x178] sm:$0xff] }
 0x13b   : > { %1210 = vmatmul.mubr.bf16.gmra.mrb[16].mxu1 %v14521_v50  ;;  %1120 = vmatprep.mubr.bf16.mxu0 %v14525_v56  ;;  %v13218_v31 = vld [vmem:[#allocation5 + $0x9c0] ss:$48 sps:$4 sm:$0xff]   ;;  %17013 = vst [vmem:[#allocation58_spill] sm:$0xff] %v14607_v33  ;;  %v14621_v7 = vpack.c.bf16 %v468_v55, %v462_v54  ;;  %v486_v54 = vld [vmem:[%s14403_s1 + $0x208] sm:$0xff]  ;;  %v492_v55 = vld [vmem:[%s14403_s1 + $0x238] sm:$0xff] }
 0x13c   : > { %1217 = vmatprep.mubr.bf16.mxu1 %v14529_v61  ;;  %10956 = vmatprep.subr.bf16.mxu1 %v13212_v3  ;;  %v13220_v32 = vld [vmem:[#allocation5 + $0xfc0] ss:$48 sps:$4 sm:$0xff]  }
 0x13d   : > { %v13219_v45 = vld [vmem:[#allocation5 + $0x6c0] ss:$48 sps:$4 sm:$0xff]   ;;  %17016 = vst [vmem:[#allocation61_spill] sm:$0xff] %v14621_v7 }
 0x13e   : > { %v449_v46 = vld [vmem:[%s14403_s1 + $0xe0] sm:$0xff]  ;;  %v455_v47 = vld [vmem:[%s14403_s1 + $0x110] sm:$0xff] }
 0x13f   : > { %v13221_v49 = vld [vmem:[#allocation5 + $0xcc0] ss:$48 sps:$4 sm:$0xff]   ;;  %v14619_v4 = vpack.c.bf16 %v455_v47, %v449_v46 }
 0x140   : > { %v13222_v51 = vld [vmem:[#allocation5 + $0xa20] ss:$48 sps:$4 sm:$0xff]  }
 0x141   : > { %v13224_v58 = vld [vmem:[#allocation5 + $0x1020] ss:$48 sps:$4 sm:$0xff]   ;;  %17015 = vst [vmem:[#allocation60_spill] sm:$0xff] %v14619_v4 }
 0x142   : > { %1121 = vmatmul.mubr.bf16.gmra.mrb[20].mxu0 %v14539_v8  ;;  %v13223_v60 = vld [vmem:[#allocation5 + $0x720] ss:$48 sps:$4 sm:$0xff]  }
 0x143   : > { %1218 = vmatmul.mubr.bf16.gmra.mrb[20].mxu1 %v14544_v14  ;;  %1128 = vmatprep.mubr.bf16.mxu0 %v14546_v15  ;;  %v13225_v62 = vld [vmem:[#allocation5 + $0xd20] ss:$48 sps:$4 sm:$0xff]  }
 0x144   : > { %1225 = vmatprep.mubr.bf16.mxu1 %v14549_v17  ;;  %v13226_v3 = vld [vmem:[#allocation5 + $0xa80] ss:$48 sps:$4 sm:$0xff]  }
 0x145   : > { %v13228_v5 = vld [vmem:[#allocation5 + $0x1080] ss:$48 sps:$4 sm:$0xff]  }
 0x146   : > { %v13227_v9 = vld [vmem:[#allocation5 + $0x780] ss:$48 sps:$4 sm:$0xff]  }
 0x147   : > { %v13230_v20 = vld [vmem:[#allocation5 + $0xae0] ss:$48 sps:$4 sm:$0xff]  }
 0x148   : > { %v13232_v21 = vld [vmem:[#allocation5 + $0x10e0] ss:$48 sps:$4 sm:$0xff]  }
 0x149   : > { %v13233_v28 = vld [vmem:[#allocation5 + $0xde0] ss:$48 sps:$4 sm:$0xff]  }
 0x14a   : > { %1129 = vmatmul.mubr.bf16.gmra.mrb[24].mxu0 %v14563_v34  ;;  %v13234_v30 = vld [vmem:[#allocation5 + $0xb40] ss:$48 sps:$4 sm:$0xff]  }
 0x14b   : > { %1226 = vmatmul.mubr.bf16.gmra.mrb[24].mxu1 %v14565_v36  ;;  %1136 = vmatprep.mubr.bf16.mxu0 %v14567_v41  ;;  %v13235_v46 = vld [vmem:[#allocation5 + $0x840] ss:$48 sps:$4 sm:$0xff]  }
 0x14c   : > { %1233 = vmatprep.mubr.bf16.mxu1 %v14569_v42  ;;  %v473_v47 = vld [vmem:[%s14403_s1 + $0x1a0] sm:$0xff] }
 0x152   : > { %1137 = vmatmul.mubr.bf16.gmra.mrb[28].mxu0 %v14581_v63 }
 0x153   : > { %1234 = vmatmul.mubr.bf16.gmra.mrb[28].mxu1 %v14583_v0  ;;  %1274 = vmatprep.mubr.bf16.mxu0 %v14585_v1 }
 0x154   : > { %1692 = vmatprep.mubr.bf16.mxu1 %v14428_v35 }
 0x15a   : > { %1275 = vmatmul.mubr.bf16.vlgmr.msra.gmra.mrb[32].mxu0 %v14595_v11 }
 0x15b   : > { %1693 = vmatmul.mubr.bf16.vlgmr.msra.gmra.mrb[32].mxu1 %v14435_v40  ;;  %10893 = vmatpush3.bf16.msra.mxu0 %v13211_v13  ;;  %v13229_v13 = vld [vmem:[#allocation5 + $0xd80] ss:$48 sps:$4 sm:$0xff]  }
 0x15c   : > { %10957 = vmatpush3.bf16.msra.mxu1 %v13213_v16  ;;  %1282 = vmatprep.mubr.bf16.mxu0 %v14597_v18  ;;  %v461_v16 = vld [vmem:[%s14403_s1 + $0x140] sm:$0xff] }
 0x15d   : > { %1700 = vmatprep.mubr.bf16.mxu1 %v14449_v52  ;;  %10894 = vmatprep.subr.bf16.mxu0 %v13214_v22  ;;  %v467_v22 = vld [vmem:[%s14403_s1 + $0x170] sm:$0xff] }
 0x15e   : > { %10958 = vmatprep.subr.bf16.mxu1 %v13216_v24  ;;  %v474_v24 = vld [vmem:[%s14403_s1 + $0x1a8] sm:$0xff] }
 0x15f   : > { %10895 = vmatpush3.bf16.msra.mxu0 %v13215_v25  ;;  %v480_v25 = vld [vmem:[%s14403_s1 + $0x1d8] sm:$0xff] }
 0x160   : > { %10959 = vmatpush3.bf16.msra.mxu1 %v13217_v26  ;;  %10896 = vmatprep.subr.bf16.mxu0 %v13218_v31  ;;  %v13231_v26 = vld [vmem:[#allocation5 + $0x7e0] ss:$48 sps:$4 sm:$0xff]   ;;  %v14631_v31 = vpack.c.bf16 %v467_v22, %v461_v16  ;;  %v13244_v16 = vld [vmem:[#allocation5 + $0x908] ss:$48 sps:$4 sm:$0xff]  }
 0x161   : > { %10960 = vmatprep.subr.bf16.mxu1 %v13220_v32  ;;  %v14633_v32 = vpack.c.bf16 %v480_v25, %v474_v24  ;;  %v498_v22 = vld [vmem:[%s14403_s1 + $0x268] sm:$0xff]  ;;  %v504_v24 = vld [vmem:[%s14403_s1 + $0x298] sm:$0xff] }
 0x162   : > { %1283 = vmatmul.mubr.bf16.gmra.mrb[36].mxu0 %v14607_v33 }
 0x163   : > { %1701 = vmatmul.mubr.bf16.gmra.mrb[36].mxu1 %v14456_v57  ;;  %1290 = vmatprep.mubr.bf16.mxu0 %v14609_v44 }
 0x164   : > { %1708 = vmatprep.mubr.bf16.mxu1 %v14467_v2  ;;  %10897 = vmatpush3.bf16.msra.mxu0 %v13219_v45  ;;  %v13236_v45 = vld [vmem:[#allocation5 + $0x1140] ss:$48 sps:$4 sm:$0xff]  }
 0x165   : > { %10961 = vmatpush3.bf16.msra.mxu1 %v13221_v49  ;;  %10898 = vmatprep.subr.bf16.mxu0 %v13222_v51  ;;  %v479_v49 = vld [vmem:[%s14403_s1 + $0x1d0] sm:$0xff] }
 0x166   : > { %10962 = vmatprep.subr.bf16.mxu1 %v13224_v58  ;;  %v13237_v51 = vld [vmem:[#allocation5 + $0xe40] ss:$48 sps:$4 sm:$0xff]  }
 0x167   : > { %v13238_v58 = vld [vmem:[#allocation5 + $0xba0] ss:$48 sps:$4 sm:$0xff]  }
 0x168   : > { %10899 = vmatpush3.bf16.msra.mxu0 %v13223_v60  ;;  %v13239_v60 = vld [vmem:[#allocation5 + $0x8a0] ss:$48 sps:$4 sm:$0xff]  }
 0x169   : > { %10963 = vmatpush3.bf16.msra.mxu1 %v13225_v62  ;;  %10900 = vmatprep.subr.bf16.mxu0 %v13226_v3  ;;  %v13240_v62 = vld [vmem:[#allocation5 + $0x11a0] ss:$48 sps:$4 sm:$0xff]  }
 0x16a   : > { %1291 = vmatmul.mubr.bf16.gmra.mrb[40].mxu0 %v14619_v4  ;;  %10964 = vmatprep.subr.bf16.mxu1 %v13228_v5  ;;  %v13241_v3 = vld [vmem:[#allocation5 + $0xea0] ss:$48 sps:$4 sm:$0xff]   ;;  %v14643_v5 = vpack.c.bf16 %v479_v49, %v473_v47 }
 0x16b   : > { %1709 = vmatmul.mubr.bf16.gmra.mrb[40].mxu1 %v14478_v10  ;;  %1298 = vmatprep.mubr.bf16.mxu0 %v14621_v7 }
 0x16c   : > { %1716 = vmatprep.mubr.bf16.mxu1 %v14488_v19  ;;  %10901 = vmatpush3.bf16.msra.mxu0 %v13227_v9  ;;  %v13242_v9 = vld [vmem:[#allocation5 + $0x308] ss:$48 sps:$4 sm:$0xff]  }
 0x16d   : > { %10965 = vmatpush3.bf16.msra.mxu1 %v13229_v13  ;;  %10902 = vmatprep.subr.bf16.mxu0 %v13230_v20  ;;  %v14645_v13 = vpack.c.bf16 %v492_v55, %v486_v54  ;;  %v485_v20 = vld [vmem:[%s14403_s1 + $0x200] sm:$0xff]  ;;  %v515_v54 = vld [vmem:[%s14403_s1 + $0x2f0] sm:$0xff] }
 0x16e   : > { %10966 = vmatprep.subr.bf16.mxu1 %v13232_v21  ;;  %v491_v21 = vld [vmem:[%s14403_s1 + $0x230] sm:$0xff] }
 0x16f   : > { %v14655_v25 = vpack.c.bf16 %v491_v21, %v485_v20  ;;  %v13250_v20 = vld [vmem:[#allocation5 + $0x3c8] ss:$48 sps:$4 sm:$0xff]  }
 0x170   : > { %10903 = vmatpush3.bf16.msra.mxu0 %v13231_v26  ;;  %v14657_v26 = vpack.c.bf16 %v504_v24, %v498_v22  ;;  %v13252_v21 = vld [vmem:[#allocation5 + $0x9c8] ss:$48 sps:$4 sm:$0xff]  }
 0x171   : > { %10967 = vmatpush3.bf16.msra.mxu1 %v13233_v28  ;;  %10904 = vmatprep.subr.bf16.mxu0 %v13234_v30  ;;  %v497_v28 = vld [vmem:[%s14403_s1 + $0x260] sm:$0xff]  ;;  %v503_v30 = vld [vmem:[%s14403_s1 + $0x290] sm:$0xff]  ;;  %v13251_v22 = vld [vmem:[#allocation5 + $0xc8] ss:$48 sps:$4 sm:$0xff]  }
 0x172   : > { %1299 = vmatmul.mubr.bf16.gmra.mrb[44].mxu0 %v14631_v31  ;;  %10968 = vmatprep.subr.bf16.mxu1 %v13236_v45  ;;  %17017 = vst [vmem:[#allocation62_spill] sm:$0xff] %v14657_v26  ;;  %v510_v45 = vld [vmem:[%s14403_s1 + $0x2c8] sm:$0xff]  ;;  %v14667_v47 = vpack.c.bf16 %v503_v30, %v497_v28 }
 0x173   : > { %1717 = vmatmul.mubr.bf16.gmra.mrb[44].mxu1 %v14499_v27  ;;  %1306 = vmatprep.mubr.bf16.mxu0 %v14633_v32  ;;  %v13253_v24 = vld [vmem:[#allocation5 + $0x6c8] ss:$48 sps:$4 sm:$0xff]  }
 0x174   : > { %1724 = vmatprep.mubr.bf16.mxu1 %v14508_v37  ;;  %10905 = vmatpush3.bf16.msra.mxu0 %v13235_v46  ;;  %v516_v46 = vld [vmem:[%s14403_s1 + $0x2f8] sm:$0xff]  ;;  %17018 = vst [vmem:[#allocation63_spill] sm:$0xff] %v14667_v47 }
 0x175   : > { %10969 = vmatpush3.bf16.msra.mxu1 %v13237_v51  ;;  %10906 = vmatprep.subr.bf16.mxu0 %v13238_v58  ;;  %v14669_v49 = vpack.c.bf16 %v516_v46, %v510_v45  ;;  %v509_v51 = vld [vmem:[%s14403_s1 + $0x2c0] sm:$0xff]  ;;  %v13243_v58 = vld [vmem:[#allocation5 + $0x8] ss:$48 sps:$4 sm:$0xff]  }
 0x176   : > { %10970 = vmatprep.subr.bf16.mxu1 %v13240_v62  ;;  %v14677_v55 = vpack.c.bf16 %v515_v54, %v509_v51  ;;  %v13246_v62 = vld [vmem:[#allocation5 + $0x368] ss:$48 sps:$4 sm:$0xff]  }
 0x177   : > { %17019 = vst [vmem:[#allocation64_spill] sm:$0xff] %v14669_v49  ;;  %v13254_v28 = vld [vmem:[#allocation5 + $0x428] ss:$48 sps:$4 sm:$0xff]  }
 0x178   : > { %10907 = vmatpush3.bf16.msra.mxu0 %v13239_v60  ;;  %17020 = vst [vmem:[#allocation65_spill] sm:$0xff] %v14677_v55  ;;  %v13245_v60 = vld [vmem:[#allocation5 + $0x608] ss:$48 sps:$4 sm:$0xff]  }
 0x179   : > { %10971 = vmatpush3.bf16.msra.mxu1 %v13241_v3  ;;  %11020 = vmatprep.subr.bf16.mxu0 %v13242_v9  ;;  %v13247_v3 = vld [vmem:[#allocation5 + $0x68] ss:$48 sps:$4 sm:$0xff]  }
 0x17a   : > { %1307 = vmatmul.mubr.bf16.gmra.mrb[48].mxu0 %v14643_v5  ;;  %11084 = vmatprep.subr.bf16.mxu1 %v13244_v16  ;;  %v13248_v9 = vld [vmem:[#allocation5 + $0x968] ss:$48 sps:$4 sm:$0xff]  }
 0x17b   : > { %1725 = vmatmul.mubr.bf16.gmra.mrb[48].mxu1 %v14519_v48  ;;  %1314 = vmatprep.mubr.bf16.mxu0 %v14645_v13  ;;  %v13249_v16 = vld [vmem:[#allocation5 + $0x668] ss:$48 sps:$4 sm:$0xff]  }
 0x17c   : > { %1732 = vmatprep.mubr.bf16.mxu1 %v14525_v56  ;;  %v13256_v30 = vld [vmem:[#allocation5 + $0xa28] ss:$48 sps:$4 sm:$0xff]  }
 0x17d   : > { %v13255_v45 = vld [vmem:[#allocation5 + $0x128] ss:$48 sps:$4 sm:$0xff]  }
 0x17e   : > { %v13257_v46 = vld [vmem:[#allocation5 + $0x728] ss:$48 sps:$4 sm:$0xff]  }
 0x17f   : > { %v13258_v51 = vld [vmem:[#allocation5 + $0x488] ss:$48 sps:$4 sm:$0xff]  }
 0x180   : > { %v13260_v54 = vld [vmem:[#allocation5 + $0xa88] ss:$48 sps:$4 sm:$0xff]  }
 0x182   : > { %1315 = vmatmul.mubr.bf16.gmra.mrb[52].mxu0 %v14655_v25 }
 0x183   : > { %1733 = vmatmul.mubr.bf16.gmra.mrb[52].mxu1 %v14539_v8  ;;  %1322 = vmatprep.mubr.bf16.mxu0 %v14657_v26 }
 0x184   : > { %1740 = vmatprep.mubr.bf16.mxu1 %v14546_v15 }
 0x18a   : > { %1323 = vmatmul.mubr.bf16.gmra.mrb[56].mxu0 %v14667_v47 }
 0x18b   : > { %1741 = vmatmul.mubr.bf16.gmra.mrb[56].mxu1 %v14563_v34  ;;  %1330 = vmatprep.mubr.bf16.mxu0 %v14669_v49 }
 0x18c   : > { %1748 = vmatprep.mubr.bf16.mxu1 %v14567_v41 }
 0x192   : > { %1331 = vmatmul.mubr.bf16.gmra.mrb[60].mxu0 %v14677_v55 }
 0x193   : > { %1749 = vmatmul.mubr.bf16.gmra.mrb[60].mxu1 %v14581_v63  ;;  %1789 = vmatprep.mubr.bf16.mxu0 %v14433_v39 }
 0x194   : > { %1886 = vmatprep.mubr.bf16.mxu1 %v14585_v1 }
 0x19a   : > { %1790 = vmatmul.mubr.bf16.vlgmr.msra.gmra.mrb[64].mxu0 %v14440_v43 }
 0x19b   : > { %1887 = vmatmul.mubr.bf16.vlgmr.msra.gmra.mrb[64].mxu1 %v14595_v11  ;;  %11021 = vmatpush3.bf16.msra.mxu0 %v13243_v58  ;;  %v13259_v58 = vld [vmem:[#allocation5 + $0x188] ss:$48 sps:$4 sm:$0xff]  }
 0x19c   : > { %11085 = vmatpush3.bf16.msra.mxu1 %v13245_v60  ;;  %1797 = vmatprep.mubr.bf16.mxu0 %v14451_v53  ;;  %v13261_v60 = vld [vmem:[#allocation5 + $0x788] ss:$48 sps:$4 sm:$0xff]  }
 0x19d   : > { %1894 = vmatprep.mubr.bf16.mxu1 %v14597_v18  ;;  %11022 = vmatprep.subr.bf16.mxu0 %v13246_v62  ;;  %v13262_v62 = vld [vmem:[#allocation5 + $0x4e8] ss:$48 sps:$4 sm:$0xff]  }
 0x19e   : > { %11086 = vmatprep.subr.bf16.mxu1 %v13248_v9  ;;  %v13263_v9 = vld [vmem:[#allocation5 + $0x1e8] ss:$48 sps:$4 sm:$0xff]  }
 0x19f   : > { %11023 = vmatpush3.bf16.msra.mxu0 %v13247_v3  ;;  %v13264_v3 = vld [vmem:[#allocation5 + $0xae8] ss:$48 sps:$4 sm:$0xff]  }
 0x1a0   : > { %11087 = vmatpush3.bf16.msra.mxu1 %v13249_v16  ;;  %11024 = vmatprep.subr.bf16.mxu0 %v13250_v20  ;;  %v13265_v16 = vld [vmem:[#allocation5 + $0x7e8] ss:$48 sps:$4 sm:$0xff]  }
 0x1a1   : > { %11088 = vmatprep.subr.bf16.mxu1 %v13252_v21  ;;  %v13266_v20 = vld [vmem:[#allocation5 + $0x548] ss:$48 sps:$4 sm:$0xff]  }
 0x1a2   : > { %1798 = vmatmul.mubr.bf16.gmra.mrb[68].mxu0 %v14461_v59  ;;  %v13268_v21 = vld [vmem:[#allocation5 + $0xb48] ss:$48 sps:$4 sm:$0xff]  }
 0x1a3   : > { %1895 = vmatmul.mubr.bf16.gmra.mrb[68].mxu1 %v14607_v33  ;;  %1805 = vmatprep.mubr.bf16.mxu0 %v14472_v6 }
 0x1a4   : > { %1902 = vmatprep.mubr.bf16.mxu1 %v14609_v44  ;;  %11025 = vmatpush3.bf16.msra.mxu0 %v13251_v22  ;;  %v13267_v22 = vld [vmem:[#allocation5 + $0x248] ss:$48 sps:$4 sm:$0xff]  }
 0x1a5   : > { %11089 = vmatpush3.bf16.msra.mxu1 %v13253_v24  ;;  %11026 = vmatprep.subr.bf16.mxu0 %v13254_v28  ;;  %v13269_v24 = vld [vmem:[#allocation5 + $0x848] ss:$48 sps:$4 sm:$0xff]  }
 0x1a6   : > { %11090 = vmatprep.subr.bf16.mxu1 %v13256_v30  ;;  %v13270_v28 = vld [vmem:[#allocation5 + $0x5a8] ss:$48 sps:$4 sm:$0xff]  }
 0x1a7   : > { %v13272_v30 = vld [vmem:[#allocation5 + $0xba8] ss:$48 sps:$4 sm:$0xff]  }
 0x1a8   : > { %11027 = vmatpush3.bf16.msra.mxu0 %v13255_v45  ;;  %v13271_v45 = vld [vmem:[#allocation5 + $0x2a8] ss:$48 sps:$4 sm:$0xff]  }
 0x1a9   : > { %11091 = vmatpush3.bf16.msra.mxu1 %v13257_v46  ;;  %11028 = vmatprep.subr.bf16.mxu0 %v13258_v51  ;;  %v13273_v46 = vld [vmem:[#allocation5 + $0x8a8] ss:$48 sps:$4 sm:$0xff]  }
 0x1aa   : > { %1806 = vmatmul.mubr.bf16.gmra.mrb[72].mxu0 %v14481_v12  ;;  %11092 = vmatprep.subr.bf16.mxu1 %v13260_v54  ;;  %v13274_v51 = vld [vmem:[#allocation5 + $0xf08] ss:$48 sps:$4 sm:$0xff]   ;;  %v13276_v54 = vld [vmem:[#allocation5 + $0x310] ss:$48 sps:$4 sm:$0xff]  }
 0x1ab   : > { %1903 = vmatmul.mubr.bf16.gmra.mrb[72].mxu1 %v14619_v4  ;;  %1813 = vmatprep.mubr.bf16.mxu0 %v14493_v23 }
 0x1ac   : > { %1910 = vmatprep.mubr.bf16.mxu1 %v14621_v7  ;;  %11029 = vmatpush3.bf16.msra.mxu0 %v13259_v58  ;;  %v13275_v58 = vld [vmem:[#allocation5 + $0xc08] ss:$48 sps:$4 sm:$0xff]  }
 0x1ad   : > { %11093 = vmatpush3.bf16.msra.mxu1 %v13261_v60  ;;  %11030 = vmatprep.subr.bf16.mxu0 %v13262_v62  ;;  %v13277_v60 = vld [vmem:[#allocation5 + $0x10] ss:$48 sps:$4 sm:$0xff]   ;;  %v13278_v62 = vld [vmem:[#allocation5 + $0xf68] ss:$48 sps:$4 sm:$0xff]  }
 0x1ae   : > { %11094 = vmatprep.subr.bf16.mxu1 %v13264_v3  ;;  %v13280_v3 = vld [vmem:[#allocation5 + $0x370] ss:$48 sps:$4 sm:$0xff]  }
 0x1b0   : > { %11031 = vmatpush3.bf16.msra.mxu0 %v13263_v9  ;;  %v13279_v9 = vld [vmem:[#allocation5 + $0xc68] ss:$48 sps:$4 sm:$0xff]  }
 0x1b1   : > { %11095 = vmatpush3.bf16.msra.mxu1 %v13265_v16  ;;  %11032 = vmatprep.subr.bf16.mxu0 %v13266_v20  ;;  %v13281_v16 = vld [vmem:[#allocation5 + $0x70] ss:$48 sps:$4 sm:$0xff]   ;;  %v13282_v20 = vld [vmem:[#allocation5 + $0xfc8] ss:$48 sps:$4 sm:$0xff]  }
 0x1b2   : > { %1814 = vmatmul.mubr.bf16.gmra.mrb[76].mxu0 %v14501_v29  ;;  %11096 = vmatprep.subr.bf16.mxu1 %v13268_v21  ;;  %v13284_v21 = vld [vmem:[#allocation5 + $0x3d0] ss:$48 sps:$4 sm:$0xff]  }
 0x1b3   : > { %1911 = vmatmul.mubr.bf16.gmra.mrb[76].mxu1 %v14631_v31  ;;  %1821 = vmatprep.mubr.bf16.mxu0 %v14510_v38 }
 0x1b4   : > { %1918 = vmatprep.mubr.bf16.mxu1 %v14633_v32  ;;  %11033 = vmatpush3.bf16.msra.mxu0 %v13267_v22  ;;  %v13283_v22 = vld [vmem:[#allocation5 + $0xcc8] ss:$48 sps:$4 sm:$0xff]  }
 0x1b5   : > { %11097 = vmatpush3.bf16.msra.mxu1 %v13269_v24  ;;  %11034 = vmatprep.subr.bf16.mxu0 %v13270_v28  ;;  %v13285_v24 = vld [vmem:[#allocation5 + $0xd0] ss:$48 sps:$4 sm:$0xff]   ;;  %v13286_v28 = vld [vmem:[#allocation5 + $0x1028] ss:$48 sps:$4 sm:$0xff]  }
 0x1b6   : > { %11098 = vmatprep.subr.bf16.mxu1 %v13272_v30  ;;  %v13288_v30 = vld [vmem:[#allocation5 + $0x430] ss:$48 sps:$4 sm:$0xff]  }
 0x1b8   : > { %11035 = vmatpush3.bf16.msra.mxu0 %v13271_v45  ;;  %v13287_v45 = vld [vmem:[#allocation5 + $0xd28] ss:$48 sps:$4 sm:$0xff]  }
 0x1b9   : > { %11099 = vmatpush3.bf16.msra.mxu1 %v13273_v46  ;;  %11148 = vmatprep.subr.bf16.mxu0 %v13274_v51  ;;  %v13289_v46 = vld [vmem:[#allocation5 + $0x130] ss:$48 sps:$4 sm:$0xff]   ;;  %v13290_v51 = vld [vmem:[#allocation5 + $0x1088] ss:$48 sps:$4 sm:$0xff]  }
 0x1ba   : > { %1822 = vmatmul.mubr.bf16.gmra.mrb[80].mxu0 %v14521_v50  ;;  %11212 = vmatprep.subr.bf16.mxu1 %v13276_v54  ;;  %v13291_v54 = vld [vmem:[#allocation5 + $0xd88] ss:$48 sps:$4 sm:$0xff]  }
 0x1bb   : > { %1919 = vmatmul.mubr.bf16.gmra.mrb[80].mxu1 %v14643_v5  ;;  %1829 = vmatprep.mubr.bf16.mxu0 %v14529_v61 }
 0x1bc   : > { %1926 = vmatprep.mubr.bf16.mxu1 %v14645_v13 }
 0x1c2   : > { %1830 = vmatmul.mubr.bf16.gmra.mrb[84].mxu0 %v14544_v14 }
 0x1c3   : > { %1927 = vmatmul.mubr.bf16.gmra.mrb[84].mxu1 %v14655_v25  ;;  %1837 = vmatprep.mubr.bf16.mxu0 %v14549_v17 }
 0x1c4   : > { %1934 = vmatprep.mubr.bf16.mxu1 %v14657_v26 }
 0x1ca   : > { %1838 = vmatmul.mubr.bf16.gmra.mrb[88].mxu0 %v14565_v36 }
 0x1cb   : > { %1935 = vmatmul.mubr.bf16.gmra.mrb[88].mxu1 %v14667_v47  ;;  %1845 = vmatprep.mubr.bf16.mxu0 %v14569_v42 }
 0x1cc   : > { %1942 = vmatprep.mubr.bf16.mxu1 %v14669_v49 }
 0x1d2   : > { %1846 = vmatmul.mubr.bf16.gmra.mrb[92].mxu0 %v14583_v0 }
 0x1d3   : > { %1943 = vmatmul.mubr.bf16.gmra.mrb[92].mxu1 %v14677_v55  ;;  %2367 = vmatprep.mubr.bf16.mxu0 %v14428_v35 }
 0x1d4   : > { %2464 = vmatprep.mubr.bf16.mxu1 %v14433_v39 }
 0x1da   : > { %2368 = vmatmul.mubr.bf16.vlgmr.msra.gmra.mrb[96].mxu0 %v14435_v40 }
 0x1db   : > { %2465 = vmatmul.mubr.bf16.vlgmr.msra.gmra.mrb[96].mxu1 %v14440_v43  ;;  %11149 = vmatpush3.bf16.msra.mxu0 %v13275_v58  ;;  %v13292_v58 = vld [vmem:[#allocation5 + $0x490] ss:$48 sps:$4 sm:$0xff]  }
 0x1dc   : > { %11213 = vmatpush3.bf16.msra.mxu1 %v13277_v60  ;;  %2375 = vmatprep.mubr.bf16.mxu0 %v14449_v52  ;;  %v13293_v60 = vld [vmem:[#allocation5 + $0x190] ss:$48 sps:$4 sm:$0xff]  }
 0x1dd   : > { %2472 = vmatprep.mubr.bf16.mxu1 %v14451_v53  ;;  %11150 = vmatprep.subr.bf16.mxu0 %v13278_v62  ;;  %v13294_v62 = vld [vmem:[#allocation5 + $0x10e8] ss:$48 sps:$4 sm:$0xff]  }
 0x1de   : > { %11214 = vmatprep.subr.bf16.mxu1 %v13280_v3  ;;  %v13296_v3 = vld [vmem:[#allocation5 + $0x4f0] ss:$48 sps:$4 sm:$0xff]  }
 0x1df   : > { %11151 = vmatpush3.bf16.msra.mxu0 %v13279_v9  ;;  %v13295_v9 = vld [vmem:[#allocation5 + $0xde8] ss:$48 sps:$4 sm:$0xff]  }
 0x1e0   : > { %11215 = vmatpush3.bf16.msra.mxu1 %v13281_v16  ;;  %11152 = vmatprep.subr.bf16.mxu0 %v13282_v20  ;;  %v13297_v16 = vld [vmem:[#allocation5 + $0x1f0] ss:$48 sps:$4 sm:$0xff]   ;;  %v13298_v20 = vld [vmem:[#allocation5 + $0x1148] ss:$48 sps:$4 sm:$0xff]  }
 0x1e1   : > { %11216 = vmatprep.subr.bf16.mxu1 %v13284_v21  ;;  %v13300_v21 = vld [vmem:[#allocation5 + $0x550] ss:$48 sps:$4 sm:$0xff]  }
 0x1e2   : > { %2376 = vmatmul.mubr.bf16.gmra.mrb[100].mxu0 %v14456_v57 }
 0x1e3   : > { %2473 = vmatmul.mubr.bf16.gmra.mrb[100].mxu1 %v14461_v59  ;;  %2383 = vmatprep.mubr.bf16.mxu0 %v14467_v2  ;;  %v13301_v59 = vld [vmem:[#allocation5 + $0x250] ss:$48 sps:$4 sm:$0xff]  }
 0x1e4   : > { %2480 = vmatprep.mubr.bf16.mxu1 %v14472_v6  ;;  %11153 = vmatpush3.bf16.msra.mxu0 %v13283_v22  ;;  %v13299_v6 = vld [vmem:[#allocation5 + $0xe48] ss:$48 sps:$4 sm:$0xff]  }
 0x1e5   : > { %11217 = vmatpush3.bf16.msra.mxu1 %v13285_v24  ;;  %11154 = vmatprep.subr.bf16.mxu0 %v13286_v28 }
 0x1e6   : > { %11218 = vmatprep.subr.bf16.mxu1 %v13288_v30 }
 0x1e8   : > { %11155 = vmatpush3.bf16.msra.mxu0 %v13287_v45 }
 0x1e9   : > { %11219 = vmatpush3.bf16.msra.mxu1 %v13289_v46  ;;  %11156 = vmatprep.subr.bf16.mxu0 %v13290_v51 }
 0x1ea   : > { %2384 = vmatmul.mubr.bf16.gmra.mrb[104].mxu0 %v14478_v10  ;;  %11220 = vmatprep.subr.bf16.mxu1 %v13292_v58 }
 0x1eb   : > { %2481 = vmatmul.mubr.bf16.gmra.mrb[104].mxu1 %v14481_v12  ;;  %2391 = vmatprep.mubr.bf16.mxu0 %v14488_v19 }
 0x1ec   : > { %2488 = vmatprep.mubr.bf16.mxu1 %v14493_v23  ;;  %11157 = vmatpush3.bf16.msra.mxu0 %v13291_v54  ;;  %v13302_v54 = vld [vmem:[#allocation5 + $0x11a8] ss:$48 sps:$4 sm:$0xff]   ;;  %v13304_v23 = vld [vmem:[#allocation5 + $0x5b0] ss:$48 sps:$4 sm:$0xff]  }
 0x1ed   : > { %v10652_v22 = vpop.f32.mrb[0].mxu0  ;;  %11221 = vmatpush3.bf16.msra.mxu1 %v13293_v60  ;;  %11158 = vmatprep.subr.bf16.mxu0 %v13294_v62 }
 0x1ee   : > { %v10716_v24 = vpop.f32.mrb[0].mxu1  ;;  %v10653_v28 = vpop.f32.mrb[1].mxu0  ;;  %11222 = vmatprep.subr.bf16.mxu1 %v13296_v3  ;;  %v13303_v3 = vld [vmem:[#allocation5 + $0xea8] ss:$48 sps:$4 sm:$0xff]  }
 0x1ef   : > { %v10654_v30 = vadd.f32 %v10653_v28, %v10652_v22  ;;  %v10717_v45 = vpop.f32.mrb[1].mxu1  ;;  %v10655_v46 = vpop.f32.mrb[2].mxu0 }
 0x1f0   : > { %v10718_v51 = vadd.f32 %v10717_v45, %v10716_v24  ;;  %v10719_v58 = vpop.f32.mrb[2].mxu1  ;;  %v10656_v12 = vpop.f32.mrb[3].mxu0  ;;  %11159 = vmatpush3.bf16.msra.mxu0 %v13295_v9  ;;  %v13308_v24 = vld [vmem:[#allocation5 + $0xf10] ss:$48 sps:$4 sm:$0xff]  }
 0x1f1   : > { %v10657_v53 = vadd.f32 %v10656_v12, %v10655_v46  ;;  %v10720_v43 = vpop.f32.mrb[3].mxu1  ;;  %11223 = vmatpush3.bf16.msra.mxu1 %v13297_v16  ;;  %11160 = vmatprep.subr.bf16.mxu0 %v13298_v20  ;;  %v13305_v16 = vld [vmem:[#allocation5 + $0x2b0] ss:$48 sps:$4 sm:$0xff]  }
 0x1f2   : > { %v14727_v60 = vadd.f32 %v10718_v51, %v10654_v30  ;;  %v10721_v62 = vadd.f32 %v10720_v43, %v10719_v58  ;;  %2392 = vmatmul.mubr.bf16.gmra.mrb[108].mxu0 %v14499_v27  ;;  %11224 = vmatprep.subr.bf16.mxu1 %v13300_v21  ;;  %v13306_v20 = vld [vmem:[#allocation5 + $0x910] ss:$48 sps:$4 sm:$0xff]  }
 0x1f3   : > { %2489 = vmatmul.mubr.bf16.gmra.mrb[108].mxu1 %v14501_v29  ;;  %2399 = vmatprep.mubr.bf16.mxu0 %v14508_v37 }
 0x1f4   : > { %v14732_v9 = vadd.f32 %v10721_v62, %v10657_v53  ;;  %2496 = vmatprep.mubr.bf16.mxu1 %v14510_v38  ;;  %11161 = vmatpush3.bf16.msra.mxu0 %v13299_v6 }
 0x1f5   : > { %v10658_v12 = vpop.f32.mrb[4].mxu0  ;;  %11225 = vmatpush3.bf16.msra.mxu1 %v13301_v59  ;;  %11162 = vmatprep.subr.bf16.mxu0 %v13302_v54 }
 0x1f6   : > { %v10722_v22 = vpop.f32.mrb[4].mxu1  ;;  %v10659_v43 = vpop.f32.mrb[5].mxu0  ;;  %11226 = vmatprep.subr.bf16.mxu1 %v13304_v23 }
 0x1f7   : > { %v10660_v21 = vadd.f32 %v10659_v43, %v10658_v12  ;;  %v10723_v28 = vpop.f32.mrb[5].mxu1  ;;  %v10661_v30 = vpop.f32.mrb[6].mxu0 }
 0x1f8   : > { %v10724_v45 = vadd.f32 %v10723_v28, %v10722_v22  ;;  %v10725_v46 = vpop.f32.mrb[6].mxu1  ;;  %v10662_v51 = vpop.f32.mrb[7].mxu0  ;;  %11163 = vmatpush3.bf16.msra.mxu0 %v13303_v3 }
 0x1f9   : > { %v10663_v53 = vadd.f32 %v10662_v51, %v10661_v30  ;;  %v10726_v58 = vpop.f32.mrb[7].mxu1  ;;  %11227 = vmatpush3.bf16.msra.mxu1 %v13305_v16  ;;  %11276 = vmatprep.subr.bf16.mxu0 %v13306_v20 }
 0x1fa   : > { %v14735_v6 = vadd.f32 %v10724_v45, %v10660_v21  ;;  %v10727_v59 = vadd.f32 %v10726_v58, %v10725_v46  ;;  %2400 = vmatmul.mubr.bf16.gmra.mrb[112].mxu0 %v14519_v48  ;;  %11340 = vmatprep.subr.bf16.mxu1 %v13308_v24 }
 0x1fb   : > { %2497 = vmatmul.mubr.bf16.gmra.mrb[112].mxu1 %v14521_v50  ;;  %2407 = vmatprep.mubr.bf16.mxu0 %v14525_v56  ;;  %v13314_v50 = vld [vmem:[#allocation5 + $0x9d0] ss:$48 sps:$4 sm:$0xff]  }
 0x1fc   : > { %v14740_v23 = vadd.f32 %v10727_v59, %v10663_v53  ;;  %2504 = vmatprep.mubr.bf16.mxu1 %v14529_v61  ;;  %v13311_v61 = vld [vmem:[#allocation5 + $0x670] ss:$48 sps:$4 sm:$0xff]  }
 0x1fd   : > { %v10664_v54 = vpop.f32.mrb[8].mxu0 }
 0x1fe   : > { %v10728_v62 = vpop.f32.mrb[8].mxu1  ;;  %v10665_v3 = vpop.f32.mrb[9].mxu0 }
 0x1ff   : > { %v10666_v12 = vadd.f32 %v10665_v3, %v10664_v54  ;;  %v10729_v16 = vpop.f32.mrb[9].mxu1  ;;  %v10667_v20 = vpop.f32.mrb[10].mxu0 }
 0x200   : > { %v10730_v22 = vadd.f32 %v10729_v16, %v10728_v62  ;;  %v10731_v43 = vpop.f32.mrb[10].mxu1  ;;  %v10668_v21 = vpop.f32.mrb[11].mxu0 }
 0x201   : > { %v10669_v28 = vadd.f32 %v10668_v21, %v10667_v20  ;;  %v10732_v30 = vpop.f32.mrb[11].mxu1 }
 0x202   : > { %v14743_v24 = vadd.f32 %v10730_v22, %v10666_v12  ;;  %v10733_v45 = vadd.f32 %v10732_v30, %v10731_v43  ;;  %2408 = vmatmul.mubr.bf16.gmra.mrb[116].mxu0 %v14539_v8 }
 0x203   : > { %2505 = vmatmul.mubr.bf16.gmra.mrb[116].mxu1 %v14544_v14  ;;  %2415 = vmatprep.mubr.bf16.mxu0 %v14546_v15 }
 0x204   : > { %v14748_v46 = vadd.f32 %v10733_v45, %v10669_v28  ;;  %2512 = vmatprep.mubr.bf16.mxu1 %v14549_v17  ;;  %v13312_v17 = vld [vmem:[#allocation5 + $0xf70] ss:$48 sps:$4 sm:$0xff]  }
 0x205   : > { %v10670_v51 = vpop.f32.mrb[12].mxu0 }
 0x206   : > { %v10734_v53 = vpop.f32.mrb[12].mxu1  ;;  %v10671_v58 = vpop.f32.mrb[13].mxu0 }
 0x207   : > { %v10672_v59 = vadd.f32 %v10671_v58, %v10670_v51  ;;  %v10735_v54 = vpop.f32.mrb[13].mxu1  ;;  %v10673_v62 = vpop.f32.mrb[14].mxu0 }
 0x208   : > { %v10736_v3 = vadd.f32 %v10735_v54, %v10734_v53  ;;  %v10737_v12 = vpop.f32.mrb[14].mxu1  ;;  %v10674_v16 = vpop.f32.mrb[15].mxu0 }
 0x209   : > { %v10675_v20 = vadd.f32 %v10674_v16, %v10673_v62  ;;  %v10738_v22 = vpop.f32.mrb[15].mxu1 }
 0x20a   : > { %v14751_v43 = vadd.f32 %v10736_v3, %v10672_v59  ;;  %v10739_v21 = vadd.f32 %v10738_v22, %v10737_v12  ;;  %2416 = vmatmul.mubr.bf16.gmra.mrb[120].mxu0 %v14563_v34 }
 0x20b   : > { %2513 = vmatmul.mubr.bf16.gmra.mrb[120].mxu1 %v14565_v36  ;;  %2423 = vmatprep.mubr.bf16.mxu0 %v14567_v41 }
 0x20c   : > { %v14756_v28 = vadd.f32 %v10739_v21, %v10675_v20  ;;  %2520 = vmatprep.mubr.bf16.mxu1 %v14569_v42 }
 0x20d   : > { %v10676_v30 = vpop.f32.mrb[16].mxu0 }
 0x20e   : > { %v10740_v45 = vpop.f32.mrb[16].mxu1  ;;  %v10677_v51 = vpop.f32.mrb[17].mxu0 }
 0x20f   : > { %v10678_v53 = vadd.f32 %v10677_v51, %v10676_v30  ;;  %v10741_v58 = vpop.f32.mrb[17].mxu1  ;;  %v10679_v54 = vpop.f32.mrb[18].mxu0  ;;  %v13307_v51 = vld [vmem:[#allocation5 + $0x610] ss:$48 sps:$4 sm:$0xff]  }
 0x210   : > { %v10742_v62 = vadd.f32 %v10741_v58, %v10740_v45  ;;  %v10743_v59 = vpop.f32.mrb[18].mxu1  ;;  %v10680_v3 = vpop.f32.mrb[19].mxu0  ;;  %v13309_v58 = vld [vmem:[#allocation5 + $0xc10] ss:$48 sps:$4 sm:$0xff]  }
 0x211   : > { %v10681_v12 = vadd.f32 %v10680_v3, %v10679_v54  ;;  %v10744_v16 = vpop.f32.mrb[19].mxu1 }
 0x212   : > { %v14759_v22 = vadd.f32 %v10742_v62, %v10678_v53  ;;  %v10745_v36 = vadd.f32 %v10744_v16, %v10743_v59  ;;  %2424 = vmatmul.mubr.bf16.gmra.mrb[124].mxu0 %v14581_v63  ;;  %v13310_v62 = vld [vmem:[#allocation5 + $0x970] ss:$48 sps:$4 sm:$0xff]  }
 0x213   : > { %2521 = vmatmul.mubr.bf16.gmra.mrb[124].mxu1 %v14583_v0  ;;  %2561 = vmatprep.mubr.bf16.mxu0 %v14585_v1 }
 0x214   : > { %v14764_v20 = vadd.f32 %v10745_v36, %v10681_v12  ;;  %3300 = vmatprep.mubr.bf16.mxu1 %v14428_v35  ;;  %v13313_v35 = vld [vmem:[#allocation5 + $0xc70] ss:$48 sps:$4 sm:$0xff]  }
 0x215   : > { %v10682_v21 = vpop.f32.mrb[20].mxu0 }
 0x216   : > { %v10746_v30 = vpop.f32.mrb[20].mxu1  ;;  %v10683_v45 = vpop.f32.mrb[21].mxu0 }
 0x217   : > { %v10684_v54 = vadd.f32 %v10683_v45, %v10682_v21  ;;  %v10747_v3 = vpop.f32.mrb[21].mxu1  ;;  %v10685_v53 = vpop.f32.mrb[22].mxu0 }
 0x218   : > { %v10748_v59 = vadd.f32 %v10747_v3, %v10746_v30  ;;  %v10749_v16 = vpop.f32.mrb[22].mxu1  ;;  %v10686_v42 = vpop.f32.mrb[23].mxu0 }
 0x219   : > { %v10687_v0 = vadd.f32 %v10686_v42, %v10685_v53  ;;  %v10750_v14 = vpop.f32.mrb[23].mxu1  ;;  %v13316_v42 = vld [vmem:[#allocation5 + $0xfd0] ss:$48 sps:$4 sm:$0xff]  }
 0x21a   : > { %v14767_v36 = vadd.f32 %v10748_v59, %v10684_v54  ;;  %v10751_v12 = vadd.f32 %v10750_v14, %v10749_v16  ;;  %2562 = vmatmul.mubr.bf16.vlgmr.msra.gmra.mrb[128].mxu0 %v14595_v11  ;;  %v13315_v14 = vld [vmem:[#allocation5 + $0x6d0] ss:$48 sps:$4 sm:$0xff]  }
 0x21b   : > { %3301 = vmatmul.mubr.bf16.vlgmr.msra.gmra.mrb[128].mxu1 %v14435_v40  ;;  %11277 = vmatpush3.bf16.msra.mxu0 %v13307_v51  ;;  %v13317_v16 = vld [vmem:[#allocation5 + $0xcd0] ss:$48 sps:$4 sm:$0xff]  }
 0x21c   : > { %v14771_v21 = vadd.f32 %v10751_v12, %v10687_v0  ;;  %11341 = vmatpush3.bf16.msra.mxu1 %v13309_v58  ;;  %2569 = vmatprep.mubr.bf16.mxu0 %v14597_v18  ;;  %v13318_v51 = vld [vmem:[#allocation5 + $0xa30] ss:$48 sps:$4 sm:$0xff]  }
 0x21d   : > { %v10688_v30 = vpop.f32.mrb[24].mxu0  ;;  %3308 = vmatprep.mubr.bf16.mxu1 %v14449_v52  ;;  %11278 = vmatprep.subr.bf16.mxu0 %v13310_v62  ;;  %v13320_v40 = vld [vmem:[#allocation5 + $0x1030] ss:$48 sps:$4 sm:$0xff]  }
 0x21e   : > { %v10752_v45 = vpop.f32.mrb[24].mxu1  ;;  %v10689_v54 = vpop.f32.mrb[25].mxu0  ;;  %11342 = vmatprep.subr.bf16.mxu1 %v13312_v17  ;;  %v13319_v17 = vld [vmem:[#allocation5 + $0x730] ss:$48 sps:$4 sm:$0xff]  }
 0x21f   : > { %v10690_v3 = vadd.f32 %v10689_v54, %v10688_v30  ;;  %v10753_v53 = vpop.f32.mrb[25].mxu1  ;;  %v10691_v59 = vpop.f32.mrb[26].mxu0  ;;  %11279 = vmatpush3.bf16.msra.mxu0 %v13311_v61  ;;  %v13322_v30 = vld [vmem:[#allocation5 + $0xa90] ss:$48 sps:$4 sm:$0xff]  }
 0x220   : > { %v10754_v0 = vadd.f32 %v10753_v53, %v10752_v45  ;;  %v10755_v12 = vpop.f32.mrb[26].mxu1  ;;  %v10692_v58 = vpop.f32.mrb[27].mxu0  ;;  %11343 = vmatpush3.bf16.msra.mxu1 %v13313_v35  ;;  %11280 = vmatprep.subr.bf16.mxu0 %v13314_v50  ;;  %v13321_v50 = vld [vmem:[#allocation5 + $0xd30] ss:$48 sps:$4 sm:$0xff]  }
 0x221   : > { %v10693_v38 = vadd.f32 %v10692_v58, %v10691_v59  ;;  %v10756_v52 = vpop.f32.mrb[27].mxu1  ;;  %11344 = vmatprep.subr.bf16.mxu1 %v13316_v42  ;;  %v13324_v54 = vld [vmem:[#allocation5 + $0x1090] ss:$48 sps:$4 sm:$0xff]  }
 0x222   : > { %v14775_v62 = vadd.f32 %v10754_v0, %v10690_v3  ;;  %v10757_v29 = vadd.f32 %v10756_v52, %v10755_v12  ;;  %2570 = vmatmul.mubr.bf16.gmra.mrb[132].mxu0 %v14607_v33  ;;  %v13323_v52 = vld [vmem:[#allocation5 + $0x790] ss:$48 sps:$4 sm:$0xff]  }
 0x223   : > { %3309 = vmatmul.mubr.bf16.gmra.mrb[132].mxu1 %v14456_v57  ;;  %2577 = vmatprep.mubr.bf16.mxu0 %v14609_v44  ;;  %v13325_v0 = vld [vmem:[#allocation5 + $0xd90] ss:$48 sps:$4 sm:$0xff]  }
 0x224   : > { %v14780_v61 = vadd.f32 %v10757_v29, %v10693_v38  ;;  %3316 = vmatprep.mubr.bf16.mxu1 %v14467_v2  ;;  %11281 = vmatpush3.bf16.msra.mxu0 %v13315_v14  ;;  %v13326_v12 = vld [vmem:[#allocation5 + $0xaf0] ss:$48 sps:$4 sm:$0xff]  }
 0x225   : > { %v10694_v35 = vpop.f32.mrb[28].mxu0  ;;  %11345 = vmatpush3.bf16.msra.mxu1 %v13317_v16  ;;  %11282 = vmatprep.subr.bf16.mxu0 %v13318_v51  ;;  %v13328_v14 = vld [vmem:[#allocation5 + $0x10f0] ss:$48 sps:$4 sm:$0xff]  }
 0x226   : > { %v10758_v42 = vpop.f32.mrb[28].mxu1  ;;  %v10695_v45 = vpop.f32.mrb[29].mxu0  ;;  %11346 = vmatprep.subr.bf16.mxu1 %v13320_v40  ;;  %v13327_v40 = vld [vmem:[#allocation5 + $0x7f0] ss:$48 sps:$4 sm:$0xff]  }
 0x227   : > { %v10696_v3 = vadd.f32 %v10695_v45, %v10694_v35  ;;  %v10759_v53 = vpop.f32.mrb[29].mxu1  ;;  %v10697_v59 = vpop.f32.mrb[30].mxu0  ;;  %v565_v35 = vlaneseq }
 0x228   : > { %v10760_v29 = vadd.f32 %v10759_v53, %v10758_v42  ;;  %v10761_v38 = vpop.f32.mrb[30].mxu1  ;;  %v10698_v58 = vpop.f32.mrb[31].mxu0  ;;  %11283 = vmatpush3.bf16.msra.mxu0 %v13319_v17  ;;  %v13332_v53 = vld [vmem:[#allocation5 + $0x1150] ss:$48 sps:$4 sm:$0xff]  }
 0x229   : > { %v10699_v2 = vadd.f32 %v10698_v58, %v10697_v59  ;;  %v10762_v16 = vpop.f32.mrb[31].mxu1  ;;  %11347 = vmatpush3.bf16.msra.mxu1 %v13321_v50  ;;  %11284 = vmatprep.subr.bf16.mxu0 %v13322_v30  ;;  %v13329_v50 = vld [vmem:[#allocation5 + $0xdf0] ss:$48 sps:$4 sm:$0xff]   ;;  %v14791_v59 = vshrl.u32 %v565_v35, 7 }
 0x22a   : > { %v14783_v51 = vadd.f32 %v10760_v29, %v10696_v3  ;;  %v10763_v57 = vadd.f32 %v10762_v16, %v10761_v38  ;;  %2578 = vmatmul.mubr.bf16.gmra.mrb[136].mxu0 %v14619_v4  ;;  %11348 = vmatprep.subr.bf16.mxu1 %v13324_v54  ;;  %v13330_v30 = vld [vmem:[#allocation5 + $0xb50] ss:$48 sps:$4 sm:$0xff]  }
 0x22b   : > { %3317 = vmatmul.mubr.bf16.gmra.mrb[136].mxu1 %v14478_v10  ;;  %2585 = vmatprep.mubr.bf16.mxu0 %v14621_v7  ;;  %v13331_v54 = vld [vmem:[#allocation5 + $0x850] ss:$48 sps:$4 sm:$0xff]   ;;  %17021 = vst [vmem:[#allocation66_spill] sm:$0xff] %v14791_v59  ;;  %vm1355_vm0 = vcmp.lt.s32.totalorder %v14791_v59, 7  ;;  %vm2642_vm1 = vcmp.lt.s32.totalorder %v14791_v59, 6 }
 0x22c   : > { %v14788_v42 = vadd.f32 %v10763_v57, %v10699_v2  ;;  %3324 = vmatprep.mubr.bf16.mxu1 %v14488_v19  ;;  %11285 = vmatpush3.bf16.msra.mxu0 %v13323_v52  ;;  %v13333_v57 = vld [vmem:[#allocation5 + $0xe50] ss:$48 sps:$4 sm:$0xff]  }
 0x22d   : > { %v10780_v17 = vpop.f32.mrb[32].mxu0  ;;  %11349 = vmatpush3.bf16.msra.mxu1 %v13325_v0  ;;  %11286 = vmatprep.subr.bf16.mxu0 %v13326_v12  ;;  %v13334_v2 = vld [vmem:[#allocation5 + $0xbb0] ss:$48 sps:$4 sm:$0xff]  }
 0x22e   : > { %v10844_v45 = vpop.f32.mrb[32].mxu1  ;;  %v10781_v3 = vpop.f32.mrb[33].mxu0  ;;  %11350 = vmatprep.subr.bf16.mxu1 %v13328_v14  ;;  %v13336_v0 = vld [vmem:[#allocation5 + $0x11b0] ss:$48 sps:$4 sm:$0xff]  }
 0x22f   : > { %v10782_v29 = vadd.f32 %v10781_v3, %v10780_v17  ;;  %v10845_v38 = vpop.f32.mrb[33].mxu1  ;;  %v10783_v58 = vpop.f32.mrb[34].mxu0  ;;  %v13335_v17 = vld [vmem:[#allocation5 + $0x8b0] ss:$48 sps:$4 sm:$0xff]  }
 0x230   : > { %v10846_v16 = vadd.f32 %v10845_v38, %v10844_v45  ;;  %v10847_v19 = vpop.f32.mrb[34].mxu1  ;;  %v10784_v52 = vpop.f32.mrb[35].mxu0  ;;  %11287 = vmatpush3.bf16.msra.mxu0 %v13327_v40  ;;  %v13338_v45 = vld [vmem:[#allocation5 + $0x30c] ss:$48 sps:$4 sm:$0xff]  }
 0x231   : > { %v14794_v12 = vadd.f32 %v10782_v29, %v14727_v60  ;;  %v10785_v10 = vadd.f32 %v10784_v52, %v10783_v58  ;;  %v10848_v7 = vpop.f32.mrb[35].mxu1  ;;  %11351 = vmatpush3.bf16.msra.mxu1 %v13329_v50  ;;  %11288 = vmatprep.subr.bf16.mxu0 %v13330_v30  ;;  %v13337_v60 = vld [vmem:[#allocation5 + $0xeb0] ss:$48 sps:$4 sm:$0xff]  }
 0x232   : > { %v10849_v14 = vadd.f32 %v10848_v7, %v10847_v19  ;;  %2586 = vmatmul.mubr.bf16.gmra.mrb[140].mxu0 %v14631_v31  ;;  %11352 = vmatprep.subr.bf16.mxu1 %v13332_v53 }
 0x233   : > { %v1280_v35 = vadd.f32 %v10785_v10, %v14732_v9  ;;  %3325 = vmatmul.mubr.bf16.gmra.mrb[140].mxu1 %v14499_v27  ;;  %2593 = vmatprep.mubr.bf16.mxu0 %v14633_v32  ;;  %v16799_v40 = vrot.slane %v14794_v12, 1  ;;  %v13340_v9 = vld [vmem:[#allocation5 + $0x90c] ss:$48 sps:$4 sm:$0xff]  }
 0x234   : > { %3332 = vmatprep.mubr.bf16.mxu1 %v14508_v37  ;;  %11289 = vmatpush3.bf16.msra.mxu0 %v13331_v54 }
 0x235   : > { %v1340_v19 = vrot.slane %v1280_v35, 1  ;;  %v10786_v7 = vpop.f32.mrb[36].mxu0  ;;  %11353 = vmatpush3.bf16.msra.mxu1 %v13333_v57  ;;  %11290 = vmatprep.subr.bf16.mxu0 %v13334_v2 }
 0x236   : > { %v10850_v50 = vpop.f32.mrb[36].mxu1  ;;  %v10787_v10 = vpop.f32.mrb[37].mxu0  ;;  %11354 = vmatprep.subr.bf16.mxu1 %v13336_v0 }
 0x237   : > { %v10788_v30 = vadd.f32 %v10787_v10, %v10786_v7  ;;  %v10851_v3 = vpop.f32.mrb[37].mxu1  ;;  %v10789_v53 = vpop.f32.mrb[38].mxu0  ;;  %v1370_v54 = vsel %vm1355_vm0, %v16799_v40, %v1340_v19 }
 0x238   : > { %v10852_v29 = vadd.f32 %v10851_v3, %v10850_v50  ;;  %v10853_v38 = vpop.f32.mrb[38].mxu1  ;;  %v10790_v58 = vpop.f32.mrb[39].mxu0  ;;  %11291 = vmatpush3.bf16.msra.mxu0 %v13335_v17  ;;  %v14807_v52 = vadd.f32 %v10846_v16, %v1370_v54 }
 0x239   : > { %v1285_v57 = vadd.f32 %v10788_v30, %v14735_v6  ;;  %v10791_v2 = vadd.f32 %v10790_v58, %v10789_v53  ;;  %v10854_v35 = vpop.f32.mrb[39].mxu1  ;;  %11355 = vmatpush3.bf16.msra.mxu1 %v13337_v60  ;;  %11404 = vmatprep.subr.bf16.mxu0 %v13338_v45 }
 0x23a   : > { %v10855_v0 = vadd.f32 %v10854_v35, %v10853_v38  ;;  %2594 = vmatmul.mubr.bf16.gmra.mrb[144].mxu0 %v14643_v5  ;;  %11468 = vmatprep.subr.bf16.mxu1 %v13340_v9 }
 0x23b   : > { %v1341_v7 = vrot.slane %v1285_v57, 1  ;;  %v1288_v10 = vadd.f32 %v10791_v2, %v14740_v23  ;;  %3333 = vmatmul.mubr.bf16.gmra.mrb[144].mxu1 %v14519_v48  ;;  %2601 = vmatprep.mubr.bf16.mxu0 %v14645_v13 }
 0x23c   : > { %3340 = vmatprep.mubr.bf16.mxu1 %v14525_v56 }
 0x23d   : > { %v1342_v16 = vrot.slane %v1288_v10, 1  ;;  %v10792_v17 = vpop.f32.mrb[40].mxu0  ;;  %v1369_v6 = vsel %vm1355_vm0, %v1340_v19, %v1341_v7 }
 0x23e   : > { %v10856_v60 = vpop.f32.mrb[40].mxu1  ;;  %v10793_v45 = vpop.f32.mrb[41].mxu0  ;;  %v14817_v50 = vadd.f32 %v10849_v14, %v1369_v6 }
 0x23f   : > { %v10794_v30 = vadd.f32 %v10793_v45, %v10792_v17  ;;  %v10857_v9 = vpop.f32.mrb[41].mxu1  ;;  %v10795_v3 = vpop.f32.mrb[42].mxu0  ;;  %v1368_v23 = vsel %vm1355_vm0, %v1341_v7, %v1342_v16 }
 0x240   : > { %v10858_v53 = vadd.f32 %v10857_v9, %v10856_v60  ;;  %v10859_v54 = vpop.f32.mrb[42].mxu1  ;;  %v10796_v38 = vpop.f32.mrb[43].mxu0  ;;  %v14821_v58 = vadd.f32 %v10852_v29, %v1368_v23 }
 0x241   : > { %v1293_v57 = vadd.f32 %v10794_v30, %v14743_v24  ;;  %v10797_v2 = vadd.f32 %v10796_v38, %v10795_v3  ;;  %v10860_v35 = vpop.f32.mrb[43].mxu1 }
 0x242   : > { %v10861_v19 = vadd.f32 %v10860_v35, %v10859_v54  ;;  %2602 = vmatmul.mubr.bf16.gmra.mrb[148].mxu0 %v14655_v25 }
 0x243   : > { %v1343_v14 = vrot.slane %v1293_v57, 1  ;;  %v1296_v10 = vadd.f32 %v10797_v2, %v14748_v46  ;;  %3341 = vmatmul.mubr.bf16.gmra.mrb[148].mxu1 %v14539_v8  ;;  %2609 = vmatprep.mubr.bf16.mxu0 %v14657_v26 }
 0x244   : > { %3348 = vmatprep.mubr.bf16.mxu1 %v14546_v15  ;;  %v17030_v15 = vld [vmem:[#allocation38_spill] sm:$0xff] }
 0x245   : > { %v1344_v7 = vrot.slane %v1296_v10, 1  ;;  %v10798_v17 = vpop.f32.mrb[44].mxu0  ;;  %v1367_v29 = vsel %vm1355_vm0, %v1342_v16, %v1343_v14 }
 0x246   : > { %v10862_v24 = vpop.f32.mrb[44].mxu1  ;;  %v10799_v6 = vpop.f32.mrb[45].mxu0  ;;  %v14831_v60 = vadd.f32 %v10855_v0, %v1367_v29 }
 0x247   : > { %v10800_v45 = vadd.f32 %v10799_v6, %v10798_v17  ;;  %v10863_v30 = vpop.f32.mrb[45].mxu1  ;;  %v10801_v9 = vpop.f32.mrb[46].mxu0  ;;  %v1366_v46 = vsel %vm1355_vm0, %v1343_v14, %v1344_v7 }
 0x248   : > { %v10864_v3 = vadd.f32 %v10863_v30, %v10862_v24  ;;  %v10865_v23 = vpop.f32.mrb[46].mxu1  ;;  %v10802_v54 = vpop.f32.mrb[47].mxu0  ;;  %v14835_v38 = vadd.f32 %v10858_v53, %v1366_v46 }
 0x249   : > { %v1301_v57 = vadd.f32 %v10800_v45, %v14751_v43  ;;  %v10803_v2 = vadd.f32 %v10802_v54, %v10801_v9  ;;  %v10866_v35 = vpop.f32.mrb[47].mxu1 }
 0x24a   : > { %v10867_v16 = vadd.f32 %v10866_v35, %v10865_v23  ;;  %2610 = vmatmul.mubr.bf16.gmra.mrb[152].mxu0 %v14667_v47 }
 0x24b   : > { %v1345_v0 = vrot.slane %v1301_v57, 1  ;;  %v1304_v10 = vadd.f32 %v10803_v2, %v14756_v28  ;;  %3349 = vmatmul.mubr.bf16.gmra.mrb[152].mxu1 %v14563_v34  ;;  %2617 = vmatprep.mubr.bf16.mxu0 %v14669_v49 }
 0x24c   : > { %3356 = vmatprep.mubr.bf16.mxu1 %v14567_v41 }
 0x24d   : > { %v1346_v14 = vrot.slane %v1304_v10, 1  ;;  %v10804_v17 = vpop.f32.mrb[48].mxu0  ;;  %v1365_v53 = vsel %vm1355_vm0, %v1344_v7, %v1345_v0 }
 0x24e   : > { %v10868_v43 = vpop.f32.mrb[48].mxu1  ;;  %v10805_v29 = vpop.f32.mrb[49].mxu0  ;;  %v14845_v24 = vadd.f32 %v10861_v19, %v1365_v53 }
 0x24f   : > { %v10806_v6 = vadd.f32 %v10805_v29, %v10804_v17  ;;  %v10869_v45 = vpop.f32.mrb[49].mxu1  ;;  %v10807_v30 = vpop.f32.mrb[50].mxu0  ;;  %v1364_v28 = vsel %vm1355_vm0, %v1345_v0, %v1346_v14  ;;  %v13341_v29 = vld [vmem:[#allocation5 + $0x60c] ss:$48 sps:$4 sm:$0xff]  }
 0x250   : > { %v10870_v9 = vadd.f32 %v10869_v45, %v10868_v43  ;;  %v10871_v46 = vpop.f32.mrb[50].mxu1  ;;  %v10808_v23 = vpop.f32.mrb[51].mxu0  ;;  %v14849_v54 = vadd.f32 %v10864_v3, %v1364_v28  ;;  %v13339_v3 = vld [vmem:[#allocation5 + $0xc] ss:$48 sps:$4 sm:$0xff]  }
 0x251   : > { %v1309_v57 = vadd.f32 %v10806_v6, %v14759_v22  ;;  %v10809_v2 = vadd.f32 %v10808_v23, %v10807_v30  ;;  %v10872_v35 = vpop.f32.mrb[51].mxu1  ;;  %v13342_v28 = vld [vmem:[#allocation5 + $0x36c] ss:$48 sps:$4 sm:$0xff]  }
 0x252   : > { %v10873_v7 = vadd.f32 %v10872_v35, %v10871_v46  ;;  %2618 = vmatmul.mubr.bf16.gmra.mrb[156].mxu0 %v14677_v55  ;;  %v13344_v35 = vld [vmem:[#allocation5 + $0x96c] ss:$48 sps:$4 sm:$0xff]  }
 0x253   : > { %v1347_v19 = vrot.slane %v1309_v57, 1  ;;  %v1312_v10 = vadd.f32 %v10809_v2, %v14764_v20  ;;  %3357 = vmatmul.mubr.bf16.gmra.mrb[156].mxu1 %v14581_v63  ;;  %3397 = vmatprep.mubr.bf16.mxu0 %v14433_v39  ;;  %v13343_v63 = vld [vmem:[#allocation5 + $0x6c] ss:$48 sps:$4 sm:$0xff]  }
 0x254   : > { %3494 = vmatprep.mubr.bf16.mxu1 %v14585_v1 }
 0x255   : > { %v1348_v0 = vrot.slane %v1312_v10, 1  ;;  %v10810_v17 = vpop.f32.mrb[52].mxu0  ;;  %v1363_v22 = vsel %vm1355_vm0, %v1346_v14, %v1347_v19 }
 0x256   : > { %v10874_v53 = vpop.f32.mrb[52].mxu1  ;;  %v10811_v43 = vpop.f32.mrb[53].mxu0  ;;  %v14859_v6 = vadd.f32 %v10867_v16, %v1363_v22  ;;  %v17022_v22 = vld [vmem:[#allocation26_spill] sm:$0xff] }
 0x257   : > { %v10812_v45 = vadd.f32 %v10811_v43, %v10810_v17  ;;  %v10875_v30 = vpop.f32.mrb[53].mxu1  ;;  %v10813_v20 = vpop.f32.mrb[54].mxu0  ;;  %v1362_v46 = vsel %vm1355_vm0, %v1347_v19, %v1348_v0  ;;  %v17023_v19 = vld [vmem:[#allocation28_spill] sm:$0xff] }
 0x258   : > { %v10876_v23 = vadd.f32 %v10875_v30, %v10874_v53  ;;  %v10877_v57 = vpop.f32.mrb[54].mxu1  ;;  %v10814_v2 = vpop.f32.mrb[55].mxu0  ;;  %v14863_v10 = vadd.f32 %v10870_v9, %v1362_v46  ;;  %v13345_v53 = vld [vmem:[#allocation5 + $0x66c] ss:$48 sps:$4 sm:$0xff]  }
 0x259   : > { %v1317_v14 = vadd.f32 %v10812_v45, %v14767_v36  ;;  %v10815_v40 = vadd.f32 %v10814_v2, %v10813_v20  ;;  %v10878_v1 = vpop.f32.mrb[55].mxu1  ;;  %v13346_v9 = vld [vmem:[#allocation5 + $0x3cc] ss:$48 sps:$4 sm:$0xff]  }
 0x25a   : > { %v10879_v16 = vadd.f32 %v10878_v1, %v10877_v57  ;;  %3398 = vmatmul.mubr.bf16.vlgmr.msra.gmra.mrb[160].mxu0 %v17022_v22  ;;  %v13348_v30 = vld [vmem:[#allocation5 + $0x9cc] ss:$48 sps:$4 sm:$0xff]  }
 0x25b   : > { %v1349_v17 = vrot.slane %v1317_v14, 1  ;;  %v1320_v43 = vadd.f32 %v10815_v40, %v14771_v21  ;;  %3495 = vmatmul.mubr.bf16.vlgmr.msra.gmra.mrb[160].mxu1 %v14595_v11  ;;  %11405 = vmatpush3.bf16.msra.mxu0 %v13339_v3  ;;  %v13347_v21 = vld [vmem:[#allocation5 + $0xcc] ss:$48 sps:$4 sm:$0xff]  }
 0x25c   : > { %11469 = vmatpush3.bf16.msra.mxu1 %v13341_v29  ;;  %3405 = vmatprep.mubr.bf16.mxu0 %v17023_v19  ;;  %v13349_v2 = vld [vmem:[#allocation5 + $0x6cc] ss:$48 sps:$4 sm:$0xff]  }
 0x25d   : > { %v1350_v46 = vrot.slane %v1320_v43, 1  ;;  %v10816_v36 = vpop.f32.mrb[56].mxu0  ;;  %3502 = vmatprep.mubr.bf16.mxu1 %v14597_v18  ;;  %11406 = vmatprep.subr.bf16.mxu0 %v13342_v28  ;;  %v1361_v1 = vsel %vm1355_vm0, %v1348_v0, %v1349_v17  ;;  %v13350_v14 = vld [vmem:[#allocation5 + $0x42c] ss:$48 sps:$4 sm:$0xff]  }
 0x25e   : > { %v10880_v45 = vpop.f32.mrb[56].mxu1  ;;  %v10817_v20 = vpop.f32.mrb[57].mxu0  ;;  %11470 = vmatprep.subr.bf16.mxu1 %v13344_v35  ;;  %v14873_v40 = vadd.f32 %v10873_v7, %v1361_v1  ;;  %v13352_v0 = vld [vmem:[#allocation5 + $0xa2c] ss:$48 sps:$4 sm:$0xff]  }
 0x25f   : > { %v10818_v3 = vadd.f32 %v10817_v20, %v10816_v36  ;;  %v10881_v29 = vpop.f32.mrb[57].mxu1  ;;  %v10819_v57 = vpop.f32.mrb[58].mxu0  ;;  %11407 = vmatpush3.bf16.msra.mxu0 %v13343_v63  ;;  %v1360_v43 = vsel %vm1355_vm0, %v1349_v17, %v1350_v46  ;;  %v17024_v63 = vld [vmem:[#allocation30_spill] sm:$0xff]  ;;  %v17025_v17 = vld [vmem:[#allocation32_spill] sm:$0xff] }
 0x260   : > { %v10882_v18 = vadd.f32 %v10881_v29, %v10880_v45  ;;  %v10883_v28 = vpop.f32.mrb[58].mxu1  ;;  %v10820_v11 = vpop.f32.mrb[59].mxu0  ;;  %11471 = vmatpush3.bf16.msra.mxu1 %v13345_v53  ;;  %11408 = vmatprep.subr.bf16.mxu0 %v13346_v9  ;;  %v14877_v41 = vadd.f32 %v10876_v23, %v1360_v43  ;;  %v13351_v23 = vld [vmem:[#allocation5 + $0x12c] ss:$48 sps:$4 sm:$0xff]  }
 0x261   : > { %v1325_v7 = vadd.f32 %v10818_v3, %v14775_v62  ;;  %v10821_v35 = vadd.f32 %v10820_v11, %v10819_v57  ;;  %v10884_v36 = vpop.f32.mrb[59].mxu1  ;;  %11472 = vmatprep.subr.bf16.mxu1 %v13348_v30  ;;  %v13353_v53 = vld [vmem:[#allocation5 + $0x72c] ss:$48 sps:$4 sm:$0xff]  }
 0x262   : > { %v10885_v1 = vadd.f32 %v10884_v36, %v10883_v28  ;;  %3406 = vmatmul.mubr.bf16.gmra.mrb[164].mxu0 %v17024_v63  ;;  %v13354_v9 = vld [vmem:[#allocation5 + $0x48c] ss:$48 sps:$4 sm:$0xff]  }
 0x263   : > { %v1351_v20 = vrot.slane %v1325_v7, 1  ;;  %v1328_v34 = vadd.f32 %v10821_v35, %v14780_v61  ;;  %3503 = vmatmul.mubr.bf16.gmra.mrb[164].mxu1 %v14607_v33  ;;  %3413 = vmatprep.mubr.bf16.mxu0 %v17025_v17  ;;  %v13355_v61 = vld [vmem:[#allocation5 + $0x18c] ss:$48 sps:$4 sm:$0xff]  }
 0x264   : > { %3510 = vmatprep.mubr.bf16.mxu1 %v14609_v44  ;;  %11409 = vmatpush3.bf16.msra.mxu0 %v13347_v21  ;;  %v13356_v29 = vld [vmem:[#allocation5 + $0xa8c] ss:$48 sps:$4 sm:$0xff]  }
 0x265   : > { %v1352_v62 = vrot.slane %v1328_v34, 1  ;;  %v10822_v11 = vpop.f32.mrb[60].mxu0  ;;  %11473 = vmatpush3.bf16.msra.mxu1 %v13349_v2  ;;  %11410 = vmatprep.subr.bf16.mxu0 %v13350_v14  ;;  %v1359_v30 = vsel %vm1355_vm0, %v1350_v46, %v1351_v20  ;;  %v13357_v7 = vld [vmem:[#allocation5 + $0x78c] ss:$48 sps:$4 sm:$0xff]  }
 0x266   : > { %v10886_v45 = vpop.f32.mrb[60].mxu1  ;;  %v10823_v3 = vpop.f32.mrb[61].mxu0  ;;  %11474 = vmatprep.subr.bf16.mxu1 %v13352_v0  ;;  %v14887_v57 = vadd.f32 %v10879_v16, %v1359_v30  ;;  %v13358_v35 = vld [vmem:[#allocation5 + $0x4ec] ss:$48 sps:$4 sm:$0xff]  }
 0x267   : > { %v10824_v43 = vadd.f32 %v10823_v3, %v10822_v11  ;;  %v10887_v28 = vpop.f32.mrb[61].mxu1  ;;  %v10825_v21 = vpop.f32.mrb[62].mxu0  ;;  %v1358_v34 = vsel %vm1355_vm0, %v1351_v20, %v1352_v62  ;;  %v13360_v46 = vld [vmem:[#allocation5 + $0xaec] ss:$48 sps:$4 sm:$0xff]  }
 0x268   : > { %v10888_v2 = vadd.f32 %v10887_v28, %v10886_v45  ;;  %v10889_v14 = vpop.f32.mrb[62].mxu1  ;;  %v10826_v36 = vpop.f32.mrb[63].mxu0  ;;  %11411 = vmatpush3.bf16.msra.mxu0 %v13351_v23  ;;  %v14891_v44 = vadd.f32 %v10882_v18, %v1358_v34  ;;  %v17026_v30 = vld [vmem:[#allocation34_spill] sm:$0xff]  ;;  %v17027_v45 = vld [vmem:[#allocation36_spill] sm:$0xff]  ;;  %v17028_v23 = vld [vmem:[#allocation61_spill] sm:$0xff] }
 0x269   : > { %v1333_v0 = vadd.f32 %v10824_v43, %v14783_v51  ;;  %v10827_v33 = vadd.f32 %v10826_v36, %v10825_v21  ;;  %v10890_v16 = vpop.f32.mrb[63].mxu1  ;;  %11475 = vmatpush3.bf16.msra.mxu1 %v13353_v53  ;;  %11412 = vmatprep.subr.bf16.mxu0 %v13354_v9  ;;  %v13359_v18 = vld [vmem:[#allocation5 + $0x1ec] ss:$48 sps:$4 sm:$0xff]  }
 0x26a   : > { %v10891_v11 = vadd.f32 %v10890_v16, %v10889_v14  ;;  %3414 = vmatmul.mubr.bf16.gmra.mrb[168].mxu0 %v17026_v30  ;;  %11476 = vmatprep.subr.bf16.mxu1 %v13356_v29  ;;  %v13361_v51 = vld [vmem:[#allocation5 + $0x7ec] ss:$48 sps:$4 sm:$0xff]   ;;  %v17029_v14 = vrot.slane %v14794_v12, 1 }
 0x26b   : > { %v1353_v3 = vrot.slane %v1333_v0, 1  ;;  %v1336_v20 = vadd.f32 %v10827_v33, %v14788_v42  ;;  %3511 = vmatmul.mubr.bf16.gmra.mrb[168].mxu1 %v14619_v4  ;;  %3421 = vmatprep.mubr.bf16.mxu0 %v17027_v45  ;;  %v13362_v43 = vld [vmem:[#allocation5 + $0x54c] ss:$48 sps:$4 sm:$0xff]  }
 0x26c   : > { %3518 = vmatprep.mubr.bf16.mxu1 %v17028_v23  ;;  %11413 = vmatpush3.bf16.msra.mxu0 %v13355_v61  ;;  %v13363_v33 = vld [vmem:[#allocation5 + $0x24c] ss:$48 sps:$4 sm:$0xff]  }
 0x26d   : > { %v1354_v28 = vrot.slane %v1336_v20, 1  ;;  %v10908_v53 = vpop.f32.mrb[64].mxu0  ;;  %11477 = vmatpush3.bf16.msra.mxu1 %v13357_v7  ;;  %11414 = vmatprep.subr.bf16.mxu0 %v13358_v35  ;;  %v1357_v9 = vsel %vm1355_vm0, %v1352_v62, %v1353_v3  ;;  %v13364_v42 = vld [vmem:[#allocation5 + $0xb4c] ss:$48 sps:$4 sm:$0xff]  }
 0x26e   : > { %v10972_v29 = vpop.f32.mrb[64].mxu1  ;;  %v10909_v21 = vpop.f32.mrb[65].mxu0  ;;  %11478 = vmatprep.subr.bf16.mxu1 %v13360_v46  ;;  %v14901_v34 = vadd.f32 %v10885_v1, %v1357_v9  ;;  %v13365_v7 = vld [vmem:[#allocation5 + $0x84c] ss:$48 sps:$4 sm:$0xff]  }
 0x26f   : > { %v1371_v61 = vsel %vm1355_vm0, %v1354_v28, %v17029_v14  ;;  %v10910_v36 = vadd.f32 %v10909_v21, %v10908_v53  ;;  %v10973_v0 = vpop.f32.mrb[65].mxu1  ;;  %v10911_v16 = vpop.f32.mrb[66].mxu0  ;;  %v13366_v35 = vld [vmem:[#allocation5 + $0x5ac] ss:$48 sps:$4 sm:$0xff]   ;;  %v1356_v62 = vsel %vm1355_vm0, %v1353_v3, %v1354_v28 }
 0x270   : > { %v14909_v20 = vadd.f32 %v10891_v11, %v1371_v61  ;;  %v10974_v46 = vadd.f32 %v10973_v0, %v10972_v29  ;;  %v10975_v23 = vpop.f32.mrb[66].mxu1  ;;  %v10912_v4 = vpop.f32.mrb[67].mxu0  ;;  %11415 = vmatpush3.bf16.msra.mxu0 %v13359_v18  ;;  %v13368_v1 = vld [vmem:[#allocation5 + $0xbac] ss:$48 sps:$4 sm:$0xff]   ;;  %v14911_v9 = vadd.f32 %v10888_v2, %v1356_v62 }
 0x271   : > { %v1792_v12 = vadd.f32 %v10910_v36, %v14807_v52  ;;  %v10913_v14 = vadd.f32 %v10912_v4, %v10911_v16  ;;  %v10976_v53 = vpop.f32.mrb[67].mxu1  ;;  %11479 = vmatpush3.bf16.msra.mxu1 %v13361_v51  ;;  %11416 = vmatprep.subr.bf16.mxu0 %v13362_v43  ;;  %v13367_v3 = vld [vmem:[#allocation5 + $0x2ac] ss:$48 sps:$4 sm:$0xff]   ;;  %v13372_v4 = vld [vmem:[#allocation5 + $0x314] ss:$48 sps:$4 sm:$0xff]  }
 0x272   : > { %v10977_v21 = vadd.f32 %v10976_v53, %v10975_v23  ;;  %3422 = vmatmul.mubr.bf16.gmra.mrb[172].mxu0 %v17030_v15  ;;  %11480 = vmatprep.subr.bf16.mxu1 %v13364_v42  ;;  %v17031_v18 = vld [vmem:[#allocation40_spill] sm:$0xff] }
 0x273   : > { %v14915_v11 = vadd.f32 %v10974_v46, %v1792_v12  ;;  %v1795_v28 = vadd.f32 %v10913_v14, %v14817_v50  ;;  %3519 = vmatmul.mubr.bf16.gmra.mrb[172].mxu1 %v14631_v31  ;;  %3429 = vmatprep.mubr.bf16.mxu0 %v17031_v18  ;;  %v13369_v2 = vld [vmem:[#allocation5 + $0x8ac] ss:$48 sps:$4 sm:$0xff]  }
 0x274   : > { %v13370_v29 = vld [vmem:[#allocation5 + $0xf0c] ss:$48 sps:$4 sm:$0xff]   ;;  %3526 = vmatprep.mubr.bf16.mxu1 %v14633_v32  ;;  %11417 = vmatpush3.bf16.msra.mxu0 %v13363_v33 }
 0x275   : > { %v14921_v52 = vadd.f32 %v10977_v21, %v1795_v28  ;;  %v10914_v23 = vpop.f32.mrb[68].mxu0  ;;  %11481 = vmatpush3.bf16.msra.mxu1 %v13365_v7  ;;  %11418 = vmatprep.subr.bf16.mxu0 %v13366_v35  ;;  %v17032_v14 = vld [vmem:[#allocation42_spill] sm:$0xff] }
 0x276   : > { %v10978_v51 = vpop.f32.mrb[68].mxu1  ;;  %v10915_v43 = vpop.f32.mrb[69].mxu0  ;;  %11482 = vmatprep.subr.bf16.mxu1 %v13368_v1  ;;  %v17033_v1 = vld [vmem:[#allocation44_spill] sm:$0xff] }
 0x277   : > { %v10916_v42 = vadd.f32 %v10915_v43, %v10914_v23  ;;  %v10979_v50 = vpop.f32.mrb[69].mxu1  ;;  %v10917_v61 = vpop.f32.mrb[70].mxu0 }
 0x278   : > { %v10980_v36 = vadd.f32 %v10979_v50, %v10978_v51  ;;  %v10981_v0 = vpop.f32.mrb[70].mxu1  ;;  %v10918_v16 = vpop.f32.mrb[71].mxu0  ;;  %11419 = vmatpush3.bf16.msra.mxu0 %v13367_v3 }
 0x279   : > { %v1800_v62 = vadd.f32 %v10916_v42, %v14821_v58  ;;  %v10919_v46 = vadd.f32 %v10918_v16, %v10917_v61  ;;  %v10982_v33 = vpop.f32.mrb[71].mxu1  ;;  %11483 = vmatpush3.bf16.msra.mxu1 %v13369_v2  ;;  %11532 = vmatprep.subr.bf16.mxu0 %v13370_v29  ;;  %v17034_v61 = vld [vmem:[#allocation46_spill] sm:$0xff]  ;;  %v17035_v16 = vld [vmem:[#allocation48_spill] sm:$0xff] }
 0x27a   : > { %v10983_v12 = vadd.f32 %v10982_v33, %v10981_v0  ;;  %3430 = vmatmul.mubr.bf16.gmra.mrb[176].mxu0 %v17032_v14  ;;  %11596 = vmatprep.subr.bf16.mxu1 %v13372_v4 }
 0x27b   : > { %v14925_v7 = vadd.f32 %v10980_v36, %v1800_v62  ;;  %v1803_v35 = vadd.f32 %v10919_v46, %v14831_v60  ;;  %3527 = vmatmul.mubr.bf16.gmra.mrb[176].mxu1 %v14643_v5  ;;  %3437 = vmatprep.mubr.bf16.mxu0 %v17033_v1 }
 0x27c   : > { %3534 = vmatprep.mubr.bf16.mxu1 %v14645_v13 }
 0x27d   : > { %v14931_v53 = vadd.f32 %v10983_v12, %v1803_v35  ;;  %v10920_v58 = vpop.f32.mrb[72].mxu0 }
 0x27e   : > { %v10984_v21 = vpop.f32.mrb[72].mxu1  ;;  %v10921_v3 = vpop.f32.mrb[73].mxu0 }
 0x27f   : > { %v10922_v28 = vadd.f32 %v10921_v3, %v10920_v58  ;;  %v10985_v2 = vpop.f32.mrb[73].mxu1  ;;  %v10923_v29 = vpop.f32.mrb[74].mxu0 }
 0x280   : > { %v10986_v23 = vadd.f32 %v10985_v2, %v10984_v21  ;;  %v10987_v4 = vpop.f32.mrb[74].mxu1  ;;  %v10924_v51 = vpop.f32.mrb[75].mxu0 }
 0x281   : > { %v1808_v43 = vadd.f32 %v10922_v28, %v14835_v38  ;;  %v10925_v60 = vadd.f32 %v10924_v51, %v10923_v29  ;;  %v10988_v42 = vpop.f32.mrb[75].mxu1 }
 0x282   : > { %v10989_v50 = vadd.f32 %v10988_v42, %v10987_v4  ;;  %3438 = vmatmul.mubr.bf16.gmra.mrb[180].mxu0 %v17034_v61  ;;  %v17036_v4 = vld [vmem:[#allocation50_spill] sm:$0xff] }
 0x283   : > { %v14935_v36 = vadd.f32 %v10986_v23, %v1808_v43  ;;  %v1811_v0 = vadd.f32 %v10925_v60, %v14845_v24  ;;  %3535 = vmatmul.mubr.bf16.gmra.mrb[180].mxu1 %v14655_v25  ;;  %3445 = vmatprep.mubr.bf16.mxu0 %v17035_v16  ;;  %v17038_v60 = vld [vmem:[#allocation52_spill] sm:$0xff] }
 0x284   : > { %3542 = vmatprep.mubr.bf16.mxu1 %v14657_v26 }
 0x285   : > { %v14941_v62 = vadd.f32 %v10989_v50, %v1811_v0  ;;  %v10926_v46 = vpop.f32.mrb[76].mxu0 }
 0x286   : > { %v10990_v33 = vpop.f32.mrb[76].mxu1  ;;  %v10927_v38 = vpop.f32.mrb[77].mxu0 }
 0x287   : > { %v10928_v12 = vadd.f32 %v10927_v38, %v10926_v46  ;;  %v10991_v35 = vpop.f32.mrb[77].mxu1  ;;  %v10929_v58 = vpop.f32.mrb[78].mxu0 }
 0x288   : > { %v10992_v21 = vadd.f32 %v10991_v35, %v10990_v33  ;;  %v10993_v3 = vpop.f32.mrb[78].mxu1  ;;  %v10930_v28 = vpop.f32.mrb[79].mxu0 }
 0x289   : > { %v1816_v2 = vadd.f32 %v10928_v12, %v14849_v54  ;;  %v10931_v24 = vadd.f32 %v10930_v28, %v10929_v58  ;;  %v10994_v29 = vpop.f32.mrb[79].mxu1 }
 0x28a   : > { %v10995_v23 = vadd.f32 %v10994_v29, %v10993_v3  ;;  %3446 = vmatmul.mubr.bf16.gmra.mrb[184].mxu0 %v17036_v4 }
 0x28b   : > { %v14945_v51 = vadd.f32 %v10992_v21, %v1816_v2  ;;  %v1819_v43 = vadd.f32 %v10931_v24, %v14859_v6  ;;  %3543 = vmatmul.mubr.bf16.gmra.mrb[184].mxu1 %v14667_v47  ;;  %3453 = vmatprep.mubr.bf16.mxu0 %v17038_v60  ;;  %v17040_v2 = vld [vmem:[#allocation54_spill] sm:$0xff] }
 0x28c   : > { %3550 = vmatprep.mubr.bf16.mxu1 %v14669_v49 }
 0x28d   : > { %17037 = vst [vmem:[#allocation67_spill] sm:$0xff] %v14945_v51  ;;  %v14951_v42 = vadd.f32 %v10995_v23, %v1819_v43  ;;  %v10932_v50 = vpop.f32.mrb[80].mxu0  ;;  %v17042_v23 = vld [vmem:[#allocation23_spill] sm:$0xff] }
 0x28e   : > { %v10996_v0 = vpop.f32.mrb[80].mxu1  ;;  %v10933_v54 = vpop.f32.mrb[81].mxu0 }
 0x28f   : > { %17039 = vst [vmem:[#allocation68_spill] sm:$0xff] %v14951_v42  ;;  %v10934_v46 = vadd.f32 %v10933_v54, %v10932_v50  ;;  %v10997_v33 = vpop.f32.mrb[81].mxu1  ;;  %v10935_v38 = vpop.f32.mrb[82].mxu0  ;;  %v13371_v54 = vld [vmem:[#allocation5 + $0xc0c] ss:$48 sps:$4 sm:$0xff]  }
 0x290   : > { %v10998_v12 = vadd.f32 %v10997_v33, %v10996_v0  ;;  %v10999_v35 = vpop.f32.mrb[82].mxu1  ;;  %v10936_v58 = vpop.f32.mrb[83].mxu0 }
 0x291   : > { %v1824_v21 = vadd.f32 %v10934_v46, %v14863_v10  ;;  %v10937_v6 = vadd.f32 %v10936_v58, %v10935_v38  ;;  %v11000_v3 = vpop.f32.mrb[83].mxu1  ;;  %v13373_v46 = vld [vmem:[#allocation5 + $0x14] ss:$48 sps:$4 sm:$0xff]  }
 0x292   : > { %v11001_v28 = vadd.f32 %v11000_v3, %v10999_v35  ;;  %3454 = vmatmul.mubr.bf16.gmra.mrb[188].mxu0 %v17040_v2 }
 0x293   : > { %v14955_v24 = vadd.f32 %v10998_v12, %v1824_v21  ;;  %v1827_v29 = vadd.f32 %v10937_v6, %v14873_v40  ;;  %3551 = vmatmul.mubr.bf16.gmra.mrb[188].mxu1 %v14677_v55  ;;  %3911 = vmatprep.mubr.bf16.mxu0 %v17042_v23  ;;  %v13374_v12 = vld [vmem:[#allocation5 + $0xf6c] ss:$48 sps:$4 sm:$0xff]   ;;  %v13376_v6 = vld [vmem:[#allocation5 + $0x374] ss:$48 sps:$4 sm:$0xff]  }
 0x294   : > { %4008 = vmatprep.mubr.bf16.mxu1 %v14433_v39  ;;  %v13375_v39 = vld [vmem:[#allocation5 + $0xc6c] ss:$48 sps:$4 sm:$0xff]  }
 0x295   : > { %17041 = vst [vmem:[#allocation69_spill] sm:$0xff] %v14955_v24  ;;  %v14961_v43 = vadd.f32 %v11001_v28, %v1827_v29  ;;  %v10938_v50 = vpop.f32.mrb[84].mxu0  ;;  %v17044_v29 = vld [vmem:[#allocation25_spill] sm:$0xff]  ;;  %v13378_v55 = vld [vmem:[#allocation5 + $0xfcc] ss:$48 sps:$4 sm:$0xff]  }
 0x296   : > { %v11002_v0 = vpop.f32.mrb[84].mxu1  ;;  %v10939_v10 = vpop.f32.mrb[85].mxu0 }
 0x297   : > { %17043 = vst [vmem:[#allocation70_spill] sm:$0xff] %v14961_v43  ;;  %v10940_v33 = vadd.f32 %v10939_v10, %v10938_v50  ;;  %v11003_v38 = vpop.f32.mrb[85].mxu1  ;;  %v10941_v35 = vpop.f32.mrb[86].mxu0  ;;  %v13377_v43 = vld [vmem:[#allocation5 + $0x74] ss:$48 sps:$4 sm:$0xff]  }
 0x298   : > { %v11004_v58 = vadd.f32 %v11003_v38, %v11002_v0  ;;  %v11005_v21 = vpop.f32.mrb[86].mxu1  ;;  %v10942_v40 = vpop.f32.mrb[87].mxu0  ;;  %v13380_v0 = vld [vmem:[#allocation5 + $0x3d4] ss:$48 sps:$4 sm:$0xff]  }
 0x299   : > { %v1832_v3 = vadd.f32 %v10940_v33, %v14877_v41  ;;  %v10943_v24 = vadd.f32 %v10942_v40, %v10941_v35  ;;  %v11006_v42 = vpop.f32.mrb[87].mxu1  ;;  %v17046_v10 = vld [vmem:[#allocation27_spill] sm:$0xff]  ;;  %v13379_v35 = vld [vmem:[#allocation5 + $0xccc] ss:$48 sps:$4 sm:$0xff]  }
 0x29a   : > { %v11007_v28 = vadd.f32 %v11006_v42, %v11005_v21  ;;  %3912 = vmatmul.mubr.bf16.vlgmr.msra.gmra.mrb[192].mxu0 %v17044_v29 }
 0x29b   : > { %v14965_v51 = vadd.f32 %v11004_v58, %v1832_v3  ;;  %v1835_v50 = vadd.f32 %v10943_v24, %v14887_v57  ;;  %4009 = vmatmul.mubr.bf16.vlgmr.msra.gmra.mrb[192].mxu1 %v17022_v22  ;;  %11533 = vmatpush3.bf16.msra.mxu0 %v13371_v54  ;;  %v13381_v24 = vld [vmem:[#allocation5 + $0xd4] ss:$48 sps:$4 sm:$0xff]   ;;  %v13382_v54 = vld [vmem:[#allocation5 + $0x102c] ss:$48 sps:$4 sm:$0xff]  }
 0x29c   : > { %11597 = vmatpush3.bf16.msra.mxu1 %v13373_v46  ;;  %3919 = vmatprep.mubr.bf16.mxu0 %v17046_v10 }
 0x29d   : > { %17045 = vst [vmem:[#allocation71_spill] sm:$0xff] %v14965_v51  ;;  %v14970_v41 = vadd.f32 %v11007_v28, %v1835_v50  ;;  %v10944_v33 = vpop.f32.mrb[88].mxu0  ;;  %4016 = vmatprep.mubr.bf16.mxu1 %v17023_v19  ;;  %11534 = vmatprep.subr.bf16.mxu0 %v13374_v12  ;;  %v13384_v28 = vld [vmem:[#allocation5 + $0x434] ss:$48 sps:$4 sm:$0xff]  }
 0x29e   : > { %v11008_v42 = vpop.f32.mrb[88].mxu1  ;;  %v10945_v38 = vpop.f32.mrb[89].mxu0  ;;  %11598 = vmatprep.subr.bf16.mxu1 %v13376_v6  ;;  %v17048_v6 = vld [vmem:[#allocation29_spill] sm:$0xff] }
 0x29f   : > { %17047 = vst [vmem:[#allocation72_spill] sm:$0xff] %v14970_v41  ;;  %v10946_v58 = vadd.f32 %v10945_v38, %v10944_v33  ;;  %v11009_v21 = vpop.f32.mrb[89].mxu1  ;;  %v10947_v57 = vpop.f32.mrb[90].mxu0  ;;  %11535 = vmatpush3.bf16.msra.mxu0 %v13375_v39  ;;  %v13383_v33 = vld [vmem:[#allocation5 + $0xd2c] ss:$48 sps:$4 sm:$0xff]  }
 0x2a0   : > { %v11010_v40 = vadd.f32 %v11009_v21, %v11008_v42  ;;  %v11011_v46 = vpop.f32.mrb[90].mxu1  ;;  %v10948_v3 = vpop.f32.mrb[91].mxu0  ;;  %11599 = vmatpush3.bf16.msra.mxu1 %v13377_v43  ;;  %11536 = vmatprep.subr.bf16.mxu0 %v13378_v55  ;;  %v17050_v42 = vld [vmem:[#allocation31_spill] sm:$0xff]  ;;  %v13386_v55 = vld [vmem:[#allocation5 + $0x108c] ss:$48 sps:$4 sm:$0xff]  }
 0x2a1   : > { %v1840_v50 = vadd.f32 %v10946_v58, %v14891_v44  ;;  %v10949_v41 = vadd.f32 %v10948_v3, %v10947_v57  ;;  %v11012_v12 = vpop.f32.mrb[91].mxu1  ;;  %11600 = vmatprep.subr.bf16.mxu1 %v13380_v0  ;;  %v13385_v43 = vld [vmem:[#allocation5 + $0x134] ss:$48 sps:$4 sm:$0xff]  }
 0x2a2   : > { %v11013_v51 = vadd.f32 %v11012_v12, %v11011_v46  ;;  %3920 = vmatmul.mubr.bf16.gmra.mrb[196].mxu0 %v17048_v6  ;;  %v13388_v44 = vld [vmem:[#allocation5 + $0x494] ss:$48 sps:$4 sm:$0xff]  }
 0x2a3   : > { %v14975_v38 = vadd.f32 %v11010_v40, %v1840_v50  ;;  %v1843_v39 = vadd.f32 %v10949_v41, %v14901_v34  ;;  %4017 = vmatmul.mubr.bf16.gmra.mrb[196].mxu1 %v17024_v63  ;;  %3927 = vmatprep.mubr.bf16.mxu0 %v17050_v42  ;;  %v13387_v40 = vld [vmem:[#allocation5 + $0xd8c] ss:$48 sps:$4 sm:$0xff]   ;;  %v13389_v3 = vld [vmem:[#allocation5 + $0x194] ss:$48 sps:$4 sm:$0xff]  }
 0x2a4   : > { %4024 = vmatprep.mubr.bf16.mxu1 %v17025_v17  ;;  %11537 = vmatpush3.bf16.msra.mxu0 %v13379_v35  ;;  %v13390_v50 = vld [vmem:[#allocation5 + $0x10ec] ss:$48 sps:$4 sm:$0xff]   ;;  %v13392_v35 = vld [vmem:[#allocation5 + $0x4f4] ss:$48 sps:$4 sm:$0xff]  }
 0x2a5   : > { %17049 = vst [vmem:[#allocation73_spill] sm:$0xff] %v14975_v38  ;;  %v14981_v58 = vadd.f32 %v11013_v51, %v1843_v39  ;;  %v10950_v0 = vpop.f32.mrb[92].mxu0  ;;  %11601 = vmatpush3.bf16.msra.mxu1 %v13381_v24  ;;  %11538 = vmatprep.subr.bf16.mxu0 %v13382_v54  ;;  %v17052_v54 = vld [vmem:[#allocation33_spill] sm:$0xff] }
 0x2a6   : > { %v11014_v21 = vpop.f32.mrb[92].mxu1  ;;  %v10951_v57 = vpop.f32.mrb[93].mxu0  ;;  %11602 = vmatprep.subr.bf16.mxu1 %v13384_v28  ;;  %v13391_v28 = vld [vmem:[#allocation5 + $0xdec] ss:$48 sps:$4 sm:$0xff]   ;;  %v13410_v17 = vld [vmem:[#allocation5 + $0x9d4] ss:$48 sps:$4 sm:$0xff]  }
 0x2a7   : > { %17051 = vst [vmem:[#allocation74_spill] sm:$0xff] %v14981_v58  ;;  %v10952_v34 = vadd.f32 %v10951_v57, %v10950_v0  ;;  %v11015_v41 = vpop.f32.mrb[93].mxu1  ;;  %v10953_v46 = vpop.f32.mrb[94].mxu0 }
 0x2a8   : > { %v11016_v12 = vadd.f32 %v11015_v41, %v11014_v21  ;;  %v11017_v38 = vpop.f32.mrb[94].mxu1  ;;  %v10954_v63 = vpop.f32.mrb[95].mxu0  ;;  %11539 = vmatpush3.bf16.msra.mxu0 %v13383_v33  ;;  %v17054_v21 = vld [vmem:[#allocation35_spill] sm:$0xff] }
 0x2a9   : > { %v1848_v51 = vadd.f32 %v10952_v34, %v14911_v9  ;;  %v10955_v39 = vadd.f32 %v10954_v63, %v10953_v46  ;;  %v11018_v58 = vpop.f32.mrb[95].mxu1  ;;  %11603 = vmatpush3.bf16.msra.mxu1 %v13385_v43  ;;  %11540 = vmatprep.subr.bf16.mxu0 %v13386_v55  ;;  %v13393_v33 = vld [vmem:[#allocation5 + $0x1f4] ss:$48 sps:$4 sm:$0xff]  }
 0x2aa   : > { %v11019_v24 = vadd.f32 %v11018_v58, %v11017_v38  ;;  %3928 = vmatmul.mubr.bf16.gmra.mrb[200].mxu0 %v17052_v54  ;;  %11604 = vmatprep.subr.bf16.mxu1 %v13388_v44  ;;  %v13394_v38 = vld [vmem:[#allocation5 + $0x114c] ss:$48 sps:$4 sm:$0xff]   ;;  %v13396_v58 = vld [vmem:[#allocation5 + $0x554] ss:$48 sps:$4 sm:$0xff]  }
 0x2ab   : > { %v14985_v0 = vadd.f32 %v11016_v12, %v1848_v51  ;;  %v1851_v57 = vadd.f32 %v10955_v39, %v14909_v20  ;;  %4025 = vmatmul.mubr.bf16.gmra.mrb[200].mxu1 %v17026_v30  ;;  %3935 = vmatprep.mubr.bf16.mxu0 %v17054_v21  ;;  %v13395_v44 = vld [vmem:[#allocation5 + $0xe4c] ss:$48 sps:$4 sm:$0xff]   ;;  %v13397_v46 = vld [vmem:[#allocation5 + $0x254] ss:$48 sps:$4 sm:$0xff]  }
 0x2ac   : > { %4032 = vmatprep.mubr.bf16.mxu1 %v17027_v45  ;;  %11541 = vmatpush3.bf16.msra.mxu0 %v13387_v40  ;;  %v13398_v12 = vld [vmem:[#allocation5 + $0x11ac] ss:$48 sps:$4 sm:$0xff]   ;;  %v13407_v45 = vld [vmem:[#allocation5 + $0x674] ss:$48 sps:$4 sm:$0xff]  }
 0x2ad   : > { %17053 = vst [vmem:[#allocation75_spill] sm:$0xff] %v14985_v0  ;;  %v14991_v63 = vadd.f32 %v11019_v24, %v1851_v57  ;;  %v11036_v9 = vpop.f32.mrb[96].mxu0  ;;  %11605 = vmatpush3.bf16.msra.mxu1 %v13389_v3  ;;  %11542 = vmatprep.subr.bf16.mxu0 %v13390_v50  ;;  %v13400_v24 = vld [vmem:[#allocation5 + $0x5b4] ss:$48 sps:$4 sm:$0xff]  }
 0x2ae   : > { %v11100_v43 = vpop.f32.mrb[96].mxu1  ;;  %v11037_v55 = vpop.f32.mrb[97].mxu0  ;;  %11606 = vmatprep.subr.bf16.mxu1 %v13392_v35  ;;  %v13399_v35 = vld [vmem:[#allocation5 + $0xeac] ss:$48 sps:$4 sm:$0xff]   ;;  %v13409_v30 = vld [vmem:[#allocation5 + $0xc74] ss:$48 sps:$4 sm:$0xff]  }
 0x2af   : > { %17055 = vst [vmem:[#allocation76_spill] sm:$0xff] %v14991_v63  ;;  %v11038_v20 = vadd.f32 %v11037_v55, %v11036_v9  ;;  %v11101_v34 = vpop.f32.mrb[97].mxu1  ;;  %v11039_v41 = vpop.f32.mrb[98].mxu0  ;;  %v13401_v9 = vld [vmem:[#allocation5 + $0x2b4] ss:$48 sps:$4 sm:$0xff]  }
 0x2b0   : > { %v11102_v51 = vadd.f32 %v11101_v34, %v11100_v43  ;;  %v11103_v39 = vpop.f32.mrb[98].mxu1  ;;  %v11040_v40 = vpop.f32.mrb[99].mxu0  ;;  %11543 = vmatpush3.bf16.msra.mxu0 %v13391_v28  ;;  %v13402_v43 = vld [vmem:[#allocation5 + $0x914] ss:$48 sps:$4 sm:$0xff]  }
 0x2b1   : > { %v11041_v57 = vadd.f32 %v11040_v40, %v11039_v41  ;;  %v11104_v3 = vpop.f32.mrb[99].mxu1  ;;  %11607 = vmatpush3.bf16.msra.mxu1 %v13393_v33  ;;  %11544 = vmatprep.subr.bf16.mxu0 %v13394_v38  ;;  %v13404_v28 = vld [vmem:[#allocation5 + $0xf14] ss:$48 sps:$4 sm:$0xff]  }
 0x2b2   : > { %v14993_v50 = vadd.f32 %v11102_v51, %v11038_v20  ;;  %v11105_v63 = vadd.f32 %v11104_v3, %v11103_v39  ;;  %3936 = vmatmul.mubr.bf16.gmra.mrb[204].mxu0 %v14499_v27  ;;  %11608 = vmatprep.subr.bf16.mxu1 %v13396_v58 }
 0x2b3   : > { %4033 = vmatmul.mubr.bf16.gmra.mrb[204].mxu1 %v17030_v15  ;;  %3943 = vmatprep.mubr.bf16.mxu0 %v14508_v37  ;;  %v13408_v15 = vld [vmem:[#allocation5 + $0xf74] ss:$48 sps:$4 sm:$0xff]  }
 0x2b4   : > { %v14998_v55 = vadd.f32 %v11105_v63, %v11041_v57  ;;  %4040 = vmatprep.mubr.bf16.mxu1 %v17031_v18  ;;  %11545 = vmatpush3.bf16.msra.mxu0 %v13395_v44 }
 0x2b5   : > { %v11042_v33 = vpop.f32.mrb[100].mxu0  ;;  %11609 = vmatpush3.bf16.msra.mxu1 %v13397_v46  ;;  %11546 = vmatprep.subr.bf16.mxu0 %v13398_v12 }
 0x2b6   : > { %v11106_v38 = vpop.f32.mrb[100].mxu1  ;;  %v11043_v20 = vpop.f32.mrb[101].mxu0  ;;  %11610 = vmatprep.subr.bf16.mxu1 %v13400_v24 }
 0x2b7   : > { %v11044_v58 = vadd.f32 %v11043_v20, %v11042_v33  ;;  %v11107_v34 = vpop.f32.mrb[101].mxu1  ;;  %v11045_v41 = vpop.f32.mrb[102].mxu0 }
 0x2b8   : > { %v11108_v51 = vadd.f32 %v11107_v34, %v11106_v38  ;;  %v11109_v39 = vpop.f32.mrb[102].mxu1  ;;  %v11046_v40 = vpop.f32.mrb[103].mxu0  ;;  %11547 = vmatpush3.bf16.msra.mxu0 %v13399_v35 }
 0x2b9   : > { %v11047_v3 = vadd.f32 %v11046_v40, %v11045_v41  ;;  %v11110_v63 = vpop.f32.mrb[103].mxu1  ;;  %11611 = vmatpush3.bf16.msra.mxu1 %v13401_v9  ;;  %11660 = vmatprep.subr.bf16.mxu0 %v13402_v43 }
 0x2ba   : > { %v15001_v57 = vadd.f32 %v11108_v51, %v11044_v58  ;;  %v11111_v44 = vadd.f32 %v11110_v63, %v11109_v39  ;;  %3944 = vmatmul.mubr.bf16.gmra.mrb[208].mxu0 %v14519_v48  ;;  %11724 = vmatprep.subr.bf16.mxu1 %v13404_v28  ;;  %v17056_v39 = vld [vmem:[#allocation47_spill] sm:$0xff] }
 0x2bb   : > { %4041 = vmatmul.mubr.bf16.gmra.mrb[208].mxu1 %v17032_v14  ;;  %3951 = vmatprep.mubr.bf16.mxu0 %v14525_v56  ;;  %v17059_v14 = vld [vmem:[#allocation53_spill] sm:$0xff] }
 0x2bc   : > { %v15006_v46 = vadd.f32 %v11111_v44, %v11047_v3  ;;  %4048 = vmatprep.mubr.bf16.mxu1 %v17033_v1 }
 0x2bd   : > { %v11048_v12 = vpop.f32.mrb[104].mxu0 }
 0x2be   : > { %v11112_v24 = vpop.f32.mrb[104].mxu1  ;;  %v11049_v35 = vpop.f32.mrb[105].mxu0 }
 0x2bf   : > { %v11050_v33 = vadd.f32 %v11049_v35, %v11048_v12  ;;  %v11113_v9 = vpop.f32.mrb[105].mxu1  ;;  %v11051_v43 = vpop.f32.mrb[106].mxu0 }
 0x2c0   : > { %v11114_v38 = vadd.f32 %v11113_v9, %v11112_v24  ;;  %v11115_v20 = vpop.f32.mrb[106].mxu1  ;;  %v11052_v58 = vpop.f32.mrb[107].mxu0 }
 0x2c1   : > { %v11053_v34 = vadd.f32 %v11052_v58, %v11051_v43  ;;  %v11116_v41 = vpop.f32.mrb[107].mxu1 }
 0x2c2   : > { %v15009_v28 = vadd.f32 %v11114_v38, %v11050_v33  ;;  %v11117_v51 = vadd.f32 %v11116_v41, %v11115_v20  ;;  %3952 = vmatmul.mubr.bf16.gmra.mrb[212].mxu0 %v14539_v8 }
 0x2c3   : > { %4049 = vmatmul.mubr.bf16.gmra.mrb[212].mxu1 %v17034_v61  ;;  %3959 = vmatprep.mubr.bf16.mxu0 %v17056_v39  ;;  %v17057_v61 = vld [vmem:[#allocation49_spill] sm:$0xff] }
 0x2c4   : > { %v15014_v40 = vadd.f32 %v11117_v51, %v11053_v34  ;;  %4056 = vmatprep.mubr.bf16.mxu1 %v17035_v16  ;;  %v17058_v34 = vld [vmem:[#allocation51_spill] sm:$0xff] }
 0x2c5   : > { %v11054_v3 = vpop.f32.mrb[108].mxu0 }
 0x2c6   : > { %v11118_v63 = vpop.f32.mrb[108].mxu1  ;;  %v11055_v44 = vpop.f32.mrb[109].mxu0 }
 0x2c7   : > { %v11056_v12 = vadd.f32 %v11055_v44, %v11054_v3  ;;  %v11119_v24 = vpop.f32.mrb[109].mxu1  ;;  %v11057_v35 = vpop.f32.mrb[110].mxu0 }
 0x2c8   : > { %v11120_v9 = vadd.f32 %v11119_v24, %v11118_v63  ;;  %v11121_v33 = vpop.f32.mrb[110].mxu1  ;;  %v11058_v43 = vpop.f32.mrb[111].mxu0 }
 0x2c9   : > { %v11059_v38 = vadd.f32 %v11058_v43, %v11057_v35  ;;  %v11122_v20 = vpop.f32.mrb[111].mxu1 }
 0x2ca   : > { %v15017_v58 = vadd.f32 %v11120_v9, %v11056_v12  ;;  %v11123_v41 = vadd.f32 %v11122_v20, %v11121_v33  ;;  %3960 = vmatmul.mubr.bf16.gmra.mrb[216].mxu0 %v17057_v61 }
 0x2cb   : > { %4057 = vmatmul.mubr.bf16.gmra.mrb[216].mxu1 %v17036_v4  ;;  %3967 = vmatprep.mubr.bf16.mxu0 %v17058_v34 }
 0x2cc   : > { %v15022_v51 = vadd.f32 %v11123_v41, %v11059_v38  ;;  %4064 = vmatprep.mubr.bf16.mxu1 %v17038_v60  ;;  %v17060_v38 = vld [vmem:[#allocation55_spill] sm:$0xff] }
 0x2cd   : > { %v11060_v3 = vpop.f32.mrb[112].mxu0  ;;  %v13405_v60 = vld [vmem:[#allocation5 + $0xc14] ss:$48 sps:$4 sm:$0xff]  }
 0x2ce   : > { %v11124_v44 = vpop.f32.mrb[112].mxu1  ;;  %v11061_v63 = vpop.f32.mrb[113].mxu0 }
 0x2cf   : > { %v11062_v24 = vadd.f32 %v11061_v63, %v11060_v3  ;;  %v11125_v16 = vpop.f32.mrb[113].mxu1  ;;  %v11063_v35 = vpop.f32.mrb[114].mxu0 }
 0x2d0   : > { %v11126_v43 = vadd.f32 %v11125_v16, %v11124_v44  ;;  %v11127_v12 = vpop.f32.mrb[114].mxu1  ;;  %v11064_v9 = vpop.f32.mrb[115].mxu0  ;;  %v13403_v44 = vld [vmem:[#allocation5 + $0x614] ss:$48 sps:$4 sm:$0xff]  }
 0x2d1   : > { %v11065_v33 = vadd.f32 %v11064_v9, %v11063_v35  ;;  %v11128_v20 = vpop.f32.mrb[115].mxu1 }
 0x2d2   : > { %v15025_v1 = vadd.f32 %v11126_v43, %v11062_v24  ;;  %v11129_v4 = vadd.f32 %v11128_v20, %v11127_v12  ;;  %3968 = vmatmul.mubr.bf16.gmra.mrb[220].mxu0 %v17059_v14  ;;  %v13406_v43 = vld [vmem:[#allocation5 + $0x974] ss:$48 sps:$4 sm:$0xff]  }
 0x2d3   : > { %4065 = vmatmul.mubr.bf16.gmra.mrb[220].mxu1 %v17040_v2  ;;  %4105 = vmatprep.mubr.bf16.mxu0 %v17060_v38 }
 0x2d4   : > { %v15030_v41 = vadd.f32 %v11129_v4, %v11065_v33  ;;  %4586 = vmatprep.mubr.bf16.mxu1 %v17042_v23  ;;  %v17061_v23 = vld [vmem:[#allocation56_spill] sm:$0xff] }
 0x2d5   : > { %v11066_v3 = vpop.f32.mrb[116].mxu0 }
 0x2d6   : > { %v11130_v63 = vpop.f32.mrb[116].mxu1  ;;  %v11067_v16 = vpop.f32.mrb[117].mxu0 }
 0x2d7   : > { %v11068_v35 = vadd.f32 %v11067_v16, %v11066_v3  ;;  %v11131_v9 = vpop.f32.mrb[117].mxu1  ;;  %v11069_v24 = vpop.f32.mrb[118].mxu0  ;;  %v13412_v3 = vld [vmem:[#allocation5 + $0xfd4] ss:$48 sps:$4 sm:$0xff]  }
 0x2d8   : > { %v11132_v12 = vadd.f32 %v11131_v9, %v11130_v63  ;;  %v11133_v20 = vpop.f32.mrb[118].mxu1  ;;  %v11070_v18 = vpop.f32.mrb[119].mxu0  ;;  %v17062_v63 = vld [vmem:[#allocation57_spill] sm:$0xff] }
 0x2d9   : > { %v11071_v2 = vadd.f32 %v11070_v18, %v11069_v24  ;;  %v11134_v0 = vpop.f32.mrb[119].mxu1 }
 0x2da   : > { %v15033_v4 = vadd.f32 %v11132_v12, %v11068_v35  ;;  %v11135_v33 = vadd.f32 %v11134_v0, %v11133_v20  ;;  %4106 = vmatmul.mubr.bf16.vlgmr.msra.gmra.mrb[224].mxu0 %v17061_v23  ;;  %v13411_v20 = vld [vmem:[#allocation5 + $0x6d4] ss:$48 sps:$4 sm:$0xff]  }
 0x2db   : > { %4587 = vmatmul.mubr.bf16.vlgmr.msra.gmra.mrb[224].mxu1 %v17044_v29  ;;  %11661 = vmatpush3.bf16.msra.mxu0 %v13403_v44  ;;  %v13413_v29 = vld [vmem:[#allocation5 + $0xcd4] ss:$48 sps:$4 sm:$0xff]  }
 0x2dc   : > { %v15037_v16 = vadd.f32 %v11135_v33, %v11071_v2  ;;  %11725 = vmatpush3.bf16.msra.mxu1 %v13405_v60  ;;  %4113 = vmatprep.mubr.bf16.mxu0 %v17062_v63  ;;  %v13414_v60 = vld [vmem:[#allocation5 + $0xa34] ss:$48 sps:$4 sm:$0xff]  }
 0x2dd   : > { %v11072_v9 = vpop.f32.mrb[120].mxu0  ;;  %4594 = vmatprep.mubr.bf16.mxu1 %v17046_v10  ;;  %11662 = vmatprep.subr.bf16.mxu0 %v13406_v43  ;;  %v13416_v33 = vld [vmem:[#allocation5 + $0x1034] ss:$48 sps:$4 sm:$0xff]  }
 0x2de   : > { %v11136_v18 = vpop.f32.mrb[120].mxu1  ;;  %v11073_v35 = vpop.f32.mrb[121].mxu0  ;;  %11726 = vmatprep.subr.bf16.mxu1 %v13408_v15  ;;  %v17063_v15 = vld [vmem:[#allocation58_spill] sm:$0xff] }
 0x2df   : > { %v11074_v0 = vadd.f32 %v11073_v35, %v11072_v9  ;;  %v11137_v24 = vpop.f32.mrb[121].mxu1  ;;  %v11075_v12 = vpop.f32.mrb[122].mxu0  ;;  %11663 = vmatpush3.bf16.msra.mxu0 %v13407_v45  ;;  %v13415_v9 = vld [vmem:[#allocation5 + $0x734] ss:$48 sps:$4 sm:$0xff]  }
 0x2e0   : > { %v11138_v44 = vadd.f32 %v11137_v24, %v11136_v18  ;;  %v11139_v19 = vpop.f32.mrb[122].mxu1  ;;  %v11076_v2 = vpop.f32.mrb[123].mxu0  ;;  %11727 = vmatpush3.bf16.msra.mxu1 %v13409_v30  ;;  %11664 = vmatprep.subr.bf16.mxu0 %v13410_v17  ;;  %v17064_v45 = vld [vmem:[#allocation59_spill] sm:$0xff] }
 0x2e1   : > { %v11077_v63 = vadd.f32 %v11076_v2, %v11075_v12  ;;  %v11140_v23 = vpop.f32.mrb[123].mxu1  ;;  %11728 = vmatprep.subr.bf16.mxu1 %v13412_v3  ;;  %v13417_v18 = vld [vmem:[#allocation5 + $0xd34] ss:$48 sps:$4 sm:$0xff]  }
 0x2e2   : > { %v15041_v43 = vadd.f32 %v11138_v44, %v11074_v0  ;;  %v11141_v10 = vadd.f32 %v11140_v23, %v11139_v19  ;;  %4114 = vmatmul.mubr.bf16.gmra.mrb[228].mxu0 %v17063_v15  ;;  %v13418_v35 = vld [vmem:[#allocation5 + $0xa94] ss:$48 sps:$4 sm:$0xff]  }
 0x2e3   : > { %4595 = vmatmul.mubr.bf16.gmra.mrb[228].mxu1 %v17048_v6  ;;  %4121 = vmatprep.mubr.bf16.mxu0 %v17064_v45  ;;  %v13420_v17 = vld [vmem:[#allocation5 + $0x1094] ss:$48 sps:$4 sm:$0xff]  }
 0x2e4   : > { %v15046_v24 = vadd.f32 %v11141_v10, %v11077_v63  ;;  %4602 = vmatprep.mubr.bf16.mxu1 %v17050_v42  ;;  %11665 = vmatpush3.bf16.msra.mxu0 %v13411_v20  ;;  %v13419_v44 = vld [vmem:[#allocation5 + $0x794] ss:$48 sps:$4 sm:$0xff]  }
 0x2e5   : > { %v11078_v30 = vpop.f32.mrb[124].mxu0  ;;  %11729 = vmatpush3.bf16.msra.mxu1 %v13413_v29  ;;  %11666 = vmatprep.subr.bf16.mxu0 %v13414_v60  ;;  %v13421_v2 = vld [vmem:[#allocation5 + $0xd94] ss:$48 sps:$4 sm:$0xff]  }
 0x2e6   : > { %17065 = vst [vmem:[#allocation77_spill] sm:$0xff] %v15046_v24  ;;  %v11142_v3 = vpop.f32.mrb[124].mxu1  ;;  %v11079_v19 = vpop.f32.mrb[125].mxu0  ;;  %11730 = vmatprep.subr.bf16.mxu1 %v13416_v33  ;;  %v13422_v10 = vld [vmem:[#allocation5 + $0xaf4] ss:$48 sps:$4 sm:$0xff]   ;;  %v17066_v24 = vld [vmem:[#allocation60_spill] sm:$0xff] }
 0x2e7   : > { %v11080_v23 = vadd.f32 %v11079_v19, %v11078_v30  ;;  %v11143_v0 = vpop.f32.mrb[125].mxu1  ;;  %v11081_v12 = vpop.f32.mrb[126].mxu0  ;;  %v13424_v63 = vld [vmem:[#allocation5 + $0x10f4] ss:$48 sps:$4 sm:$0xff]  }
 0x2e8   : > { %v11144_v6 = vadd.f32 %v11143_v0, %v11142_v3  ;;  %v11145_v45 = vpop.f32.mrb[126].mxu1  ;;  %v11082_v15 = vpop.f32.mrb[127].mxu0  ;;  %11667 = vmatpush3.bf16.msra.mxu0 %v13415_v9  ;;  %v13423_v33 = vld [vmem:[#allocation5 + $0x7f4] ss:$48 sps:$4 sm:$0xff]  }
 0x2e9   : > { %v11083_v42 = vadd.f32 %v11082_v15, %v11081_v12  ;;  %v11146_v20 = vpop.f32.mrb[127].mxu1  ;;  %11731 = vmatpush3.bf16.msra.mxu1 %v13417_v18  ;;  %11668 = vmatprep.subr.bf16.mxu0 %v13418_v35  ;;  %v17067_v30 = vld [vmem:[#allocation61_spill] sm:$0xff] }
 0x2ea   : > { %v15049_v29 = vadd.f32 %v11144_v6, %v11080_v23  ;;  %v11147_v60 = vadd.f32 %v11146_v20, %v11145_v45  ;;  %4122 = vmatmul.mubr.bf16.gmra.mrb[232].mxu0 %v17066_v24  ;;  %11732 = vmatprep.subr.bf16.mxu1 %v13420_v17  ;;  %v13425_v3 = vld [vmem:[#allocation5 + $0xdf4] ss:$48 sps:$4 sm:$0xff]  }
 0x2eb   : > { %4603 = vmatmul.mubr.bf16.gmra.mrb[232].mxu1 %v17052_v54  ;;  %4129 = vmatprep.mubr.bf16.mxu0 %v17067_v30  ;;  %v13426_v19 = vld [vmem:[#allocation5 + $0xb54] ss:$48 sps:$4 sm:$0xff]  }
 0x2ec   : > { %v15054_v9 = vadd.f32 %v11147_v60, %v11083_v42  ;;  %4610 = vmatprep.mubr.bf16.mxu1 %v17054_v21  ;;  %11669 = vmatpush3.bf16.msra.mxu0 %v13419_v44  ;;  %v13428_v15 = vld [vmem:[#allocation5 + $0x1154] ss:$48 sps:$4 sm:$0xff]  }
 0x2ed   : > { %v11164_v18 = vpop.f32.mrb[128].mxu0  ;;  %11733 = vmatpush3.bf16.msra.mxu1 %v13421_v2  ;;  %11670 = vmatprep.subr.bf16.mxu0 %v13422_v10  ;;  %v13427_v0 = vld [vmem:[#allocation5 + $0x854] ss:$48 sps:$4 sm:$0xff]  }
 0x2ee   : > { %v11228_v6 = vpop.f32.mrb[128].mxu1  ;;  %v11165_v45 = vpop.f32.mrb[129].mxu0  ;;  %11734 = vmatprep.subr.bf16.mxu1 %v13424_v63  ;;  %v13429_v12 = vld [vmem:[#allocation5 + $0xe54] ss:$48 sps:$4 sm:$0xff]  }
 0x2ef   : > { %v11166_v35 = vadd.f32 %v11165_v45, %v11164_v18  ;;  %v11229_v17 = vpop.f32.mrb[129].mxu1  ;;  %v11167_v23 = vpop.f32.mrb[130].mxu0  ;;  %v13430_v60 = vld [vmem:[#allocation5 + $0xbb4] ss:$48 sps:$4 sm:$0xff]  }
 0x2f0   : > { %v15057_v20 = vadd.f32 %v11229_v17, %v11228_v6  ;;  %v11231_v54 = vpop.f32.mrb[130].mxu1  ;;  %v11168_v42 = vpop.f32.mrb[131].mxu0  ;;  %11671 = vmatpush3.bf16.msra.mxu0 %v13423_v33  ;;  %v13432_v21 = vld [vmem:[#allocation5 + $0x11b4] ss:$48 sps:$4 sm:$0xff]  }
 0x2f1   : > { %v15060_v44 = vadd.f32 %v11166_v35, %v14993_v50  ;;  %v11169_v2 = vadd.f32 %v11168_v42, %v11167_v23  ;;  %v11232_v10 = vpop.f32.mrb[131].mxu1  ;;  %11735 = vmatpush3.bf16.msra.mxu1 %v13425_v3  ;;  %11672 = vmatprep.subr.bf16.mxu0 %v13426_v19  ;;  %v13431_v18 = vld [vmem:[#allocation5 + $0x8b4] ss:$48 sps:$4 sm:$0xff]   ;;  %v13436_v35 = vld [vmem:[#allocation5 + $0x918] ss:$48 sps:$4 sm:$0xff]  }
 0x2f2   : > { %v15063_v63 = vadd.f32 %v11232_v10, %v11231_v54  ;;  %4130 = vmatmul.mubr.bf16.gmra.mrb[236].mxu0 %v14631_v31  ;;  %11736 = vmatprep.subr.bf16.mxu1 %v13428_v15  ;;  %v13433_v50 = vld [vmem:[#allocation5 + $0xeb4] ss:$48 sps:$4 sm:$0xff]   ;;  %v13434_v54 = vld [vmem:[#allocation5 + $0x318] ss:$48 sps:$4 sm:$0xff]  }
 0x2f3   : > { %v2567_v6 = vadd.f32 %v11169_v2, %v14998_v55  ;;  %4611 = vmatmul.mubr.bf16.gmra.mrb[236].mxu1 %v14499_v27  ;;  %4137 = vmatprep.mubr.bf16.mxu0 %v14633_v32  ;;  %v16847_v33 = vrot.slane %v15060_v44, 2 }
 0x2f4   : > { %4618 = vmatprep.mubr.bf16.mxu1 %v14508_v37  ;;  %11673 = vmatpush3.bf16.msra.mxu0 %v13427_v0 }
 0x2f5   : > { %v2627_v3 = vrot.slane %v2567_v6, 2  ;;  %v11170_v19 = vpop.f32.mrb[132].mxu0  ;;  %11737 = vmatpush3.bf16.msra.mxu1 %v13429_v12  ;;  %11674 = vmatprep.subr.bf16.mxu0 %v13430_v60 }
 0x2f6   : > { %v11234_v45 = vpop.f32.mrb[132].mxu1  ;;  %v11171_v15 = vpop.f32.mrb[133].mxu0  ;;  %11738 = vmatprep.subr.bf16.mxu1 %v13432_v21 }
 0x2f7   : > { %v2657_v55 = vsel %vm2642_vm1, %v16847_v33, %v2627_v3  ;;  %v11172_v17 = vadd.f32 %v11171_v15, %v11170_v19  ;;  %v11235_v23 = vpop.f32.mrb[133].mxu1  ;;  %v11173_v42 = vpop.f32.mrb[134].mxu0 }
 0x2f8   : > { %v2659_v0 = vadd.f32 %v2657_v55, %v14915_v11  ;;  %v15076_v2 = vadd.f32 %v11235_v23, %v11234_v45  ;;  %v11237_v10 = vpop.f32.mrb[134].mxu1  ;;  %v11174_v12 = vpop.f32.mrb[135].mxu0  ;;  %11675 = vmatpush3.bf16.msra.mxu0 %v13431_v18  ;;  %v15085_v11 = vld [vmem:[#allocation8] ss:$0 sm:$0xff] }
 0x2f9   : > { %v2572_v60 = vadd.f32 %v11172_v17, %v15001_v57  ;;  %v11175_v6 = vadd.f32 %v11174_v12, %v11173_v42  ;;  %v11238_v21 = vpop.f32.mrb[135].mxu1  ;;  %11739 = vmatpush3.bf16.msra.mxu1 %v13433_v50  ;;  %11788 = vmatprep.subr.bf16.mxu0 %v13434_v54  ;;  %v15089_v57 = vadd.s32 8, %v14791_v59 }
 0x2fa   : > { %v15079_v37 = vadd.f32 %v11238_v21, %v11237_v10  ;;  %4138 = vmatmul.mubr.bf16.gmra.mrb[240].mxu0 %v14643_v5  ;;  %11852 = vmatprep.subr.bf16.mxu1 %v13436_v35  ;;  %v2682_v55 = vadd.f32 %v15085_v11, %v2659_v0 }
 0x2fb   : > { %v2628_v19 = vrot.slane %v2572_v60, 2  ;;  %v2575_v15 = vadd.f32 %v11175_v6, %v15006_v46  ;;  %4619 = vmatmul.mubr.bf16.gmra.mrb[240].mxu1 %v14519_v48  ;;  %4145 = vmatprep.mubr.bf16.mxu0 %v14645_v13  ;;  %17068 = vst [vmem:[#allocation78_spill] sm:$0xff] %v15089_v57  ;;  %vm2715_vm2 = vcmp.le.s32.totalorder %v15089_v57, 13 }
 0x2fc   : > { %4626 = vmatprep.mubr.bf16.mxu1 %v14525_v56 }
 0x2fd   : > { %v2656_v18 = vsel %vm2642_vm1, %v2627_v3, %v2628_v19  ;;  %v2629_v50 = vrot.slane %v2575_v15, 2  ;;  %v11176_v54 = vpop.f32.mrb[136].mxu0 }
 0x2fe   : > { %v2660_v45 = vadd.f32 %v2656_v18, %v14921_v52  ;;  %v11240_v35 = vpop.f32.mrb[136].mxu1  ;;  %v11177_v46 = vpop.f32.mrb[137].mxu0 }
 0x2ff   : > { %v2655_v17 = vsel %vm2642_vm1, %v2628_v19, %v2629_v50  ;;  %v11178_v23 = vadd.f32 %v11177_v46, %v11176_v54  ;;  %v11241_v42 = vpop.f32.mrb[137].mxu1  ;;  %v11179_v10 = vpop.f32.mrb[138].mxu0  ;;  %v2698_v19 = vmax.f32 %v2682_v55, 0.0 }
 0x300   : > { %v2683_v12 = vadd.f32 %v15085_v11, %v2660_v45  ;;  %v2661_v60 = vadd.f32 %v2655_v17, %v14925_v7  ;;  %v15099_v6 = vadd.f32 %v11241_v42, %v11240_v35  ;;  %v11243_v3 = vpop.f32.mrb[138].mxu1  ;;  %v11180_v21 = vpop.f32.mrb[139].mxu0 }
 0x301   : > { %v2580_v52 = vadd.f32 %v11178_v23, %v15009_v28  ;;  %v11181_v15 = vadd.f32 %v11180_v21, %v11179_v10  ;;  %v11244_v0 = vpop.f32.mrb[139].mxu1 }
 0x302   : > { %v2699_v18 = vmax.f32 %v2683_v12, 0.0  ;;  %v15103_v33 = vadd.f32 %v11244_v0, %v11243_v3  ;;  %4146 = vmatmul.mubr.bf16.gmra.mrb[244].mxu0 %v14655_v25  ;;  %v2684_v10 = vadd.f32 %v15085_v11, %v2661_v60 }
 0x303   : > { %v2630_v54 = vrot.slane %v2580_v52, 2  ;;  %v2583_v45 = vadd.f32 %v11181_v15, %v15014_v40  ;;  %4627 = vmatmul.mubr.bf16.gmra.mrb[244].mxu1 %v14539_v8  ;;  %4153 = vmatprep.mubr.bf16.mxu0 %v14657_v26 }
 0x304   : > { %v2717_v7 = vsel %vm2715_vm2, %v2699_v18, 0.0  ;;  %4634 = vmatprep.mubr.bf16.mxu1 %v17056_v39 }
 0x305   : > { %v2732_v28 = vmax.f32 %v2698_v19, %v2717_v7  ;;  %v2654_v35 = vsel %vm2642_vm1, %v2629_v50, %v2630_v54  ;;  %v2631_v46 = vrot.slane %v2583_v45, 2  ;;  %v11182_v17 = vpop.f32.mrb[140].mxu0 }
 0x306   : > { %v2662_v55 = vadd.f32 %v2654_v35, %v14931_v53  ;;  %v11246_v23 = vpop.f32.mrb[140].mxu1  ;;  %v11183_v42 = vpop.f32.mrb[141].mxu0 }
 0x307   : > { %v2733_v40 = vrot.slane %v2732_v28, 4  ;;  %v2653_v12 = vsel %vm2642_vm1, %v2630_v54, %v2631_v46  ;;  %v11184_v3 = vadd.f32 %v11183_v42, %v11182_v17  ;;  %v11247_v21 = vpop.f32.mrb[141].mxu1  ;;  %v11185_v52 = vpop.f32.mrb[142].mxu0  ;;  %v2700_v54 = vmax.f32 %v2684_v10, 0.0 }
 0x308   : > { %v2685_v15 = vadd.f32 %v15085_v11, %v2662_v55  ;;  %v2663_v0 = vadd.f32 %v2653_v12, %v14935_v36  ;;  %v15120_v50 = vadd.f32 %v11247_v21, %v11246_v23  ;;  %v11249_v18 = vpop.f32.mrb[142].mxu1  ;;  %v11186_v19 = vpop.f32.mrb[143].mxu0 }
 0x309   : > { %v2734_v53 = vmax.f32 %v2732_v28, %v2733_v40  ;;  %v2588_v45 = vadd.f32 %v11184_v3, %v15017_v58  ;;  %v11187_v7 = vadd.f32 %v11186_v19, %v11185_v52  ;;  %v11250_v35 = vpop.f32.mrb[143].mxu1 }
 0x30a   : > { %v2701_v60 = vmax.f32 %v2685_v15, 0.0  ;;  %v15123_v39 = vadd.f32 %v11250_v35, %v11249_v18  ;;  %4154 = vmatmul.mubr.bf16.gmra.mrb[248].mxu0 %v14667_v47  ;;  %v2686_v10 = vadd.f32 %v15085_v11, %v2663_v0  ;;  %v17069_v35 = vld [vmem:[#allocation67_spill] sm:$0xff] }
 0x30b   : > { %v2632_v17 = vrot.slane %v2588_v45, 2  ;;  %v2591_v55 = vadd.f32 %v11187_v7, %v15022_v51  ;;  %4635 = vmatmul.mubr.bf16.gmra.mrb[248].mxu1 %v17057_v61  ;;  %4161 = vmatprep.mubr.bf16.mxu0 %v14669_v49  ;;  %v2735_v36 = vrot.slane %v2734_v53, 2 }
 0x30c   : > { %v2719_v28 = vsel %vm2715_vm2, %v2701_v60, 0.0  ;;  %4642 = vmatprep.mubr.bf16.mxu1 %v17058_v34  ;;  %v2702_v34 = vmax.f32 %v2686_v10, 0.0 }
 0x30d   : > { %v2739_v58 = vmax.f32 %v2700_v54, %v2719_v28  ;;  %v2652_v23 = vsel %vm2642_vm1, %v2631_v46, %v2632_v17  ;;  %v2633_v42 = vrot.slane %v2591_v55, 2  ;;  %v11188_v40 = vpop.f32.mrb[144].mxu0  ;;  %v2736_v45 = vmax.f32 %v2734_v53, %v2735_v36 }
 0x30e   : > { %v2664_v51 = vadd.f32 %v2652_v23, %v14941_v62  ;;  %v11252_v12 = vpop.f32.mrb[144].mxu1  ;;  %v11189_v3 = vpop.f32.mrb[145].mxu0 }
 0x30f   : > { %v2740_v21 = vrot.slane %v2739_v58, 4  ;;  %v2651_v52 = vsel %vm2642_vm1, %v2632_v17, %v2633_v42  ;;  %v11190_v15 = vadd.f32 %v11189_v3, %v11188_v40  ;;  %v11253_v18 = vpop.f32.mrb[145].mxu1  ;;  %v11191_v19 = vpop.f32.mrb[146].mxu0  ;;  %v17070_v40 = vld [vmem:[#allocation65_spill] sm:$0xff]  ;;  %v2737_v3 = vrot.slane %v2736_v45, 1 }
 0x310   : > { %v2687_v7 = vadd.f32 %v15085_v11, %v2664_v51  ;;  %v2665_v46 = vadd.f32 %v2651_v52, %v17069_v35  ;;  %v15140_v60 = vadd.f32 %v11253_v18, %v11252_v12  ;;  %v11255_v54 = vpop.f32.mrb[146].mxu1  ;;  %v11192_v0 = vpop.f32.mrb[147].mxu0  ;;  %v17071_v12 = vld [vmem:[#allocation24_spill] sm:$0xff]  ;;  %v13435_v18 = vld [vmem:[#allocation5 + $0x18] ss:$48 sps:$4 sm:$0xff]  }
 0x311   : > { %v2741_v55 = vmax.f32 %v2739_v58, %v2740_v21  ;;  %v2596_v62 = vadd.f32 %v11190_v15, %v15025_v1  ;;  %v11193_v28 = vadd.f32 %v11192_v0, %v11191_v19  ;;  %v11256_v23 = vpop.f32.mrb[147].mxu1  ;;  %v17072_v19 = vld [vmem:[#allocation68_spill] sm:$0xff]  ;;  %v13437_v0 = vld [vmem:[#allocation5 + $0x618] ss:$48 sps:$4 sm:$0xff]  }
 0x312   : > { %v2703_v61 = vmax.f32 %v2687_v7, 0.0  ;;  %v15143_v17 = vadd.f32 %v11256_v23, %v11255_v54  ;;  %4162 = vmatmul.mubr.bf16.gmra.mrb[252].mxu0 %v17070_v40 }
 0x313   : > { %v2742_v53 = vrot.slane %v2741_v55, 2  ;;  %v2634_v36 = vrot.slane %v2596_v62, 2  ;;  %v2599_v51 = vadd.f32 %v11193_v28, %v15030_v41  ;;  %4643 = vmatmul.mubr.bf16.gmra.mrb[252].mxu1 %v17059_v14  ;;  %4683 = vmatprep.mubr.bf16.mxu0 %v17071_v12  ;;  %v2688_v41 = vadd.f32 %v15085_v11, %v2665_v46  ;;  %v13440_v14 = vld [vmem:[#allocation5 + $0x978] ss:$48 sps:$4 sm:$0xff]  }
 0x314   : > { %v2721_v1 = vsel %vm2715_vm2, %v2703_v61, 0.0  ;;  %4780 = vmatprep.mubr.bf16.mxu1 %v17060_v38 }
 0x315   : > { %v2743_v58 = vmax.f32 %v2741_v55, %v2742_v53  ;;  %v2746_v10 = vmax.f32 %v2702_v34, %v2721_v1  ;;  %v2650_v21 = vsel %vm2642_vm1, %v2633_v42, %v2634_v36  ;;  %v2635_v52 = vrot.slane %v2599_v51, 2  ;;  %v11194_v15 = vpop.f32.mrb[148].mxu0  ;;  %v13438_v42 = vld [vmem:[#allocation5 + $0x378] ss:$48 sps:$4 sm:$0xff]  }
 0x316   : > { %v2666_v7 = vadd.f32 %v2650_v21, %v17072_v19  ;;  %v11258_v35 = vpop.f32.mrb[148].mxu1  ;;  %v11195_v54 = vpop.f32.mrb[149].mxu0  ;;  %v2738_v53 = vmax.f32 %v2736_v45, %v2737_v3  ;;  %v17073_v1 = vld [vmem:[#allocation69_spill] sm:$0xff] }
 0x317   : > { %v2744_v62 = vrot.slane %v2743_v58, 1  ;;  %v2747_v61 = vrot.slane %v2746_v10, 4  ;;  %v2649_v55 = vsel %vm2642_vm1, %v2634_v36, %v2635_v52  ;;  %v11196_v34 = vadd.f32 %v11195_v54, %v11194_v15  ;;  %v11259_v28 = vpop.f32.mrb[149].mxu1  ;;  %v11197_v23 = vpop.f32.mrb[150].mxu0  ;;  %v13439_v15 = vld [vmem:[#allocation5 + $0x78] ss:$48 sps:$4 sm:$0xff]  }
 0x318   : > { %v2689_v51 = vadd.f32 %v15085_v11, %v2666_v7  ;;  %v2667_v46 = vadd.f32 %v2649_v55, %v17073_v1  ;;  %v15160_v38 = vadd.f32 %v11259_v28, %v11258_v35  ;;  %v11261_v21 = vpop.f32.mrb[150].mxu1  ;;  %v11198_v19 = vpop.f32.mrb[151].mxu0  ;;  %v2704_v54 = vmax.f32 %v2688_v41, 0.0  ;;  %v13441_v45 = vld [vmem:[#allocation5 + $0x678] ss:$48 sps:$4 sm:$0xff]   ;;  %v17075_v41 = vld [vmem:[#allocation28_spill] sm:$0xff] }
 0x319   : > { %v2745_v8 = vmax.f32 %v2743_v58, %v2744_v62  ;;  %v2748_v56 = vmax.f32 %v2746_v10, %v2747_v61  ;;  %v2604_v48 = vadd.f32 %v11196_v34, %v15033_v4  ;;  %v11199_v27 = vadd.f32 %v11198_v19, %v11197_v23  ;;  %v11262_v36 = vpop.f32.mrb[151].mxu1  ;;  %v13442_v3 = vld [vmem:[#allocation5 + $0x3d8] ss:$48 sps:$4 sm:$0xff]   ;;  %v17074_v58 = vld [vmem:[#allocation56_spill] sm:$0xff]  ;;  %v17077_v28 = vld [vmem:[#allocation70_spill] sm:$0xff] }
 0x31a   : > { %v2705_v12 = vmax.f32 %v2689_v51, 0.0  ;;  %v15163_v40 = vadd.f32 %v11262_v36, %v11261_v21  ;;  %4684 = vmatmul.mubr.bf16.vlgmr.msra.gmra.mrb[0].mxu0 %v17022_v22  ;;  %v13446_v36 = vld [vmem:[#allocation5 + $0x438] ss:$48 sps:$4 sm:$0xff]  }
 0x31b   : > { %v2749_v7 = vrot.slane %v2748_v56, 2  ;;  %v2636_v35 = vrot.slane %v2604_v48, 2  ;;  %v15167_v55 = vadd.f32 %v11199_v27, %v15037_v16  ;;  %4781 = vmatmul.mubr.bf16.vlgmr.msra.gmra.mrb[0].mxu1 %v17074_v58  ;;  %11789 = vmatpush3.bf16.msra.mxu0 %v13435_v18  ;;  %v9404_v4 = vsel %vm9403_vm3, %v2745_v8, %v2738_v53  ;;  %v17076_v16 = vld [vmem:[#allocation57_spill] sm:$0xff] }
 0x31c   : > { %v2723_v10 = vsel %vm2715_vm2, %v2705_v12, 0.0  ;;  %11853 = vmatpush3.bf16.msra.mxu1 %v13437_v0  ;;  %4691 = vmatprep.mubr.bf16.mxu0 %v17075_v41  ;;  %v13444_v18 = vld [vmem:[#allocation5 + $0x9d8] ss:$48 sps:$4 sm:$0xff]   ;;  %v2690_v8 = vadd.f32 %v15085_v11, %v2667_v46 }
 0x31d   : > { %v2750_v62 = vmax.f32 %v2748_v56, %v2749_v7  ;;  %v2753_v61 = vmax.f32 %v2704_v54, %v2723_v10  ;;  %v2648_v34 = vsel %vm2642_vm1, %v2635_v52, %v2636_v35  ;;  %v2637_v48 = vrot.slane %v15167_v55, 2  ;;  %v11200_v27 = vpop.f32.mrb[152].mxu0  ;;  %4788 = vmatprep.mubr.bf16.mxu1 %v17076_v16  ;;  %11790 = vmatprep.subr.bf16.mxu0 %v13438_v42  ;;  %v13443_v53 = vld [vmem:[#allocation5 + $0xd8] ss:$48 sps:$4 sm:$0xff]  }
 0x31e   : > { %v2668_v23 = vadd.f32 %v2648_v34, %v17077_v28  ;;  %v11264_v12 = vpop.f32.mrb[152].mxu1  ;;  %v11201_v0 = vpop.f32.mrb[153].mxu0  ;;  %11854 = vmatprep.subr.bf16.mxu1 %v13440_v14  ;;  %v13445_v42 = vld [vmem:[#allocation5 + $0x6d8] ss:$48 sps:$4 sm:$0xff]  }
 0x31f   : > { %v2751_v56 = vrot.slane %v2750_v62, 1  ;;  %v2754_v51 = vrot.slane %v2753_v61, 4  ;;  %v2647_v52 = vsel %vm2642_vm1, %v2636_v35, %v2637_v48  ;;  %v11202_v1 = vadd.f32 %v11201_v0, %v11200_v27  ;;  %v11265_v21 = vpop.f32.mrb[153].mxu1  ;;  %v11203_v19 = vpop.f32.mrb[154].mxu0  ;;  %11791 = vmatpush3.bf16.msra.mxu0 %v13439_v15  ;;  %v17078_v54 = vld [vmem:[#allocation71_spill] sm:$0xff] }
 0x320   : > { %v2691_v46 = vadd.f32 %v15085_v11, %v2668_v23  ;;  %v2669_v7 = vadd.f32 %v2647_v52, %v17078_v54  ;;  %v15184_v55 = vadd.f32 %v11265_v21, %v11264_v12  ;;  %v11267_v14 = vpop.f32.mrb[154].mxu1  ;;  %v11204_v10 = vpop.f32.mrb[155].mxu0  ;;  %11855 = vmatpush3.bf16.msra.mxu1 %v13441_v45  ;;  %11792 = vmatprep.subr.bf16.mxu0 %v13442_v3  ;;  %v13448_v34 = vld [vmem:[#allocation5 + $0xa38] ss:$48 sps:$4 sm:$0xff]   ;;  %v2706_v15 = vmax.f32 %v2690_v8, 0.0  ;;  %v17080_v23 = vld [vmem:[#allocation30_spill] sm:$0xff] }
 0x321   : > { %v2752_v28 = vmax.f32 %v2750_v62, %v2751_v56  ;;  %v2755_v16 = vmax.f32 %v2753_v61, %v2754_v51  ;;  %v2612_v35 = vadd.f32 %v11202_v1, %v15041_v43  ;;  %v11205_v27 = vadd.f32 %v11204_v10, %v11203_v19  ;;  %v11268_v0 = vpop.f32.mrb[155].mxu1  ;;  %11856 = vmatprep.subr.bf16.mxu1 %v13444_v18  ;;  %v13447_v12 = vld [vmem:[#allocation5 + $0x138] ss:$48 sps:$4 sm:$0xff]   ;;  %v17082_v3 = vld [vmem:[#allocation58_spill] sm:$0xff]  ;;  %v17083_v62 = vld [vmem:[#allocation32_spill] sm:$0xff] }
 0x322   : > { %v2707_v58 = vmax.f32 %v2691_v46, 0.0  ;;  %v15187_v41 = vadd.f32 %v11268_v0, %v11267_v14  ;;  %4692 = vmatmul.mubr.bf16.gmra.mrb[4].mxu0 %v17080_v23  ;;  %v17081_v54 = vld [vmem:[#allocation77_spill] sm:$0xff]  ;;  %v17084_v18 = vld [vmem:[#allocation59_spill] sm:$0xff]  ;;  %v17085_v10 = vld [vmem:[#allocation72_spill] sm:$0xff] }
 0x323   : > { %v2756_v52 = vrot.slane %v2755_v16, 2  ;;  %v2638_v21 = vrot.slane %v2612_v35, 2  ;;  %v15191_v45 = vadd.f32 %v11205_v27, %v17081_v54  ;;  %4789 = vmatmul.mubr.bf16.gmra.mrb[4].mxu1 %v17082_v3  ;;  %4699 = vmatprep.mubr.bf16.mxu0 %v17083_v62  ;;  %v9406_v43 = vsel %vm9405_vm4, %v2752_v28, %v9404_v4  ;;  %v13449_v46 = vld [vmem:[#allocation5 + $0x738] ss:$48 sps:$4 sm:$0xff]  }
 0x324   : > { %17079 = vst [vmem:[#allocation67_spill] sm:$0xff] %v15187_v41  ;;  %v2725_v61 = vsel %vm2715_vm2, %v2707_v58, 0.0  ;;  %4796 = vmatprep.mubr.bf16.mxu1 %v17084_v18  ;;  %11793 = vmatpush3.bf16.msra.mxu0 %v13443_v53  ;;  %v13450_v14 = vld [vmem:[#allocation5 + $0x498] ss:$48 sps:$4 sm:$0xff]   ;;  %v2692_v4 = vadd.f32 %v15085_v11, %v2669_v7 }
 0x325   : > { %v2757_v8 = vmax.f32 %v2755_v16, %v2756_v52  ;;  %v2760_v56 = vmax.f32 %v2706_v15, %v2725_v61  ;;  %v2646_v51 = vsel %vm2642_vm1, %v2637_v48, %v2638_v21  ;;  %v2639_v1 = vrot.slane %v15191_v45, 2  ;;  %v11206_v19 = vpop.f32.mrb[156].mxu0  ;;  %11857 = vmatpush3.bf16.msra.mxu1 %v13445_v42  ;;  %11794 = vmatprep.subr.bf16.mxu0 %v13446_v36  ;;  %v13451_v53 = vld [vmem:[#allocation5 + $0x198] ss:$48 sps:$4 sm:$0xff]  }
 0x326   : > { %v2670_v28 = vadd.f32 %v2646_v51, %v17085_v10  ;;  %v11270_v58 = vpop.f32.mrb[156].mxu1  ;;  %v11207_v35 = vpop.f32.mrb[157].mxu0  ;;  %11858 = vmatprep.subr.bf16.mxu1 %v13448_v34  ;;  %v13452_v16 = vld [vmem:[#allocation5 + $0xa98] ss:$48 sps:$4 sm:$0xff]  }
 0x327   : > { %v2758_v27 = vrot.slane %v2757_v8, 1  ;;  %v2761_v0 = vrot.slane %v2760_v56, 4  ;;  %v2645_v48 = vsel %vm2642_vm1, %v2638_v21, %v2639_v1  ;;  %v11208_v15 = vadd.f32 %v11207_v35, %v11206_v19  ;;  %v11271_v52 = vpop.f32.mrb[157].mxu1  ;;  %v11209_v42 = vpop.f32.mrb[158].mxu0  ;;  %v13453_v36 = vld [vmem:[#allocation5 + $0x798] ss:$48 sps:$4 sm:$0xff]  }
 0x328   : > { %v13454_v54 = vld [vmem:[#allocation5 + $0x4f8] ss:$48 sps:$4 sm:$0xff]   ;;  %v2693_v45 = vadd.f32 %v15085_v11, %v2670_v28  ;;  %v15208_v51 = vadd.f32 %v11271_v52, %v11270_v58  ;;  %v11273_v10 = vpop.f32.mrb[158].mxu1  ;;  %v11210_v34 = vpop.f32.mrb[159].mxu0  ;;  %11795 = vmatpush3.bf16.msra.mxu0 %v13447_v12  ;;  %v2708_v19 = vmax.f32 %v2692_v4, 0.0  ;;  %v17087_v28 = vld [vmem:[#allocation34_spill] sm:$0xff] }
 0x329   : > { %v17086_v7 = vld [vmem:[#allocation73_spill] sm:$0xff]  ;;  %v2762_v3 = vmax.f32 %v2760_v56, %v2761_v0  ;;  %v2620_v62 = vadd.f32 %v11208_v15, %v15049_v29  ;;  %v11211_v23 = vadd.f32 %v11210_v34, %v11209_v42  ;;  %v11274_v21 = vpop.f32.mrb[159].mxu1  ;;  %11859 = vmatpush3.bf16.msra.mxu1 %v13449_v46  ;;  %11796 = vmatprep.subr.bf16.mxu0 %v13450_v14  ;;  %v17088_v29 = vld [vmem:[#allocation36_spill] sm:$0xff]  ;;  %v17089_v15 = vld [vmem:[#allocation74_spill] sm:$0xff] }
 0x32a   : > { %v2671_v61 = vadd.f32 %v2645_v48, %v17086_v7  ;;  %v13456_v18 = vld [vmem:[#allocation5 + $0xaf8] ss:$48 sps:$4 sm:$0xff]   ;;  %v2709_v35 = vmax.f32 %v2693_v45, 0.0  ;;  %v15211_v41 = vadd.f32 %v11274_v21, %v11273_v10  ;;  %4700 = vmatmul.mubr.bf16.gmra.mrb[8].mxu0 %v17087_v28  ;;  %11860 = vmatprep.subr.bf16.mxu1 %v13452_v16  ;;  %v2759_v48 = vmax.f32 %v2757_v8, %v2758_v27 }
 0x32b   : > { %v13455_v58 = vld [vmem:[#allocation5 + $0x1f8] ss:$48 sps:$4 sm:$0xff]   ;;  %v2763_v52 = vrot.slane %v2762_v3, 2  ;;  %v2640_v12 = vrot.slane %v2620_v62, 2  ;;  %v2623_v56 = vadd.f32 %v11211_v23, %v15054_v9  ;;  %4797 = vmatmul.mubr.bf16.gmra.mrb[8].mxu1 %v17066_v24  ;;  %4707 = vmatprep.mubr.bf16.mxu0 %v17088_v29  ;;  %v17090_v10 = vrot.slane %v15060_v44, 2 }
 0x32c   : > { %v2727_v46 = vsel %vm2715_vm2, %v2709_v35, 0.0  ;;  %4804 = vmatprep.mubr.bf16.mxu1 %v17067_v30  ;;  %11797 = vmatpush3.bf16.msra.mxu0 %v13451_v53  ;;  %v15221_v14 = vsel %vm9407_vm5, %v2759_v48, %v9406_v43  ;;  %v13457_v23 = vld [vmem:[#allocation5 + $0x7f8] ss:$48 sps:$4 sm:$0xff]   ;;  %v2694_v0 = vadd.f32 %v15085_v11, %v2671_v61 }
 0x32d   : > { %v2764_v4 = vmax.f32 %v2762_v3, %v2763_v52  ;;  %v2767_v16 = vmax.f32 %v2708_v19, %v2727_v46  ;;  %v2644_v62 = vsel %vm2642_vm1, %v2639_v1, %v2640_v12  ;;  %v2641_v8 = vrot.slane %v2623_v56, 2  ;;  %v11292_v9 = vpop.f32.mrb[160].mxu0  ;;  %11861 = vmatpush3.bf16.msra.mxu1 %v13453_v36  ;;  %11798 = vmatprep.subr.bf16.mxu0 %v13454_v54  ;;  %v13458_v27 = vld [vmem:[#allocation5 + $0x558] ss:$48 sps:$4 sm:$0xff]   ;;  %v17092_v52 = vld [vmem:[#allocation76_spill] sm:$0xff] }
 0x32e   : > { %v2672_v42 = vadd.f32 %v2644_v62, %v17089_v15  ;;  %v11356_v45 = vpop.f32.mrb[160].mxu1  ;;  %v11293_v53 = vpop.f32.mrb[161].mxu0  ;;  %11862 = vmatprep.subr.bf16.mxu1 %v13456_v18  ;;  %v13459_v43 = vld [vmem:[#allocation5 + $0x258] ss:$48 sps:$4 sm:$0xff]  }
 0x32f   : > { %v13460_v7 = vld [vmem:[#allocation5 + $0xb58] ss:$48 sps:$4 sm:$0xff]   ;;  %v2768_v3 = vrot.slane %v2767_v16, 4  ;;  %v2643_v1 = vsel %vm2642_vm1, %v2640_v12, %v2641_v8  ;;  %v2658_v36 = vsel %vm2642_vm1, %v2641_v8, %v17090_v10  ;;  %v11294_v54 = vadd.f32 %v11293_v53, %v11292_v9  ;;  %v11357_v34 = vpop.f32.mrb[161].mxu1  ;;  %v11295_v61 = vpop.f32.mrb[162].mxu0 }
 0x330   : > { %v13461_v21 = vld [vmem:[#allocation5 + $0x858] ss:$48 sps:$4 sm:$0xff]   ;;  %v2695_v35 = vadd.f32 %v15085_v11, %v2672_v42  ;;  %v2674_v56 = vadd.f32 %v2658_v36, %v17092_v52  ;;  %v11358_v46 = vadd.f32 %v11357_v34, %v11356_v45  ;;  %v11359_v62 = vpop.f32.mrb[162].mxu1  ;;  %v11296_v15 = vpop.f32.mrb[163].mxu0  ;;  %11799 = vmatpush3.bf16.msra.mxu0 %v13455_v58  ;;  %v2765_v53 = vrot.slane %v2764_v4, 1  ;;  %v17093_v36 = vld [vmem:[#allocation38_spill] sm:$0xff] }
 0x331   : > { %v13462_v19 = vld [vmem:[#allocation5 + $0x5b8] ss:$48 sps:$4 sm:$0xff]   ;;  %v2769_v44 = vmax.f32 %v2767_v16, %v2768_v3  ;;  %v3400_v30 = vadd.f32 %v11294_v54, %v15057_v20  ;;  %v11297_v8 = vadd.f32 %v11296_v15, %v11295_v61  ;;  %v11360_v9 = vpop.f32.mrb[163].mxu1  ;;  %11863 = vmatpush3.bf16.msra.mxu1 %v13457_v23  ;;  %11800 = vmatprep.subr.bf16.mxu0 %v13458_v27  ;;  %v2710_v45 = vmax.f32 %v2694_v0, 0.0  ;;  %v17094_v20 = vld [vmem:[#allocation40_spill] sm:$0xff] }
 0x332   : > { %v17091_v18 = vld [vmem:[#allocation75_spill] sm:$0xff]  ;;  %v2711_v10 = vmax.f32 %v2695_v35, 0.0  ;;  %4708 = vmatmul.mubr.bf16.gmra.mrb[12].mxu0 %v17093_v36  ;;  %11864 = vmatprep.subr.bf16.mxu1 %v13460_v7  ;;  %v2766_v3 = vmax.f32 %v2764_v4, %v2765_v53  ;;  %v13468_v52 = vld [vmem:[#allocation5 + $0x320] ss:$48 sps:$4 sm:$0xff]  }
 0x333   : > { %v2673_v48 = vadd.f32 %v2643_v1, %v17091_v18  ;;  %v13464_v12 = vld [vmem:[#allocation5 + $0xbb8] ss:$48 sps:$4 sm:$0xff]   ;;  %v2697_v1 = vadd.f32 %v15085_v11, %v2674_v56  ;;  %v11361_v18 = vadd.f32 %v11360_v9, %v11359_v62  ;;  %v15240_v58 = vadd.f32 %v11358_v46, %v3400_v30  ;;  %4805 = vmatmul.mubr.bf16.gmra.mrb[12].mxu1 %v14631_v31 }
 0x334   : > { %v3403_v16 = vadd.f32 %v11297_v8, %v15063_v63  ;;  %4715 = vmatprep.mubr.bf16.mxu0 %v17094_v20  ;;  %v13463_v23 = vld [vmem:[#allocation5 + $0x2b8] ss:$48 sps:$4 sm:$0xff]   ;;  %v2729_v54 = vsel %vm2715_vm2, %v2711_v10, 0.0  ;;  %4812 = vmatprep.mubr.bf16.mxu1 %v14633_v32  ;;  %v2770_v63 = vrot.slane %v2769_v44, 2  ;;  %v9410_v56 = vsel %vm9409_vm6, %v2766_v3, %v15221_v14  ;;  %v17095_v14 = vld [vmem:[#allocation42_spill] sm:$0xff] }
 0x335   : > { %v2696_v42 = vadd.f32 %v15085_v11, %v2673_v48  ;;  %v13465_v27 = vld [vmem:[#allocation5 + $0x8b8] ss:$48 sps:$4 sm:$0xff]   ;;  %v2713_v34 = vmax.f32 %v2697_v1, 0.0  ;;  %11801 = vmatpush3.bf16.msra.mxu0 %v13459_v43  ;;  %v2774_v30 = vmax.f32 %v2710_v45, %v2729_v54  ;;  %v11298_v61 = vpop.f32.mrb[164].mxu0  ;;  %11865 = vmatpush3.bf16.msra.mxu1 %v13461_v21  ;;  %v16862_v43 = vrot.slane %v15240_v58, 1 }
 0x336   : > { %v13466_v0 = vld [vmem:[#allocation5 + $0xf18] ss:$48 sps:$4 sm:$0xff]   ;;  %v3500_v7 = vadd.f32 %v11361_v18, %v3403_v16  ;;  %11802 = vmatprep.subr.bf16.mxu0 %v13462_v19  ;;  %v11362_v48 = vpop.f32.mrb[164].mxu1  ;;  %v11299_v4 = vpop.f32.mrb[165].mxu0  ;;  %11866 = vmatprep.subr.bf16.mxu1 %v13464_v12 }
 0x337   : > { %v2712_v11 = vmax.f32 %v2696_v42, 0.0  ;;  %v2731_v35 = vsel %vm2715_vm2, %v2713_v34, 0.0  ;;  %v11300_v15 = vadd.f32 %v11299_v4, %v11298_v61  ;;  %v11363_v8 = vpop.f32.mrb[165].mxu1  ;;  %v11301_v21 = vpop.f32.mrb[166].mxu0 }
 0x338   : > { %v3560_v62 = vrot.slane %v3500_v7, 1  ;;  %v11364_v19 = vadd.f32 %v11363_v8, %v11362_v48  ;;  %v11365_v9 = vpop.f32.mrb[166].mxu1  ;;  %v11302_v53 = vpop.f32.mrb[167].mxu0 }
 0x339   : > { %v15252_v46 = vmax.f32 %v2712_v11, %v2731_v35  ;;  %11803 = vmatpush3.bf16.msra.mxu0 %v13463_v23  ;;  %v3408_v10 = vadd.f32 %v11300_v15, %v15076_v2  ;;  %v11303_v42 = vadd.f32 %v11302_v53, %v11301_v21  ;;  %v11366_v12 = vpop.f32.mrb[167].mxu1  ;;  %11867 = vmatpush3.bf16.msra.mxu1 %v13465_v27  ;;  %v17096_v2 = vld [vmem:[#allocation44_spill] sm:$0xff]  ;;  %v2775_v11 = vrot.slane %v2774_v30, 4 }
 0x33a   : > { %11916 = vmatprep.subr.bf16.mxu0 %v13466_v0  ;;  %v11367_v1 = vadd.f32 %v11366_v12, %v11365_v9  ;;  %4716 = vmatmul.mubr.bf16.gmra.mrb[16].mxu0 %v17095_v14  ;;  %v15261_v18 = vsel %vm1355_vm0, %v16862_v43, %v3560_v62  ;;  %v2771_v23 = vmax.f32 %v2769_v44, %v2770_v63  ;;  %v13471_v43 = vld [vmem:[#allocation5 + $0xc78] ss:$48 sps:$4 sm:$0xff]  }
 0x33b   : > { %11980 = vmatprep.subr.bf16.mxu1 %v13468_v52  ;;  %v3505_v45 = vadd.f32 %v11364_v19, %v3408_v10  ;;  %v3411_v16 = vadd.f32 %v11303_v42, %v15079_v37  ;;  %4813 = vmatmul.mubr.bf16.gmra.mrb[16].mxu1 %v14643_v5  ;;  %v2776_v53 = vmax.f32 %v2774_v30, %v2775_v11  ;;  %v17097_v42 = vld [vmem:[#allocation46_spill] sm:$0xff] }
 0x33c   : > { %4723 = vmatprep.mubr.bf16.mxu0 %v17096_v2  ;;  %4820 = vmatprep.mubr.bf16.mxu1 %v14645_v13  ;;  %v2772_v4 = vrot.slane %v2771_v23, 1 }
 0x33d   : > { %v3561_v27 = vrot.slane %v3505_v45, 1  ;;  %v3508_v3 = vadd.f32 %v11367_v1, %v3411_v16  ;;  %v11304_v54 = vpop.f32.mrb[168].mxu0  ;;  %v17098_v1 = vld [vmem:[#allocation48_spill] sm:$0xff] }
 0x33e   : > { %v11368_v34 = vpop.f32.mrb[168].mxu1  ;;  %v11305_v0 = vpop.f32.mrb[169].mxu0  ;;  %v2773_v9 = vmax.f32 %v2771_v23, %v2772_v4 }
 0x33f   : > { %v3562_v7 = vrot.slane %v3508_v3, 1  ;;  %v11306_v61 = vadd.f32 %v11305_v0, %v11304_v54  ;;  %v11369_v35 = vpop.f32.mrb[169].mxu1  ;;  %v11307_v48 = vpop.f32.mrb[170].mxu0  ;;  %v15269_v37 = vsel %vm1355_vm0, %v3560_v62, %v3561_v27  ;;  %v2777_v0 = vrot.slane %v2776_v53, 2 }
 0x340   : > { %v11370_v52 = vadd.f32 %v11369_v35, %v11368_v34  ;;  %v11371_v44 = vpop.f32.mrb[170].mxu1  ;;  %v11308_v63 = vpop.f32.mrb[171].mxu0 }
 0x341   : > { %v3416_v15 = vadd.f32 %v11306_v61, %v15099_v6  ;;  %v11309_v8 = vadd.f32 %v11308_v63, %v11307_v48  ;;  %v11372_v21 = vpop.f32.mrb[171].mxu1  ;;  %v15274_v19 = vsel %vm1355_vm0, %v3561_v27, %v3562_v7  ;;  %v9412_v6 = vsel %vm9411_vm7, %v2773_v9, %v9410_v56 }
 0x342   : > { %v11373_v10 = vadd.f32 %v11372_v21, %v11371_v44  ;;  %4724 = vmatmul.mubr.bf16.gmra.mrb[20].mxu0 %v17097_v42  ;;  %v2778_v9 = vmax.f32 %v2776_v53, %v2777_v0 }
 0x343   : > { %v3513_v12 = vadd.f32 %v11370_v52, %v3416_v15  ;;  %v3419_v62 = vadd.f32 %v11309_v8, %v15103_v33  ;;  %4821 = vmatmul.mubr.bf16.gmra.mrb[20].mxu1 %v14655_v25  ;;  %4731 = vmatprep.mubr.bf16.mxu0 %v17098_v1  ;;  %v17099_v15 = vld [vmem:[#allocation50_spill] sm:$0xff] }
 0x344   : > { %4828 = vmatprep.mubr.bf16.mxu1 %v14657_v26  ;;  %v13485_v26 = vld [vmem:[#allocation5 + $0x1a0] ss:$48 sps:$4 sm:$0xff]  }
 0x345   : > { %v3563_v45 = vrot.slane %v3513_v12, 1  ;;  %v3516_v16 = vadd.f32 %v11373_v10, %v3419_v62  ;;  %v11310_v27 = vpop.f32.mrb[172].mxu0  ;;  %v2782_v62 = vrot.slane %v15252_v46, 4 }
 0x346   : > { %v11374_v3 = vpop.f32.mrb[172].mxu1  ;;  %v11311_v23 = vpop.f32.mrb[173].mxu0 }
 0x347   : > { %v3564_v30 = vrot.slane %v3516_v16, 1  ;;  %v11312_v54 = vadd.f32 %v11311_v23, %v11310_v27  ;;  %v11375_v11 = vpop.f32.mrb[173].mxu1  ;;  %v11313_v34 = vpop.f32.mrb[174].mxu0  ;;  %v15284_v33 = vsel %vm1355_vm0, %v3562_v7, %v3563_v45  ;;  %v17100_v7 = vld [vmem:[#allocation52_spill] sm:$0xff] }
 0x348   : > { %v11376_v61 = vadd.f32 %v11375_v11, %v11374_v3  ;;  %v11377_v35 = vpop.f32.mrb[174].mxu1  ;;  %v11314_v48 = vpop.f32.mrb[175].mxu0  ;;  %v2779_v11 = vrot.slane %v2778_v9, 1 }
 0x349   : > { %v3424_v56 = vadd.f32 %v11312_v54, %v15120_v50  ;;  %v11315_v4 = vadd.f32 %v11314_v48, %v11313_v34  ;;  %v11378_v52 = vpop.f32.mrb[175].mxu1  ;;  %v15289_v44 = vsel %vm1355_vm0, %v3563_v45, %v3564_v30 }
 0x34a   : > { %v11379_v63 = vadd.f32 %v11378_v52, %v11377_v35  ;;  %4732 = vmatmul.mubr.bf16.gmra.mrb[24].mxu0 %v17099_v15 }
 0x34b   : > { %v3521_v8 = vadd.f32 %v11376_v61, %v3424_v56  ;;  %v3427_v21 = vadd.f32 %v11315_v4, %v15123_v39  ;;  %4829 = vmatmul.mubr.bf16.gmra.mrb[24].mxu1 %v14667_v47  ;;  %4739 = vmatprep.mubr.bf16.mxu0 %v17100_v7  ;;  %v2780_v4 = vmax.f32 %v2778_v9, %v2779_v11  ;;  %v13469_v11 = vld [vmem:[#allocation5 + $0x20] ss:$48 sps:$4 sm:$0xff]  }
 0x34c   : > { %4836 = vmatprep.mubr.bf16.mxu1 %v14669_v49  ;;  %v17110_v47 = vld [vmem:[#allocation30_spill] sm:$0xff] }
 0x34d   : > { %v3565_v50 = vrot.slane %v3521_v8, 1  ;;  %v3524_v10 = vadd.f32 %v11379_v63, %v3427_v21  ;;  %v11316_v12 = vpop.f32.mrb[176].mxu0  ;;  %v17101_v63 = vld [vmem:[#allocation54_spill] sm:$0xff]  ;;  %v2783_v8 = vmax.f32 %v15252_v46, %v2782_v62 }
 0x34e   : > { %v11380_v45 = vpop.f32.mrb[176].mxu1  ;;  %v11317_v16 = vpop.f32.mrb[177].mxu0 }
 0x34f   : > { %v3566_v27 = vrot.slane %v3524_v10, 1  ;;  %v11318_v3 = vadd.f32 %v11317_v16, %v11316_v12  ;;  %v11381_v23 = vpop.f32.mrb[177].mxu1  ;;  %v11319_v54 = vpop.f32.mrb[178].mxu0  ;;  %v15299_v39 = vsel %vm1355_vm0, %v3564_v30, %v3565_v50  ;;  %v17102_v10 = vld [vmem:[#allocation65_spill] sm:$0xff]  ;;  %v17103_v12 = vld [vmem:[#allocation23_spill] sm:$0xff] }
 0x350   : > { %v11382_v53 = vadd.f32 %v11381_v23, %v11380_v45  ;;  %v11383_v34 = vpop.f32.mrb[178].mxu1  ;;  %v11320_v0 = vpop.f32.mrb[179].mxu0  ;;  %v17104_v45 = vld [vmem:[#allocation24_spill] sm:$0xff] }
 0x351   : > { %v3432_v61 = vadd.f32 %v11318_v3, %v15140_v60  ;;  %v11321_v35 = vadd.f32 %v11320_v0, %v11319_v54  ;;  %v11384_v48 = vpop.f32.mrb[179].mxu1  ;;  %v15304_v56 = vsel %vm1355_vm0, %v3565_v50, %v3566_v27  ;;  %v15312_v60 = vsel %vm9413_vm8, %v2780_v4, %v9412_v6  ;;  %v13467_v3 = vld [vmem:[#allocation5 + $0xc18] ss:$48 sps:$4 sm:$0xff]   ;;  %v13472_v4 = vld [vmem:[#allocation5 + $0x380] ss:$48 sps:$4 sm:$0xff]  }
 0x352   : > { %v11385_v52 = vadd.f32 %v11384_v48, %v11383_v34  ;;  %4740 = vmatmul.mubr.bf16.gmra.mrb[28].mxu0 %v17101_v63  ;;  %v13470_v34 = vld [vmem:[#allocation5 + $0xf78] ss:$48 sps:$4 sm:$0xff]   ;;  %v2784_v6 = vrot.slane %v2783_v8, 2 }
 0x353   : > { %v3529_v30 = vadd.f32 %v11382_v53, %v3432_v61  ;;  %v3435_v21 = vadd.f32 %v11321_v35, %v15143_v17  ;;  %4837 = vmatmul.mubr.bf16.gmra.mrb[28].mxu1 %v17102_v10  ;;  %5309 = vmatprep.mubr.bf16.mxu0 %v17103_v12  ;;  %v17107_v10 = vld [vmem:[#allocation28_spill] sm:$0xff] }
 0x354   : > { %5406 = vmatprep.mubr.bf16.mxu1 %v17104_v45 }
 0x355   : > { %v3567_v50 = vrot.slane %v3529_v30, 1  ;;  %v3532_v16 = vadd.f32 %v11385_v52, %v3435_v21  ;;  %v11322_v9 = vpop.f32.mrb[180].mxu0 }
 0x356   : > { %v11386_v23 = vpop.f32.mrb[180].mxu1  ;;  %v11323_v54 = vpop.f32.mrb[181].mxu0 }
 0x357   : > { %v3568_v46 = vrot.slane %v3532_v16, 1  ;;  %v11324_v62 = vadd.f32 %v11323_v54, %v11322_v9  ;;  %v11387_v53 = vpop.f32.mrb[181].mxu1  ;;  %v11325_v17 = vpop.f32.mrb[182].mxu0  ;;  %v15317_v0 = vsel %vm1355_vm0, %v3566_v27, %v3567_v50  ;;  %v17105_v54 = vld [vmem:[#allocation25_spill] sm:$0xff] }
 0x358   : > { %v11388_v61 = vadd.f32 %v11387_v53, %v11386_v23  ;;  %v11389_v35 = vpop.f32.mrb[182].mxu1  ;;  %v11326_v48 = vpop.f32.mrb[183].mxu0  ;;  %v13473_v23 = vld [vmem:[#allocation5 + $0x80] ss:$48 sps:$4 sm:$0xff]   ;;  %v13474_v53 = vld [vmem:[#allocation5 + $0xfd8] ss:$48 sps:$4 sm:$0xff]  }
 0x359   : > { %v3440_v52 = vadd.f32 %v11324_v62, %v15160_v38  ;;  %v11327_v30 = vadd.f32 %v11326_v48, %v11325_v17  ;;  %v11390_v21 = vpop.f32.mrb[183].mxu1  ;;  %v15322_v16 = vsel %vm1355_vm0, %v3567_v50, %v3568_v46  ;;  %v13476_v38 = vld [vmem:[#allocation5 + $0x3e0] ss:$48 sps:$4 sm:$0xff]   ;;  %v2785_v62 = vmax.f32 %v2783_v8, %v2784_v6  ;;  %v17106_v17 = vld [vmem:[#allocation27_spill] sm:$0xff] }
 0x35a   : > { %v11391_v9 = vadd.f32 %v11390_v21, %v11389_v35  ;;  %5310 = vmatmul.mubr.bf16.vlgmr.msra.gmra.mrb[32].mxu0 %v17105_v54  ;;  %v13478_v8 = vld [vmem:[#allocation5 + $0x1038] ss:$48 sps:$4 sm:$0xff]  }
 0x35b   : > { %v3537_v27 = vadd.f32 %v11388_v61, %v3440_v52  ;;  %v3443_v57 = vadd.f32 %v11327_v30, %v15163_v40  ;;  %5407 = vmatmul.mubr.bf16.vlgmr.msra.gmra.mrb[32].mxu1 %v17022_v22  ;;  %11917 = vmatpush3.bf16.msra.mxu0 %v13467_v3  ;;  %v13475_v40 = vld [vmem:[#allocation5 + $0xcd8] ss:$48 sps:$4 sm:$0xff]   ;;  %v13477_v22 = vld [vmem:[#allocation5 + $0xe0] ss:$48 sps:$4 sm:$0xff]  }
 0x35c   : > { %11981 = vmatpush3.bf16.msra.mxu1 %v13469_v11  ;;  %5317 = vmatprep.mubr.bf16.mxu0 %v17106_v17 }
 0x35d   : > { %v3569_v48 = vrot.slane %v3537_v27, 1  ;;  %v3540_v50 = vadd.f32 %v11391_v9, %v3443_v57  ;;  %v11328_v45 = vpop.f32.mrb[184].mxu0  ;;  %5414 = vmatprep.mubr.bf16.mxu1 %v17107_v10  ;;  %11918 = vmatprep.subr.bf16.mxu0 %v13470_v34  ;;  %v2786_v57 = vrot.slane %v2785_v62, 1  ;;  %v13480_v34 = vld [vmem:[#allocation5 + $0x440] ss:$48 sps:$4 sm:$0xff]  }
 0x35e   : > { %v11392_v35 = vpop.f32.mrb[184].mxu1  ;;  %v11329_v61 = vpop.f32.mrb[185].mxu0  ;;  %11982 = vmatprep.subr.bf16.mxu1 %v13472_v4 }
 0x35f   : > { %v3570_v52 = vrot.slane %v3540_v50, 1  ;;  %v11330_v30 = vadd.f32 %v11329_v61, %v11328_v45  ;;  %v11393_v3 = vpop.f32.mrb[185].mxu1  ;;  %v11331_v21 = vpop.f32.mrb[186].mxu0  ;;  %11919 = vmatpush3.bf16.msra.mxu0 %v13471_v43  ;;  %v15331_v11 = vsel %vm1355_vm0, %v3568_v46, %v3569_v48  ;;  %v2787_v61 = vmax.f32 %v2785_v62, %v2786_v57  ;;  %v17108_v46 = vld [vmem:[#allocation29_spill] sm:$0xff] }
 0x360   : > { %v11394_v6 = vadd.f32 %v11393_v3, %v11392_v35  ;;  %v11395_v9 = vpop.f32.mrb[186].mxu1  ;;  %v11332_v27 = vpop.f32.mrb[187].mxu0  ;;  %11983 = vmatpush3.bf16.msra.mxu1 %v13473_v23  ;;  %11920 = vmatprep.subr.bf16.mxu0 %v13474_v53  ;;  %v17109_v35 = vld [vmem:[#allocation67_spill] sm:$0xff] }
 0x361   : > { %v3448_v4 = vadd.f32 %v11330_v30, %v15184_v55  ;;  %v11333_v50 = vadd.f32 %v11332_v27, %v11331_v21  ;;  %v11396_v45 = vpop.f32.mrb[187].mxu1  ;;  %11984 = vmatprep.subr.bf16.mxu1 %v13476_v38  ;;  %v15336_v43 = vsel %vm1355_vm0, %v3569_v48, %v3570_v52  ;;  %v17111_v23 = vld [vmem:[#allocation31_spill] sm:$0xff]  ;;  %v13481_v55 = vld [vmem:[#allocation5 + $0x140] ss:$48 sps:$4 sm:$0xff]   ;;  %v15344_v38 = vsel %vm9415_vm9, %v2787_v61, %v15312_v60 }
 0x362   : > { %v11397_v10 = vadd.f32 %v11396_v45, %v11395_v9  ;;  %5318 = vmatmul.mubr.bf16.gmra.mrb[36].mxu0 %v17108_v46  ;;  %v13479_v53 = vld [vmem:[#allocation5 + $0xd38] ss:$48 sps:$4 sm:$0xff]   ;;  %17112 = vst [vmem:[#allocation68_spill] sm:$0xff] %v15344_v38  ;;  %v17113_v48 = vld [vmem:[#allocation32_spill] sm:$0xff] }
 0x363   : > { %v3545_v49 = vadd.f32 %v11394_v6, %v3448_v4  ;;  %v3451_v3 = vadd.f32 %v11333_v50, %v17109_v35  ;;  %5415 = vmatmul.mubr.bf16.gmra.mrb[36].mxu1 %v17110_v47  ;;  %5325 = vmatprep.mubr.bf16.mxu0 %v17111_v23  ;;  %v13482_v30 = vld [vmem:[#allocation5 + $0x1098] ss:$48 sps:$4 sm:$0xff]   ;;  %v13484_v4 = vld [vmem:[#allocation5 + $0x4a0] ss:$48 sps:$4 sm:$0xff]  }
 0x364   : > { %5422 = vmatprep.mubr.bf16.mxu1 %v17113_v48  ;;  %11921 = vmatpush3.bf16.msra.mxu0 %v13475_v40  ;;  %v13483_v27 = vld [vmem:[#allocation5 + $0xd98] ss:$48 sps:$4 sm:$0xff]  }
 0x365   : > { %v3571_v62 = vrot.slane %v3545_v49, 1  ;;  %v3548_v21 = vadd.f32 %v11397_v10, %v3451_v3  ;;  %v11334_v57 = vpop.f32.mrb[188].mxu0  ;;  %11985 = vmatpush3.bf16.msra.mxu1 %v13477_v22  ;;  %11922 = vmatprep.subr.bf16.mxu0 %v13478_v8  ;;  %v13486_v60 = vld [vmem:[#allocation5 + $0x10f8] ss:$48 sps:$4 sm:$0xff]   ;;  %v13488_v22 = vld [vmem:[#allocation5 + $0x500] ss:$48 sps:$4 sm:$0xff]  }
 0x366   : > { %v11398_v6 = vpop.f32.mrb[188].mxu1  ;;  %v11335_v9 = vpop.f32.mrb[189].mxu0  ;;  %11986 = vmatprep.subr.bf16.mxu1 %v13480_v34  ;;  %v13494_v38 = vld [vmem:[#allocation5 + $0x11b8] ss:$48 sps:$4 sm:$0xff]  }
 0x367   : > { %v3572_v50 = vrot.slane %v3548_v21, 1  ;;  %v11336_v45 = vadd.f32 %v11335_v9, %v11334_v57  ;;  %v11399_v35 = vpop.f32.mrb[189].mxu1  ;;  %v11337_v47 = vpop.f32.mrb[190].mxu0  ;;  %v15349_v61 = vsel %vm1355_vm0, %v3570_v52, %v3571_v62  ;;  %v17114_v9 = vld [vmem:[#allocation33_spill] sm:$0xff] }
 0x368   : > { %v11400_v49 = vadd.f32 %v11399_v35, %v11398_v6  ;;  %v11401_v10 = vpop.f32.mrb[190].mxu1  ;;  %v11338_v40 = vpop.f32.mrb[191].mxu0  ;;  %11923 = vmatpush3.bf16.msra.mxu0 %v13479_v53  ;;  %v17115_v53 = vld [vmem:[#allocation35_spill] sm:$0xff] }
 0x369   : > { %v3456_v8 = vadd.f32 %v11336_v45, %v15208_v51  ;;  %v11339_v34 = vadd.f32 %v11338_v40, %v11337_v47  ;;  %v11402_v3 = vpop.f32.mrb[191].mxu1  ;;  %11987 = vmatpush3.bf16.msra.mxu1 %v13481_v55  ;;  %11924 = vmatprep.subr.bf16.mxu0 %v13482_v30  ;;  %v15354_v21 = vsel %vm1355_vm0, %v3571_v62, %v3572_v50  ;;  %v13487_v51 = vld [vmem:[#allocation5 + $0xdf8] ss:$48 sps:$4 sm:$0xff]   ;;  %v13489_v47 = vld [vmem:[#allocation5 + $0x200] ss:$48 sps:$4 sm:$0xff]  }
 0x36a   : > { %v11403_v57 = vadd.f32 %v11402_v3, %v11401_v10  ;;  %5326 = vmatmul.mubr.bf16.gmra.mrb[40].mxu0 %v17114_v9  ;;  %11988 = vmatprep.subr.bf16.mxu1 %v13484_v4  ;;  %v13490_v45 = vld [vmem:[#allocation5 + $0x1158] ss:$48 sps:$4 sm:$0xff]   ;;  %v13493_v3 = vld [vmem:[#allocation5 + $0x260] ss:$48 sps:$4 sm:$0xff]  }
 0x36b   : > { %v3553_v52 = vadd.f32 %v11400_v49, %v3456_v8  ;;  %v3459_v6 = vadd.f32 %v11339_v34, %v15211_v41  ;;  %5423 = vmatmul.mubr.bf16.gmra.mrb[40].mxu1 %v17087_v28  ;;  %5333 = vmatprep.mubr.bf16.mxu0 %v17115_v53  ;;  %v13491_v49 = vld [vmem:[#allocation5 + $0xe58] ss:$48 sps:$4 sm:$0xff]   ;;  %v13492_v41 = vld [vmem:[#allocation5 + $0x560] ss:$48 sps:$4 sm:$0xff]  }
 0x36c   : > { %5430 = vmatprep.mubr.bf16.mxu1 %v17088_v29  ;;  %11925 = vmatpush3.bf16.msra.mxu0 %v13483_v27 }
 0x36d   : > { %v3573_v55 = vrot.slane %v3553_v52, 1  ;;  %v3556_v30 = vadd.f32 %v11403_v57, %v3459_v6  ;;  %v11420_v62 = vpop.f32.mrb[192].mxu0  ;;  %11989 = vmatpush3.bf16.msra.mxu1 %v13485_v26  ;;  %11926 = vmatprep.subr.bf16.mxu0 %v13486_v60  ;;  %v13496_v26 = vld [vmem:[#allocation5 + $0x5c0] ss:$48 sps:$4 sm:$0xff]  }
 0x36e   : > { %v11484_v35 = vpop.f32.mrb[192].mxu1  ;;  %v11421_v4 = vpop.f32.mrb[193].mxu0  ;;  %11990 = vmatprep.subr.bf16.mxu1 %v13488_v22 }
 0x36f   : > { %v3574_v10 = vrot.slane %v3556_v30, 1  ;;  %v11422_v40 = vadd.f32 %v11421_v4, %v11420_v62  ;;  %v11485_v8 = vpop.f32.mrb[193].mxu1  ;;  %v11423_v34 = vpop.f32.mrb[194].mxu0  ;;  %v15363_v29 = vsel %vm1355_vm0, %v3572_v50, %v3573_v55  ;;  %v17116_v4 = vld [vmem:[#allocation37_spill] sm:$0xff] }
 0x370   : > { %v11486_v27 = vadd.f32 %v11485_v8, %v11484_v35  ;;  %v11487_v57 = vpop.f32.mrb[194].mxu1  ;;  %v11424_v52 = vpop.f32.mrb[195].mxu0  ;;  %11927 = vmatpush3.bf16.msra.mxu0 %v13487_v51  ;;  %v13495_v50 = vld [vmem:[#allocation5 + $0xeb8] ss:$48 sps:$4 sm:$0xff]   ;;  %v17117_v35 = vrot.slane %v15240_v58, 1 }
 0x371   : > { %v3914_v60 = vadd.f32 %v11422_v40, %v15261_v18  ;;  %v11425_v22 = vadd.f32 %v11424_v52, %v11423_v34  ;;  %v11488_v6 = vpop.f32.mrb[195].mxu1  ;;  %11991 = vmatpush3.bf16.msra.mxu1 %v13489_v47  ;;  %11928 = vmatprep.subr.bf16.mxu0 %v13490_v45  ;;  %v15368_v30 = vsel %vm1355_vm0, %v3573_v55, %v3574_v10  ;;  %v17118_v45 = vld [vmem:[#allocation39_spill] sm:$0xff]  ;;  %v13497_v55 = vld [vmem:[#allocation5 + $0x2c0] ss:$48 sps:$4 sm:$0xff]  }
 0x372   : > { %v11489_v62 = vadd.f32 %v11488_v6, %v11487_v57  ;;  %5334 = vmatmul.mubr.bf16.gmra.mrb[44].mxu0 %v17116_v4  ;;  %11992 = vmatprep.subr.bf16.mxu1 %v13492_v41  ;;  %v15375_v51 = vsel %vm1355_vm0, %v3574_v10, %v17117_v35  ;;  %v13498_v40 = vld [vmem:[#allocation5 + $0x920] ss:$48 sps:$4 sm:$0xff]  }
 0x373   : > { %v15377_v18 = vadd.f32 %v11486_v27, %v3914_v60  ;;  %v3917_v47 = vadd.f32 %v11425_v22, %v15269_v37  ;;  %5431 = vmatmul.mubr.bf16.gmra.mrb[44].mxu1 %v17093_v36  ;;  %5341 = vmatprep.mubr.bf16.mxu0 %v17118_v45  ;;  %v13500_v41 = vld [vmem:[#allocation5 + $0xf20] ss:$48 sps:$4 sm:$0xff]  }
 0x374   : > { %5438 = vmatprep.mubr.bf16.mxu1 %v17094_v20  ;;  %11929 = vmatpush3.bf16.msra.mxu0 %v13491_v49 }
 0x375   : > { %v15383_v8 = vadd.f32 %v11489_v62, %v3917_v47  ;;  %v11426_v58 = vpop.f32.mrb[196].mxu0  ;;  %11993 = vmatpush3.bf16.msra.mxu1 %v13493_v3  ;;  %11930 = vmatprep.subr.bf16.mxu0 %v13494_v38  ;;  %v17119_v47 = vld [vmem:[#allocation41_spill] sm:$0xff] }
 0x376   : > { %v11490_v10 = vpop.f32.mrb[196].mxu1  ;;  %v11427_v34 = vpop.f32.mrb[197].mxu0  ;;  %11994 = vmatprep.subr.bf16.mxu1 %v13496_v26  ;;  %v17120_v26 = vld [vmem:[#allocation43_spill] sm:$0xff] }
 0x377   : > { %v11428_v27 = vadd.f32 %v11427_v34, %v11426_v58  ;;  %v11491_v37 = vpop.f32.mrb[197].mxu1  ;;  %v11429_v57 = vpop.f32.mrb[198].mxu0 }
 0x378   : > { %v11492_v52 = vadd.f32 %v11491_v37, %v11490_v10  ;;  %v11493_v60 = vpop.f32.mrb[198].mxu1  ;;  %v11430_v22 = vpop.f32.mrb[199].mxu0  ;;  %11931 = vmatpush3.bf16.msra.mxu0 %v13495_v50 }
 0x379   : > { %v3922_v6 = vadd.f32 %v11428_v27, %v15274_v19  ;;  %v11431_v35 = vadd.f32 %v11430_v22, %v11429_v57  ;;  %v11494_v49 = vpop.f32.mrb[199].mxu1  ;;  %11995 = vmatpush3.bf16.msra.mxu1 %v13497_v55  ;;  %12044 = vmatprep.subr.bf16.mxu0 %v13498_v40  ;;  %v17121_v22 = vld [vmem:[#allocation45_spill] sm:$0xff] }
 0x37a   : > { %v11495_v62 = vadd.f32 %v11494_v49, %v11493_v60  ;;  %5342 = vmatmul.mubr.bf16.gmra.mrb[48].mxu0 %v17119_v47  ;;  %12108 = vmatprep.subr.bf16.mxu1 %v13500_v41  ;;  %v17122_v49 = vld [vmem:[#allocation47_spill] sm:$0xff] }
 0x37b   : > { %v15387_v38 = vadd.f32 %v11492_v52, %v3922_v6  ;;  %v3925_v3 = vadd.f32 %v11431_v35, %v15284_v33  ;;  %5439 = vmatmul.mubr.bf16.gmra.mrb[48].mxu1 %v17095_v14  ;;  %5349 = vmatprep.mubr.bf16.mxu0 %v17120_v26  ;;  %v13506_v14 = vld [vmem:[#allocation5 + $0x9e0] ss:$48 sps:$4 sm:$0xff]  }
 0x37c   : > { %5446 = vmatprep.mubr.bf16.mxu1 %v17096_v2  ;;  %v13505_v2 = vld [vmem:[#allocation5 + $0xc80] ss:$48 sps:$4 sm:$0xff]  }
 0x37d   : > { %v15393_v50 = vadd.f32 %v11495_v62, %v3925_v3  ;;  %v11432_v19 = vpop.f32.mrb[200].mxu0 }
 0x37e   : > { %v11496_v58 = vpop.f32.mrb[200].mxu1  ;;  %v11433_v55 = vpop.f32.mrb[201].mxu0 }
 0x37f   : > { %v11434_v40 = vadd.f32 %v11433_v55, %v11432_v19  ;;  %v11497_v10 = vpop.f32.mrb[201].mxu1  ;;  %v11435_v34 = vpop.f32.mrb[202].mxu0 }
 0x380   : > { %v11498_v27 = vadd.f32 %v11497_v10, %v11496_v58  ;;  %v11499_v41 = vpop.f32.mrb[202].mxu1  ;;  %v11436_v37 = vpop.f32.mrb[203].mxu0 }
 0x381   : > { %v3930_v57 = vadd.f32 %v11434_v40, %v15289_v44  ;;  %v11437_v33 = vadd.f32 %v11436_v37, %v11435_v34  ;;  %v11500_v52 = vpop.f32.mrb[203].mxu1 }
 0x382   : > { %v11501_v60 = vadd.f32 %v11500_v52, %v11499_v41  ;;  %5350 = vmatmul.mubr.bf16.gmra.mrb[52].mxu0 %v17121_v22 }
 0x383   : > { %v15397_v6 = vadd.f32 %v11498_v27, %v3930_v57  ;;  %v3933_v35 = vadd.f32 %v11437_v33, %v15299_v39  ;;  %5447 = vmatmul.mubr.bf16.gmra.mrb[52].mxu1 %v17097_v42  ;;  %5357 = vmatprep.mubr.bf16.mxu0 %v17122_v49  ;;  %v17123_v33 = vld [vmem:[#allocation49_spill] sm:$0xff] }
 0x384   : > { %5454 = vmatprep.mubr.bf16.mxu1 %v17098_v1 }
 0x385   : > { %v15403_v62 = vadd.f32 %v11501_v60, %v3933_v35  ;;  %v11438_v3 = vpop.f32.mrb[204].mxu0  ;;  %v17124_v35 = vld [vmem:[#allocation51_spill] sm:$0xff] }
 0x386   : > { %v11502_v19 = vpop.f32.mrb[204].mxu1  ;;  %v11439_v44 = vpop.f32.mrb[205].mxu0 }
 0x387   : > { %v11440_v58 = vadd.f32 %v11439_v44, %v11438_v3  ;;  %v11503_v55 = vpop.f32.mrb[205].mxu1  ;;  %v11441_v40 = vpop.f32.mrb[206].mxu0 }
 0x388   : > { %v11504_v10 = vadd.f32 %v11503_v55, %v11502_v19  ;;  %v11505_v34 = vpop.f32.mrb[206].mxu1  ;;  %v11442_v27 = vpop.f32.mrb[207].mxu0 }
 0x389   : > { %v3938_v41 = vadd.f32 %v11440_v58, %v15304_v56  ;;  %v11443_v39 = vadd.f32 %v11442_v27, %v11441_v40  ;;  %v11506_v37 = vpop.f32.mrb[207].mxu1 }
 0x38a   : > { %v11507_v57 = vadd.f32 %v11506_v37, %v11505_v34  ;;  %5358 = vmatmul.mubr.bf16.gmra.mrb[56].mxu0 %v17123_v33 }
 0x38b   : > { %v15407_v52 = vadd.f32 %v11504_v10, %v3938_v41  ;;  %v3941_v60 = vadd.f32 %v11443_v39, %v15317_v0  ;;  %5455 = vmatmul.mubr.bf16.gmra.mrb[56].mxu1 %v17099_v15  ;;  %5365 = vmatprep.mubr.bf16.mxu0 %v17124_v35  ;;  %v17125_v15 = vld [vmem:[#allocation53_spill] sm:$0xff] }
 0x38c   : > { %5462 = vmatprep.mubr.bf16.mxu1 %v17100_v7 }
 0x38d   : > { %v15413_v3 = vadd.f32 %v11507_v57, %v3941_v60  ;;  %v11444_v19 = vpop.f32.mrb[208].mxu0  ;;  %v17126_v60 = vld [vmem:[#allocation55_spill] sm:$0xff] }
 0x38e   : > { %v11508_v44 = vpop.f32.mrb[208].mxu1  ;;  %v11445_v56 = vpop.f32.mrb[209].mxu0 }
 0x38f   : > { %v11446_v58 = vadd.f32 %v11445_v56, %v11444_v19  ;;  %v11509_v55 = vpop.f32.mrb[209].mxu1  ;;  %v11447_v40 = vpop.f32.mrb[210].mxu0 }
 0x390   : > { %v11510_v34 = vadd.f32 %v11509_v55, %v11508_v44  ;;  %v11511_v27 = vpop.f32.mrb[210].mxu1  ;;  %v11448_v10 = vpop.f32.mrb[211].mxu0  ;;  %v13501_v55 = vld [vmem:[#allocation5 + $0xc20] ss:$48 sps:$4 sm:$0xff]  }
 0x391   : > { %v3946_v41 = vadd.f32 %v11446_v58, %v15322_v16  ;;  %v11449_v0 = vadd.f32 %v11448_v10, %v11447_v40  ;;  %v11512_v39 = vpop.f32.mrb[211].mxu1  ;;  %v13499_v58 = vld [vmem:[#allocation5 + $0x620] ss:$48 sps:$4 sm:$0xff]  }
 0x392   : > { %v11513_v37 = vadd.f32 %v11512_v39, %v11511_v27  ;;  %5366 = vmatmul.mubr.bf16.gmra.mrb[60].mxu0 %v17125_v15 }
 0x393   : > { %v15417_v1 = vadd.f32 %v11510_v34, %v3946_v41  ;;  %v3949_v57 = vadd.f32 %v11449_v0, %v15331_v11  ;;  %5463 = vmatmul.mubr.bf16.gmra.mrb[60].mxu1 %v17101_v63  ;;  %5503 = vmatprep.mubr.bf16.mxu0 %v17126_v60  ;;  %v13502_v34 = vld [vmem:[#allocation5 + $0x980] ss:$48 sps:$4 sm:$0xff]  }
 0x394   : > { %6242 = vmatprep.mubr.bf16.mxu1 %v17103_v12  ;;  %v13504_v0 = vld [vmem:[#allocation5 + $0xf80] ss:$48 sps:$4 sm:$0xff]  }
 0x395   : > { %v15423_v19 = vadd.f32 %v11513_v37, %v3949_v57  ;;  %v11450_v44 = vpop.f32.mrb[212].mxu0  ;;  %v13503_v12 = vld [vmem:[#allocation5 + $0x680] ss:$48 sps:$4 sm:$0xff]  }
 0x396   : > { %v11514_v56 = vpop.f32.mrb[212].mxu1  ;;  %v11451_v16 = vpop.f32.mrb[213].mxu0  ;;  %v17127_v57 = vld [vmem:[#allocation56_spill] sm:$0xff] }
 0x397   : > { %v11452_v40 = vadd.f32 %v11451_v16, %v11450_v44  ;;  %v11515_v27 = vpop.f32.mrb[213].mxu1  ;;  %v11453_v10 = vpop.f32.mrb[214].mxu0  ;;  %v17128_v16 = vld [vmem:[#allocation57_spill] sm:$0xff] }
 0x398   : > { %v11516_v41 = vadd.f32 %v11515_v27, %v11514_v56  ;;  %v11517_v39 = vpop.f32.mrb[214].mxu1  ;;  %v11454_v11 = vpop.f32.mrb[215].mxu0  ;;  %v13508_v56 = vld [vmem:[#allocation5 + $0xfe0] ss:$48 sps:$4 sm:$0xff]  }
 0x399   : > { %v3954_v63 = vadd.f32 %v11452_v40, %v15336_v43  ;;  %v11455_v7 = vadd.f32 %v11454_v11, %v11453_v10  ;;  %v11518_v42 = vpop.f32.mrb[215].mxu1 }
 0x39a   : > { %v11519_v37 = vadd.f32 %v11518_v42, %v11517_v39  ;;  %5504 = vmatmul.mubr.bf16.vlgmr.msra.gmra.mrb[64].mxu0 %v17127_v57 }
 0x39b   : > { %v15427_v59 = vadd.f32 %v11516_v41, %v3954_v63  ;;  %v3957_v44 = vadd.f32 %v11455_v7, %v15349_v61  ;;  %6243 = vmatmul.mubr.bf16.vlgmr.msra.gmra.mrb[64].mxu1 %v17105_v54  ;;  %12045 = vmatpush3.bf16.msra.mxu0 %v13499_v58  ;;  %v13507_v63 = vld [vmem:[#allocation5 + $0x6e0] ss:$48 sps:$4 sm:$0xff]  }
 0x39c   : > { %12109 = vmatpush3.bf16.msra.mxu1 %v13501_v55  ;;  %5511 = vmatprep.mubr.bf16.mxu0 %v17128_v16  ;;  %v17129_v54 = vld [vmem:[#allocation58_spill] sm:$0xff] }
 0x39d   : > { %v15432_v43 = vadd.f32 %v11519_v37, %v3957_v44  ;;  %v11456_v40 = vpop.f32.mrb[216].mxu0  ;;  %6250 = vmatprep.mubr.bf16.mxu1 %v17106_v17  ;;  %12046 = vmatprep.subr.bf16.mxu0 %v13502_v34  ;;  %v13509_v44 = vld [vmem:[#allocation5 + $0xce0] ss:$48 sps:$4 sm:$0xff]  }
 0x39e   : > { %v11520_v42 = vpop.f32.mrb[216].mxu1  ;;  %v11457_v27 = vpop.f32.mrb[217].mxu0  ;;  %12110 = vmatprep.subr.bf16.mxu1 %v13504_v0  ;;  %v13510_v34 = vld [vmem:[#allocation5 + $0xa40] ss:$48 sps:$4 sm:$0xff]  }
 0x39f   : > { %v11458_v10 = vadd.f32 %v11457_v27, %v11456_v40  ;;  %v11521_v41 = vpop.f32.mrb[217].mxu1  ;;  %v11459_v7 = vpop.f32.mrb[218].mxu0  ;;  %12047 = vmatpush3.bf16.msra.mxu0 %v13503_v12  ;;  %v13512_v0 = vld [vmem:[#allocation5 + $0x1040] ss:$48 sps:$4 sm:$0xff]  }
 0x3a0   : > { %v11522_v61 = vadd.f32 %v11521_v41, %v11520_v42  ;;  %v11523_v58 = vpop.f32.mrb[218].mxu1  ;;  %v11460_v39 = vpop.f32.mrb[219].mxu0  ;;  %12111 = vmatpush3.bf16.msra.mxu1 %v13505_v2  ;;  %12048 = vmatprep.subr.bf16.mxu0 %v13506_v14  ;;  %v17130_v42 = vld [vmem:[#allocation59_spill] sm:$0xff]  ;;  %v13511_v14 = vld [vmem:[#allocation5 + $0x740] ss:$48 sps:$4 sm:$0xff]  }
 0x3a1   : > { %v3962_v55 = vadd.f32 %v11458_v10, %v15354_v21  ;;  %v11461_v11 = vadd.f32 %v11460_v39, %v11459_v7  ;;  %v11524_v37 = vpop.f32.mrb[219].mxu1  ;;  %12112 = vmatprep.subr.bf16.mxu1 %v13508_v56  ;;  %v13513_v56 = vld [vmem:[#allocation5 + $0xd40] ss:$48 sps:$4 sm:$0xff]  }
 0x3a2   : > { %v11525_v17 = vadd.f32 %v11524_v37, %v11523_v58  ;;  %5512 = vmatmul.mubr.bf16.gmra.mrb[68].mxu0 %v17129_v54  ;;  %v13514_v27 = vld [vmem:[#allocation5 + $0xaa0] ss:$48 sps:$4 sm:$0xff]  }
 0x3a3   : > { %v15437_v40 = vadd.f32 %v11522_v61, %v3962_v55  ;;  %v3965_v12 = vadd.f32 %v11461_v11, %v15363_v29  ;;  %6251 = vmatmul.mubr.bf16.gmra.mrb[68].mxu1 %v17108_v46  ;;  %5519 = vmatprep.mubr.bf16.mxu0 %v17130_v42  ;;  %v13516_v7 = vld [vmem:[#allocation5 + $0x10a0] ss:$48 sps:$4 sm:$0xff]   ;;  %v13536_v46 = vld [vmem:[#allocation5 + $0x97c] ss:$48 sps:$4 sm:$0xff]  }
 0x3a4   : > { %6258 = vmatprep.mubr.bf16.mxu1 %v17111_v23  ;;  %12049 = vmatpush3.bf16.msra.mxu0 %v13507_v63  ;;  %v13515_v63 = vld [vmem:[#allocation5 + $0x7a0] ss:$48 sps:$4 sm:$0xff]  }
 0x3a5   : > { %v15443_v2 = vadd.f32 %v11525_v17, %v3965_v12  ;;  %v11462_v21 = vpop.f32.mrb[220].mxu0  ;;  %12113 = vmatpush3.bf16.msra.mxu1 %v13509_v44  ;;  %12050 = vmatprep.subr.bf16.mxu0 %v13510_v34  ;;  %v13517_v44 = vld [vmem:[#allocation5 + $0xda0] ss:$48 sps:$4 sm:$0xff]  }
 0x3a6   : > { %v11526_v10 = vpop.f32.mrb[220].mxu1  ;;  %v11463_v41 = vpop.f32.mrb[221].mxu0  ;;  %12114 = vmatprep.subr.bf16.mxu1 %v13512_v0  ;;  %v13518_v34 = vld [vmem:[#allocation5 + $0xb00] ss:$48 sps:$4 sm:$0xff]  }
 0x3a7   : > { %v11464_v29 = vadd.f32 %v11463_v41, %v11462_v21  ;;  %v11527_v61 = vpop.f32.mrb[221].mxu1  ;;  %v11465_v58 = vpop.f32.mrb[222].mxu0  ;;  %v13520_v0 = vld [vmem:[#allocation5 + $0x1100] ss:$48 sps:$4 sm:$0xff]  }
 0x3a8   : > { %v11528_v39 = vadd.f32 %v11527_v61, %v11526_v10  ;;  %v11529_v55 = vpop.f32.mrb[222].mxu1  ;;  %v11466_v11 = vpop.f32.mrb[223].mxu0  ;;  %12051 = vmatpush3.bf16.msra.mxu0 %v13511_v14  ;;  %v17131_v14 = vld [vmem:[#allocation61_spill] sm:$0xff]  ;;  %v13521_v41 = vld [vmem:[#allocation5 + $0xe00] ss:$48 sps:$4 sm:$0xff]  }
 0x3a9   : > { %v3970_v17 = vadd.f32 %v11464_v29, %v15368_v30  ;;  %v11467_v37 = vadd.f32 %v11466_v11, %v11465_v58  ;;  %v11530_v12 = vpop.f32.mrb[223].mxu1  ;;  %12115 = vmatpush3.bf16.msra.mxu1 %v13513_v56  ;;  %12052 = vmatprep.subr.bf16.mxu0 %v13514_v27  ;;  %v13519_v30 = vld [vmem:[#allocation5 + $0x800] ss:$48 sps:$4 sm:$0xff]  }
 0x3aa   : > { %v11531_v23 = vadd.f32 %v11530_v12, %v11529_v55  ;;  %5520 = vmatmul.mubr.bf16.gmra.mrb[72].mxu0 %v17066_v24  ;;  %12116 = vmatprep.subr.bf16.mxu1 %v13516_v7  ;;  %v13522_v7 = vld [vmem:[#allocation5 + $0xb60] ss:$48 sps:$4 sm:$0xff]  }
 0x3ab   : > { %v15447_v21 = vadd.f32 %v11528_v39, %v3970_v17  ;;  %v3973_v10 = vadd.f32 %v11467_v37, %v15375_v51  ;;  %6259 = vmatmul.mubr.bf16.gmra.mrb[72].mxu1 %v17114_v9  ;;  %5527 = vmatprep.mubr.bf16.mxu0 %v17131_v14  ;;  %v13524_v58 = vld [vmem:[#allocation5 + $0x1160] ss:$48 sps:$4 sm:$0xff]  }
 0x3ac   : > { %6266 = vmatprep.mubr.bf16.mxu1 %v17115_v53  ;;  %12053 = vmatpush3.bf16.msra.mxu0 %v13515_v63  ;;  %v13523_v63 = vld [vmem:[#allocation5 + $0x860] ss:$48 sps:$4 sm:$0xff]   ;;  %v13534_v53 = vld [vmem:[#allocation5 + $0x37c] ss:$48 sps:$4 sm:$0xff]  }
 0x3ad   : > { %v15453_v56 = vadd.f32 %v11531_v23, %v3973_v10  ;;  %v11548_v27 = vpop.f32.mrb[224].mxu0  ;;  %12117 = vmatpush3.bf16.msra.mxu1 %v13517_v44  ;;  %12054 = vmatprep.subr.bf16.mxu0 %v13518_v34  ;;  %v13525_v34 = vld [vmem:[#allocation5 + $0xe60] ss:$48 sps:$4 sm:$0xff]  }
 0x3ae   : > { %v11612_v29 = vpop.f32.mrb[224].mxu1  ;;  %v11549_v61 = vpop.f32.mrb[225].mxu0  ;;  %12118 = vmatprep.subr.bf16.mxu1 %v13520_v0  ;;  %v13526_v10 = vld [vmem:[#allocation5 + $0xbc0] ss:$48 sps:$4 sm:$0xff]  }
 0x3af   : > { %v11550_v51 = vadd.f32 %v11549_v61, %v11548_v27  ;;  %v11613_v39 = vpop.f32.mrb[225].mxu1  ;;  %v11551_v55 = vpop.f32.mrb[226].mxu0  ;;  %v13528_v27 = vld [vmem:[#allocation5 + $0x11c0] ss:$48 sps:$4 sm:$0xff]  }
 0x3b0   : > { %v15455_v11 = vadd.f32 %v11613_v39, %v11612_v29  ;;  %v11615_v17 = vpop.f32.mrb[226].mxu1  ;;  %v11552_v37 = vpop.f32.mrb[227].mxu0  ;;  %12055 = vmatpush3.bf16.msra.mxu0 %v13519_v30 }
 0x3b1   : > { %v15458_v23 = vadd.f32 %v11550_v51, %v15377_v18  ;;  %v11553_v12 = vadd.f32 %v11552_v37, %v11551_v55  ;;  %v11616_v44 = vpop.f32.mrb[227].mxu1  ;;  %12119 = vmatpush3.bf16.msra.mxu1 %v13521_v41  ;;  %12056 = vmatprep.subr.bf16.mxu0 %v13522_v7  ;;  %v13527_v18 = vld [vmem:[#allocation5 + $0x8c0] ss:$48 sps:$4 sm:$0xff]   ;;  %v13530_v7 = vld [vmem:[#allocation5 + $0x31c] ss:$48 sps:$4 sm:$0xff]  }
 0x3b2   : > { %v15460_v0 = vadd.f32 %v11616_v44, %v11615_v17  ;;  %5528 = vmatmul.mubr.bf16.gmra.mrb[76].mxu0 %v14631_v31  ;;  %12120 = vmatprep.subr.bf16.mxu1 %v13524_v58  ;;  %v13529_v41 = vld [vmem:[#allocation5 + $0xec0] ss:$48 sps:$4 sm:$0xff]   ;;  %v13532_v58 = vld [vmem:[#allocation5 + $0x91c] ss:$48 sps:$4 sm:$0xff]  }
 0x3b3   : > { %v15464_v29 = vadd.f32 %v11553_v12, %v15383_v8  ;;  %6267 = vmatmul.mubr.bf16.gmra.mrb[76].mxu1 %v17116_v4  ;;  %5535 = vmatprep.mubr.bf16.mxu0 %v14633_v32  ;;  %v13533_v4 = vld [vmem:[#allocation5 + $0x61c] ss:$48 sps:$4 sm:$0xff]  }
 0x3b4   : > { %6274 = vmatprep.mubr.bf16.mxu1 %v17118_v45  ;;  %12057 = vmatpush3.bf16.msra.mxu0 %v13523_v63 }
 0x3b5   : > { %v11554_v30 = vpop.f32.mrb[228].mxu0  ;;  %12121 = vmatpush3.bf16.msra.mxu1 %v13525_v34  ;;  %12058 = vmatprep.subr.bf16.mxu0 %v13526_v10 }
 0x3b6   : > { %v11618_v61 = vpop.f32.mrb[228].mxu1  ;;  %v11555_v51 = vpop.f32.mrb[229].mxu0  ;;  %12122 = vmatprep.subr.bf16.mxu1 %v13528_v27 }
 0x3b7   : > { %v11556_v39 = vadd.f32 %v11555_v51, %v11554_v30  ;;  %v11619_v8 = vpop.f32.mrb[229].mxu1  ;;  %v11557_v55 = vpop.f32.mrb[230].mxu0 }
 0x3b8   : > { %v15469_v17 = vadd.f32 %v11619_v8, %v11618_v61  ;;  %v11621_v37 = vpop.f32.mrb[230].mxu1  ;;  %v11558_v12 = vpop.f32.mrb[231].mxu0  ;;  %12059 = vmatpush3.bf16.msra.mxu0 %v13527_v18 }
 0x3b9   : > { %v15472_v63 = vadd.f32 %v11556_v39, %v15387_v38  ;;  %v11559_v44 = vadd.f32 %v11558_v12, %v11557_v55  ;;  %v11622_v34 = vpop.f32.mrb[231].mxu1  ;;  %12123 = vmatpush3.bf16.msra.mxu1 %v13529_v41  ;;  %12172 = vmatprep.subr.bf16.mxu0 %v13530_v7 }
 0x3ba   : > { %v15474_v10 = vadd.f32 %v11622_v34, %v11621_v37  ;;  %5536 = vmatmul.mubr.bf16.gmra.mrb[80].mxu0 %v14643_v5  ;;  %12236 = vmatprep.subr.bf16.mxu1 %v13532_v58 }
 0x3bb   : > { %v15478_v27 = vadd.f32 %v11559_v44, %v15393_v50  ;;  %6275 = vmatmul.mubr.bf16.gmra.mrb[80].mxu1 %v17119_v47  ;;  %5543 = vmatprep.mubr.bf16.mxu0 %v14645_v13  ;;  %v17132_v44 = vld [vmem:[#allocation62_spill] sm:$0xff]  ;;  %v17135_v47 = vld [vmem:[#allocation65_spill] sm:$0xff] }
 0x3bc   : > { %6282 = vmatprep.mubr.bf16.mxu1 %v17120_v26 }
 0x3bd   : > { %v11560_v38 = vpop.f32.mrb[232].mxu0 }
 0x3be   : > { %v11624_v18 = vpop.f32.mrb[232].mxu1  ;;  %v11561_v30 = vpop.f32.mrb[233].mxu0 }
 0x3bf   : > { %v11562_v61 = vadd.f32 %v11561_v30, %v11560_v38  ;;  %v11625_v41 = vpop.f32.mrb[233].mxu1  ;;  %v11563_v7 = vpop.f32.mrb[234].mxu0 }
 0x3c0   : > { %v15483_v51 = vadd.f32 %v11625_v41, %v11624_v18  ;;  %v11627_v39 = vpop.f32.mrb[234].mxu1  ;;  %v11564_v8 = vpop.f32.mrb[235].mxu0 }
 0x3c1   : > { %v15486_v58 = vadd.f32 %v11562_v61, %v15397_v6  ;;  %v11565_v50 = vadd.f32 %v11564_v8, %v11563_v7  ;;  %v11628_v55 = vpop.f32.mrb[235].mxu1 }
 0x3c2   : > { %v15488_v37 = vadd.f32 %v11628_v55, %v11627_v39  ;;  %5544 = vmatmul.mubr.bf16.gmra.mrb[84].mxu0 %v14655_v25 }
 0x3c3   : > { %v15492_v12 = vadd.f32 %v11565_v50, %v15403_v62  ;;  %6283 = vmatmul.mubr.bf16.gmra.mrb[84].mxu1 %v17121_v22  ;;  %5551 = vmatprep.mubr.bf16.mxu0 %v17132_v44  ;;  %v17133_v22 = vld [vmem:[#allocation63_spill] sm:$0xff] }
 0x3c4   : > { %6290 = vmatprep.mubr.bf16.mxu1 %v17122_v49 }
 0x3c5   : > { %v11566_v34 = vpop.f32.mrb[236].mxu0 }
 0x3c6   : > { %v11630_v38 = vpop.f32.mrb[236].mxu1  ;;  %v11567_v18 = vpop.f32.mrb[237].mxu0 }
 0x3c7   : > { %v11568_v6 = vadd.f32 %v11567_v18, %v11566_v34  ;;  %v11631_v30 = vpop.f32.mrb[237].mxu1  ;;  %v11569_v61 = vpop.f32.mrb[238].mxu0  ;;  %v17134_v34 = vld [vmem:[#allocation64_spill] sm:$0xff] }
 0x3c8   : > { %v15497_v41 = vadd.f32 %v11631_v30, %v11630_v38  ;;  %v11633_v7 = vpop.f32.mrb[238].mxu1  ;;  %v11570_v39 = vpop.f32.mrb[239].mxu0 }
 0x3c9   : > { %v15500_v8 = vadd.f32 %v11568_v6, %v15407_v52  ;;  %v11571_v62 = vadd.f32 %v11570_v39, %v11569_v61  ;;  %v11634_v50 = vpop.f32.mrb[239].mxu1 }
 0x3ca   : > { %v15502_v55 = vadd.f32 %v11634_v50, %v11633_v7  ;;  %5552 = vmatmul.mubr.bf16.gmra.mrb[88].mxu0 %v17133_v22 }
 0x3cb   : > { %v15506_v49 = vadd.f32 %v11571_v62, %v15413_v3  ;;  %6291 = vmatmul.mubr.bf16.gmra.mrb[88].mxu1 %v17123_v33  ;;  %5559 = vmatprep.mubr.bf16.mxu0 %v17134_v34 }
 0x3cc   : > { %6298 = vmatprep.mubr.bf16.mxu1 %v17124_v35 }
 0x3cd   : > { %v11572_v38 = vpop.f32.mrb[240].mxu0 }
 0x3ce   : > { %v11636_v18 = vpop.f32.mrb[240].mxu1  ;;  %v11573_v30 = vpop.f32.mrb[241].mxu0 }
 0x3cf   : > { %v11574_v52 = vadd.f32 %v11573_v30, %v11572_v38  ;;  %v11637_v6 = vpop.f32.mrb[241].mxu1  ;;  %v11575_v61 = vpop.f32.mrb[242].mxu0  ;;  %v17137_v38 = vld [vmem:[#allocation24_spill] sm:$0xff] }
 0x3d0   : > { %v15511_v39 = vadd.f32 %v11637_v6, %v11636_v18  ;;  %v11639_v7 = vpop.f32.mrb[242].mxu1  ;;  %v11576_v50 = vpop.f32.mrb[243].mxu0 }
 0x3d1   : > { %v15514_v26 = vadd.f32 %v11574_v52, %v15417_v1  ;;  %v11577_v3 = vadd.f32 %v11576_v50, %v11575_v61  ;;  %v11640_v62 = vpop.f32.mrb[243].mxu1  ;;  %v13531_v50 = vld [vmem:[#allocation5 + $0x1c] ss:$48 sps:$4 sm:$0xff]  }
 0x3d2   : > { %v15516_v33 = vadd.f32 %v11640_v62, %v11639_v7  ;;  %5560 = vmatmul.mubr.bf16.gmra.mrb[92].mxu0 %v17135_v47 }
 0x3d3   : > { %v15520_v35 = vadd.f32 %v11577_v3, %v15423_v19  ;;  %6299 = vmatmul.mubr.bf16.gmra.mrb[92].mxu1 %v17125_v15  ;;  %6339 = vmatprep.mubr.bf16.mxu0 %v17137_v38 }
 0x3d4   : > { %6436 = vmatprep.mubr.bf16.mxu1 %v17126_v60  ;;  %v17139_v60 = vld [vmem:[#allocation26_spill] sm:$0xff] }
 0x3d5   : > { %17136 = vst [vmem:[#allocation69_spill] sm:$0xff] %v15520_v35  ;;  %v11578_v18 = vpop.f32.mrb[244].mxu0  ;;  %v13541_v35 = vld [vmem:[#allocation5 + $0x6dc] ss:$48 sps:$4 sm:$0xff]  }
 0x3d6   : > { %v11642_v30 = vpop.f32.mrb[244].mxu1  ;;  %v11579_v6 = vpop.f32.mrb[245].mxu0 }
 0x3d7   : > { %v11580_v1 = vadd.f32 %v11579_v6, %v11578_v18  ;;  %v11643_v52 = vpop.f32.mrb[245].mxu1  ;;  %v11581_v61 = vpop.f32.mrb[246].mxu0  ;;  %v17141_v6 = vld [vmem:[#allocation28_spill] sm:$0xff] }
 0x3d8   : > { %v15525_v7 = vadd.f32 %v11643_v52, %v11642_v30  ;;  %v11645_v62 = vpop.f32.mrb[246].mxu1  ;;  %v11582_v45 = vpop.f32.mrb[247].mxu0  ;;  %v13535_v30 = vld [vmem:[#allocation5 + $0x7c] ss:$48 sps:$4 sm:$0xff]  }
 0x3d9   : > { %v15528_v19 = vadd.f32 %v11580_v1, %v15427_v59  ;;  %v11583_v3 = vadd.f32 %v11582_v45, %v11581_v61  ;;  %v11646_v15 = vpop.f32.mrb[247].mxu1  ;;  %v13537_v59 = vld [vmem:[#allocation5 + $0x67c] ss:$48 sps:$4 sm:$0xff]  }
 0x3da   : > { %v15530_v9 = vadd.f32 %v11646_v15, %v11645_v62  ;;  %6340 = vmatmul.mubr.bf16.vlgmr.msra.gmra.mrb[96].mxu0 %v17139_v60  ;;  %v13538_v1 = vld [vmem:[#allocation5 + $0x3dc] ss:$48 sps:$4 sm:$0xff]  }
 0x3db   : > { %17138 = vst [vmem:[#allocation70_spill] sm:$0xff] %v15528_v19  ;;  %v15534_v18 = vadd.f32 %v11583_v3, %v15432_v43  ;;  %6437 = vmatmul.mubr.bf16.vlgmr.msra.gmra.mrb[96].mxu1 %v17127_v57  ;;  %12173 = vmatpush3.bf16.msra.mxu0 %v13531_v50  ;;  %v13540_v15 = vld [vmem:[#allocation5 + $0x9dc] ss:$48 sps:$4 sm:$0xff]  }
 0x3dc   : > { %12237 = vmatpush3.bf16.msra.mxu1 %v13533_v4  ;;  %6347 = vmatprep.mubr.bf16.mxu0 %v17141_v6  ;;  %v13542_v6 = vld [vmem:[#allocation5 + $0x43c] ss:$48 sps:$4 sm:$0xff]  }
 0x3dd   : > { %17140 = vst [vmem:[#allocation71_spill] sm:$0xff] %v15534_v18  ;;  %v11584_v45 = vpop.f32.mrb[248].mxu0  ;;  %6444 = vmatprep.mubr.bf16.mxu1 %v17128_v16  ;;  %12174 = vmatprep.subr.bf16.mxu0 %v13534_v53  ;;  %v13539_v18 = vld [vmem:[#allocation5 + $0xdc] ss:$48 sps:$4 sm:$0xff]  }
 0x3de   : > { %v11648_v52 = vpop.f32.mrb[248].mxu1  ;;  %v11585_v61 = vpop.f32.mrb[249].mxu0  ;;  %12238 = vmatprep.subr.bf16.mxu1 %v13536_v46 }
 0x3df   : > { %v11586_v62 = vadd.f32 %v11585_v61, %v11584_v45  ;;  %v11649_v43 = vpop.f32.mrb[249].mxu1  ;;  %v11587_v3 = vpop.f32.mrb[250].mxu0  ;;  %12175 = vmatpush3.bf16.msra.mxu0 %v13535_v30  ;;  %v17142_v45 = vld [vmem:[#allocation30_spill] sm:$0xff] }
 0x3e0   : > { %v15539_v57 = vadd.f32 %v11649_v43, %v11648_v52  ;;  %v11651_v50 = vpop.f32.mrb[250].mxu1  ;;  %v11588_v4 = vpop.f32.mrb[251].mxu0  ;;  %12239 = vmatpush3.bf16.msra.mxu1 %v13537_v59  ;;  %12176 = vmatprep.subr.bf16.mxu0 %v13538_v1  ;;  %v13544_v30 = vld [vmem:[#allocation5 + $0xa3c] ss:$48 sps:$4 sm:$0xff]  }
 0x3e1   : > { %v15542_v19 = vadd.f32 %v11586_v62, %v15437_v40  ;;  %v11589_v16 = vadd.f32 %v11588_v4, %v11587_v3  ;;  %v11652_v53 = vpop.f32.mrb[251].mxu1  ;;  %12240 = vmatprep.subr.bf16.mxu1 %v13540_v15  ;;  %v13543_v40 = vld [vmem:[#allocation5 + $0x13c] ss:$48 sps:$4 sm:$0xff]  }
 0x3e2   : > { %v15544_v46 = vadd.f32 %v11652_v53, %v11651_v50  ;;  %6348 = vmatmul.mubr.bf16.gmra.mrb[100].mxu0 %v17142_v45  ;;  %v13545_v1 = vld [vmem:[#allocation5 + $0x73c] ss:$48 sps:$4 sm:$0xff]  }
 0x3e3   : > { %v15548_v52 = vadd.f32 %v11589_v16, %v15443_v2  ;;  %6445 = vmatmul.mubr.bf16.gmra.mrb[100].mxu1 %v17129_v54  ;;  %6355 = vmatprep.mubr.bf16.mxu0 %v17113_v48  ;;  %v13546_v15 = vld [vmem:[#allocation5 + $0x49c] ss:$48 sps:$4 sm:$0xff]  }
 0x3e4   : > { %6452 = vmatprep.mubr.bf16.mxu1 %v17130_v42  ;;  %12177 = vmatpush3.bf16.msra.mxu0 %v13539_v18  ;;  %v13548_v43 = vld [vmem:[#allocation5 + $0xa9c] ss:$48 sps:$4 sm:$0xff]  }
 0x3e5   : > { %17143 = vst [vmem:[#allocation77_spill] sm:$0xff] %v15548_v52  ;;  %v11590_v59 = vpop.f32.mrb[252].mxu0  ;;  %12241 = vmatpush3.bf16.msra.mxu1 %v13541_v35  ;;  %12178 = vmatprep.subr.bf16.mxu0 %v13542_v6  ;;  %v13547_v42 = vld [vmem:[#allocation5 + $0x19c] ss:$48 sps:$4 sm:$0xff]  }
 0x3e6   : > { %v11654_v61 = vpop.f32.mrb[252].mxu1  ;;  %v11591_v62 = vpop.f32.mrb[253].mxu0  ;;  %12242 = vmatprep.subr.bf16.mxu1 %v13544_v30  ;;  %v13549_v54 = vld [vmem:[#allocation5 + $0x79c] ss:$48 sps:$4 sm:$0xff]  }
 0x3e7   : > { %v11592_v3 = vadd.f32 %v11591_v62, %v11590_v59  ;;  %v11655_v16 = vpop.f32.mrb[253].mxu1  ;;  %v11593_v2 = vpop.f32.mrb[254].mxu0  ;;  %v13550_v52 = vld [vmem:[#allocation5 + $0x4fc] ss:$48 sps:$4 sm:$0xff]  }
 0x3e8   : > { %v15553_v50 = vadd.f32 %v11655_v16, %v11654_v61  ;;  %v11657_v4 = vpop.f32.mrb[254].mxu1  ;;  %v11594_v53 = vpop.f32.mrb[255].mxu0  ;;  %12179 = vmatpush3.bf16.msra.mxu0 %v13543_v40  ;;  %v13552_v59 = vld [vmem:[#allocation5 + $0xafc] ss:$48 sps:$4 sm:$0xff]  }
 0x3e9   : > { %v15556_v18 = vadd.f32 %v11592_v3, %v15447_v21  ;;  %v11595_v35 = vadd.f32 %v11594_v53, %v11593_v2  ;;  %v11658_v6 = vpop.f32.mrb[255].mxu1  ;;  %12243 = vmatpush3.bf16.msra.mxu1 %v13545_v1  ;;  %12180 = vmatprep.subr.bf16.mxu0 %v13546_v15  ;;  %v17146_v40 = vld [vmem:[#allocation36_spill] sm:$0xff] }
 0x3ea   : > { %v15558_v30 = vadd.f32 %v11658_v6, %v11657_v4  ;;  %6356 = vmatmul.mubr.bf16.gmra.mrb[104].mxu0 %v17087_v28  ;;  %12244 = vmatprep.subr.bf16.mxu1 %v13548_v43  ;;  %v13551_v21 = vld [vmem:[#allocation5 + $0x1fc] ss:$48 sps:$4 sm:$0xff]  }
 0x3eb   : > { %17144 = vst [vmem:[#allocation72_spill] sm:$0xff] %v15556_v18  ;;  %v15562_v61 = vadd.f32 %v11595_v35, %v15453_v56  ;;  %6453 = vmatmul.mubr.bf16.gmra.mrb[104].mxu1 %v17066_v24  ;;  %6363 = vmatprep.mubr.bf16.mxu0 %v17146_v40  ;;  %v13553_v15 = vld [vmem:[#allocation5 + $0x7fc] ss:$48 sps:$4 sm:$0xff]  }
 0x3ec   : > { %6460 = vmatprep.mubr.bf16.mxu1 %v17131_v14  ;;  %12181 = vmatpush3.bf16.msra.mxu0 %v13547_v42  ;;  %v13554_v62 = vld [vmem:[#allocation5 + $0x55c] ss:$48 sps:$4 sm:$0xff]  }
 0x3ed   : > { %17145 = vst [vmem:[#allocation73_spill] sm:$0xff] %v15562_v61  ;;  %v11676_v1 = vpop.f32.mrb[0].mxu0  ;;  %12245 = vmatpush3.bf16.msra.mxu1 %v13549_v54  ;;  %12182 = vmatprep.subr.bf16.mxu0 %v13550_v52  ;;  %v13556_v43 = vld [vmem:[#allocation5 + $0xb5c] ss:$48 sps:$4 sm:$0xff]  }
 0x3ee   : > { %v11740_v3 = vpop.f32.mrb[0].mxu1  ;;  %v11677_v16 = vpop.f32.mrb[1].mxu0  ;;  %12246 = vmatprep.subr.bf16.mxu1 %v13552_v59  ;;  %v13555_v24 = vld [vmem:[#allocation5 + $0x25c] ss:$48 sps:$4 sm:$0xff]  }
 0x3ef   : > { %v11678_v2 = vadd.f32 %v11677_v16, %v11676_v1  ;;  %v11741_v56 = vpop.f32.mrb[1].mxu1  ;;  %v11679_v4 = vpop.f32.mrb[2].mxu0  ;;  %v13557_v54 = vld [vmem:[#allocation5 + $0x85c] ss:$48 sps:$4 sm:$0xff]  }
 0x3f0   : > { %v11742_v53 = vadd.f32 %v11741_v56, %v11740_v3  ;;  %v11743_v35 = vpop.f32.mrb[2].mxu1  ;;  %v11680_v6 = vpop.f32.mrb[3].mxu0  ;;  %12183 = vmatpush3.bf16.msra.mxu0 %v13551_v21  ;;  %v13558_v52 = vld [vmem:[#allocation5 + $0x5bc] ss:$48 sps:$4 sm:$0xff]  }
 0x3f1   : > { %v4686_v42 = vadd.f32 %v11678_v2, %v15455_v11  ;;  %v11681_v14 = vadd.f32 %v11680_v6, %v11679_v4  ;;  %v11744_v61 = vpop.f32.mrb[3].mxu1  ;;  %12247 = vmatpush3.bf16.msra.mxu1 %v13553_v15  ;;  %12184 = vmatprep.subr.bf16.mxu0 %v13554_v62  ;;  %v13560_v59 = vld [vmem:[#allocation5 + $0xbbc] ss:$48 sps:$4 sm:$0xff]   ;;  %v13564_v2 = vld [vmem:[#allocation5 + $0x324] ss:$48 sps:$4 sm:$0xff]  }
 0x3f2   : > { %v11745_v18 = vadd.f32 %v11744_v61, %v11743_v35  ;;  %6364 = vmatmul.mubr.bf16.gmra.mrb[108].mxu0 %v17093_v36  ;;  %12248 = vmatprep.subr.bf16.mxu1 %v13556_v43  ;;  %v13559_v11 = vld [vmem:[#allocation5 + $0x2bc] ss:$48 sps:$4 sm:$0xff]  }
 0x3f3   : > { %v15569_v1 = vadd.f32 %v11742_v53, %v4686_v42  ;;  %v4689_v3 = vadd.f32 %v11681_v14, %v15460_v0  ;;  %6461 = vmatmul.mubr.bf16.gmra.mrb[108].mxu1 %v14631_v31  ;;  %6371 = vmatprep.mubr.bf16.mxu0 %v17094_v20  ;;  %v13561_v61 = vld [vmem:[#allocation5 + $0x8bc] ss:$48 sps:$4 sm:$0xff]  }
 0x3f4   : > { %6468 = vmatprep.mubr.bf16.mxu1 %v14633_v32  ;;  %12185 = vmatpush3.bf16.msra.mxu0 %v13555_v24  ;;  %v13562_v62 = vld [vmem:[#allocation5 + $0xf1c] ss:$48 sps:$4 sm:$0xff]  }
 0x3f5   : > { %v4786_v21 = vadd.f32 %v11745_v18, %v4689_v3  ;;  %v11682_v15 = vpop.f32.mrb[4].mxu0  ;;  %12249 = vmatpush3.bf16.msra.mxu1 %v13557_v54  ;;  %12186 = vmatprep.subr.bf16.mxu0 %v13558_v52  ;;  %v16905_v14 = vrot.slane %v15569_v1, 2  ;;  %v17147_v18 = vld [vmem:[#allocation66_spill] sm:$0xff] }
 0x3f6   : > { %v11746_v16 = vpop.f32.mrb[4].mxu1  ;;  %v11683_v43 = vpop.f32.mrb[5].mxu0  ;;  %12250 = vmatprep.subr.bf16.mxu1 %v13560_v59  ;;  %vm5584_vm10 = vcmp.lt.s32.totalorder %v17147_v18, 5 }
 0x3f7   : > { %v4846_v0 = vrot.slane %v4786_v21, 2  ;;  %v11684_v56 = vadd.f32 %v11683_v43, %v11682_v15  ;;  %v11747_v4 = vpop.f32.mrb[5].mxu1  ;;  %v11685_v53 = vpop.f32.mrb[6].mxu0  ;;  %v17148_v15 = vld [vmem:[#allocation42_spill] sm:$0xff]  ;;  %v17149_v43 = vld [vmem:[#allocation44_spill] sm:$0xff] }
 0x3f8   : > { %v11748_v35 = vadd.f32 %v11747_v4, %v11746_v16  ;;  %v11749_v6 = vpop.f32.mrb[6].mxu1  ;;  %v11686_v24 = vpop.f32.mrb[7].mxu0  ;;  %12187 = vmatpush3.bf16.msra.mxu0 %v13559_v11 }
 0x3f9   : > { %v4875_v42 = vsel %vm2642_vm1, %v16905_v14, %v4846_v0  ;;  %v4694_v54 = vadd.f32 %v11684_v56, %v15469_v17  ;;  %v11687_v52 = vadd.f32 %v11686_v24, %v11685_v53  ;;  %v11750_v59 = vpop.f32.mrb[7].mxu1  ;;  %12251 = vmatpush3.bf16.msra.mxu1 %v13561_v61  ;;  %12300 = vmatprep.subr.bf16.mxu0 %v13562_v62  ;;  %v17152_v14 = vld [vmem:[#allocation50_spill] sm:$0xff] }
 0x3fa   : > { %v15582_v3 = vadd.f32 %v4875_v42, %v15458_v23  ;;  %v11751_v21 = vadd.f32 %v11750_v59, %v11749_v6  ;;  %6372 = vmatmul.mubr.bf16.gmra.mrb[112].mxu0 %v17148_v15  ;;  %12364 = vmatprep.subr.bf16.mxu1 %v13564_v2 }
 0x3fb   : > { %v4791_v16 = vadd.f32 %v11748_v35, %v4694_v54  ;;  %v4697_v11 = vadd.f32 %v11687_v52, %v15474_v10  ;;  %6469 = vmatmul.mubr.bf16.gmra.mrb[112].mxu1 %v14643_v5  ;;  %6379 = vmatprep.mubr.bf16.mxu0 %v17149_v43 }
 0x3fc   : > { %6476 = vmatprep.mubr.bf16.mxu1 %v14645_v13 }
 0x3fd   : > { %v4847_v17 = vrot.slane %v4791_v16, 2  ;;  %v4794_v56 = vadd.f32 %v11751_v21, %v4697_v11  ;;  %v11688_v61 = vpop.f32.mrb[8].mxu0 }
 0x3fe   : > { %v11752_v62 = vpop.f32.mrb[8].mxu1  ;;  %v11689_v4 = vpop.f32.mrb[9].mxu0 }
 0x3ff   : > { %v4874_v23 = vsel %vm2642_vm1, %v4846_v0, %v4847_v17  ;;  %v4848_v53 = vrot.slane %v4794_v56, 2  ;;  %v11690_v6 = vadd.f32 %v11689_v4, %v11688_v61  ;;  %v11753_v2 = vpop.f32.mrb[9].mxu1  ;;  %v11691_v35 = vpop.f32.mrb[10].mxu0  ;;  %v17150_v56 = vld [vmem:[#allocation46_spill] sm:$0xff] }
 0x400   : > { %v15592_v10 = vadd.f32 %v4874_v23, %v15464_v29  ;;  %v11754_v24 = vadd.f32 %v11753_v2, %v11752_v62  ;;  %v11755_v42 = vpop.f32.mrb[10].mxu1  ;;  %v11692_v54 = vpop.f32.mrb[11].mxu0  ;;  %v17151_v62 = vld [vmem:[#allocation48_spill] sm:$0xff] }
 0x401   : > { %v4873_v52 = vsel %vm2642_vm1, %v4847_v17, %v4848_v53  ;;  %v4702_v59 = vadd.f32 %v11690_v6, %v15483_v51  ;;  %v11693_v21 = vadd.f32 %v11692_v54, %v11691_v35  ;;  %v11756_v16 = vpop.f32.mrb[11].mxu1 }
 0x402   : > { %v15598_v11 = vadd.f32 %v4873_v52, %v15472_v63  ;;  %v11757_v0 = vadd.f32 %v11756_v16, %v11755_v42  ;;  %6380 = vmatmul.mubr.bf16.gmra.mrb[116].mxu0 %v17150_v56 }
 0x403   : > { %v4799_v61 = vadd.f32 %v11754_v24, %v4702_v59  ;;  %v4705_v29 = vadd.f32 %v11693_v21, %v15488_v37  ;;  %6477 = vmatmul.mubr.bf16.gmra.mrb[116].mxu1 %v14655_v25  ;;  %6387 = vmatprep.mubr.bf16.mxu0 %v17151_v62 }
 0x404   : > { %6484 = vmatprep.mubr.bf16.mxu1 %v17132_v44 }
 0x405   : > { %v4849_v17 = vrot.slane %v4799_v61, 2  ;;  %v4802_v4 = vadd.f32 %v11757_v0, %v4705_v29  ;;  %v11694_v51 = vpop.f32.mrb[12].mxu0 }
 0x406   : > { %v11758_v23 = vpop.f32.mrb[12].mxu1  ;;  %v11695_v6 = vpop.f32.mrb[13].mxu0 }
 0x407   : > { %v4872_v63 = vsel %vm2642_vm1, %v4848_v53, %v4849_v17  ;;  %v4850_v2 = vrot.slane %v4802_v4, 2  ;;  %v11696_v35 = vadd.f32 %v11695_v6, %v11694_v51  ;;  %v11759_v42 = vpop.f32.mrb[13].mxu1  ;;  %v11697_v24 = vpop.f32.mrb[14].mxu0 }
 0x408   : > { %v11760_v54 = vadd.f32 %v11759_v42, %v11758_v23  ;;  %v11761_v37 = vpop.f32.mrb[14].mxu1  ;;  %v11698_v52 = vpop.f32.mrb[15].mxu0  ;;  %v15608_v59 = vadd.f32 %v4872_v63, %v15478_v27  ;;  %v17153_v27 = vld [vmem:[#allocation52_spill] sm:$0xff] }
 0x409   : > { %v4871_v21 = vsel %vm2642_vm1, %v4849_v17, %v4850_v2  ;;  %v4710_v16 = vadd.f32 %v11696_v35, %v15497_v41  ;;  %v11699_v0 = vadd.f32 %v11698_v52, %v11697_v24  ;;  %v11762_v61 = vpop.f32.mrb[15].mxu1 }
 0x40a   : > { %v11763_v29 = vadd.f32 %v11762_v61, %v11761_v37  ;;  %6388 = vmatmul.mubr.bf16.gmra.mrb[120].mxu0 %v17152_v14  ;;  %v15615_v53 = vadd.f32 %v4871_v21, %v15486_v58 }
 0x40b   : > { %v4807_v4 = vadd.f32 %v11760_v54, %v4710_v16  ;;  %v4713_v51 = vadd.f32 %v11699_v0, %v15502_v55  ;;  %6485 = vmatmul.mubr.bf16.gmra.mrb[120].mxu1 %v17133_v22  ;;  %6395 = vmatprep.mubr.bf16.mxu0 %v17153_v27 }
 0x40c   : > { %6492 = vmatprep.mubr.bf16.mxu1 %v17134_v34 }
 0x40d   : > { %v4851_v17 = vrot.slane %v4807_v4, 2  ;;  %v4810_v23 = vadd.f32 %v11763_v29, %v4713_v51  ;;  %v11700_v41 = vpop.f32.mrb[16].mxu0  ;;  %v17154_v51 = vld [vmem:[#allocation54_spill] sm:$0xff] }
 0x40e   : > { %v11764_v6 = vpop.f32.mrb[16].mxu1  ;;  %v11701_v63 = vpop.f32.mrb[17].mxu0 }
 0x40f   : > { %v4870_v35 = vsel %vm2642_vm1, %v4850_v2, %v4851_v17  ;;  %v4852_v42 = vrot.slane %v4810_v23, 2  ;;  %v11702_v58 = vadd.f32 %v11701_v63, %v11700_v41  ;;  %v11765_v24 = vpop.f32.mrb[17].mxu1  ;;  %v11703_v54 = vpop.f32.mrb[18].mxu0 }
 0x410   : > { %v11766_v37 = vadd.f32 %v11765_v24, %v11764_v6  ;;  %v11767_v55 = vpop.f32.mrb[18].mxu1  ;;  %v11704_v52 = vpop.f32.mrb[19].mxu0  ;;  %v15624_v21 = vadd.f32 %v4870_v35, %v15492_v12  ;;  %v17155_v12 = vld [vmem:[#allocation23_spill] sm:$0xff] }
 0x411   : > { %v4869_v16 = vsel %vm2642_vm1, %v4851_v17, %v4852_v42  ;;  %v4718_v0 = vadd.f32 %v11702_v58, %v15511_v39  ;;  %v11705_v61 = vadd.f32 %v11704_v52, %v11703_v54  ;;  %v11768_v29 = vpop.f32.mrb[19].mxu1 }
 0x412   : > { %v11769_v4 = vadd.f32 %v11768_v29, %v11767_v55  ;;  %6396 = vmatmul.mubr.bf16.gmra.mrb[124].mxu0 %v17154_v51  ;;  %v15631_v2 = vadd.f32 %v4869_v16, %v15500_v8  ;;  %v13563_v55 = vld [vmem:[#allocation5 + $0xc1c] ss:$48 sps:$4 sm:$0xff]  }
 0x413   : > { %v4815_v23 = vadd.f32 %v11766_v37, %v4718_v0  ;;  %v4721_v41 = vadd.f32 %v11705_v61, %v15516_v33  ;;  %6493 = vmatmul.mubr.bf16.gmra.mrb[124].mxu1 %v17135_v47  ;;  %6853 = vmatprep.mubr.bf16.mxu0 %v17155_v12  ;;  %v13565_v0 = vld [vmem:[#allocation5 + $0x24] ss:$48 sps:$4 sm:$0xff]  }
 0x414   : > { %6950 = vmatprep.mubr.bf16.mxu1 %v17137_v38 }
 0x415   : > { %v4853_v17 = vrot.slane %v4815_v23, 2  ;;  %v4818_v6 = vadd.f32 %v11769_v4, %v4721_v41  ;;  %v11706_v39 = vpop.f32.mrb[20].mxu0 }
 0x416   : > { %v11770_v63 = vpop.f32.mrb[20].mxu1  ;;  %v11707_v35 = vpop.f32.mrb[21].mxu0 }
 0x417   : > { %v4868_v58 = vsel %vm2642_vm1, %v4852_v42, %v4853_v17  ;;  %v4854_v24 = vrot.slane %v4818_v6, 2  ;;  %v11708_v8 = vadd.f32 %v11707_v35, %v11706_v39  ;;  %v11771_v54 = vpop.f32.mrb[21].mxu1  ;;  %v11709_v37 = vpop.f32.mrb[22].mxu0  ;;  %v13566_v42 = vld [vmem:[#allocation5 + $0xf7c] ss:$48 sps:$4 sm:$0xff]   ;;  %v17156_v39 = vld [vmem:[#allocation25_spill] sm:$0xff] }
 0x418   : > { %v11772_v33 = vadd.f32 %v11771_v54, %v11770_v63  ;;  %v11773_v52 = vpop.f32.mrb[22].mxu1  ;;  %v11710_v16 = vpop.f32.mrb[23].mxu0  ;;  %v15640_v61 = vadd.f32 %v4868_v58, %v15506_v49  ;;  %v13568_v35 = vld [vmem:[#allocation5 + $0x384] ss:$48 sps:$4 sm:$0xff]   ;;  %v13567_v49 = vld [vmem:[#allocation5 + $0xc7c] ss:$48 sps:$4 sm:$0xff]  }
 0x419   : > { %v4867_v29 = vsel %vm2642_vm1, %v4853_v17, %v4854_v24  ;;  %v4726_v4 = vadd.f32 %v11708_v8, %v15525_v7  ;;  %v11711_v23 = vadd.f32 %v11710_v16, %v11709_v37  ;;  %v11774_v41 = vpop.f32.mrb[23].mxu1  ;;  %v17158_v17 = vld [vmem:[#allocation27_spill] sm:$0xff]  ;;  %v13570_v58 = vld [vmem:[#allocation5 + $0xfdc] ss:$48 sps:$4 sm:$0xff]  }
 0x41a   : > { %v11775_v6 = vadd.f32 %v11774_v41, %v11773_v52  ;;  %6854 = vmatmul.mubr.bf16.vlgmr.msra.gmra.mrb[128].mxu0 %v17156_v39  ;;  %v15647_v63 = vadd.f32 %v4867_v29, %v15514_v26  ;;  %v13569_v7 = vld [vmem:[#allocation5 + $0x84] ss:$48 sps:$4 sm:$0xff]   ;;  %v17159_v16 = vld [vmem:[#allocation28_spill] sm:$0xff] }
 0x41b   : > { %v4823_v54 = vadd.f32 %v11772_v33, %v4726_v4  ;;  %v4729_v38 = vadd.f32 %v11711_v23, %v15530_v9  ;;  %6951 = vmatmul.mubr.bf16.vlgmr.msra.gmra.mrb[128].mxu1 %v17139_v60  ;;  %12301 = vmatpush3.bf16.msra.mxu0 %v13563_v55  ;;  %v13572_v26 = vld [vmem:[#allocation5 + $0x3e4] ss:$48 sps:$4 sm:$0xff]  }
 0x41c   : > { %17157 = vst [vmem:[#allocation74_spill] sm:$0xff] %v15647_v63  ;;  %12365 = vmatpush3.bf16.msra.mxu1 %v13565_v0  ;;  %6861 = vmatprep.mubr.bf16.mxu0 %v17158_v17 }
 0x41d   : > { %v4855_v8 = vrot.slane %v4823_v54, 2  ;;  %v4826_v37 = vadd.f32 %v11775_v6, %v4729_v38  ;;  %v11712_v52 = vpop.f32.mrb[24].mxu0  ;;  %6958 = vmatprep.mubr.bf16.mxu1 %v17159_v16  ;;  %12302 = vmatprep.subr.bf16.mxu0 %v13566_v42  ;;  %v13571_v38 = vld [vmem:[#allocation5 + $0xcdc] ss:$48 sps:$4 sm:$0xff]   ;;  %v17160_v6 = vld [vmem:[#allocation69_spill] sm:$0xff] }
 0x41e   : > { %v11776_v29 = vpop.f32.mrb[24].mxu1  ;;  %v11713_v33 = vpop.f32.mrb[25].mxu0  ;;  %12366 = vmatprep.subr.bf16.mxu1 %v13568_v35 }
 0x41f   : > { %v4866_v9 = vsel %vm2642_vm1, %v4854_v24, %v4855_v8  ;;  %v4856_v55 = vrot.slane %v4826_v37, 2  ;;  %v11714_v4 = vadd.f32 %v11713_v33, %v11712_v52  ;;  %v11777_v0 = vpop.f32.mrb[25].mxu1  ;;  %v11715_v23 = vpop.f32.mrb[26].mxu0  ;;  %12303 = vmatpush3.bf16.msra.mxu0 %v13567_v49  ;;  %v13573_v52 = vld [vmem:[#allocation5 + $0xe4] ss:$48 sps:$4 sm:$0xff]  }
 0x420   : > { %v11778_v41 = vadd.f32 %v11777_v0, %v11776_v29  ;;  %v11779_v60 = vpop.f32.mrb[26].mxu1  ;;  %v11716_v54 = vpop.f32.mrb[27].mxu0  ;;  %12367 = vmatpush3.bf16.msra.mxu1 %v13569_v7  ;;  %12304 = vmatprep.subr.bf16.mxu0 %v13570_v58  ;;  %v15656_v42 = vadd.f32 %v4866_v9, %v17160_v6  ;;  %v13574_v33 = vld [vmem:[#allocation5 + $0x103c] ss:$48 sps:$4 sm:$0xff]   ;;  %v17162_v29 = vld [vmem:[#allocation29_spill] sm:$0xff] }
 0x421   : > { %v4865_v35 = vsel %vm2642_vm1, %v4855_v8, %v4856_v55  ;;  %v4734_v16 = vadd.f32 %v11714_v4, %v15539_v57  ;;  %v11717_v24 = vadd.f32 %v11716_v54, %v11715_v23  ;;  %v11780_v37 = vpop.f32.mrb[27].mxu1  ;;  %12368 = vmatprep.subr.bf16.mxu1 %v13572_v26  ;;  %v13576_v0 = vld [vmem:[#allocation5 + $0x444] ss:$48 sps:$4 sm:$0xff]   ;;  %v17163_v7 = vld [vmem:[#allocation70_spill] sm:$0xff] }
 0x422   : > { %17161 = vst [vmem:[#allocation75_spill] sm:$0xff] %v15656_v42  ;;  %v11781_v49 = vadd.f32 %v11780_v37, %v11779_v60  ;;  %6862 = vmatmul.mubr.bf16.gmra.mrb[132].mxu0 %v17162_v29  ;;  %v15663_v58 = vadd.f32 %v4865_v35, %v17163_v7  ;;  %v17165_v8 = vld [vmem:[#allocation31_spill] sm:$0xff]  ;;  %v13575_v57 = vld [vmem:[#allocation5 + $0xd3c] ss:$48 sps:$4 sm:$0xff]  }
 0x423   : > { %v4831_v63 = vadd.f32 %v11778_v41, %v4734_v16  ;;  %v4737_v9 = vadd.f32 %v11717_v24, %v15544_v46  ;;  %6959 = vmatmul.mubr.bf16.gmra.mrb[132].mxu1 %v17142_v45  ;;  %6869 = vmatprep.mubr.bf16.mxu0 %v17165_v8  ;;  %v13577_v23 = vld [vmem:[#allocation5 + $0x144] ss:$48 sps:$4 sm:$0xff]   ;;  %v13578_v54 = vld [vmem:[#allocation5 + $0x109c] ss:$48 sps:$4 sm:$0xff]  }
 0x424   : > { %17164 = vst [vmem:[#allocation76_spill] sm:$0xff] %v15663_v58  ;;  %6966 = vmatprep.mubr.bf16.mxu1 %v17113_v48  ;;  %12305 = vmatpush3.bf16.msra.mxu0 %v13571_v38  ;;  %v13580_v16 = vld [vmem:[#allocation5 + $0x4a4] ss:$48 sps:$4 sm:$0xff]  }
 0x425   : > { %v4857_v26 = vrot.slane %v4831_v63, 2  ;;  %v4834_v4 = vadd.f32 %v11781_v49, %v4737_v9  ;;  %v11718_v60 = vpop.f32.mrb[28].mxu0  ;;  %12369 = vmatpush3.bf16.msra.mxu1 %v13573_v52  ;;  %12306 = vmatprep.subr.bf16.mxu0 %v13574_v33  ;;  %v13579_v49 = vld [vmem:[#allocation5 + $0xd9c] ss:$48 sps:$4 sm:$0xff]   ;;  %v17166_v52 = vld [vmem:[#allocation71_spill] sm:$0xff] }
 0x426   : > { %v11782_v6 = vpop.f32.mrb[28].mxu1  ;;  %v11719_v35 = vpop.f32.mrb[29].mxu0  ;;  %12370 = vmatprep.subr.bf16.mxu1 %v13576_v0 }
 0x427   : > { %v4864_v46 = vsel %vm2642_vm1, %v4856_v55, %v4857_v26  ;;  %v4858_v41 = vrot.slane %v4834_v4, 2  ;;  %v11720_v24 = vadd.f32 %v11719_v35, %v11718_v60  ;;  %v11783_v37 = vpop.f32.mrb[29].mxu1  ;;  %v11721_v7 = vpop.f32.mrb[30].mxu0  ;;  %v13581_v55 = vld [vmem:[#allocation5 + $0x1a4] ss:$48 sps:$4 sm:$0xff]  }
 0x428   : > { %v11784_v38 = vadd.f32 %v11783_v37, %v11782_v6  ;;  %v11785_v48 = vpop.f32.mrb[30].mxu1  ;;  %v11722_v63 = vpop.f32.mrb[31].mxu0  ;;  %12307 = vmatpush3.bf16.msra.mxu0 %v13575_v57  ;;  %v15672_v33 = vadd.f32 %v4864_v46, %v17166_v52  ;;  %v13582_v4 = vld [vmem:[#allocation5 + $0x10fc] ss:$48 sps:$4 sm:$0xff]   ;;  %v17168_v6 = vld [vmem:[#allocation33_spill] sm:$0xff] }
 0x429   : > { %v4863_v9 = vsel %vm2642_vm1, %v4857_v26, %v4858_v41  ;;  %v4742_v0 = vadd.f32 %v11720_v24, %v15553_v50  ;;  %v11723_v45 = vadd.f32 %v11722_v63, %v11721_v7  ;;  %v11786_v58 = vpop.f32.mrb[31].mxu1  ;;  %12371 = vmatpush3.bf16.msra.mxu1 %v13577_v23  ;;  %12308 = vmatprep.subr.bf16.mxu0 %v13578_v54  ;;  %v13584_v57 = vld [vmem:[#allocation5 + $0x504] ss:$48 sps:$4 sm:$0xff]   ;;  %v13583_v26 = vld [vmem:[#allocation5 + $0xdfc] ss:$48 sps:$4 sm:$0xff]  }
 0x42a   : > { %17167 = vst [vmem:[#allocation67_spill] sm:$0xff] %v15672_v33  ;;  %v11787_v60 = vadd.f32 %v11786_v58, %v11785_v48  ;;  %6870 = vmatmul.mubr.bf16.gmra.mrb[136].mxu0 %v17168_v6  ;;  %12372 = vmatprep.subr.bf16.mxu1 %v13580_v16  ;;  %v15679_v35 = vadd.f32 %v4863_v9, %v15542_v19  ;;  %v17170_v50 = vld [vmem:[#allocation35_spill] sm:$0xff]  ;;  %v13586_v16 = vld [vmem:[#allocation5 + $0x115c] ss:$48 sps:$4 sm:$0xff]  }
 0x42b   : > { %v4839_v46 = vadd.f32 %v11784_v38, %v4742_v0  ;;  %v4745_v37 = vadd.f32 %v11723_v45, %v15558_v30  ;;  %6967 = vmatmul.mubr.bf16.gmra.mrb[136].mxu1 %v17087_v28  ;;  %6877 = vmatprep.mubr.bf16.mxu0 %v17170_v50  ;;  %v13585_v54 = vld [vmem:[#allocation5 + $0x204] ss:$48 sps:$4 sm:$0xff]   ;;  %v17188_v33 = vld [vmem:[#allocation56_spill] sm:$0xff] }
 0x42c   : > { %17169 = vst [vmem:[#allocation62_spill] sm:$0xff] %v15679_v35  ;;  %6974 = vmatprep.mubr.bf16.mxu1 %v17146_v40  ;;  %12309 = vmatpush3.bf16.msra.mxu0 %v13579_v49  ;;  %v13588_v7 = vld [vmem:[#allocation5 + $0x564] ss:$48 sps:$4 sm:$0xff]  }
 0x42d   : > { %v4859_v23 = vrot.slane %v4839_v46, 2  ;;  %v4842_v48 = vadd.f32 %v11787_v60, %v4745_v37  ;;  %v11804_v58 = vpop.f32.mrb[32].mxu0  ;;  %12373 = vmatpush3.bf16.msra.mxu1 %v13581_v55  ;;  %12310 = vmatprep.subr.bf16.mxu0 %v13582_v4  ;;  %v13587_v60 = vld [vmem:[#allocation5 + $0xe5c] ss:$48 sps:$4 sm:$0xff]   ;;  %v17171_v55 = vld [vmem:[#allocation77_spill] sm:$0xff] }
 0x42e   : > { %v11868_v19 = vpop.f32.mrb[32].mxu1  ;;  %v11805_v24 = vpop.f32.mrb[33].mxu0  ;;  %12374 = vmatprep.subr.bf16.mxu1 %v13584_v57  ;;  %v17173_v57 = vrot.slane %v15569_v1, 2  ;;  %v17177_v1 = vld [vmem:[#allocation39_spill] sm:$0xff] }
 0x42f   : > { %v4862_v45 = vsel %vm2642_vm1, %v4858_v41, %v4859_v23  ;;  %v4860_v30 = vrot.slane %v4842_v48, 2  ;;  %v11806_v38 = vadd.f32 %v11805_v24, %v11804_v58  ;;  %v11869_v63 = vpop.f32.mrb[33].mxu1  ;;  %v11807_v52 = vpop.f32.mrb[34].mxu0  ;;  %v13589_v58 = vld [vmem:[#allocation5 + $0x264] ss:$48 sps:$4 sm:$0xff]  }
 0x430   : > { %v11870_v49 = vadd.f32 %v11869_v63, %v11868_v19  ;;  %v11871_v9 = vpop.f32.mrb[34].mxu1  ;;  %v11808_v0 = vpop.f32.mrb[35].mxu0  ;;  %12311 = vmatpush3.bf16.msra.mxu0 %v13583_v26  ;;  %v15688_v4 = vadd.f32 %v4862_v45, %v17171_v55  ;;  %v13590_v19 = vld [vmem:[#allocation5 + $0x11bc] ss:$48 sps:$4 sm:$0xff]   ;;  %v17174_v63 = vld [vmem:[#allocation37_spill] sm:$0xff] }
 0x431   : > { %v4861_v46 = vsel %vm2642_vm1, %v4859_v23, %v4860_v30  ;;  %v4876_v41 = vsel %vm2642_vm1, %v4860_v30, %v17173_v57  ;;  %v11809_v37 = vadd.f32 %v11808_v0, %v11807_v52  ;;  %v11872_v48 = vpop.f32.mrb[35].mxu1  ;;  %12375 = vmatpush3.bf16.msra.mxu1 %v13585_v54  ;;  %12312 = vmatprep.subr.bf16.mxu0 %v13586_v16  ;;  %v13592_v45 = vld [vmem:[#allocation5 + $0x5c4] ss:$48 sps:$4 sm:$0xff]   ;;  %v17175_v55 = vld [vmem:[#allocation72_spill] sm:$0xff] }
 0x432   : > { %17172 = vst [vmem:[#allocation63_spill] sm:$0xff] %v15688_v4  ;;  %v15696_v24 = vadd.f32 %v11870_v49, %v11806_v38  ;;  %v11873_v26 = vadd.f32 %v11872_v48, %v11871_v9  ;;  %6878 = vmatmul.mubr.bf16.gmra.mrb[140].mxu0 %v17174_v63  ;;  %12376 = vmatprep.subr.bf16.mxu1 %v13588_v7  ;;  %v17178_v30 = vld [vmem:[#allocation73_spill] sm:$0xff]  ;;  %v13591_v16 = vld [vmem:[#allocation5 + $0xebc] ss:$48 sps:$4 sm:$0xff]  }
 0x433   : > { %v15700_v23 = vadd.f32 %v4861_v46, %v17175_v55  ;;  %6975 = vmatmul.mubr.bf16.gmra.mrb[140].mxu1 %v17093_v36  ;;  %6885 = vmatprep.mubr.bf16.mxu0 %v17177_v1  ;;  %v15705_v52 = vadd.f32 %v4876_v41, %v17178_v30  ;;  %v13593_v7 = vld [vmem:[#allocation5 + $0x2c4] ss:$48 sps:$4 sm:$0xff]  }
 0x434   : > { %v15707_v54 = vadd.f32 %v11873_v26, %v11809_v37  ;;  %6982 = vmatprep.mubr.bf16.mxu1 %v17094_v20  ;;  %12313 = vmatpush3.bf16.msra.mxu0 %v13587_v60  ;;  %v13594_v49 = vld [vmem:[#allocation5 + $0x924] ss:$48 sps:$4 sm:$0xff]  }
 0x435   : > { %17176 = vst [vmem:[#allocation64_spill] sm:$0xff] %v15700_v23  ;;  %17179 = vst [vmem:[#allocation65_spill] sm:$0xff] %v15705_v52  ;;  %v11810_v38 = vpop.f32.mrb[36].mxu0  ;;  %12377 = vmatpush3.bf16.msra.mxu1 %v13589_v58  ;;  %12314 = vmatprep.subr.bf16.mxu0 %v13590_v19  ;;  %v13596_v46 = vld [vmem:[#allocation5 + $0xf24] ss:$48 sps:$4 sm:$0xff]  }
 0x436   : > { %v11874_v9 = vpop.f32.mrb[36].mxu1  ;;  %v11811_v0 = vpop.f32.mrb[37].mxu0  ;;  %12378 = vmatprep.subr.bf16.mxu1 %v13592_v45  ;;  %v17180_v19 = vld [vmem:[#allocation41_spill] sm:$0xff]  ;;  %v17181_v45 = vld [vmem:[#allocation43_spill] sm:$0xff] }
 0x437   : > { %v11812_v57 = vadd.f32 %v11811_v0, %v11810_v38  ;;  %v11875_v48 = vpop.f32.mrb[37].mxu1  ;;  %v11813_v55 = vpop.f32.mrb[38].mxu0  ;;  %v17184_v52 = vld [vmem:[#allocation49_spill] sm:$0xff] }
 0x438   : > { %v11876_v41 = vadd.f32 %v11875_v48, %v11874_v9  ;;  %v11877_v30 = vpop.f32.mrb[38].mxu1  ;;  %v11814_v37 = vpop.f32.mrb[39].mxu0  ;;  %12315 = vmatpush3.bf16.msra.mxu0 %v13591_v16  ;;  %v17186_v4 = vld [vmem:[#allocation53_spill] sm:$0xff] }
 0x439   : > { %v11815_v26 = vadd.f32 %v11814_v37, %v11813_v55  ;;  %v11878_v20 = vpop.f32.mrb[39].mxu1  ;;  %12379 = vmatpush3.bf16.msra.mxu1 %v13593_v7  ;;  %12428 = vmatprep.subr.bf16.mxu0 %v13594_v49  ;;  %v17182_v37 = vld [vmem:[#allocation45_spill] sm:$0xff] }
 0x43a   : > { %v15710_v60 = vadd.f32 %v11876_v41, %v11812_v57  ;;  %v11879_v58 = vadd.f32 %v11878_v20, %v11877_v30  ;;  %6886 = vmatmul.mubr.bf16.gmra.mrb[144].mxu0 %v17180_v19  ;;  %12492 = vmatprep.subr.bf16.mxu1 %v13596_v46 }
 0x43b   : > { %6983 = vmatmul.mubr.bf16.gmra.mrb[144].mxu1 %v17148_v15  ;;  %6893 = vmatprep.mubr.bf16.mxu0 %v17181_v45 }
 0x43c   : > { %v15715_v38 = vadd.f32 %v11879_v58, %v11815_v26  ;;  %6990 = vmatprep.mubr.bf16.mxu1 %v17149_v43  ;;  %v17183_v26 = vld [vmem:[#allocation47_spill] sm:$0xff] }
 0x43d   : > { %v11816_v9 = vpop.f32.mrb[40].mxu0 }
 0x43e   : > { %v11880_v16 = vpop.f32.mrb[40].mxu1  ;;  %v11817_v0 = vpop.f32.mrb[41].mxu0 }
 0x43f   : > { %v11818_v48 = vadd.f32 %v11817_v0, %v11816_v9  ;;  %v11881_v7 = vpop.f32.mrb[41].mxu1  ;;  %v11819_v49 = vpop.f32.mrb[42].mxu0 }
 0x440   : > { %v11882_v57 = vadd.f32 %v11881_v7, %v11880_v16  ;;  %v11883_v55 = vpop.f32.mrb[42].mxu1  ;;  %v11820_v20 = vpop.f32.mrb[43].mxu0 }
 0x441   : > { %v11821_v41 = vadd.f32 %v11820_v20, %v11819_v49  ;;  %v11884_v30 = vpop.f32.mrb[43].mxu1 }
 0x442   : > { %v11885_v46 = vadd.f32 %v11884_v30, %v11883_v55  ;;  %6894 = vmatmul.mubr.bf16.gmra.mrb[148].mxu0 %v17182_v37  ;;  %v15719_v15 = vadd.f32 %v11882_v57, %v11818_v48 }
 0x443   : > { %6991 = vmatmul.mubr.bf16.gmra.mrb[148].mxu1 %v17150_v56  ;;  %6901 = vmatprep.mubr.bf16.mxu0 %v17183_v26 }
 0x444   : > { %6998 = vmatprep.mubr.bf16.mxu1 %v17151_v62  ;;  %v15724_v58 = vadd.f32 %v11885_v46, %v11821_v41  ;;  %v17185_v41 = vld [vmem:[#allocation51_spill] sm:$0xff] }
 0x445   : > { %v11822_v9 = vpop.f32.mrb[44].mxu0 }
 0x446   : > { %v11886_v0 = vpop.f32.mrb[44].mxu1  ;;  %v11823_v16 = vpop.f32.mrb[45].mxu0 }
 0x447   : > { %v11824_v7 = vadd.f32 %v11823_v16, %v11822_v9  ;;  %v11887_v43 = vpop.f32.mrb[45].mxu1  ;;  %v11825_v49 = vpop.f32.mrb[46].mxu0 }
 0x448   : > { %v11888_v20 = vadd.f32 %v11887_v43, %v11886_v0  ;;  %v11889_v55 = vpop.f32.mrb[46].mxu1  ;;  %v11826_v30 = vpop.f32.mrb[47].mxu0 }
 0x449   : > { %v11827_v36 = vadd.f32 %v11826_v30, %v11825_v49  ;;  %v11890_v48 = vpop.f32.mrb[47].mxu1 }
 0x44a   : > { %v11891_v57 = vadd.f32 %v11890_v48, %v11889_v55  ;;  %6902 = vmatmul.mubr.bf16.gmra.mrb[152].mxu0 %v17184_v52  ;;  %v15727_v56 = vadd.f32 %v11888_v20, %v11824_v7 }
 0x44b   : > { %6999 = vmatmul.mubr.bf16.gmra.mrb[152].mxu1 %v17152_v14  ;;  %6909 = vmatprep.mubr.bf16.mxu0 %v17185_v41 }
 0x44c   : > { %7006 = vmatprep.mubr.bf16.mxu1 %v17153_v27  ;;  %v15732_v46 = vadd.f32 %v11891_v57, %v11827_v36  ;;  %v17187_v36 = vld [vmem:[#allocation55_spill] sm:$0xff] }
 0x44d   : > { %v11828_v9 = vpop.f32.mrb[48].mxu0 }
 0x44e   : > { %v11892_v16 = vpop.f32.mrb[48].mxu1  ;;  %v11829_v43 = vpop.f32.mrb[49].mxu0 }
 0x44f   : > { %v11830_v0 = vadd.f32 %v11829_v43, %v11828_v9  ;;  %v11893_v62 = vpop.f32.mrb[49].mxu1  ;;  %v11831_v49 = vpop.f32.mrb[50].mxu0 }
 0x450   : > { %v11894_v30 = vadd.f32 %v11893_v62, %v11892_v16  ;;  %v11895_v55 = vpop.f32.mrb[50].mxu1  ;;  %v11832_v48 = vpop.f32.mrb[51].mxu0 }
 0x451   : > { %v11833_v23 = vadd.f32 %v11832_v48, %v11831_v49  ;;  %v11896_v7 = vpop.f32.mrb[51].mxu1  ;;  %v13595_v48 = vld [vmem:[#allocation5 + $0x624] ss:$48 sps:$4 sm:$0xff]  }
 0x452   : > { %v11897_v20 = vadd.f32 %v11896_v7, %v11895_v55  ;;  %6910 = vmatmul.mubr.bf16.gmra.mrb[156].mxu0 %v17186_v4  ;;  %v15735_v14 = vadd.f32 %v11894_v30, %v11830_v0  ;;  %v13597_v0 = vld [vmem:[#allocation5 + $0xc24] ss:$48 sps:$4 sm:$0xff]  }
 0x453   : > { %7007 = vmatmul.mubr.bf16.gmra.mrb[156].mxu1 %v17154_v51  ;;  %7047 = vmatprep.mubr.bf16.mxu0 %v17187_v36  ;;  %v13598_v51 = vld [vmem:[#allocation5 + $0x984] ss:$48 sps:$4 sm:$0xff]  }
 0x454   : > { %7528 = vmatprep.mubr.bf16.mxu1 %v17155_v12  ;;  %v15740_v57 = vadd.f32 %v11897_v20, %v11833_v23  ;;  %v13600_v12 = vld [vmem:[#allocation5 + $0xf84] ss:$48 sps:$4 sm:$0xff]  }
 0x455   : > { %v11834_v9 = vpop.f32.mrb[52].mxu0  ;;  %v13599_v20 = vld [vmem:[#allocation5 + $0x684] ss:$48 sps:$4 sm:$0xff]  }
 0x456   : > { %v11898_v43 = vpop.f32.mrb[52].mxu1  ;;  %v11835_v62 = vpop.f32.mrb[53].mxu0 }
 0x457   : > { %v11836_v16 = vadd.f32 %v11835_v62, %v11834_v9  ;;  %v11899_v27 = vpop.f32.mrb[53].mxu1  ;;  %v11837_v49 = vpop.f32.mrb[54].mxu0  ;;  %v17190_v9 = vld [vmem:[#allocation57_spill] sm:$0xff] }
 0x458   : > { %v11900_v55 = vadd.f32 %v11899_v27, %v11898_v43  ;;  %v11901_v7 = vpop.f32.mrb[54].mxu1  ;;  %v11838_v40 = vpop.f32.mrb[55].mxu0  ;;  %v13601_v27 = vld [vmem:[#allocation5 + $0xc84] ss:$48 sps:$4 sm:$0xff]  }
 0x459   : > { %v11839_v30 = vadd.f32 %v11838_v40, %v11837_v49  ;;  %v11902_v28 = vpop.f32.mrb[55].mxu1  ;;  %v13602_v43 = vld [vmem:[#allocation5 + $0x9e4] ss:$48 sps:$4 sm:$0xff]  }
 0x45a   : > { %v11903_v35 = vadd.f32 %v11902_v28, %v11901_v7  ;;  %7048 = vmatmul.mubr.bf16.vlgmr.msra.gmra.mrb[160].mxu0 %v17188_v33  ;;  %v15743_v23 = vadd.f32 %v11900_v55, %v11836_v16  ;;  %v13604_v28 = vld [vmem:[#allocation5 + $0xfe4] ss:$48 sps:$4 sm:$0xff]  }
 0x45b   : > { %7529 = vmatmul.mubr.bf16.vlgmr.msra.gmra.mrb[160].mxu1 %v17156_v39  ;;  %12429 = vmatpush3.bf16.msra.mxu0 %v13595_v48  ;;  %v13605_v33 = vld [vmem:[#allocation5 + $0xce4] ss:$48 sps:$4 sm:$0xff]  }
 0x45c   : > { %17189 = vst [vmem:[#allocation69_spill] sm:$0xff] %v15743_v23  ;;  %12493 = vmatpush3.bf16.msra.mxu1 %v13597_v0  ;;  %7055 = vmatprep.mubr.bf16.mxu0 %v17190_v9  ;;  %v15747_v62 = vadd.f32 %v11903_v35, %v11839_v30  ;;  %v13603_v9 = vld [vmem:[#allocation5 + $0x6e4] ss:$48 sps:$4 sm:$0xff]  }
 0x45d   : > { %v11840_v40 = vpop.f32.mrb[56].mxu0  ;;  %7536 = vmatprep.mubr.bf16.mxu1 %v17158_v17  ;;  %12430 = vmatprep.subr.bf16.mxu0 %v13598_v51  ;;  %v13606_v17 = vld [vmem:[#allocation5 + $0xa44] ss:$48 sps:$4 sm:$0xff]  }
 0x45e   : > { %17191 = vst [vmem:[#allocation70_spill] sm:$0xff] %v15747_v62  ;;  %v11904_v49 = vpop.f32.mrb[56].mxu1  ;;  %v11841_v7 = vpop.f32.mrb[57].mxu0  ;;  %12494 = vmatprep.subr.bf16.mxu1 %v13600_v12  ;;  %v17192_v62 = vld [vmem:[#allocation58_spill] sm:$0xff]  ;;  %v13608_v23 = vld [vmem:[#allocation5 + $0x1044] ss:$48 sps:$4 sm:$0xff]  }
 0x45f   : > { %v11842_v16 = vadd.f32 %v11841_v7, %v11840_v40  ;;  %v11905_v55 = vpop.f32.mrb[57].mxu1  ;;  %v11843_v39 = vpop.f32.mrb[58].mxu0  ;;  %12431 = vmatpush3.bf16.msra.mxu0 %v13599_v20  ;;  %v17193_v20 = vld [vmem:[#allocation59_spill] sm:$0xff] }
 0x460   : > { %v11906_v48 = vadd.f32 %v11905_v55, %v11904_v49  ;;  %v11907_v0 = vpop.f32.mrb[58].mxu1  ;;  %v11844_v42 = vpop.f32.mrb[59].mxu0  ;;  %12495 = vmatpush3.bf16.msra.mxu1 %v13601_v27  ;;  %12432 = vmatprep.subr.bf16.mxu0 %v13602_v43  ;;  %v13607_v27 = vld [vmem:[#allocation5 + $0x744] ss:$48 sps:$4 sm:$0xff]  }
 0x461   : > { %v11845_v35 = vadd.f32 %v11844_v42, %v11843_v39  ;;  %v11908_v30 = vpop.f32.mrb[59].mxu1  ;;  %12496 = vmatprep.subr.bf16.mxu1 %v13604_v28  ;;  %v13609_v42 = vld [vmem:[#allocation5 + $0xd44] ss:$48 sps:$4 sm:$0xff]  }
 0x462   : > { %v11909_v51 = vadd.f32 %v11908_v30, %v11907_v0  ;;  %7056 = vmatmul.mubr.bf16.gmra.mrb[164].mxu0 %v17192_v62  ;;  %v15751_v12 = vadd.f32 %v11906_v48, %v11842_v16  ;;  %v13610_v40 = vld [vmem:[#allocation5 + $0xaa4] ss:$48 sps:$4 sm:$0xff]  }
 0x463   : > { %7537 = vmatmul.mubr.bf16.gmra.mrb[164].mxu1 %v17162_v29  ;;  %7063 = vmatprep.mubr.bf16.mxu0 %v17193_v20  ;;  %v13612_v7 = vld [vmem:[#allocation5 + $0x10a4] ss:$48 sps:$4 sm:$0xff]   ;;  %v17194_v20 = vld [vmem:[#allocation60_spill] sm:$0xff] }
 0x464   : > { %7544 = vmatprep.mubr.bf16.mxu1 %v17165_v8  ;;  %12433 = vmatpush3.bf16.msra.mxu0 %v13603_v9  ;;  %v15756_v43 = vadd.f32 %v11909_v51, %v11845_v35  ;;  %v13611_v9 = vld [vmem:[#allocation5 + $0x7a4] ss:$48 sps:$4 sm:$0xff]  }
 0x465   : > { %v11846_v39 = vpop.f32.mrb[60].mxu0  ;;  %12497 = vmatpush3.bf16.msra.mxu1 %v13605_v33  ;;  %12434 = vmatprep.subr.bf16.mxu0 %v13606_v17  ;;  %v13613_v33 = vld [vmem:[#allocation5 + $0xda4] ss:$48 sps:$4 sm:$0xff]  }
 0x466   : > { %v11910_v28 = vpop.f32.mrb[60].mxu1  ;;  %v11847_v49 = vpop.f32.mrb[61].mxu0  ;;  %12498 = vmatprep.subr.bf16.mxu1 %v13608_v23  ;;  %v13614_v17 = vld [vmem:[#allocation5 + $0xb04] ss:$48 sps:$4 sm:$0xff]  }
 0x467   : > { %v11848_v16 = vadd.f32 %v11847_v49, %v11846_v39  ;;  %v11911_v55 = vpop.f32.mrb[61].mxu1  ;;  %v11849_v48 = vpop.f32.mrb[62].mxu0  ;;  %v13616_v23 = vld [vmem:[#allocation5 + $0x1104] ss:$48 sps:$4 sm:$0xff]  }
 0x468   : > { %v11912_v0 = vadd.f32 %v11911_v55, %v11910_v28  ;;  %v11913_v30 = vpop.f32.mrb[62].mxu1  ;;  %v11850_v29 = vpop.f32.mrb[63].mxu0  ;;  %12435 = vmatpush3.bf16.msra.mxu0 %v13607_v27  ;;  %v17195_v39 = vld [vmem:[#allocation61_spill] sm:$0xff] }
 0x469   : > { %v11851_v8 = vadd.f32 %v11850_v29, %v11849_v48  ;;  %v11914_v35 = vpop.f32.mrb[63].mxu1  ;;  %12499 = vmatpush3.bf16.msra.mxu1 %v13609_v42  ;;  %12436 = vmatprep.subr.bf16.mxu0 %v13610_v40  ;;  %v13615_v29 = vld [vmem:[#allocation5 + $0x804] ss:$48 sps:$4 sm:$0xff]  }
 0x46a   : > { %v11915_v51 = vadd.f32 %v11914_v35, %v11913_v30  ;;  %7064 = vmatmul.mubr.bf16.gmra.mrb[168].mxu0 %v17194_v20  ;;  %12500 = vmatprep.subr.bf16.mxu1 %v13612_v7  ;;  %v15759_v62 = vadd.f32 %v11912_v0, %v11848_v16  ;;  %v13617_v40 = vld [vmem:[#allocation5 + $0xe04] ss:$48 sps:$4 sm:$0xff]  }
 0x46b   : > { %7545 = vmatmul.mubr.bf16.gmra.mrb[168].mxu1 %v17168_v6  ;;  %7071 = vmatprep.mubr.bf16.mxu0 %v17195_v39  ;;  %v13618_v28 = vld [vmem:[#allocation5 + $0xb64] ss:$48 sps:$4 sm:$0xff]  }
 0x46c   : > { %7552 = vmatprep.mubr.bf16.mxu1 %v17170_v50  ;;  %12437 = vmatpush3.bf16.msra.mxu0 %v13611_v9  ;;  %v15764_v27 = vadd.f32 %v11915_v51, %v11851_v8  ;;  %v13620_v16 = vld [vmem:[#allocation5 + $0x1164] ss:$48 sps:$4 sm:$0xff]  }
 0x46d   : > { %v11932_v42 = vpop.f32.mrb[64].mxu0  ;;  %12501 = vmatpush3.bf16.msra.mxu1 %v13613_v33  ;;  %12438 = vmatprep.subr.bf16.mxu0 %v13614_v17  ;;  %v13619_v9 = vld [vmem:[#allocation5 + $0x864] ss:$48 sps:$4 sm:$0xff]  }
 0x46e   : > { %v11996_v49 = vpop.f32.mrb[64].mxu1  ;;  %v11933_v7 = vpop.f32.mrb[65].mxu0  ;;  %12502 = vmatprep.subr.bf16.mxu1 %v13616_v23  ;;  %v13621_v51 = vld [vmem:[#allocation5 + $0xe64] ss:$48 sps:$4 sm:$0xff]  }
 0x46f   : > { %v11934_v55 = vadd.f32 %v11933_v7, %v11932_v42  ;;  %v11997_v48 = vpop.f32.mrb[65].mxu1  ;;  %v11935_v0 = vpop.f32.mrb[66].mxu0  ;;  %v13622_v6 = vld [vmem:[#allocation5 + $0xbc4] ss:$48 sps:$4 sm:$0xff]   ;;  %v13626_v7 = vld [vmem:[#allocation5 + $0x328] ss:$48 sps:$4 sm:$0xff]  }
 0x470   : > { %v15766_v30 = vadd.f32 %v11997_v48, %v11996_v49  ;;  %v11999_v35 = vpop.f32.mrb[66].mxu1  ;;  %v11936_v50 = vpop.f32.mrb[67].mxu0  ;;  %12439 = vmatpush3.bf16.msra.mxu0 %v13615_v29  ;;  %v13624_v42 = vld [vmem:[#allocation5 + $0x11c4] ss:$48 sps:$4 sm:$0xff]  }
 0x471   : > { %v15769_v8 = vadd.f32 %v11934_v55, %v15696_v24  ;;  %v11937_v33 = vadd.f32 %v11936_v50, %v11935_v0  ;;  %v12000_v17 = vpop.f32.mrb[67].mxu1  ;;  %12503 = vmatpush3.bf16.msra.mxu1 %v13617_v40  ;;  %12440 = vmatprep.subr.bf16.mxu0 %v13618_v28  ;;  %v13623_v50 = vld [vmem:[#allocation5 + $0x8c4] ss:$48 sps:$4 sm:$0xff]   ;;  %v13628_v55 = vld [vmem:[#allocation5 + $0x928] ss:$48 sps:$4 sm:$0xff]  }
 0x472   : > { %v15771_v23 = vadd.f32 %v12000_v17, %v11999_v35  ;;  %7072 = vmatmul.mubr.bf16.gmra.mrb[172].mxu0 %v14631_v31  ;;  %12504 = vmatprep.subr.bf16.mxu1 %v13620_v16  ;;  %v13625_v24 = vld [vmem:[#allocation5 + $0xec4] ss:$48 sps:$4 sm:$0xff]  }
 0x473   : > { %v5509_v49 = vadd.f32 %v11937_v33, %v15707_v54  ;;  %7553 = vmatmul.mubr.bf16.gmra.mrb[172].mxu1 %v17174_v63  ;;  %7079 = vmatprep.mubr.bf16.mxu0 %v14633_v32  ;;  %v16930_v29 = vrot.slane %v15769_v8, 3 }
 0x474   : > { %7560 = vmatprep.mubr.bf16.mxu1 %v17177_v1  ;;  %12441 = vmatpush3.bf16.msra.mxu0 %v13619_v9 }
 0x475   : > { %v5569_v40 = vrot.slane %v5509_v49, 3  ;;  %v11938_v28 = vpop.f32.mrb[68].mxu0  ;;  %12505 = vmatpush3.bf16.msra.mxu1 %v13621_v51  ;;  %12442 = vmatprep.subr.bf16.mxu0 %v13622_v6 }
 0x476   : > { %v12002_v16 = vpop.f32.mrb[68].mxu1  ;;  %v11939_v54 = vpop.f32.mrb[69].mxu0  ;;  %12506 = vmatprep.subr.bf16.mxu1 %v13624_v42 }
 0x477   : > { %v5599_v48 = vsel %vm5584_vm10, %v16930_v29, %v5569_v40  ;;  %v11940_v0 = vadd.f32 %v11939_v54, %v11938_v28  ;;  %v12003_v35 = vpop.f32.mrb[69].mxu1  ;;  %v11941_v9 = vpop.f32.mrb[70].mxu0 }
 0x478   : > { %v5601_v33 = vadd.f32 %v5599_v48, %v15582_v3  ;;  %v15785_v17 = vadd.f32 %v12003_v35, %v12002_v16  ;;  %v12005_v49 = vpop.f32.mrb[70].mxu1  ;;  %v11942_v51 = vpop.f32.mrb[71].mxu0  ;;  %12443 = vmatpush3.bf16.msra.mxu0 %v13623_v50  ;;  %v15794_v3 = vld [vmem:[#allocation8 + $0x1] ss:$0 sm:$0xff] }
 0x479   : > { %v5514_v6 = vadd.f32 %v11940_v0, %v15710_v60  ;;  %v11943_v1 = vadd.f32 %v11942_v51, %v11941_v9  ;;  %v12006_v42 = vpop.f32.mrb[71].mxu1  ;;  %12507 = vmatpush3.bf16.msra.mxu1 %v13625_v24  ;;  %12556 = vmatprep.subr.bf16.mxu0 %v13626_v7 }
 0x47a   : > { %v15788_v63 = vadd.f32 %v12006_v42, %v12005_v49  ;;  %7080 = vmatmul.mubr.bf16.gmra.mrb[176].mxu0 %v14643_v5  ;;  %12620 = vmatprep.subr.bf16.mxu1 %v13628_v55  ;;  %v5624_v48 = vadd.f32 %v15794_v3, %v5601_v33  ;;  %v17196_v42 = vld [vmem:[#allocation78_spill] sm:$0xff] }
 0x47b   : > { %v5570_v28 = vrot.slane %v5514_v6, 3  ;;  %v5517_v54 = vadd.f32 %v11943_v1, %v15715_v38  ;;  %7561 = vmatmul.mubr.bf16.gmra.mrb[176].mxu1 %v17180_v19  ;;  %7087 = vmatprep.mubr.bf16.mxu0 %v14645_v13  ;;  %vm5657_vm11 = vcmp.le.s32.totalorder %v17196_v42, 12 }
 0x47c   : > { %7568 = vmatprep.mubr.bf16.mxu1 %v17181_v45 }
 0x47d   : > { %v5598_v60 = vsel %vm5584_vm10, %v5569_v40, %v5570_v28  ;;  %v5571_v50 = vrot.slane %v5517_v54, 3  ;;  %v11944_v24 = vpop.f32.mrb[72].mxu0 }
 0x47e   : > { %v5602_v7 = vadd.f32 %v5598_v60, %v15592_v10  ;;  %v12008_v16 = vpop.f32.mrb[72].mxu1  ;;  %v11945_v55 = vpop.f32.mrb[73].mxu0 }
 0x47f   : > { %v5597_v1 = vsel %vm5584_vm10, %v5570_v28, %v5571_v50  ;;  %v11946_v38 = vadd.f32 %v11945_v55, %v11944_v24  ;;  %v12009_v0 = vpop.f32.mrb[73].mxu1  ;;  %v11947_v35 = vpop.f32.mrb[74].mxu0  ;;  %v5640_v28 = vmax.f32 %v5624_v48, 0.0 }
 0x480   : > { %v5625_v9 = vadd.f32 %v15794_v3, %v5602_v7  ;;  %v5603_v49 = vadd.f32 %v5597_v1, %v15598_v11  ;;  %v15805_v51 = vadd.f32 %v12009_v0, %v12008_v16  ;;  %v12011_v40 = vpop.f32.mrb[74].mxu1  ;;  %v11948_v6 = vpop.f32.mrb[75].mxu0 }
 0x481   : > { %v5522_v10 = vadd.f32 %v11946_v38, %v15719_v15  ;;  %v11949_v54 = vadd.f32 %v11948_v6, %v11947_v35  ;;  %v12012_v33 = vpop.f32.mrb[75].mxu1 }
 0x482   : > { %v5641_v60 = vmax.f32 %v5625_v9, 0.0  ;;  %v15809_v29 = vadd.f32 %v12012_v33, %v12011_v40  ;;  %7088 = vmatmul.mubr.bf16.gmra.mrb[180].mxu0 %v14655_v25  ;;  %v5626_v35 = vadd.f32 %v15794_v3, %v5603_v49 }
 0x483   : > { %v5572_v24 = vrot.slane %v5522_v10, 3  ;;  %v5525_v7 = vadd.f32 %v11949_v54, %v15724_v58  ;;  %7569 = vmatmul.mubr.bf16.gmra.mrb[180].mxu1 %v17182_v37  ;;  %7095 = vmatprep.mubr.bf16.mxu0 %v17132_v44 }
 0x484   : > { %v5659_v11 = vsel %vm5657_vm11, %v5641_v60, 0.0  ;;  %7576 = vmatprep.mubr.bf16.mxu1 %v17183_v26 }
 0x485   : > { %v5674_v15 = vmax.f32 %v5640_v28, %v5659_v11  ;;  %v5596_v16 = vsel %vm5584_vm10, %v5571_v50, %v5572_v24  ;;  %v5573_v55 = vrot.slane %v5525_v7, 3  ;;  %v11950_v1 = vpop.f32.mrb[76].mxu0 }
 0x486   : > { %v5604_v48 = vadd.f32 %v5596_v16, %v15608_v59  ;;  %v12014_v38 = vpop.f32.mrb[76].mxu1  ;;  %v11951_v0 = vpop.f32.mrb[77].mxu0 }
 0x487   : > { %v5675_v58 = vrot.slane %v5674_v15, 4  ;;  %v5595_v9 = vsel %vm5584_vm10, %v5572_v24, %v5573_v55  ;;  %v11952_v40 = vadd.f32 %v11951_v0, %v11950_v1  ;;  %v12015_v6 = vpop.f32.mrb[77].mxu1  ;;  %v11953_v10 = vpop.f32.mrb[78].mxu0  ;;  %v5642_v24 = vmax.f32 %v5626_v35, 0.0 }
 0x488   : > { %v5627_v54 = vadd.f32 %v15794_v3, %v5604_v48  ;;  %v5605_v33 = vadd.f32 %v5595_v9, %v15615_v53  ;;  %v15826_v50 = vadd.f32 %v12015_v6, %v12014_v38  ;;  %v12017_v60 = vpop.f32.mrb[78].mxu1  ;;  %v11954_v28 = vpop.f32.mrb[79].mxu0 }
 0x489   : > { %v5676_v59 = vmax.f32 %v5674_v15, %v5675_v58  ;;  %v5530_v7 = vadd.f32 %v11952_v40, %v15727_v56  ;;  %v11955_v11 = vadd.f32 %v11954_v28, %v11953_v10  ;;  %v12018_v16 = vpop.f32.mrb[79].mxu1 }
 0x48a   : > { %v5643_v49 = vmax.f32 %v5627_v54, 0.0  ;;  %v15829_v26 = vadd.f32 %v12018_v16, %v12017_v60  ;;  %7096 = vmatmul.mubr.bf16.gmra.mrb[184].mxu0 %v17133_v22  ;;  %v5628_v6 = vadd.f32 %v15794_v3, %v5605_v33 }
 0x48b   : > { %v5574_v1 = vrot.slane %v5530_v7, 3  ;;  %v5533_v48 = vadd.f32 %v11955_v11, %v15732_v46  ;;  %7577 = vmatmul.mubr.bf16.gmra.mrb[184].mxu1 %v17184_v52  ;;  %7103 = vmatprep.mubr.bf16.mxu0 %v17134_v34  ;;  %v5677_v53 = vrot.slane %v5676_v59, 2 }
 0x48c   : > { %v5661_v15 = vsel %vm5657_vm11, %v5643_v49, 0.0  ;;  %7584 = vmatprep.mubr.bf16.mxu1 %v17185_v41 }
 0x48d   : > { %v5681_v56 = vmax.f32 %v5642_v24, %v5661_v15  ;;  %v5594_v38 = vsel %vm5584_vm10, %v5573_v55, %v5574_v1  ;;  %v5575_v0 = vrot.slane %v5533_v48, 3  ;;  %v11956_v58 = vpop.f32.mrb[80].mxu0  ;;  %v5678_v7 = vmax.f32 %v5676_v59, %v5677_v53 }
 0x48e   : > { %v5606_v35 = vadd.f32 %v5594_v38, %v15624_v21  ;;  %v12020_v9 = vpop.f32.mrb[80].mxu1  ;;  %v11957_v46 = vpop.f32.mrb[81].mxu0  ;;  %v5644_v59 = vmax.f32 %v5628_v6, 0.0 }
 0x48f   : > { %v5682_v40 = vrot.slane %v5681_v56, 4  ;;  %v5593_v10 = vsel %vm5584_vm10, %v5574_v1, %v5575_v0  ;;  %v11958_v54 = vadd.f32 %v11957_v46, %v11956_v58  ;;  %v12021_v60 = vpop.f32.mrb[81].mxu1  ;;  %v11959_v28 = vpop.f32.mrb[82].mxu0 }
 0x490   : > { %v5629_v11 = vadd.f32 %v15794_v3, %v5606_v35  ;;  %v5607_v55 = vadd.f32 %v5593_v10, %v15631_v2  ;;  %v15846_v16 = vadd.f32 %v12021_v60, %v12020_v9  ;;  %v12023_v49 = vpop.f32.mrb[82].mxu1  ;;  %v11960_v21 = vpop.f32.mrb[83].mxu0  ;;  %v17197_v2 = vld [vmem:[#allocation24_spill] sm:$0xff]  ;;  %v5679_v35 = vrot.slane %v5678_v7, 1 }
 0x491   : > { %v5683_v24 = vmax.f32 %v5681_v56, %v5682_v40  ;;  %v5538_v48 = vadd.f32 %v11958_v54, %v15735_v14  ;;  %v11961_v15 = vadd.f32 %v11960_v21, %v11959_v28  ;;  %v12024_v33 = vpop.f32.mrb[83].mxu1 }
 0x492   : > { %v5645_v38 = vmax.f32 %v5629_v11, 0.0  ;;  %v15849_v41 = vadd.f32 %v12024_v33, %v12023_v49  ;;  %7104 = vmatmul.mubr.bf16.gmra.mrb[188].mxu0 %v17135_v47  ;;  %v5630_v10 = vadd.f32 %v15794_v3, %v5607_v55 }
 0x493   : > { %v5684_v1 = vrot.slane %v5683_v24, 2  ;;  %v5576_v53 = vrot.slane %v5538_v48, 3  ;;  %v5541_v58 = vadd.f32 %v11961_v15, %v15740_v57  ;;  %7585 = vmatmul.mubr.bf16.gmra.mrb[188].mxu1 %v17186_v4  ;;  %7625 = vmatprep.mubr.bf16.mxu0 %v17197_v2  ;;  %v13627_v15 = vld [vmem:[#allocation5 + $0x28] ss:$48 sps:$4 sm:$0xff]  }
 0x494   : > { %v5663_v14 = vsel %vm5657_vm11, %v5645_v38, 0.0  ;;  %7722 = vmatprep.mubr.bf16.mxu1 %v17187_v36  ;;  %v17199_v36 = vld [vmem:[#allocation69_spill] sm:$0xff] }
 0x495   : > { %v5685_v56 = vmax.f32 %v5683_v24, %v5684_v1  ;;  %v5688_v9 = vmax.f32 %v5644_v59, %v5663_v14  ;;  %v5592_v46 = vsel %vm5584_vm10, %v5575_v0, %v5576_v53  ;;  %v5577_v40 = vrot.slane %v5541_v58, 3  ;;  %v11962_v6 = vpop.f32.mrb[84].mxu0  ;;  %v17198_v0 = vld [vmem:[#allocation74_spill] sm:$0xff] }
 0x496   : > { %v5608_v57 = vadd.f32 %v5592_v46, %v15640_v61  ;;  %v12026_v54 = vpop.f32.mrb[84].mxu1  ;;  %v11963_v60 = vpop.f32.mrb[85].mxu0  ;;  %v13629_v61 = vld [vmem:[#allocation5 + $0x628] ss:$48 sps:$4 sm:$0xff]   ;;  %v5680_v58 = vmax.f32 %v5678_v7, %v5679_v35  ;;  %v17202_v7 = vld [vmem:[#allocation56_spill] sm:$0xff] }
 0x497   : > { %v5686_v28 = vrot.slane %v5685_v56, 1  ;;  %v5689_v11 = vrot.slane %v5688_v9, 4  ;;  %v5591_v49 = vsel %vm5584_vm10, %v5576_v53, %v5577_v40  ;;  %v11964_v21 = vadd.f32 %v11963_v60, %v11962_v6  ;;  %v12027_v48 = vpop.f32.mrb[85].mxu1  ;;  %v11965_v24 = vpop.f32.mrb[86].mxu0  ;;  %v13630_v6 = vld [vmem:[#allocation5 + $0x388] ss:$48 sps:$4 sm:$0xff]  }
 0x498   : > { %v5631_v33 = vadd.f32 %v15794_v3, %v5608_v57  ;;  %v5609_v38 = vadd.f32 %v5591_v49, %v17198_v0  ;;  %v15866_v1 = vadd.f32 %v12027_v48, %v12026_v54  ;;  %v12029_v55 = vpop.f32.mrb[86].mxu1  ;;  %v11966_v59 = vpop.f32.mrb[87].mxu0  ;;  %v5646_v60 = vmax.f32 %v5630_v10, 0.0  ;;  %v17200_v57 = vld [vmem:[#allocation26_spill] sm:$0xff]  ;;  %v13632_v49 = vld [vmem:[#allocation5 + $0x988] ss:$48 sps:$4 sm:$0xff]  }
 0x499   : > { %v5687_v14 = vmax.f32 %v5685_v56, %v5686_v28  ;;  %v5690_v46 = vmax.f32 %v5688_v9, %v5689_v11  ;;  %v5546_v4 = vadd.f32 %v11964_v21, %v17199_v36  ;;  %v11967_v52 = vadd.f32 %v11966_v59, %v11965_v24  ;;  %v12030_v53 = vpop.f32.mrb[87].mxu1  ;;  %v17201_v0 = vld [vmem:[#allocation70_spill] sm:$0xff]  ;;  %v13631_v35 = vld [vmem:[#allocation5 + $0x88] ss:$48 sps:$4 sm:$0xff]   ;;  %v17203_v9 = vld [vmem:[#allocation28_spill] sm:$0xff] }
 0x49a   : > { %v5647_v37 = vmax.f32 %v5631_v33, 0.0  ;;  %v15869_v45 = vadd.f32 %v12030_v53, %v12029_v55  ;;  %7626 = vmatmul.mubr.bf16.vlgmr.msra.gmra.mrb[192].mxu0 %v17200_v57  ;;  %v13633_v10 = vld [vmem:[#allocation5 + $0x688] ss:$48 sps:$4 sm:$0xff]   ;;  %v5632_v55 = vadd.f32 %v15794_v3, %v5609_v38 }
 0x49b   : > { %v5691_v54 = vrot.slane %v5690_v46, 2  ;;  %v5578_v48 = vrot.slane %v5546_v4, 3  ;;  %v15873_v19 = vadd.f32 %v11967_v52, %v17201_v0  ;;  %7723 = vmatmul.mubr.bf16.vlgmr.msra.gmra.mrb[192].mxu1 %v17202_v7  ;;  %12557 = vmatpush3.bf16.msra.mxu0 %v13627_v15  ;;  %v9426_v36 = vsel %vm9403_vm3, %v5687_v14, %v5680_v58  ;;  %v13634_v28 = vld [vmem:[#allocation5 + $0x3e8] ss:$48 sps:$4 sm:$0xff]  }
 0x49c   : > { %v5665_v56 = vsel %vm5657_vm11, %v5647_v37, 0.0  ;;  %12621 = vmatpush3.bf16.msra.mxu1 %v13629_v61  ;;  %7633 = vmatprep.mubr.bf16.mxu0 %v17203_v9  ;;  %v17204_v15 = vld [vmem:[#allocation57_spill] sm:$0xff]  ;;  %v17205_v37 = vld [vmem:[#allocation75_spill] sm:$0xff]  ;;  %v5648_v9 = vmax.f32 %v5632_v55, 0.0 }
 0x49d   : > { %v5692_v11 = vmax.f32 %v5690_v46, %v5691_v54  ;;  %v5695_v21 = vmax.f32 %v5646_v60, %v5665_v56  ;;  %v5590_v4 = vsel %vm5584_vm10, %v5577_v40, %v5578_v48  ;;  %v5579_v52 = vrot.slane %v15873_v19, 3  ;;  %v11968_v24 = vpop.f32.mrb[88].mxu0  ;;  %7730 = vmatprep.mubr.bf16.mxu1 %v17204_v15  ;;  %12558 = vmatprep.subr.bf16.mxu0 %v13630_v6  ;;  %v13636_v33 = vld [vmem:[#allocation5 + $0x9e8] ss:$48 sps:$4 sm:$0xff]   ;;  %v17206_v6 = vld [vmem:[#allocation76_spill] sm:$0xff] }
 0x49e   : > { %v5610_v59 = vadd.f32 %v5590_v4, %v17205_v37  ;;  %v12032_v61 = vpop.f32.mrb[88].mxu1  ;;  %v11969_v58 = vpop.f32.mrb[89].mxu0  ;;  %12622 = vmatprep.subr.bf16.mxu1 %v13632_v49  ;;  %v13635_v49 = vld [vmem:[#allocation5 + $0xe8] ss:$48 sps:$4 sm:$0xff]  }
 0x49f   : > { %v5693_v14 = vrot.slane %v5692_v11, 1  ;;  %v5696_v46 = vrot.slane %v5695_v21, 4  ;;  %v5589_v53 = vsel %vm5584_vm10, %v5578_v48, %v5579_v52  ;;  %v11970_v40 = vadd.f32 %v11969_v58, %v11968_v24  ;;  %v12033_v60 = vpop.f32.mrb[89].mxu1  ;;  %v11971_v19 = vpop.f32.mrb[90].mxu0  ;;  %12559 = vmatpush3.bf16.msra.mxu0 %v13631_v35  ;;  %v13637_v24 = vld [vmem:[#allocation5 + $0x6e8] ss:$48 sps:$4 sm:$0xff]  }
 0x4a0   : > { %v5633_v54 = vadd.f32 %v15794_v3, %v5610_v59  ;;  %v5611_v0 = vadd.f32 %v5589_v53, %v17206_v6  ;;  %v15890_v56 = vadd.f32 %v12033_v60, %v12032_v61  ;;  %v12035_v38 = vpop.f32.mrb[90].mxu1  ;;  %v11972_v4 = vpop.f32.mrb[91].mxu0  ;;  %12623 = vmatpush3.bf16.msra.mxu1 %v13633_v10  ;;  %12560 = vmatprep.subr.bf16.mxu0 %v13634_v28  ;;  %v13638_v58 = vld [vmem:[#allocation5 + $0x448] ss:$48 sps:$4 sm:$0xff]   ;;  %v17207_v61 = vld [vmem:[#allocation30_spill] sm:$0xff] }
 0x4a1   : > { %v5697_v37 = vmax.f32 %v5695_v21, %v5696_v46  ;;  %v5554_v15 = vadd.f32 %v11970_v40, %v15751_v12  ;;  %v11973_v7 = vadd.f32 %v11972_v4, %v11971_v19  ;;  %v12036_v48 = vpop.f32.mrb[91].mxu1  ;;  %12624 = vmatprep.subr.bf16.mxu1 %v13636_v33  ;;  %v5694_v35 = vmax.f32 %v5692_v11, %v5693_v14  ;;  %v13640_v53 = vld [vmem:[#allocation5 + $0xa48] ss:$48 sps:$4 sm:$0xff]   ;;  %v17208_v21 = vld [vmem:[#allocation58_spill] sm:$0xff]  ;;  %v17209_v12 = vld [vmem:[#allocation32_spill] sm:$0xff] }
 0x4a2   : > { %v5649_v59 = vmax.f32 %v5633_v54, 0.0  ;;  %v15893_v57 = vadd.f32 %v12036_v48, %v12035_v38  ;;  %7634 = vmatmul.mubr.bf16.gmra.mrb[196].mxu0 %v17207_v61  ;;  %v17210_v55 = vld [vmem:[#allocation59_spill] sm:$0xff] }
 0x4a3   : > { %v5698_v60 = vrot.slane %v5697_v37, 2  ;;  %v5580_v10 = vrot.slane %v5554_v15, 3  ;;  %v15897_v28 = vadd.f32 %v11973_v7, %v15756_v43  ;;  %7731 = vmatmul.mubr.bf16.gmra.mrb[196].mxu1 %v17208_v21  ;;  %7641 = vmatprep.mubr.bf16.mxu0 %v17209_v12  ;;  %v9427_v33 = vsel %vm9405_vm4, %v5694_v35, %v9426_v36  ;;  %v13639_v14 = vld [vmem:[#allocation5 + $0x148] ss:$48 sps:$4 sm:$0xff]  }
 0x4a4   : > { %v5667_v11 = vsel %vm5657_vm11, %v5649_v59, 0.0  ;;  %7738 = vmatprep.mubr.bf16.mxu1 %v17210_v55  ;;  %12561 = vmatpush3.bf16.msra.mxu0 %v13635_v49  ;;  %v13641_v19 = vld [vmem:[#allocation5 + $0x748] ss:$48 sps:$4 sm:$0xff]   ;;  %v5634_v36 = vadd.f32 %v15794_v3, %v5611_v0 }
 0x4a5   : > { %v5699_v46 = vmax.f32 %v5697_v37, %v5698_v60  ;;  %v5702_v40 = vmax.f32 %v5648_v9, %v5667_v11  ;;  %v5588_v15 = vsel %vm5584_vm10, %v5579_v52, %v5580_v10  ;;  %v5581_v43 = vrot.slane %v15897_v28, 3  ;;  %v11974_v7 = vpop.f32.mrb[92].mxu0  ;;  %12625 = vmatpush3.bf16.msra.mxu1 %v13637_v24  ;;  %12562 = vmatprep.subr.bf16.mxu0 %v13638_v58  ;;  %v13642_v54 = vld [vmem:[#allocation5 + $0x4a8] ss:$48 sps:$4 sm:$0xff]   ;;  %v17212_v58 = vld [vmem:[#allocation62_spill] sm:$0xff] }
 0x4a6   : > { %v17211_v6 = vld [vmem:[#allocation67_spill] sm:$0xff]  ;;  %v12038_v4 = vpop.f32.mrb[92].mxu1  ;;  %v11975_v48 = vpop.f32.mrb[93].mxu0  ;;  %12626 = vmatprep.subr.bf16.mxu1 %v13640_v53 }
 0x4a7   : > { %v5612_v38 = vadd.f32 %v5588_v15, %v17211_v6  ;;  %v13644_v49 = vld [vmem:[#allocation5 + $0xaa8] ss:$48 sps:$4 sm:$0xff]   ;;  %v5703_v37 = vrot.slane %v5702_v40, 4  ;;  %v5587_v9 = vsel %vm5584_vm10, %v5580_v10, %v5581_v43  ;;  %v11976_v52 = vadd.f32 %v11975_v48, %v11974_v7  ;;  %v12039_v35 = vpop.f32.mrb[93].mxu1  ;;  %v11977_v59 = vpop.f32.mrb[94].mxu0 }
 0x4a8   : > { %v5700_v60 = vrot.slane %v5699_v46, 1  ;;  %v5613_v28 = vadd.f32 %v5587_v9, %v17212_v58  ;;  %v15914_v11 = vadd.f32 %v12039_v35, %v12038_v4  ;;  %v12041_v0 = vpop.f32.mrb[94].mxu1  ;;  %v11978_v15 = vpop.f32.mrb[95].mxu0  ;;  %12563 = vmatpush3.bf16.msra.mxu0 %v13639_v14  ;;  %v13643_v6 = vld [vmem:[#allocation5 + $0x1a8] ss:$48 sps:$4 sm:$0xff]   ;;  %v5650_v14 = vmax.f32 %v5634_v36, 0.0 }
 0x4a9   : > { %v5635_v24 = vadd.f32 %v15794_v3, %v5612_v38  ;;  %v5704_v53 = vmax.f32 %v5702_v40, %v5703_v37  ;;  %v5562_v55 = vadd.f32 %v11976_v52, %v15759_v62  ;;  %v11979_v21 = vadd.f32 %v11978_v15, %v11977_v59  ;;  %v12042_v12 = vpop.f32.mrb[95].mxu1  ;;  %12627 = vmatpush3.bf16.msra.mxu1 %v13641_v19  ;;  %v13645_v10 = vld [vmem:[#allocation5 + $0x7a8] ss:$48 sps:$4 sm:$0xff]   ;;  %v17213_v38 = vld [vmem:[#allocation34_spill] sm:$0xff]  ;;  %v17214_v62 = vld [vmem:[#allocation36_spill] sm:$0xff] }
 0x4aa   : > { %12564 = vmatprep.subr.bf16.mxu0 %v13642_v54  ;;  %v13646_v7 = vld [vmem:[#allocation5 + $0x508] ss:$48 sps:$4 sm:$0xff]   ;;  %v15917_v61 = vadd.f32 %v12042_v12, %v12041_v0  ;;  %7642 = vmatmul.mubr.bf16.gmra.mrb[200].mxu0 %v17213_v38  ;;  %v5701_v9 = vmax.f32 %v5699_v46, %v5700_v60  ;;  %v5636_v52 = vadd.f32 %v15794_v3, %v5613_v28 }
 0x4ab   : > { %v5651_v48 = vmax.f32 %v5635_v24, 0.0  ;;  %12628 = vmatprep.subr.bf16.mxu1 %v13644_v49  ;;  %v13648_v4 = vld [vmem:[#allocation5 + $0xb08] ss:$48 sps:$4 sm:$0xff]   ;;  %v5705_v35 = vrot.slane %v5704_v53, 2  ;;  %v5582_v58 = vrot.slane %v5562_v55, 3  ;;  %v5565_v40 = vadd.f32 %v11979_v21, %v15764_v27  ;;  %7739 = vmatmul.mubr.bf16.gmra.mrb[200].mxu1 %v17194_v20 }
 0x4ac   : > { %7649 = vmatprep.mubr.bf16.mxu0 %v17214_v62  ;;  %7746 = vmatprep.mubr.bf16.mxu1 %v17195_v39  ;;  %v13647_v12 = vld [vmem:[#allocation5 + $0x208] ss:$48 sps:$4 sm:$0xff]   ;;  %v15927_v54 = vsel %vm9407_vm5, %v5701_v9, %v9427_v33  ;;  %v17217_v9 = vld [vmem:[#allocation64_spill] sm:$0xff] }
 0x4ad   : > { %v5669_v19 = vsel %vm5657_vm11, %v5651_v48, 0.0  ;;  %12565 = vmatpush3.bf16.msra.mxu0 %v13643_v6  ;;  %v5586_v55 = vsel %vm5584_vm10, %v5581_v43, %v5582_v58  ;;  %v5583_v36 = vrot.slane %v5565_v40, 3  ;;  %v12060_v27 = vpop.f32.mrb[96].mxu0  ;;  %12629 = vmatpush3.bf16.msra.mxu1 %v13645_v10  ;;  %v13649_v21 = vld [vmem:[#allocation5 + $0x808] ss:$48 sps:$4 sm:$0xff]   ;;  %v5706_v37 = vmax.f32 %v5704_v53, %v5705_v35 }
 0x4ae   : > { %v5709_v46 = vmax.f32 %v5650_v14, %v5669_v19  ;;  %12566 = vmatprep.subr.bf16.mxu0 %v13646_v7  ;;  %v13650_v49 = vld [vmem:[#allocation5 + $0x568] ss:$48 sps:$4 sm:$0xff]   ;;  %v12124_v24 = vpop.f32.mrb[96].mxu1  ;;  %v12061_v0 = vpop.f32.mrb[97].mxu0  ;;  %12630 = vmatprep.subr.bf16.mxu1 %v13648_v4  ;;  %v17216_v43 = vrot.slane %v15769_v8, 3 }
 0x4af   : > { %v17215_v59 = vld [vmem:[#allocation63_spill] sm:$0xff]  ;;  %v5585_v6 = vsel %vm5584_vm10, %v5582_v58, %v5583_v36  ;;  %v12062_v7 = vadd.f32 %v12061_v0, %v12060_v27  ;;  %v12125_v48 = vpop.f32.mrb[97].mxu1  ;;  %v12063_v53 = vpop.f32.mrb[98].mxu0  ;;  %v17218_v14 = vld [vmem:[#allocation65_spill] sm:$0xff]  ;;  %v5707_v0 = vrot.slane %v5706_v37, 1 }
 0x4b0   : > { %v5614_v60 = vadd.f32 %v5586_v55, %v17215_v59  ;;  %v13652_v33 = vld [vmem:[#allocation5 + $0xb68] ss:$48 sps:$4 sm:$0xff]   ;;  %v5710_v15 = vrot.slane %v5709_v46, 4  ;;  %v5600_v10 = vsel %vm5584_vm10, %v5583_v36, %v17216_v43  ;;  %v5615_v35 = vadd.f32 %v5585_v6, %v17217_v9  ;;  %v12127_v19 = vpop.f32.mrb[98].mxu1  ;;  %v12064_v55 = vpop.f32.mrb[99].mxu0 }
 0x4b1   : > { %v5616_v40 = vadd.f32 %v5600_v10, %v17218_v14  ;;  %v12126_v4 = vadd.f32 %v12125_v48, %v12124_v24  ;;  %12567 = vmatpush3.bf16.msra.mxu0 %v13647_v12  ;;  %v13651_v59 = vld [vmem:[#allocation5 + $0x268] ss:$48 sps:$4 sm:$0xff]   ;;  %v6342_v8 = vadd.f32 %v12062_v7, %v15766_v30  ;;  %v12065_v39 = vadd.f32 %v12064_v55, %v12063_v53  ;;  %v12128_v20 = vpop.f32.mrb[99].mxu1  ;;  %v17219_v10 = vld [vmem:[#allocation38_spill] sm:$0xff] }
 0x4b2   : > { %v5637_v28 = vadd.f32 %v15794_v3, %v5614_v60  ;;  %v5711_v58 = vmax.f32 %v5709_v46, %v5710_v15  ;;  %12631 = vmatpush3.bf16.msra.mxu1 %v13649_v21  ;;  %12568 = vmatprep.subr.bf16.mxu0 %v13650_v49  ;;  %v13653_v36 = vld [vmem:[#allocation5 + $0x868] ss:$48 sps:$4 sm:$0xff]   ;;  %v5638_v6 = vadd.f32 %v15794_v3, %v5615_v35  ;;  %v5652_v46 = vmax.f32 %v5636_v52, 0.0  ;;  %v17220_v21 = vld [vmem:[#allocation40_spill] sm:$0xff] }
 0x4b3   : > { %v13654_v27 = vld [vmem:[#allocation5 + $0x5c8] ss:$48 sps:$4 sm:$0xff]   ;;  %v5639_v43 = vadd.f32 %v15794_v3, %v5616_v40  ;;  %v12129_v24 = vadd.f32 %v12128_v20, %v12127_v19  ;;  %7650 = vmatmul.mubr.bf16.gmra.mrb[204].mxu0 %v17219_v10  ;;  %12632 = vmatprep.subr.bf16.mxu1 %v13652_v33  ;;  %v15946_v15 = vadd.f32 %v12126_v4, %v6342_v8  ;;  %v13660_v4 = vld [vmem:[#allocation5 + $0x32c] ss:$48 sps:$4 sm:$0xff]  }
 0x4b4   : > { %v5653_v60 = vmax.f32 %v5637_v28, 0.0  ;;  %v13656_v12 = vld [vmem:[#allocation5 + $0xbc8] ss:$48 sps:$4 sm:$0xff]   ;;  %v6345_v30 = vadd.f32 %v12065_v39, %v15771_v23  ;;  %7747 = vmatmul.mubr.bf16.gmra.mrb[204].mxu1 %v14631_v31  ;;  %7657 = vmatprep.mubr.bf16.mxu0 %v17220_v21  ;;  %v5708_v49 = vmax.f32 %v5706_v37, %v5707_v0  ;;  %v5654_v48 = vmax.f32 %v5638_v6, 0.0 }
 0x4b5   : > { %v5655_v3 = vmax.f32 %v5639_v43, 0.0  ;;  %7754 = vmatprep.mubr.bf16.mxu1 %v14633_v32  ;;  %12569 = vmatpush3.bf16.msra.mxu0 %v13651_v59  ;;  %v13655_v20 = vld [vmem:[#allocation5 + $0x2c8] ss:$48 sps:$4 sm:$0xff]   ;;  %v5712_v33 = vrot.slane %v5711_v58, 2  ;;  %v12066_v28 = vpop.f32.mrb[100].mxu0  ;;  %v16941_v35 = vrot.slane %v15946_v15, 1 }
 0x4b6   : > { %v5671_v7 = vsel %vm5657_vm11, %v5653_v60, 0.0  ;;  %v6442_v53 = vadd.f32 %v12129_v24, %v6345_v30  ;;  %12633 = vmatpush3.bf16.msra.mxu1 %v13653_v36  ;;  %12570 = vmatprep.subr.bf16.mxu0 %v13654_v27  ;;  %v13657_v39 = vld [vmem:[#allocation5 + $0x8c8] ss:$48 sps:$4 sm:$0xff]   ;;  %v9429_v37 = vsel %vm9409_vm6, %v5708_v49, %v15927_v54  ;;  %v12130_v14 = vpop.f32.mrb[100].mxu1  ;;  %v12067_v40 = vpop.f32.mrb[101].mxu0 }
 0x4b7   : > { %v5716_v52 = vmax.f32 %v5652_v46, %v5671_v7  ;;  %v13658_v23 = vld [vmem:[#allocation5 + $0xf28] ss:$48 sps:$4 sm:$0xff]   ;;  %v5673_v9 = vsel %vm5657_vm11, %v5655_v3, 0.0  ;;  %12634 = vmatprep.subr.bf16.mxu1 %v13656_v12  ;;  %v5713_v19 = vmax.f32 %v5711_v58, %v5712_v33  ;;  %v12068_v36 = vadd.f32 %v12067_v40, %v12066_v28  ;;  %v12131_v27 = vpop.f32.mrb[101].mxu1  ;;  %v12069_v0 = vpop.f32.mrb[102].mxu0  ;;  %v17221_v7 = vld [vmem:[#allocation42_spill] sm:$0xff] }
 0x4b8   : > { %v5723_v59 = vmax.f32 %v5654_v48, %v5673_v9  ;;  %v6502_v8 = vrot.slane %v6442_v53, 1  ;;  %v12132_v60 = vadd.f32 %v12131_v27, %v12130_v14  ;;  %v12133_v6 = vpop.f32.mrb[102].mxu1  ;;  %v12070_v43 = vpop.f32.mrb[103].mxu0  ;;  %v17222_v33 = vld [vmem:[#allocation44_spill] sm:$0xff] }
 0x4b9   : > { %v5717_v55 = vrot.slane %v5716_v52, 4  ;;  %12571 = vmatpush3.bf16.msra.mxu0 %v13655_v20  ;;  %v5714_v54 = vrot.slane %v5713_v19, 1  ;;  %v6350_v24 = vadd.f32 %v12068_v36, %v15785_v17  ;;  %v12071_v46 = vadd.f32 %v12070_v43, %v12069_v0  ;;  %v12134_v30 = vpop.f32.mrb[103].mxu1 }
 0x4ba   : > { %12635 = vmatpush3.bf16.msra.mxu1 %v13657_v39  ;;  %12684 = vmatprep.subr.bf16.mxu0 %v13658_v23  ;;  %v15964_v58 = vsel %vm1355_vm0, %v16941_v35, %v6502_v8  ;;  %v5724_v12 = vrot.slane %v5723_v59, 4  ;;  %v12135_v49 = vadd.f32 %v12134_v30, %v12133_v6 }
 0x4bb   : > { %7658 = vmatmul.mubr.bf16.gmra.mrb[208].mxu0 %v17221_v7  ;;  %12748 = vmatprep.subr.bf16.mxu1 %v13660_v4  ;;  %v5715_v48 = vmax.f32 %v5713_v19, %v5714_v54  ;;  %v5718_v3 = vmax.f32 %v5716_v52, %v5717_v55  ;;  %v6447_v20 = vadd.f32 %v12132_v60, %v6350_v24 }
 0x4bc   : > { %v6353_v17 = vadd.f32 %v12071_v46, %v15788_v63  ;;  %7755 = vmatmul.mubr.bf16.gmra.mrb[208].mxu1 %v14643_v5  ;;  %7665 = vmatprep.mubr.bf16.mxu0 %v17222_v33  ;;  %v5725_v53 = vmax.f32 %v5723_v59, %v5724_v12 }
 0x4bd   : > { %7762 = vmatprep.mubr.bf16.mxu1 %v14645_v13  ;;  %v5719_v28 = vrot.slane %v5718_v3, 2  ;;  %v9430_v39 = vsel %vm9411_vm7, %v5715_v48, %v9429_v37  ;;  %v6503_v23 = vrot.slane %v6447_v20, 1  ;;  %v12072_v14 = vpop.f32.mrb[104].mxu0  ;;  %v17223_v48 = vld [vmem:[#allocation46_spill] sm:$0xff] }
 0x4be   : > { %v6450_v9 = vadd.f32 %v12135_v49, %v6353_v17  ;;  %v5726_v40 = vrot.slane %v5725_v53, 2  ;;  %v12136_v4 = vpop.f32.mrb[104].mxu1  ;;  %v12073_v19 = vpop.f32.mrb[105].mxu0  ;;  %v17224_v17 = vld [vmem:[#allocation48_spill] sm:$0xff] }
 0x4bf   : > { %v5720_v52 = vmax.f32 %v5718_v3, %v5719_v28  ;;  %v12074_v36 = vadd.f32 %v12073_v19, %v12072_v14  ;;  %v12137_v63 = vpop.f32.mrb[105].mxu1  ;;  %v12075_v27 = vpop.f32.mrb[106].mxu0  ;;  %v15974_v0 = vsel %vm1355_vm0, %v6502_v8, %v6503_v23 }
 0x4c0   : > { %v6504_v55 = vrot.slane %v6450_v9, 1  ;;  %v5727_v59 = vmax.f32 %v5725_v53, %v5726_v40  ;;  %v12138_v60 = vadd.f32 %v12137_v63, %v12136_v4  ;;  %v12139_v6 = vpop.f32.mrb[106].mxu1  ;;  %v12076_v43 = vpop.f32.mrb[107].mxu0 }
 0x4c1   : > { %v5721_v37 = vrot.slane %v5720_v52, 1  ;;  %v6358_v54 = vadd.f32 %v12074_v36, %v15805_v51  ;;  %v12077_v24 = vadd.f32 %v12076_v43, %v12075_v27  ;;  %v12140_v46 = vpop.f32.mrb[107].mxu1 }
 0x4c2   : > { %v15979_v30 = vsel %vm1355_vm0, %v6503_v23, %v6504_v55  ;;  %v5728_v12 = vrot.slane %v5727_v59, 1  ;;  %v12141_v49 = vadd.f32 %v12140_v46, %v12139_v6 }
 0x4c3   : > { %7666 = vmatmul.mubr.bf16.gmra.mrb[212].mxu0 %v17223_v48  ;;  %v5722_v3 = vmax.f32 %v5720_v52, %v5721_v37  ;;  %v6455_v8 = vadd.f32 %v12138_v60, %v6358_v54  ;;  %v6361_v20 = vadd.f32 %v12077_v24, %v15809_v29  ;;  %v17226_v24 = vld [vmem:[#allocation50_spill] sm:$0xff] }
 0x4c4   : > { %7763 = vmatmul.mubr.bf16.gmra.mrb[212].mxu1 %v14655_v25  ;;  %7673 = vmatprep.mubr.bf16.mxu0 %v17224_v17  ;;  %v5729_v53 = vmax.f32 %v5727_v59, %v5728_v12 }
 0x4c5   : > { %7770 = vmatprep.mubr.bf16.mxu1 %v17132_v44  ;;  %v9431_v51 = vsel %vm9413_vm8, %v5722_v3, %v9430_v39  ;;  %v6505_v28 = vrot.slane %v6455_v8, 1  ;;  %v6458_v23 = vadd.f32 %v12141_v49, %v6361_v20  ;;  %v12078_v9 = vpop.f32.mrb[108].mxu0 }
 0x4c6   : > { %v15988_v14 = vsel %vm9415_vm9, %v5729_v53, %v9431_v51  ;;  %v12142_v40 = vpop.f32.mrb[108].mxu1  ;;  %v12079_v4 = vpop.f32.mrb[109].mxu0 }
 0x4c7   : > { %17225 = vst [vmem:[#allocation71_spill] sm:$0xff] %v15988_v14  ;;  %v6506_v19 = vrot.slane %v6458_v23, 1  ;;  %v12080_v52 = vadd.f32 %v12079_v4, %v12078_v9  ;;  %v12143_v29 = vpop.f32.mrb[109].mxu1  ;;  %v12081_v36 = vpop.f32.mrb[110].mxu0  ;;  %v15992_v63 = vsel %vm1355_vm0, %v6504_v55, %v6505_v28  ;;  %v17227_v55 = vld [vmem:[#allocation52_spill] sm:$0xff] }
 0x4c8   : > { %v12144_v27 = vadd.f32 %v12143_v29, %v12142_v40  ;;  %v12145_v59 = vpop.f32.mrb[110].mxu1  ;;  %v12082_v60 = vpop.f32.mrb[111].mxu0 }
 0x4c9   : > { %v6366_v39 = vadd.f32 %v12080_v52, %v15826_v50  ;;  %v12083_v6 = vadd.f32 %v12082_v60, %v12081_v36  ;;  %v12146_v43 = vpop.f32.mrb[111].mxu1  ;;  %v15997_v37 = vsel %vm1355_vm0, %v6505_v28, %v6506_v19  ;;  %v17228_v60 = vld [vmem:[#allocation54_spill] sm:$0xff] }
 0x4ca   : > { %v12147_v54 = vadd.f32 %v12146_v43, %v12145_v59 }
 0x4cb   : > { %7674 = vmatmul.mubr.bf16.gmra.mrb[216].mxu0 %v17226_v24  ;;  %v6463_v46 = vadd.f32 %v12144_v27, %v6366_v39  ;;  %v6369_v12 = vadd.f32 %v12083_v6, %v15829_v26 }
 0x4cc   : > { %7771 = vmatmul.mubr.bf16.gmra.mrb[216].mxu1 %v17133_v22  ;;  %7681 = vmatprep.mubr.bf16.mxu0 %v17227_v55 }
 0x4cd   : > { %7778 = vmatprep.mubr.bf16.mxu1 %v17134_v34  ;;  %v6507_v49 = vrot.slane %v6463_v46, 1  ;;  %v6466_v50 = vadd.f32 %v12147_v54, %v6369_v12  ;;  %v12084_v3 = vpop.f32.mrb[112].mxu0 }
 0x4ce   : > { %v12148_v8 = vpop.f32.mrb[112].mxu1  ;;  %v12085_v20 = vpop.f32.mrb[113].mxu0 }
 0x4cf   : > { %v6508_v53 = vrot.slane %v6466_v50, 1  ;;  %v12086_v51 = vadd.f32 %v12085_v20, %v12084_v3  ;;  %v12149_v28 = vpop.f32.mrb[113].mxu1  ;;  %v12087_v23 = vpop.f32.mrb[114].mxu0  ;;  %v16006_v9 = vsel %vm1355_vm0, %v6506_v19, %v6507_v49  ;;  %v17229_v19 = vld [vmem:[#allocation23_spill] sm:$0xff] }
 0x4d0   : > { %v12150_v26 = vadd.f32 %v12149_v28, %v12148_v8  ;;  %v12151_v40 = vpop.f32.mrb[114].mxu1  ;;  %v12088_v4 = vpop.f32.mrb[115].mxu0  ;;  %v13659_v20 = vld [vmem:[#allocation5 + $0xc28] ss:$48 sps:$4 sm:$0xff]  }
 0x4d1   : > { %v6374_v52 = vadd.f32 %v12086_v51, %v15846_v16  ;;  %v12089_v29 = vadd.f32 %v12088_v4, %v12087_v23  ;;  %v12152_v36 = vpop.f32.mrb[115].mxu1  ;;  %v16011_v27 = vsel %vm1355_vm0, %v6507_v49, %v6508_v53 }
 0x4d2   : > { %v12153_v59 = vadd.f32 %v12152_v36, %v12151_v40 }
 0x4d3   : > { %7682 = vmatmul.mubr.bf16.gmra.mrb[220].mxu0 %v17228_v60  ;;  %v6471_v39 = vadd.f32 %v12150_v26, %v6374_v52  ;;  %v6377_v6 = vadd.f32 %v12089_v29, %v15849_v41  ;;  %v13661_v26 = vld [vmem:[#allocation5 + $0x2c] ss:$48 sps:$4 sm:$0xff]   ;;  %v13662_v29 = vld [vmem:[#allocation5 + $0xf88] ss:$48 sps:$4 sm:$0xff]  }
 0x4d4   : > { %7779 = vmatmul.mubr.bf16.gmra.mrb[220].mxu1 %v17135_v47  ;;  %8251 = vmatprep.mubr.bf16.mxu0 %v17229_v19 }
 0x4d5   : > { %8348 = vmatprep.mubr.bf16.mxu1 %v17197_v2  ;;  %v6509_v43 = vrot.slane %v6471_v39, 1  ;;  %v6474_v16 = vadd.f32 %v12153_v59, %v6377_v6  ;;  %v12090_v54 = vpop.f32.mrb[116].mxu0  ;;  %v17230_v39 = vld [vmem:[#allocation25_spill] sm:$0xff]  ;;  %v13664_v6 = vld [vmem:[#allocation5 + $0x38c] ss:$48 sps:$4 sm:$0xff]  }
 0x4d6   : > { %v12154_v46 = vpop.f32.mrb[116].mxu1  ;;  %v12091_v12 = vpop.f32.mrb[117].mxu0 }
 0x4d7   : > { %v6510_v50 = vrot.slane %v6474_v16, 1  ;;  %v12092_v49 = vadd.f32 %v12091_v12, %v12090_v54  ;;  %v12155_v3 = vpop.f32.mrb[117].mxu1  ;;  %v12093_v8 = vpop.f32.mrb[118].mxu0  ;;  %v16020_v51 = vsel %vm1355_vm0, %v6508_v53, %v6509_v43  ;;  %v17231_v54 = vld [vmem:[#allocation26_spill] sm:$0xff] }
 0x4d8   : > { %v12156_v41 = vadd.f32 %v12155_v3, %v12154_v46  ;;  %v12157_v28 = vpop.f32.mrb[118].mxu1  ;;  %v12094_v23 = vpop.f32.mrb[119].mxu0  ;;  %v13663_v46 = vld [vmem:[#allocation5 + $0xc88] ss:$48 sps:$4 sm:$0xff]   ;;  %v13665_v12 = vld [vmem:[#allocation5 + $0x8c] ss:$48 sps:$4 sm:$0xff]  }
 0x4d9   : > { %v6382_v40 = vadd.f32 %v12092_v49, %v15866_v1  ;;  %v12095_v4 = vadd.f32 %v12094_v23, %v12093_v8  ;;  %v12158_v52 = vpop.f32.mrb[119].mxu1  ;;  %v16025_v36 = vsel %vm1355_vm0, %v6509_v43, %v6510_v50  ;;  %v17232_v1 = vld [vmem:[#allocation27_spill] sm:$0xff]  ;;  %v17233_v23 = vld [vmem:[#allocation28_spill] sm:$0xff] }
 0x4da   : > { %v12159_v59 = vadd.f32 %v12158_v52, %v12157_v28  ;;  %v13666_v49 = vld [vmem:[#allocation5 + $0xfe8] ss:$48 sps:$4 sm:$0xff]   ;;  %v13668_v28 = vld [vmem:[#allocation5 + $0x3ec] ss:$48 sps:$4 sm:$0xff]  }
 0x4db   : > { %8252 = vmatmul.mubr.bf16.vlgmr.msra.gmra.mrb[224].mxu0 %v17230_v39  ;;  %v6479_v16 = vadd.f32 %v12156_v41, %v6382_v40  ;;  %v6385_v53 = vadd.f32 %v12095_v4, %v15869_v45 }
 0x4dc   : > { %8349 = vmatmul.mubr.bf16.vlgmr.msra.gmra.mrb[224].mxu1 %v17231_v54  ;;  %12685 = vmatpush3.bf16.msra.mxu0 %v13659_v20 }
 0x4dd   : > { %12749 = vmatpush3.bf16.msra.mxu1 %v13661_v26  ;;  %8259 = vmatprep.mubr.bf16.mxu0 %v17232_v1  ;;  %v6511_v3 = vrot.slane %v6479_v16, 1  ;;  %v6482_v8 = vadd.f32 %v12159_v59, %v6385_v53  ;;  %v12096_v43 = vpop.f32.mrb[120].mxu0  ;;  %v13667_v53 = vld [vmem:[#allocation5 + $0xce8] ss:$48 sps:$4 sm:$0xff]  }
 0x4de   : > { %8356 = vmatprep.mubr.bf16.mxu1 %v17233_v23  ;;  %12686 = vmatprep.subr.bf16.mxu0 %v13662_v29  ;;  %v12160_v52 = vpop.f32.mrb[120].mxu1  ;;  %v12097_v41 = vpop.f32.mrb[121].mxu0 }
 0x4df   : > { %12750 = vmatprep.subr.bf16.mxu1 %v13664_v6  ;;  %v6512_v45 = vrot.slane %v6482_v8, 1  ;;  %v12098_v40 = vadd.f32 %v12097_v41, %v12096_v43  ;;  %v12161_v4 = vpop.f32.mrb[121].mxu1  ;;  %v12099_v20 = vpop.f32.mrb[122].mxu0  ;;  %v16034_v26 = vsel %vm1355_vm0, %v6510_v50, %v6511_v3  ;;  %v13669_v6 = vld [vmem:[#allocation5 + $0xec] ss:$48 sps:$4 sm:$0xff]   ;;  %v17234_v50 = vld [vmem:[#allocation29_spill] sm:$0xff] }
 0x4e0   : > { %12687 = vmatpush3.bf16.msra.mxu0 %v13663_v46  ;;  %v12162_v35 = vadd.f32 %v12161_v4, %v12160_v52  ;;  %v12163_v16 = vpop.f32.mrb[122].mxu1  ;;  %v12100_v59 = vpop.f32.mrb[123].mxu0  ;;  %v13670_v8 = vld [vmem:[#allocation5 + $0x1048] ss:$48 sps:$4 sm:$0xff]   ;;  %v13672_v52 = vld [vmem:[#allocation5 + $0x44c] ss:$48 sps:$4 sm:$0xff]  }
 0x4e1   : > { %12751 = vmatpush3.bf16.msra.mxu1 %v13665_v12  ;;  %12688 = vmatprep.subr.bf16.mxu0 %v13666_v49  ;;  %v6390_v29 = vadd.f32 %v12098_v40, %v15890_v56  ;;  %v12101_v42 = vadd.f32 %v12100_v59, %v12099_v20  ;;  %v12164_v14 = vpop.f32.mrb[123].mxu1  ;;  %v16039_v46 = vsel %vm1355_vm0, %v6511_v3, %v6512_v45  ;;  %v17235_v49 = vld [vmem:[#allocation30_spill] sm:$0xff]  ;;  %v17236_v4 = vld [vmem:[#allocation31_spill] sm:$0xff]  ;;  %v17237_v56 = vld [vmem:[#allocation32_spill] sm:$0xff] }
 0x4e2   : > { %12752 = vmatprep.subr.bf16.mxu1 %v13668_v28  ;;  %v12165_v43 = vadd.f32 %v12164_v14, %v12163_v16  ;;  %v13671_v28 = vld [vmem:[#allocation5 + $0xd48] ss:$48 sps:$4 sm:$0xff]   ;;  %v13673_v14 = vld [vmem:[#allocation5 + $0x14c] ss:$48 sps:$4 sm:$0xff]  }
 0x4e3   : > { %8260 = vmatmul.mubr.bf16.gmra.mrb[228].mxu0 %v17234_v50  ;;  %v6487_v41 = vadd.f32 %v12162_v35, %v6390_v29  ;;  %v6393_v12 = vadd.f32 %v12101_v42, %v15893_v57  ;;  %v13674_v3 = vld [vmem:[#allocation5 + $0x10a8] ss:$48 sps:$4 sm:$0xff]   ;;  %v13676_v35 = vld [vmem:[#allocation5 + $0x4ac] ss:$48 sps:$4 sm:$0xff]  }
 0x4e4   : > { %8357 = vmatmul.mubr.bf16.gmra.mrb[228].mxu1 %v17235_v49  ;;  %8267 = vmatprep.mubr.bf16.mxu0 %v17236_v4 }
 0x4e5   : > { %8364 = vmatprep.mubr.bf16.mxu1 %v17237_v56  ;;  %12689 = vmatpush3.bf16.msra.mxu0 %v13667_v53  ;;  %v6513_v40 = vrot.slane %v6487_v41, 1  ;;  %v6490_v20 = vadd.f32 %v12165_v43, %v6393_v12  ;;  %v12102_v59 = vpop.f32.mrb[124].mxu0 }
 0x4e6   : > { %12753 = vmatpush3.bf16.msra.mxu1 %v13669_v6  ;;  %12690 = vmatprep.subr.bf16.mxu0 %v13670_v8  ;;  %v12166_v16 = vpop.f32.mrb[124].mxu1  ;;  %v12103_v23 = vpop.f32.mrb[125].mxu0  ;;  %v13675_v6 = vld [vmem:[#allocation5 + $0xda8] ss:$48 sps:$4 sm:$0xff]  }
 0x4e7   : > { %12754 = vmatprep.subr.bf16.mxu1 %v13672_v52  ;;  %v6514_v42 = vrot.slane %v6490_v20, 1  ;;  %v12104_v57 = vadd.f32 %v12103_v23, %v12102_v59  ;;  %v12167_v29 = vpop.f32.mrb[125].mxu1  ;;  %v12105_v49 = vpop.f32.mrb[126].mxu0  ;;  %v16048_v56 = vsel %vm1355_vm0, %v6512_v45, %v6513_v40  ;;  %v13677_v52 = vld [vmem:[#allocation5 + $0x1ac] ss:$48 sps:$4 sm:$0xff]   ;;  %v17238_v45 = vld [vmem:[#allocation33_spill] sm:$0xff] }
 0x4e8   : > { %v12168_v53 = vadd.f32 %v12167_v29, %v12166_v16  ;;  %v12169_v41 = vpop.f32.mrb[126].mxu1  ;;  %v12106_v43 = vpop.f32.mrb[127].mxu0  ;;  %v13678_v20 = vld [vmem:[#allocation5 + $0x1108] ss:$48 sps:$4 sm:$0xff]   ;;  %v13680_v16 = vld [vmem:[#allocation5 + $0x50c] ss:$48 sps:$4 sm:$0xff]  }
 0x4e9   : > { %12691 = vmatpush3.bf16.msra.mxu0 %v13671_v28  ;;  %v6398_v8 = vadd.f32 %v12104_v57, %v15914_v11  ;;  %v12107_v12 = vadd.f32 %v12106_v43, %v12105_v49  ;;  %v12170_v54 = vpop.f32.mrb[127].mxu1  ;;  %v16053_v23 = vsel %vm1355_vm0, %v6513_v40, %v6514_v42  ;;  %v17239_v11 = vld [vmem:[#allocation35_spill] sm:$0xff] }
 0x4ea   : > { %12755 = vmatpush3.bf16.msra.mxu1 %v13673_v14  ;;  %12692 = vmatprep.subr.bf16.mxu0 %v13674_v3  ;;  %v12171_v59 = vadd.f32 %v12170_v54, %v12169_v41  ;;  %v13679_v49 = vld [vmem:[#allocation5 + $0xe08] ss:$48 sps:$4 sm:$0xff]   ;;  %v13681_v54 = vld [vmem:[#allocation5 + $0x20c] ss:$48 sps:$4 sm:$0xff]  }
 0x4eb   : > { %8268 = vmatmul.mubr.bf16.gmra.mrb[232].mxu0 %v17238_v45  ;;  %12756 = vmatprep.subr.bf16.mxu1 %v13676_v35  ;;  %v6495_v29 = vadd.f32 %v12168_v53, %v6398_v8  ;;  %v6401_v28 = vadd.f32 %v12107_v12, %v15917_v61  ;;  %v13682_v57 = vld [vmem:[#allocation5 + $0x1168] ss:$48 sps:$4 sm:$0xff]   ;;  %v13684_v53 = vld [vmem:[#allocation5 + $0x56c] ss:$48 sps:$4 sm:$0xff]  }
 0x4ec   : > { %8365 = vmatmul.mubr.bf16.gmra.mrb[232].mxu1 %v17213_v38  ;;  %8275 = vmatprep.mubr.bf16.mxu0 %v17239_v11 }
 0x4ed   : > { %8372 = vmatprep.mubr.bf16.mxu1 %v17214_v62  ;;  %12693 = vmatpush3.bf16.msra.mxu0 %v13675_v6  ;;  %v6515_v14 = vrot.slane %v6495_v29, 1  ;;  %v6498_v3 = vadd.f32 %v12171_v59, %v6401_v28  ;;  %v12188_v40 = vpop.f32.mrb[128].mxu0 }
 0x4ee   : > { %12757 = vmatpush3.bf16.msra.mxu1 %v13677_v52  ;;  %12694 = vmatprep.subr.bf16.mxu0 %v13678_v20  ;;  %v12252_v35 = vpop.f32.mrb[128].mxu1  ;;  %v12189_v41 = vpop.f32.mrb[129].mxu0  ;;  %v13683_v52 = vld [vmem:[#allocation5 + $0xe68] ss:$48 sps:$4 sm:$0xff]  }
 0x4ef   : > { %12758 = vmatprep.subr.bf16.mxu1 %v13680_v16  ;;  %v6516_v61 = vrot.slane %v6498_v3, 1  ;;  %v12190_v43 = vadd.f32 %v12189_v41, %v12188_v40  ;;  %v12253_v8 = vpop.f32.mrb[129].mxu1  ;;  %v12191_v12 = vpop.f32.mrb[130].mxu0  ;;  %v16062_v62 = vsel %vm1355_vm0, %v6514_v42, %v6515_v14  ;;  %v13685_v16 = vld [vmem:[#allocation5 + $0x26c] ss:$48 sps:$4 sm:$0xff]   ;;  %v17240_v42 = vld [vmem:[#allocation37_spill] sm:$0xff] }
 0x4f0   : > { %v12254_v6 = vadd.f32 %v12253_v8, %v12252_v35  ;;  %v12255_v29 = vpop.f32.mrb[130].mxu1  ;;  %v12192_v59 = vpop.f32.mrb[131].mxu0  ;;  %v13686_v3 = vld [vmem:[#allocation5 + $0x11c8] ss:$48 sps:$4 sm:$0xff]   ;;  %v13688_v35 = vld [vmem:[#allocation5 + $0x5cc] ss:$48 sps:$4 sm:$0xff]  }
 0x4f1   : > { %12695 = vmatpush3.bf16.msra.mxu0 %v13679_v49  ;;  %v6856_v20 = vadd.f32 %v12190_v43, %v15964_v58  ;;  %v12193_v28 = vadd.f32 %v12192_v59, %v12191_v12  ;;  %v12256_v38 = vpop.f32.mrb[131].mxu1  ;;  %v16067_v40 = vsel %vm1355_vm0, %v6515_v14, %v6516_v61  ;;  %v17241_v49 = vrot.slane %v15946_v15, 1  ;;  %v13689_v15 = vld [vmem:[#allocation5 + $0x2cc] ss:$48 sps:$4 sm:$0xff]  }
 0x4f2   : > { %12759 = vmatpush3.bf16.msra.mxu1 %v13681_v54  ;;  %12696 = vmatprep.subr.bf16.mxu0 %v13682_v57  ;;  %v12257_v41 = vadd.f32 %v12256_v38, %v12255_v29  ;;  %v17242_v57 = vld [vmem:[#allocation39_spill] sm:$0xff] }
 0x4f3   : > { %8276 = vmatmul.mubr.bf16.gmra.mrb[236].mxu0 %v17240_v42  ;;  %12760 = vmatprep.subr.bf16.mxu1 %v13684_v53  ;;  %v16074_v58 = vsel %vm1355_vm0, %v6516_v61, %v17241_v49  ;;  %v16076_v43 = vadd.f32 %v12254_v6, %v6856_v20  ;;  %v6859_v54 = vadd.f32 %v12193_v28, %v15974_v0  ;;  %v13687_v38 = vld [vmem:[#allocation5 + $0xec8] ss:$48 sps:$4 sm:$0xff]   ;;  %v13690_v61 = vld [vmem:[#allocation5 + $0x92c] ss:$48 sps:$4 sm:$0xff]  }
 0x4f4   : > { %8373 = vmatmul.mubr.bf16.gmra.mrb[236].mxu1 %v17219_v10  ;;  %8283 = vmatprep.mubr.bf16.mxu0 %v17242_v57  ;;  %v13692_v6 = vld [vmem:[#allocation5 + $0xf2c] ss:$48 sps:$4 sm:$0xff]  }
 0x4f5   : > { %8380 = vmatprep.mubr.bf16.mxu1 %v17220_v21  ;;  %12697 = vmatpush3.bf16.msra.mxu0 %v13683_v52  ;;  %v16082_v14 = vadd.f32 %v12257_v41, %v6859_v54  ;;  %v12194_v53 = vpop.f32.mrb[132].mxu0  ;;  %v17253_v10 = vld [vmem:[#allocation58_spill] sm:$0xff] }
 0x4f6   : > { %12761 = vmatpush3.bf16.msra.mxu1 %v13685_v16  ;;  %12698 = vmatprep.subr.bf16.mxu0 %v13686_v3  ;;  %v12258_v8 = vpop.f32.mrb[132].mxu1  ;;  %v12195_v12 = vpop.f32.mrb[133].mxu0  ;;  %v17243_v3 = vld [vmem:[#allocation41_spill] sm:$0xff] }
 0x4f7   : > { %12762 = vmatprep.subr.bf16.mxu1 %v13688_v35  ;;  %v12196_v0 = vadd.f32 %v12195_v12, %v12194_v53  ;;  %v12259_v29 = vpop.f32.mrb[133].mxu1  ;;  %v12197_v59 = vpop.f32.mrb[134].mxu0  ;;  %v17244_v53 = vld [vmem:[#allocation43_spill] sm:$0xff] }
 0x4f8   : > { %v12260_v20 = vadd.f32 %v12259_v29, %v12258_v8  ;;  %v12261_v28 = vpop.f32.mrb[134].mxu1  ;;  %v12198_v49 = vpop.f32.mrb[135].mxu0 }
 0x4f9   : > { %12699 = vmatpush3.bf16.msra.mxu0 %v13687_v38  ;;  %v6864_v52 = vadd.f32 %v12196_v0, %v15979_v30  ;;  %v12199_v41 = vadd.f32 %v12198_v49, %v12197_v59  ;;  %v12262_v54 = vpop.f32.mrb[135].mxu1 }
 0x4fa   : > { %12763 = vmatpush3.bf16.msra.mxu1 %v13689_v15  ;;  %12812 = vmatprep.subr.bf16.mxu0 %v13690_v61  ;;  %v12263_v16 = vadd.f32 %v12262_v54, %v12261_v28 }
 0x4fb   : > { %8284 = vmatmul.mubr.bf16.gmra.mrb[240].mxu0 %v17243_v3  ;;  %12876 = vmatprep.subr.bf16.mxu1 %v13692_v6  ;;  %v16086_v18 = vadd.f32 %v12260_v20, %v6864_v52  ;;  %v6867_v35 = vadd.f32 %v12199_v41, %v15992_v63  ;;  %v17245_v52 = vld [vmem:[#allocation45_spill] sm:$0xff] }
 0x4fc   : > { %8381 = vmatmul.mubr.bf16.gmra.mrb[240].mxu1 %v17221_v7  ;;  %8291 = vmatprep.mubr.bf16.mxu0 %v17244_v53 }
 0x4fd   : > { %8388 = vmatprep.mubr.bf16.mxu1 %v17222_v33  ;;  %v16092_v38 = vadd.f32 %v12263_v16, %v6867_v35  ;;  %v12200_v30 = vpop.f32.mrb[136].mxu0  ;;  %v17246_v16 = vld [vmem:[#allocation47_spill] sm:$0xff] }
 0x4fe   : > { %v12264_v8 = vpop.f32.mrb[136].mxu1  ;;  %v12201_v15 = vpop.f32.mrb[137].mxu0 }
 0x4ff   : > { %v12202_v61 = vadd.f32 %v12201_v15, %v12200_v30  ;;  %v12265_v12 = vpop.f32.mrb[137].mxu1  ;;  %v12203_v0 = vpop.f32.mrb[138].mxu0 }
 0x500   : > { %v12266_v29 = vadd.f32 %v12265_v12, %v12264_v8  ;;  %v12267_v6 = vpop.f32.mrb[138].mxu1  ;;  %v12204_v59 = vpop.f32.mrb[139].mxu0 }
 0x501   : > { %v6872_v20 = vadd.f32 %v12202_v61, %v15997_v37  ;;  %v12205_v63 = vadd.f32 %v12204_v59, %v12203_v0  ;;  %v12268_v28 = vpop.f32.mrb[139].mxu1 }
 0x502   : > { %v12269_v49 = vadd.f32 %v12268_v28, %v12267_v6  ;;  %v17247_v28 = vld [vmem:[#allocation49_spill] sm:$0xff] }
 0x503   : > { %8292 = vmatmul.mubr.bf16.gmra.mrb[244].mxu0 %v17245_v52  ;;  %v16096_v41 = vadd.f32 %v12266_v29, %v6872_v20  ;;  %v6875_v54 = vadd.f32 %v12205_v63, %v16006_v9 }
 0x504   : > { %8389 = vmatmul.mubr.bf16.gmra.mrb[244].mxu1 %v17223_v48  ;;  %8299 = vmatprep.mubr.bf16.mxu0 %v17246_v16 }
 0x505   : > { %8396 = vmatprep.mubr.bf16.mxu1 %v17224_v17  ;;  %v16102_v35 = vadd.f32 %v12269_v49, %v6875_v54  ;;  %v12206_v30 = vpop.f32.mrb[140].mxu0  ;;  %v17248_v54 = vld [vmem:[#allocation51_spill] sm:$0xff] }
 0x506   : > { %v12270_v8 = vpop.f32.mrb[140].mxu1  ;;  %v12207_v37 = vpop.f32.mrb[141].mxu0 }
 0x507   : > { %v12208_v15 = vadd.f32 %v12207_v37, %v12206_v30  ;;  %v12271_v61 = vpop.f32.mrb[141].mxu1  ;;  %v12209_v12 = vpop.f32.mrb[142].mxu0 }
 0x508   : > { %v12272_v0 = vadd.f32 %v12271_v61, %v12270_v8  ;;  %v12273_v6 = vpop.f32.mrb[142].mxu1  ;;  %v12210_v29 = vpop.f32.mrb[143].mxu0 }
 0x509   : > { %v6880_v59 = vadd.f32 %v12208_v15, %v16011_v27  ;;  %v12211_v9 = vadd.f32 %v12210_v29, %v12209_v12  ;;  %v12274_v20 = vpop.f32.mrb[143].mxu1 }
 0x50a   : > { %v12275_v63 = vadd.f32 %v12274_v20, %v12273_v6 }
 0x50b   : > { %8300 = vmatmul.mubr.bf16.gmra.mrb[248].mxu0 %v17247_v28  ;;  %v16106_v48 = vadd.f32 %v12272_v0, %v6880_v59  ;;  %v6883_v49 = vadd.f32 %v12211_v9, %v16020_v51 }
 0x50c   : > { %8397 = vmatmul.mubr.bf16.gmra.mrb[248].mxu1 %v17226_v24  ;;  %8307 = vmatprep.mubr.bf16.mxu0 %v17248_v54  ;;  %v17249_v24 = vld [vmem:[#allocation53_spill] sm:$0xff] }
 0x50d   : > { %8404 = vmatprep.mubr.bf16.mxu1 %v17227_v55  ;;  %v16112_v30 = vadd.f32 %v12275_v63, %v6883_v49  ;;  %v12212_v8 = vpop.f32.mrb[144].mxu0  ;;  %v17250_v49 = vld [vmem:[#allocation55_spill] sm:$0xff]  ;;  %v13694_v55 = vld [vmem:[#allocation5 + $0x98c] ss:$48 sps:$4 sm:$0xff]  }
 0x50e   : > { %v12276_v37 = vpop.f32.mrb[144].mxu1  ;;  %v12213_v27 = vpop.f32.mrb[145].mxu0 }
 0x50f   : > { %v12214_v15 = vadd.f32 %v12213_v27, %v12212_v8  ;;  %v12277_v61 = vpop.f32.mrb[145].mxu1  ;;  %v12215_v12 = vpop.f32.mrb[146].mxu0 }
 0x510   : > { %v12278_v6 = vadd.f32 %v12277_v61, %v12276_v37  ;;  %v12279_v29 = vpop.f32.mrb[146].mxu1  ;;  %v12216_v0 = vpop.f32.mrb[147].mxu0 }
 0x511   : > { %v6888_v59 = vadd.f32 %v12214_v15, %v16025_v36  ;;  %v12217_v51 = vadd.f32 %v12216_v0, %v12215_v12  ;;  %v12280_v9 = vpop.f32.mrb[147].mxu1 }
 0x512   : > { %v12281_v20 = vadd.f32 %v12280_v9, %v12279_v29  ;;  %v13691_v29 = vld [vmem:[#allocation5 + $0x62c] ss:$48 sps:$4 sm:$0xff]  }
 0x513   : > { %8308 = vmatmul.mubr.bf16.gmra.mrb[252].mxu0 %v17249_v24  ;;  %v16116_v17 = vadd.f32 %v12278_v6, %v6888_v59  ;;  %v6891_v63 = vadd.f32 %v12217_v51, %v16034_v26  ;;  %v13693_v9 = vld [vmem:[#allocation5 + $0xc2c] ss:$48 sps:$4 sm:$0xff]  }
 0x514   : > { %8405 = vmatmul.mubr.bf16.gmra.mrb[252].mxu1 %v17228_v60  ;;  %8445 = vmatprep.mubr.bf16.mxu0 %v17250_v49 }
 0x515   : > { %8974 = vmatprep.mubr.bf16.mxu1 %v17229_v19  ;;  %v16122_v8 = vadd.f32 %v12281_v20, %v6891_v63  ;;  %v12218_v37 = vpop.f32.mrb[148].mxu0  ;;  %v17251_v19 = vld [vmem:[#allocation56_spill] sm:$0xff] }
 0x516   : > { %v12282_v27 = vpop.f32.mrb[148].mxu1  ;;  %v12219_v36 = vpop.f32.mrb[149].mxu0  ;;  %v13696_v20 = vld [vmem:[#allocation5 + $0xf8c] ss:$48 sps:$4 sm:$0xff]  }
 0x517   : > { %v12220_v15 = vadd.f32 %v12219_v36, %v12218_v37  ;;  %v12283_v61 = vpop.f32.mrb[149].mxu1  ;;  %v12221_v12 = vpop.f32.mrb[150].mxu0  ;;  %v17252_v36 = vld [vmem:[#allocation57_spill] sm:$0xff] }
 0x518   : > { %v12284_v0 = vadd.f32 %v12283_v61, %v12282_v27  ;;  %v12285_v6 = vpop.f32.mrb[150].mxu1  ;;  %v12222_v59 = vpop.f32.mrb[151].mxu0  ;;  %v13695_v27 = vld [vmem:[#allocation5 + $0x68c] ss:$48 sps:$4 sm:$0xff]  }
 0x519   : > { %v6896_v26 = vadd.f32 %v12220_v15, %v16039_v46  ;;  %v12223_v51 = vadd.f32 %v12222_v59, %v12221_v12  ;;  %v12286_v60 = vpop.f32.mrb[151].mxu1  ;;  %v13697_v61 = vld [vmem:[#allocation5 + $0xc8c] ss:$48 sps:$4 sm:$0xff]  }
 0x51a   : > { %v12287_v33 = vadd.f32 %v12286_v60, %v12285_v6  ;;  %v13698_v46 = vld [vmem:[#allocation5 + $0x9ec] ss:$48 sps:$4 sm:$0xff]  }
 0x51b   : > { %8446 = vmatmul.mubr.bf16.vlgmr.msra.gmra.mrb[0].mxu0 %v17251_v19  ;;  %v16126_v63 = vadd.f32 %v12284_v0, %v6896_v26  ;;  %v6899_v37 = vadd.f32 %v12223_v51, %v16048_v56  ;;  %v13700_v60 = vld [vmem:[#allocation5 + $0xfec] ss:$48 sps:$4 sm:$0xff]  }
 0x51c   : > { %8975 = vmatmul.mubr.bf16.vlgmr.msra.gmra.mrb[0].mxu1 %v17230_v39  ;;  %12813 = vmatpush3.bf16.msra.mxu0 %v13691_v29  ;;  %v13699_v51 = vld [vmem:[#allocation5 + $0x6ec] ss:$48 sps:$4 sm:$0xff]  }
 0x51d   : > { %12877 = vmatpush3.bf16.msra.mxu1 %v13693_v9  ;;  %8453 = vmatprep.mubr.bf16.mxu0 %v17252_v36  ;;  %v16131_v15 = vadd.f32 %v12287_v33, %v6899_v37  ;;  %v12224_v12 = vpop.f32.mrb[152].mxu0 }
 0x51e   : > { %8982 = vmatprep.mubr.bf16.mxu1 %v17232_v1  ;;  %12814 = vmatprep.subr.bf16.mxu0 %v13694_v55  ;;  %v12288_v0 = vpop.f32.mrb[152].mxu1  ;;  %v12225_v6 = vpop.f32.mrb[153].mxu0  ;;  %v13701_v55 = vld [vmem:[#allocation5 + $0xcec] ss:$48 sps:$4 sm:$0xff]  }
 0x51f   : > { %12878 = vmatprep.subr.bf16.mxu1 %v13696_v20  ;;  %v12226_v56 = vadd.f32 %v12225_v6, %v12224_v12  ;;  %v12289_v59 = vpop.f32.mrb[153].mxu1  ;;  %v12227_v39 = vpop.f32.mrb[154].mxu0  ;;  %v13702_v1 = vld [vmem:[#allocation5 + $0xa4c] ss:$48 sps:$4 sm:$0xff]  }
 0x520   : > { %12815 = vmatpush3.bf16.msra.mxu0 %v13695_v27  ;;  %v12290_v29 = vadd.f32 %v12289_v59, %v12288_v0  ;;  %v12291_v9 = vpop.f32.mrb[154].mxu1  ;;  %v12228_v26 = vpop.f32.mrb[155].mxu0  ;;  %v13704_v20 = vld [vmem:[#allocation5 + $0x104c] ss:$48 sps:$4 sm:$0xff]  }
 0x521   : > { %12879 = vmatpush3.bf16.msra.mxu1 %v13697_v61  ;;  %12816 = vmatprep.subr.bf16.mxu0 %v13698_v46  ;;  %v6904_v33 = vadd.f32 %v12226_v56, %v16053_v23  ;;  %v12229_v37 = vadd.f32 %v12228_v26, %v12227_v39  ;;  %v12292_v7 = vpop.f32.mrb[155].mxu1  ;;  %v17254_v61 = vld [vmem:[#allocation59_spill] sm:$0xff]  ;;  %v13703_v23 = vld [vmem:[#allocation5 + $0x74c] ss:$48 sps:$4 sm:$0xff]  }
 0x522   : > { %12880 = vmatprep.subr.bf16.mxu1 %v13700_v60  ;;  %v12293_v21 = vadd.f32 %v12292_v7, %v12291_v9  ;;  %v13705_v7 = vld [vmem:[#allocation5 + $0xd4c] ss:$48 sps:$4 sm:$0xff]  }
 0x523   : > { %8454 = vmatmul.mubr.bf16.gmra.mrb[4].mxu0 %v17253_v10  ;;  %v16136_v12 = vadd.f32 %v12290_v29, %v6904_v33  ;;  %v6907_v27 = vadd.f32 %v12229_v37, %v16062_v62  ;;  %v13706_v0 = vld [vmem:[#allocation5 + $0xaac] ss:$48 sps:$4 sm:$0xff]  }
 0x524   : > { %8983 = vmatmul.mubr.bf16.gmra.mrb[4].mxu1 %v17234_v50  ;;  %8461 = vmatprep.mubr.bf16.mxu0 %v17254_v61  ;;  %v13708_v59 = vld [vmem:[#allocation5 + $0x10ac] ss:$48 sps:$4 sm:$0xff]  }
 0x525   : > { %8990 = vmatprep.mubr.bf16.mxu1 %v17236_v4  ;;  %12817 = vmatpush3.bf16.msra.mxu0 %v13699_v51  ;;  %v16142_v46 = vadd.f32 %v12293_v21, %v6907_v27  ;;  %v12230_v60 = vpop.f32.mrb[156].mxu0  ;;  %v13707_v4 = vld [vmem:[#allocation5 + $0x7ac] ss:$48 sps:$4 sm:$0xff]  }
 0x526   : > { %12881 = vmatpush3.bf16.msra.mxu1 %v13701_v55  ;;  %12818 = vmatprep.subr.bf16.mxu0 %v13702_v1  ;;  %v12294_v6 = vpop.f32.mrb[156].mxu1  ;;  %v12231_v56 = vpop.f32.mrb[157].mxu0  ;;  %v13709_v37 = vld [vmem:[#allocation5 + $0xdac] ss:$48 sps:$4 sm:$0xff]  }
 0x527   : > { %12882 = vmatprep.subr.bf16.mxu1 %v13704_v20  ;;  %v12232_v62 = vadd.f32 %v12231_v56, %v12230_v60  ;;  %v12295_v39 = vpop.f32.mrb[157].mxu1  ;;  %v12233_v50 = vpop.f32.mrb[158].mxu0  ;;  %v13710_v55 = vld [vmem:[#allocation5 + $0xb0c] ss:$48 sps:$4 sm:$0xff]  }
 0x528   : > { %v12296_v29 = vadd.f32 %v12295_v39, %v12294_v6  ;;  %v12297_v9 = vpop.f32.mrb[158].mxu1  ;;  %v12234_v26 = vpop.f32.mrb[159].mxu0  ;;  %v17255_v27 = vld [vmem:[#allocation60_spill] sm:$0xff] }
 0x529   : > { %12819 = vmatpush3.bf16.msra.mxu0 %v13703_v23  ;;  %v6912_v21 = vadd.f32 %v12232_v62, %v16067_v40  ;;  %v12235_v51 = vadd.f32 %v12234_v26, %v12233_v50  ;;  %v12298_v33 = vpop.f32.mrb[159].mxu1  ;;  %v13712_v20 = vld [vmem:[#allocation5 + $0x110c] ss:$48 sps:$4 sm:$0xff]   ;;  %v17256_v23 = vld [vmem:[#allocation61_spill] sm:$0xff] }
 0x52a   : > { %12883 = vmatpush3.bf16.msra.mxu1 %v13705_v7  ;;  %12820 = vmatprep.subr.bf16.mxu0 %v13706_v0  ;;  %v12299_v1 = vadd.f32 %v12298_v33, %v12297_v9  ;;  %v13711_v40 = vld [vmem:[#allocation5 + $0x80c] ss:$48 sps:$4 sm:$0xff]  }
 0x52b   : > { %8462 = vmatmul.mubr.bf16.gmra.mrb[8].mxu0 %v17255_v27  ;;  %12884 = vmatprep.subr.bf16.mxu1 %v13708_v59  ;;  %v16146_v60 = vadd.f32 %v12296_v29, %v6912_v21  ;;  %v6915_v6 = vadd.f32 %v12235_v51, %v16074_v58  ;;  %v13713_v56 = vld [vmem:[#allocation5 + $0xe0c] ss:$48 sps:$4 sm:$0xff]  }
 0x52c   : > { %8991 = vmatmul.mubr.bf16.gmra.mrb[8].mxu1 %v17238_v45  ;;  %8469 = vmatprep.mubr.bf16.mxu0 %v17256_v23  ;;  %v13714_v59 = vld [vmem:[#allocation5 + $0xb6c] ss:$48 sps:$4 sm:$0xff]  }
 0x52d   : > { %8998 = vmatprep.mubr.bf16.mxu1 %v17239_v11  ;;  %12821 = vmatpush3.bf16.msra.mxu0 %v13707_v4  ;;  %v16152_v7 = vadd.f32 %v12299_v1, %v6915_v6  ;;  %v12316_v0 = vpop.f32.mrb[160].mxu0  ;;  %v13716_v50 = vld [vmem:[#allocation5 + $0x116c] ss:$48 sps:$4 sm:$0xff]  }
 0x52e   : > { %12885 = vmatpush3.bf16.msra.mxu1 %v13709_v37  ;;  %12822 = vmatprep.subr.bf16.mxu0 %v13710_v55  ;;  %v12380_v62 = vpop.f32.mrb[160].mxu1  ;;  %v12317_v39 = vpop.f32.mrb[161].mxu0  ;;  %v13715_v4 = vld [vmem:[#allocation5 + $0x86c] ss:$48 sps:$4 sm:$0xff]  }
 0x52f   : > { %12886 = vmatprep.subr.bf16.mxu1 %v13712_v20  ;;  %v12318_v58 = vadd.f32 %v12317_v39, %v12316_v0  ;;  %v12381_v29 = vpop.f32.mrb[161].mxu1  ;;  %v12319_v45 = vpop.f32.mrb[162].mxu0  ;;  %v13717_v37 = vld [vmem:[#allocation5 + $0xe6c] ss:$48 sps:$4 sm:$0xff]  }
 0x530   : > { %v16154_v9 = vadd.f32 %v12381_v29, %v12380_v62  ;;  %v12383_v26 = vpop.f32.mrb[162].mxu1  ;;  %v12320_v11 = vpop.f32.mrb[163].mxu0  ;;  %v13718_v55 = vld [vmem:[#allocation5 + $0xbcc] ss:$48 sps:$4 sm:$0xff]  }
 0x531   : > { %12823 = vmatpush3.bf16.msra.mxu0 %v13711_v40  ;;  %v16157_v21 = vadd.f32 %v12318_v58, %v16076_v43  ;;  %v12321_v51 = vadd.f32 %v12320_v11, %v12319_v45  ;;  %v12384_v33 = vpop.f32.mrb[163].mxu1  ;;  %v13720_v20 = vld [vmem:[#allocation5 + $0x11cc] ss:$48 sps:$4 sm:$0xff]  }
 0x532   : > { %12887 = vmatpush3.bf16.msra.mxu1 %v13713_v56  ;;  %12824 = vmatprep.subr.bf16.mxu0 %v13714_v59  ;;  %v16159_v1 = vadd.f32 %v12384_v33, %v12383_v26  ;;  %v13719_v43 = vld [vmem:[#allocation5 + $0x8cc] ss:$48 sps:$4 sm:$0xff]   ;;  %v13722_v56 = vld [vmem:[#allocation10 + $0x40] sm:$0xff]  }
 0x533   : > { %8470 = vmatmul.mubr.bf16.gmra.mrb[12].mxu0 %v14631_v31  ;;  %12888 = vmatprep.subr.bf16.mxu1 %v13716_v50  ;;  %v16163_v6 = vadd.f32 %v12321_v51, %v16082_v14  ;;  %v13721_v0 = vld [vmem:[#allocation5 + $0xecc] ss:$48 sps:$4 sm:$0xff]  }
 0x534   : > { %8999 = vmatmul.mubr.bf16.gmra.mrb[12].mxu1 %v17240_v42  ;;  %8477 = vmatprep.mubr.bf16.mxu0 %v14633_v32 }
 0x535   : > { %9006 = vmatprep.mubr.bf16.mxu1 %v17242_v57  ;;  %12825 = vmatpush3.bf16.msra.mxu0 %v13715_v4  ;;  %v12322_v40 = vpop.f32.mrb[164].mxu0 }
 0x536   : > { %12889 = vmatpush3.bf16.msra.mxu1 %v13717_v37  ;;  %12826 = vmatprep.subr.bf16.mxu0 %v13718_v55  ;;  %v12386_v59 = vpop.f32.mrb[164].mxu1  ;;  %v12323_v62 = vpop.f32.mrb[165].mxu0 }
 0x537   : > { %12890 = vmatprep.subr.bf16.mxu1 %v13720_v20  ;;  %v12324_v39 = vadd.f32 %v12323_v62, %v12322_v40  ;;  %v12387_v50 = vpop.f32.mrb[165].mxu1  ;;  %v12325_v14 = vpop.f32.mrb[166].mxu0 }
 0x538   : > { %v16168_v58 = vadd.f32 %v12387_v50, %v12386_v59  ;;  %v12389_v42 = vpop.f32.mrb[166].mxu1  ;;  %v12326_v29 = vpop.f32.mrb[167].mxu0 }
 0x539   : > { %12827 = vmatpush3.bf16.msra.mxu0 %v13719_v43  ;;  %v16171_v57 = vadd.f32 %v12324_v39, %v16086_v18  ;;  %v12327_v45 = vadd.f32 %v12326_v29, %v12325_v14  ;;  %v12390_v26 = vpop.f32.mrb[167].mxu1 }
 0x53a   : > { %12891 = vmatpush3.bf16.msra.mxu1 %v13721_v0  ;;  %12940 = vmatprep.subr.bf16.mxu0 %v13722_v56  ;;  %v16173_v11 = vadd.f32 %v12390_v26, %v12389_v42 }
 0x53b   : > { %8478 = vmatmul.mubr.bf16.gmra.mrb[16].mxu0 %v14643_v5  ;;  %v16177_v4 = vadd.f32 %v12327_v45, %v16092_v38 }
 0x53c   : > { %9007 = vmatmul.mubr.bf16.gmra.mrb[16].mxu1 %v17243_v3  ;;  %8485 = vmatprep.mubr.bf16.mxu0 %v14645_v13 }
 0x53d   : > { %9014 = vmatprep.mubr.bf16.mxu1 %v17244_v53  ;;  %v12328_v51 = vpop.f32.mrb[168].mxu0 }
 0x53e   : > { %v12392_v18 = vpop.f32.mrb[168].mxu1  ;;  %v12329_v33 = vpop.f32.mrb[169].mxu0 }
 0x53f   : > { %v12330_v37 = vadd.f32 %v12329_v33, %v12328_v51  ;;  %v12393_v55 = vpop.f32.mrb[169].mxu1  ;;  %v12331_v20 = vpop.f32.mrb[170].mxu0 }
 0x540   : > { %v16182_v43 = vadd.f32 %v12393_v55, %v12392_v18  ;;  %v12395_v40 = vpop.f32.mrb[170].mxu1  ;;  %v12332_v0 = vpop.f32.mrb[171].mxu0 }
 0x541   : > { %v16185_v56 = vadd.f32 %v12330_v37, %v16096_v41  ;;  %v12333_v38 = vadd.f32 %v12332_v0, %v12331_v20  ;;  %v12396_v59 = vpop.f32.mrb[171].mxu1 }
 0x542   : > { %v16187_v3 = vadd.f32 %v12396_v59, %v12395_v40 }
 0x543   : > { %8486 = vmatmul.mubr.bf16.gmra.mrb[20].mxu0 %v14655_v25  ;;  %v16191_v53 = vadd.f32 %v12333_v38, %v16102_v35 }
 0x544   : > { %9015 = vmatmul.mubr.bf16.gmra.mrb[20].mxu1 %v17245_v52  ;;  %8493 = vmatprep.mubr.bf16.mxu0 %v17132_v44 }
 0x545   : > { %9022 = vmatprep.mubr.bf16.mxu1 %v17246_v16  ;;  %v12334_v62 = vpop.f32.mrb[172].mxu0 }
 0x546   : > { %v12398_v39 = vpop.f32.mrb[172].mxu1  ;;  %v12335_v50 = vpop.f32.mrb[173].mxu0 }
 0x547   : > { %v12336_v41 = vadd.f32 %v12335_v50, %v12334_v62  ;;  %v12399_v14 = vpop.f32.mrb[173].mxu1  ;;  %v12337_v42 = vpop.f32.mrb[174].mxu0 }
 0x548   : > { %v16196_v29 = vadd.f32 %v12399_v14, %v12398_v39  ;;  %v12401_v45 = vpop.f32.mrb[174].mxu1  ;;  %v12338_v26 = vpop.f32.mrb[175].mxu0 }
 0x549   : > { %v16199_v51 = vadd.f32 %v12336_v41, %v16106_v48  ;;  %v12339_v35 = vadd.f32 %v12338_v26, %v12337_v42  ;;  %v12402_v18 = vpop.f32.mrb[175].mxu1 }
 0x54a   : > { %v16201_v52 = vadd.f32 %v12402_v18, %v12401_v45 }
 0x54b   : > { %8494 = vmatmul.mubr.bf16.gmra.mrb[24].mxu0 %v17133_v22  ;;  %v16205_v16 = vadd.f32 %v12339_v35, %v16112_v30 }
 0x54c   : > { %9023 = vmatmul.mubr.bf16.gmra.mrb[24].mxu1 %v17247_v28  ;;  %8501 = vmatprep.mubr.bf16.mxu0 %v17134_v34 }
 0x54d   : > { %9030 = vmatprep.mubr.bf16.mxu1 %v17248_v54  ;;  %v12340_v33 = vpop.f32.mrb[176].mxu0 }
 0x54e   : > { %v12404_v37 = vpop.f32.mrb[176].mxu1  ;;  %v12341_v55 = vpop.f32.mrb[177].mxu0 }
 0x54f   : > { %v12342_v48 = vadd.f32 %v12341_v55, %v12340_v33  ;;  %v12405_v20 = vpop.f32.mrb[177].mxu1  ;;  %v12343_v40 = vpop.f32.mrb[178].mxu0  ;;  %v13723_v33 = vld [vmem:[#allocation10] sm:$0xff]   ;;  %v13724_v55 = vld [vmem:[#allocation10 + $0x48] sm:$0xff]  }
 0x550   : > { %v16210_v0 = vadd.f32 %v12405_v20, %v12404_v37  ;;  %v12407_v38 = vpop.f32.mrb[178].mxu1  ;;  %v12344_v59 = vpop.f32.mrb[179].mxu0  ;;  %v17258_v20 = vld [vmem:[#allocation28_spill] sm:$0xff] }
 0x551   : > { %v16213_v62 = vadd.f32 %v12342_v48, %v16116_v17  ;;  %v12345_v30 = vadd.f32 %v12344_v59, %v12343_v40  ;;  %v12408_v39 = vpop.f32.mrb[179].mxu1  ;;  %v13725_v40 = vld [vmem:[#allocation10 + $0x8] sm:$0xff]  }
 0x552   : > { %v16215_v28 = vadd.f32 %v12408_v39, %v12407_v38  ;;  %v13726_v38 = vld [vmem:[#allocation10 + $0x50] sm:$0xff]  }
 0x553   : > { %8502 = vmatmul.mubr.bf16.gmra.mrb[28].mxu0 %v17135_v47  ;;  %v16219_v54 = vadd.f32 %v12345_v30, %v16122_v8 }
 0x554   : > { %9031 = vmatmul.mubr.bf16.gmra.mrb[28].mxu1 %v17249_v24  ;;  %9071 = vmatprep.mubr.bf16.mxu0 %v17197_v2 }
 0x555   : > { %9168 = vmatprep.mubr.bf16.mxu1 %v17250_v49  ;;  %v12346_v50 = vpop.f32.mrb[180].mxu0  ;;  %v17257_v49 = vld [vmem:[#allocation26_spill] sm:$0xff] }
 0x556   : > { %v12410_v41 = vpop.f32.mrb[180].mxu1  ;;  %v12347_v14 = vpop.f32.mrb[181].mxu0 }
 0x557   : > { %v12348_v17 = vadd.f32 %v12347_v14, %v12346_v50  ;;  %v12411_v42 = vpop.f32.mrb[181].mxu1  ;;  %v12349_v45 = vpop.f32.mrb[182].mxu0 }
 0x558   : > { %v16224_v26 = vadd.f32 %v12411_v42, %v12410_v41  ;;  %v12413_v35 = vpop.f32.mrb[182].mxu1  ;;  %v12350_v18 = vpop.f32.mrb[183].mxu0 }
 0x559   : > { %v16227_v8 = vadd.f32 %v12348_v17, %v16126_v63  ;;  %v12351_v37 = vadd.f32 %v12350_v18, %v12349_v45  ;;  %v12414_v24 = vpop.f32.mrb[183].mxu1 }
 0x55a   : > { %v16229_v2 = vadd.f32 %v12414_v24, %v12413_v35  ;;  %v13728_v35 = vld [vmem:[#allocation10 + $0x58] sm:$0xff]  }
 0x55b   : > { %9072 = vmatmul.mubr.bf16.vlgmr.msra.gmra.mrb[32].mxu0 %v17257_v49  ;;  %v16233_v48 = vadd.f32 %v12351_v37, %v16131_v15  ;;  %v17260_v24 = vld [vmem:[#allocation32_spill] sm:$0xff] }
 0x55c   : > { %9169 = vmatmul.mubr.bf16.vlgmr.msra.gmra.mrb[32].mxu1 %v17251_v19  ;;  %9079 = vmatprep.mubr.bf16.mxu0 %v17258_v20  ;;  %v13727_v19 = vld [vmem:[#allocation10 + $0x10] sm:$0xff]   ;;  %v13730_v49 = vld [vmem:[#allocation10 + $0x60] sm:$0xff]  }
 0x55d   : > { %9176 = vmatprep.mubr.bf16.mxu1 %v17252_v36  ;;  %12941 = vmatpush3.bf16.msra.mxu0 %v13723_v33  ;;  %v12352_v63 = vpop.f32.mrb[184].mxu0  ;;  %v17259_v33 = vld [vmem:[#allocation30_spill] sm:$0xff] }
 0x55e   : > { %12942 = vmatprep.subr.bf16.mxu0 %v13724_v55  ;;  %v12416_v59 = vpop.f32.mrb[184].mxu1  ;;  %v12353_v30 = vpop.f32.mrb[185].mxu0 }
 0x55f   : > { %v12354_v39 = vadd.f32 %v12353_v30, %v12352_v63  ;;  %v12417_v50 = vpop.f32.mrb[185].mxu1  ;;  %v12355_v41 = vpop.f32.mrb[186].mxu0 }
 0x560   : > { %v16238_v14 = vadd.f32 %v12417_v50, %v12416_v59  ;;  %v12419_v15 = vpop.f32.mrb[186].mxu1  ;;  %v12356_v17 = vpop.f32.mrb[187].mxu0 }
 0x561   : > { %12943 = vmatpush3.bf16.msra.mxu0 %v13725_v40  ;;  %v16241_v42 = vadd.f32 %v12354_v39, %v16136_v12  ;;  %v12357_v36 = vadd.f32 %v12356_v17, %v12355_v41  ;;  %v12420_v45 = vpop.f32.mrb[187].mxu1  ;;  %v13729_v12 = vld [vmem:[#allocation10 + $0x18] sm:$0xff]  }
 0x562   : > { %12944 = vmatprep.subr.bf16.mxu0 %v13726_v38  ;;  %v16243_v18 = vadd.f32 %v12420_v45, %v12419_v15  ;;  %v13732_v15 = vld [vmem:[#allocation10 + $0x68] sm:$0xff]   ;;  %v17262_v45 = vld [vmem:[#allocation36_spill] sm:$0xff] }
 0x563   : > { %9080 = vmatmul.mubr.bf16.gmra.mrb[36].mxu0 %v17259_v33  ;;  %v16247_v37 = vadd.f32 %v12357_v36, %v16142_v46  ;;  %v13734_v33 = vld [vmem:[#allocation10 + $0x70] sm:$0xff]  }
 0x564   : > { %9177 = vmatmul.mubr.bf16.gmra.mrb[36].mxu1 %v17253_v10  ;;  %9087 = vmatprep.mubr.bf16.mxu0 %v17260_v24  ;;  %v13731_v10 = vld [vmem:[#allocation10 + $0x20] sm:$0xff]  }
 0x565   : > { %9184 = vmatprep.mubr.bf16.mxu1 %v17254_v61  ;;  %12945 = vmatpush3.bf16.msra.mxu0 %v13727_v19  ;;  %v12358_v55 = vpop.f32.mrb[188].mxu0  ;;  %v17261_v19 = vld [vmem:[#allocation34_spill] sm:$0xff] }
 0x566   : > { %12946 = vmatprep.subr.bf16.mxu0 %v13728_v35  ;;  %v12422_v20 = vpop.f32.mrb[188].mxu1  ;;  %v12359_v40 = vpop.f32.mrb[189].mxu0 }
 0x567   : > { %v12360_v63 = vadd.f32 %v12359_v40, %v12358_v55  ;;  %v12423_v38 = vpop.f32.mrb[189].mxu1  ;;  %v12361_v59 = vpop.f32.mrb[190].mxu0 }
 0x568   : > { %v16252_v30 = vadd.f32 %v12423_v38, %v12422_v20  ;;  %v12425_v46 = vpop.f32.mrb[190].mxu1  ;;  %v12362_v39 = vpop.f32.mrb[191].mxu0  ;;  %v13735_v38 = vld [vmem:[#allocation10 + $0x30] sm:$0xff]  }
 0x569   : > { %12947 = vmatpush3.bf16.msra.mxu0 %v13729_v12  ;;  %v16255_v50 = vadd.f32 %v12360_v63, %v16146_v60  ;;  %v12363_v61 = vadd.f32 %v12362_v39, %v12361_v59  ;;  %v12426_v41 = vpop.f32.mrb[191].mxu1  ;;  %v13733_v60 = vld [vmem:[#allocation10 + $0x28] sm:$0xff]  }
 0x56a   : > { %12948 = vmatprep.subr.bf16.mxu0 %v13730_v49  ;;  %v16257_v17 = vadd.f32 %v12426_v41, %v12425_v46 }
 0x56b   : > { %9088 = vmatmul.mubr.bf16.gmra.mrb[40].mxu0 %v17261_v19  ;;  %v16261_v36 = vadd.f32 %v12363_v61, %v16152_v7  ;;  %v13737_v19 = vld [vmem:[#allocation10 + $0x38] sm:$0xff]  }
 0x56c   : > { %9185 = vmatmul.mubr.bf16.gmra.mrb[40].mxu1 %v17255_v27  ;;  %9095 = vmatprep.mubr.bf16.mxu0 %v17262_v45 }
 0x56d   : > { %9192 = vmatprep.mubr.bf16.mxu1 %v17256_v23  ;;  %12949 = vmatpush3.bf16.msra.mxu0 %v13731_v10  ;;  %v12444_v35 = vpop.f32.mrb[192].mxu0  ;;  %v13736_v23 = vld [vmem:[#allocation10 + $0x78] sm:$0xff]   ;;  %v17263_v10 = vld [vmem:[#allocation38_spill] sm:$0xff] }
 0x56e   : > { %12950 = vmatprep.subr.bf16.mxu0 %v13732_v15  ;;  %v12508_v24 = vpop.f32.mrb[192].mxu1  ;;  %v12445_v12 = vpop.f32.mrb[193].mxu0  ;;  %v17264_v15 = vld [vmem:[#allocation40_spill] sm:$0xff] }
 0x56f   : > { %v12446_v55 = vadd.f32 %v12445_v12, %v12444_v35  ;;  %v12509_v49 = vpop.f32.mrb[193].mxu1  ;;  %v12447_v20 = vpop.f32.mrb[194].mxu0 }
 0x570   : > { %v12510_v40 = vadd.f32 %v12509_v49, %v12508_v24  ;;  %v12511_v63 = vpop.f32.mrb[194].mxu1  ;;  %v12448_v7 = vpop.f32.mrb[195].mxu0 }
 0x571   : > { %12951 = vmatpush3.bf16.msra.mxu0 %v13733_v60  ;;  %v7628_v27 = vadd.f32 %v12446_v55, %v16154_v9  ;;  %v12449_v59 = vadd.f32 %v12448_v7, %v12447_v20  ;;  %v12512_v46 = vpop.f32.mrb[195].mxu1 }
 0x572   : > { %12952 = vmatprep.subr.bf16.mxu0 %v13734_v33  ;;  %v12513_v39 = vadd.f32 %v12512_v46, %v12511_v63  ;;  %v17266_v46 = vld [vmem:[#allocation42_spill] sm:$0xff] }
 0x573   : > { %9096 = vmatmul.mubr.bf16.gmra.mrb[44].mxu0 %v17263_v10  ;;  %v16268_v61 = vadd.f32 %v12510_v40, %v7628_v27  ;;  %v7631_v41 = vadd.f32 %v12449_v59, %v16159_v1  ;;  %v17267_v10 = vld [vmem:[#allocation44_spill] sm:$0xff] }
 0x574   : > { %9193 = vmatmul.mubr.bf16.gmra.mrb[44].mxu1 %v14631_v31  ;;  %9103 = vmatprep.mubr.bf16.mxu0 %v17264_v15 }
 0x575   : > { %9200 = vmatprep.mubr.bf16.mxu1 %v14633_v32  ;;  %12953 = vmatpush3.bf16.msra.mxu0 %v13735_v38  ;;  %v7728_v9 = vadd.f32 %v12513_v39, %v7631_v41  ;;  %v12450_v45 = vpop.f32.mrb[196].mxu0  ;;  %v7787_v33 = vrot.slane %v16268_v61, 2  ;;  %v17265_v32 = vld [vmem:[#allocation66_spill] sm:$0xff] }
 0x576   : > { %12954 = vmatprep.subr.bf16.mxu0 %v13736_v23  ;;  %v12514_v60 = vpop.f32.mrb[196].mxu1  ;;  %v12451_v35 = vpop.f32.mrb[197].mxu0  ;;  %vm9249_vm13 = vcmp.lt.s32.totalorder %v17265_v32, 4 }
 0x577   : > { %v7788_v24 = vrot.slane %v7728_v9, 2  ;;  %v12452_v12 = vadd.f32 %v12451_v35, %v12450_v45  ;;  %v12515_v55 = vpop.f32.mrb[197].mxu1  ;;  %v12453_v49 = vpop.f32.mrb[198].mxu0 }
 0x578   : > { %v12516_v1 = vadd.f32 %v12515_v55, %v12514_v60  ;;  %v12517_v20 = vpop.f32.mrb[198].mxu1  ;;  %v12454_v31 = vpop.f32.mrb[199].mxu0 }
 0x579   : > { %12955 = vmatpush3.bf16.msra.mxu0 %v13737_v19  ;;  %v7817_v40 = vsel %vm2642_vm1, %v7787_v33, %v7788_v24  ;;  %v7636_v63 = vadd.f32 %v12452_v12, %v16168_v58  ;;  %v12455_v7 = vadd.f32 %v12454_v31, %v12453_v49  ;;  %v12518_v38 = vpop.f32.mrb[199].mxu1 }
 0x57a   : > { %v16281_v27 = vadd.f32 %v7817_v40, %v16157_v21  ;;  %v12519_v59 = vadd.f32 %v12518_v38, %v12517_v20  ;;  %v17269_v38 = vld [vmem:[#allocation48_spill] sm:$0xff] }
 0x57b   : > { %9104 = vmatmul.mubr.bf16.gmra.mrb[48].mxu0 %v17266_v46  ;;  %v7733_v23 = vadd.f32 %v12516_v1, %v7636_v63  ;;  %v7639_v39 = vadd.f32 %v12455_v7, %v16173_v11  ;;  %v17268_v63 = vld [vmem:[#allocation46_spill] sm:$0xff] }
 0x57c   : > { %9201 = vmatmul.mubr.bf16.gmra.mrb[48].mxu1 %v14643_v5  ;;  %9111 = vmatprep.mubr.bf16.mxu0 %v17267_v10 }
 0x57d   : > { %9208 = vmatprep.mubr.bf16.mxu1 %v14645_v13  ;;  %v7789_v41 = vrot.slane %v7733_v23, 2  ;;  %v7736_v15 = vadd.f32 %v12519_v59, %v7639_v39  ;;  %v12456_v58 = vpop.f32.mrb[200].mxu0 }
 0x57e   : > { %v12520_v19 = vpop.f32.mrb[200].mxu1  ;;  %v12457_v9 = vpop.f32.mrb[201].mxu0 }
 0x57f   : > { %v7816_v21 = vsel %vm2642_vm1, %v7788_v24, %v7789_v41  ;;  %v7790_v45 = vrot.slane %v7736_v15, 2  ;;  %v12458_v60 = vadd.f32 %v12457_v9, %v12456_v58  ;;  %v12521_v35 = vpop.f32.mrb[201].mxu1  ;;  %v12459_v12 = vpop.f32.mrb[202].mxu0 }
 0x580   : > { %v16291_v11 = vadd.f32 %v7816_v21, %v16163_v6  ;;  %v12522_v5 = vadd.f32 %v12521_v35, %v12520_v19  ;;  %v12523_v55 = vpop.f32.mrb[202].mxu1  ;;  %v12460_v49 = vpop.f32.mrb[203].mxu0 }
 0x581   : > { %v7815_v13 = vsel %vm2642_vm1, %v7789_v41, %v7790_v45  ;;  %v7644_v1 = vadd.f32 %v12458_v60, %v16182_v43  ;;  %v12461_v20 = vadd.f32 %v12460_v49, %v12459_v12  ;;  %v12524_v31 = vpop.f32.mrb[203].mxu1  ;;  %v17271_v49 = vld [vmem:[#allocation52_spill] sm:$0xff] }
 0x582   : > { %v16297_v40 = vadd.f32 %v7815_v13, %v16171_v57  ;;  %v12525_v24 = vadd.f32 %v12524_v31, %v12523_v55 }
 0x583   : > { %9112 = vmatmul.mubr.bf16.gmra.mrb[52].mxu0 %v17268_v63  ;;  %v7741_v7 = vadd.f32 %v12522_v5, %v7644_v1  ;;  %v7647_v6 = vadd.f32 %v12461_v20, %v16187_v3  ;;  %v17270_v5 = vld [vmem:[#allocation50_spill] sm:$0xff] }
 0x584   : > { %9209 = vmatmul.mubr.bf16.gmra.mrb[52].mxu1 %v14655_v25  ;;  %9119 = vmatprep.mubr.bf16.mxu0 %v17269_v38 }
 0x585   : > { %9216 = vmatprep.mubr.bf16.mxu1 %v17132_v44  ;;  %v7791_v59 = vrot.slane %v7741_v7, 2  ;;  %v7744_v46 = vadd.f32 %v12525_v24, %v7647_v6 }
 0x586   : > { %v12462_v43 = vpop.f32.mrb[204].mxu0 }
 0x587   : > { %v12526_v23 = vpop.f32.mrb[204].mxu1  ;;  %v12463_v39 = vpop.f32.mrb[205].mxu0  ;;  %v7814_v57 = vsel %vm2642_vm1, %v7790_v45, %v7791_v59  ;;  %v7792_v10 = vrot.slane %v7744_v46, 2 }
 0x588   : > { %v12464_v41 = vadd.f32 %v12463_v39, %v12462_v43  ;;  %v12527_v15 = vpop.f32.mrb[205].mxu1  ;;  %v12465_v58 = vpop.f32.mrb[206].mxu0  ;;  %v16307_v3 = vadd.f32 %v7814_v57, %v16177_v4  ;;  %v17272_v39 = vld [vmem:[#allocation71_spill] sm:$0xff] }
 0x589   : > { %v12528_v25 = vadd.f32 %v12527_v15, %v12526_v23  ;;  %v12529_v19 = vpop.f32.mrb[206].mxu1  ;;  %v12466_v9 = vpop.f32.mrb[207].mxu0  ;;  %v7813_v44 = vsel %vm2642_vm1, %v7791_v59, %v7792_v10  ;;  %v9451_v57 = vpack.c.bf16 %v17272_v39, %v17272_v39  ;;  %v17273_v15 = vld [vmem:[#allocation54_spill] sm:$0xff] }
 0x58a   : > { %v7652_v21 = vadd.f32 %v12464_v41, %v16196_v29  ;;  %v12467_v60 = vadd.f32 %v12466_v9, %v12465_v58  ;;  %v12530_v35 = vpop.f32.mrb[207].mxu1  ;;  %v16313_v12 = vadd.f32 %v7813_v44, %v16185_v56 }
 0x58b   : > { %v12531_v45 = vadd.f32 %v12530_v35, %v12529_v19  ;;  %9120 = vmatmul.mubr.bf16.gmra.mrb[56].mxu0 %v17270_v5 }
 0x58c   : > { %v7749_v55 = vadd.f32 %v12528_v25, %v7652_v21  ;;  %v7655_v4 = vadd.f32 %v12467_v60, %v16201_v52  ;;  %9217 = vmatmul.mubr.bf16.gmra.mrb[56].mxu1 %v17133_v22  ;;  %9127 = vmatprep.mubr.bf16.mxu0 %v17271_v49 }
 0x58d   : > { %9224 = vmatprep.mubr.bf16.mxu1 %v17134_v34 }
 0x58e   : > { %v7793_v13 = vrot.slane %v7749_v55, 2  ;;  %v7752_v1 = vadd.f32 %v12531_v45, %v7655_v4  ;;  %v12468_v29 = vpop.f32.mrb[208].mxu0  ;;  %v17274_v55 = vld [vmem:[#allocation68_spill] sm:$0xff] }
 0x58f   : > { %v12532_v20 = vpop.f32.mrb[208].mxu1  ;;  %v12469_v31 = vpop.f32.mrb[209].mxu0 }
 0x590   : > { %v7812_v56 = vsel %vm2642_vm1, %v7792_v10, %v7793_v13  ;;  %v7794_v24 = vrot.slane %v7752_v1, 2  ;;  %v12470_v63 = vadd.f32 %v12469_v31, %v12468_v29  ;;  %v12533_v7 = vpop.f32.mrb[209].mxu1  ;;  %v12471_v6 = vpop.f32.mrb[210].mxu0 }
 0x591   : > { %v16323_v52 = vadd.f32 %v7812_v56, %v16191_v53  ;;  %v12534_v22 = vadd.f32 %v12533_v7, %v12532_v20  ;;  %v12535_v38 = vpop.f32.mrb[210].mxu1  ;;  %v12472_v59 = vpop.f32.mrb[211].mxu0 }
 0x592   : > { %v7811_v34 = vsel %vm2642_vm1, %v7793_v13, %v7794_v24  ;;  %v7660_v46 = vadd.f32 %v12470_v63, %v16210_v0  ;;  %v12473_v43 = vadd.f32 %v12472_v59, %v12471_v6  ;;  %v12536_v23 = vpop.f32.mrb[211].mxu1 }
 0x593   : > { %v16331_v10 = vadd.f32 %v7811_v34, %v16199_v51  ;;  %v12537_v41 = vadd.f32 %v12536_v23, %v12535_v38  ;;  %9128 = vmatmul.mubr.bf16.gmra.mrb[60].mxu0 %v17273_v15 }
 0x594   : > { %v7757_v53 = vadd.f32 %v12534_v22, %v7660_v46  ;;  %v7663_v58 = vadd.f32 %v12473_v43, %v16215_v28  ;;  %9225 = vmatmul.mubr.bf16.gmra.mrb[60].mxu1 %v17135_v47  ;;  %9684 = vmatprep.mubr.bf16.mxu0 %v9451_v57  ;;  %v9450_v28 = vpack.c.bf16 %v17274_v55, %v17274_v55 }
 0x596   : > { %v7795_v25 = vrot.slane %v7757_v53, 2  ;;  %v7760_v19 = vadd.f32 %v12537_v41, %v7663_v58  ;;  %v12474_v0 = vpop.f32.mrb[212].mxu0 }
 0x597   : > { %v12538_v9 = vpop.f32.mrb[212].mxu1  ;;  %v12475_v44 = vpop.f32.mrb[213].mxu0 }
 0x598   : > { %v7810_v21 = vsel %vm2642_vm1, %v7794_v24, %v7795_v25  ;;  %v7796_v60 = vrot.slane %v7760_v19, 2  ;;  %v12476_v51 = vadd.f32 %v12475_v44, %v12474_v0  ;;  %v12539_v35 = vpop.f32.mrb[213].mxu1  ;;  %v12477_v45 = vpop.f32.mrb[214].mxu0 }
 0x599   : > { %v16339_v5 = vadd.f32 %v7810_v21, %v16205_v16  ;;  %v12540_v47 = vadd.f32 %v12539_v35, %v12538_v9  ;;  %v12541_v4 = vpop.f32.mrb[214].mxu1  ;;  %v12478_v49 = vpop.f32.mrb[215].mxu0 }
 0x59a   : > { %v7809_v13 = vsel %vm2642_vm1, %v7795_v25, %v7796_v60  ;;  %v7668_v1 = vadd.f32 %v12476_v51, %v16224_v26  ;;  %v12479_v29 = vadd.f32 %v12478_v49, %v12477_v45  ;;  %v12542_v20 = vpop.f32.mrb[215].mxu1 }
 0x59b   : > { %v16347_v31 = vadd.f32 %v7809_v13, %v16213_v62  ;;  %v12543_v56 = vadd.f32 %v12542_v20, %v12541_v4  ;;  %9685 = vmatmul.mubr.bf16.vlgmr.msra.gmra.mrb[64].mxu0 %v9450_v28 }
 0x59c   : > { %v7765_v16 = vadd.f32 %v12540_v47, %v7668_v1  ;;  %v7671_v24 = vadd.f32 %v12479_v29, %v16229_v2 }
 0x59e   : > { %v7797_v63 = vrot.slane %v7765_v16, 2  ;;  %v7768_v7 = vadd.f32 %v12543_v56, %v7671_v24  ;;  %v12480_v6 = vpop.f32.mrb[216].mxu0 }
 0x59f   : > { %v12544_v22 = vpop.f32.mrb[216].mxu1  ;;  %v12481_v38 = vpop.f32.mrb[217].mxu0 }
 0x5a0   : > { %v7808_v59 = vsel %vm2642_vm1, %v7796_v60, %v7797_v63  ;;  %v7798_v34 = vrot.slane %v7768_v7, 2  ;;  %v12482_v26 = vadd.f32 %v12481_v38, %v12480_v6  ;;  %v12545_v46 = vpop.f32.mrb[217].mxu1  ;;  %v12483_v43 = vpop.f32.mrb[218].mxu0 }
 0x5a1   : > { %v16353_v62 = vadd.f32 %v7808_v59, %v16219_v54  ;;  %v12546_v23 = vadd.f32 %v12545_v46, %v12544_v22  ;;  %v12547_v39 = vpop.f32.mrb[218].mxu1  ;;  %v12484_v57 = vpop.f32.mrb[219].mxu0 }
 0x5a2   : > { %v7807_v2 = vsel %vm2642_vm1, %v7797_v63, %v7798_v34  ;;  %v7676_v41 = vadd.f32 %v12482_v26, %v16238_v14  ;;  %v12485_v15 = vadd.f32 %v12484_v57, %v12483_v43  ;;  %v12548_v53 = vpop.f32.mrb[219].mxu1 }
 0x5a3   : > { %v16359_v58 = vadd.f32 %v7807_v2, %v16227_v8  ;;  %v12549_v25 = vadd.f32 %v12548_v53, %v12547_v39 }
 0x5a4   : > { %v7773_v19 = vadd.f32 %v12546_v23, %v7676_v41  ;;  %v7679_v0 = vadd.f32 %v12485_v15, %v16243_v18 }
 0x5a6   : > { %v7799_v9 = vrot.slane %v7773_v19, 2  ;;  %v7776_v54 = vadd.f32 %v12549_v25, %v7679_v0  ;;  %v12486_v44 = vpop.f32.mrb[220].mxu0 }
 0x5a7   : > { %v12550_v21 = vpop.f32.mrb[220].mxu1  ;;  %v12487_v60 = vpop.f32.mrb[221].mxu0 }
 0x5a8   : > { %v7806_v51 = vsel %vm2642_vm1, %v7798_v34, %v7799_v9  ;;  %v7800_v35 = vrot.slane %v7776_v54, 2  ;;  %v12488_v45 = vadd.f32 %v12487_v60, %v12486_v44  ;;  %v12551_v14 = vpop.f32.mrb[221].mxu1  ;;  %v12489_v55 = vpop.f32.mrb[222].mxu0 }
 0x5a9   : > { %v16365_v28 = vadd.f32 %v7806_v51, %v16233_v48  ;;  %v12552_v8 = vadd.f32 %v12551_v14, %v12550_v21  ;;  %v12553_v47 = vpop.f32.mrb[222].mxu1  ;;  %v12490_v4 = vpop.f32.mrb[223].mxu0 }
 0x5aa   : > { %v7805_v18 = vsel %vm2642_vm1, %v7799_v9, %v7800_v35  ;;  %v7684_v49 = vadd.f32 %v12488_v45, %v16252_v30  ;;  %v12491_v13 = vadd.f32 %v12490_v4, %v12489_v55  ;;  %v12554_v1 = vpop.f32.mrb[223].mxu1 }
 0x5ab   : > { %v16371_v29 = vadd.f32 %v7805_v18, %v16241_v42  ;;  %v12555_v20 = vadd.f32 %v12554_v1, %v12553_v47 }
 0x5ac   : > { %v7781_v56 = vadd.f32 %v12552_v8, %v7684_v49  ;;  %v7687_v16 = vadd.f32 %v12491_v13, %v16257_v17 }
 0x5ae   : > { %v7801_v24 = vrot.slane %v7781_v56, 2  ;;  %v7784_v48 = vadd.f32 %v12555_v20, %v7687_v16  ;;  %v12572_v63 = vpop.f32.mrb[224].mxu0 }
 0x5af   : > { %v12636_v7 = vpop.f32.mrb[224].mxu1  ;;  %v12573_v6 = vpop.f32.mrb[225].mxu0 }
 0x5b0   : > { %v7804_v22 = vsel %vm2642_vm1, %v7800_v35, %v7801_v24  ;;  %v7802_v38 = vrot.slane %v7784_v48, 2  ;;  %v12574_v59 = vadd.f32 %v12573_v6, %v12572_v63  ;;  %v12637_v30 = vpop.f32.mrb[225].mxu1  ;;  %v12575_v34 = vpop.f32.mrb[226].mxu0 }
 0x5b1   : > { %v16377_v26 = vadd.f32 %v7804_v22, %v16247_v37  ;;  %v12638_v42 = vadd.f32 %v12637_v30, %v12636_v7  ;;  %v12639_v46 = vpop.f32.mrb[226].mxu1  ;;  %v12576_v43 = vpop.f32.mrb[227].mxu0 }
 0x5b2   : > { %v7803_v17 = vsel %vm2642_vm1, %v7801_v24, %v7802_v38  ;;  %v7818_v23 = vsel %vm2642_vm1, %v7802_v38, %v7787_v33  ;;  %v12577_v39 = vadd.f32 %v12576_v43, %v12575_v34  ;;  %v12640_v57 = vpop.f32.mrb[227].mxu1 }
 0x5b3   : > { %v16386_v2 = vadd.f32 %v7803_v17, %v16255_v50  ;;  %v16389_v41 = vadd.f32 %v7818_v23, %v16261_v36  ;;  %v16391_v37 = vadd.f32 %v12638_v42, %v12574_v59  ;;  %v12641_v15 = vadd.f32 %v12640_v57, %v12639_v46 }
 0x5b5   : > { %v16393_v53 = vadd.f32 %v12641_v15, %v12577_v39 }
 0x5b6   : > { %v12578_v25 = vpop.f32.mrb[228].mxu0 }
 0x5b7   : > { %v12642_v19 = vpop.f32.mrb[228].mxu1  ;;  %v12579_v0 = vpop.f32.mrb[229].mxu0 }
 0x5b8   : > { %v12580_v61 = vadd.f32 %v12579_v0, %v12578_v25  ;;  %v12643_v9 = vpop.f32.mrb[229].mxu1  ;;  %v12581_v54 = vpop.f32.mrb[230].mxu0 }
 0x5b9   : > { %v12644_v33 = vadd.f32 %v12643_v9, %v12642_v19  ;;  %v12645_v44 = vpop.f32.mrb[230].mxu1  ;;  %v12582_v21 = vpop.f32.mrb[231].mxu0 }
 0x5ba   : > { %v12583_v60 = vadd.f32 %v12582_v21, %v12581_v54  ;;  %v12646_v50 = vpop.f32.mrb[231].mxu1 }
 0x5bb   : > { %v16395_v51 = vadd.f32 %v12644_v33, %v12580_v61  ;;  %v12647_v36 = vadd.f32 %v12646_v50, %v12645_v44 }
 0x5bd   : > { %v16397_v35 = vadd.f32 %v12647_v36, %v12583_v60 }
 0x5be   : > { %v12584_v45 = vpop.f32.mrb[232].mxu0 }
 0x5bf   : > { %v12648_v14 = vpop.f32.mrb[232].mxu1  ;;  %v12585_v55 = vpop.f32.mrb[233].mxu0 }
 0x5c0   : > { %v12586_v8 = vadd.f32 %v12585_v55, %v12584_v45  ;;  %v12649_v47 = vpop.f32.mrb[233].mxu1  ;;  %v12587_v4 = vpop.f32.mrb[234].mxu0 }
 0x5c1   : > { %v12650_v18 = vadd.f32 %v12649_v47, %v12648_v14  ;;  %v12651_v49 = vpop.f32.mrb[234].mxu1  ;;  %v12588_v13 = vpop.f32.mrb[235].mxu0 }
 0x5c2   : > { %v12589_v1 = vadd.f32 %v12588_v13, %v12587_v4  ;;  %v12652_v20 = vpop.f32.mrb[235].mxu1 }
 0x5c3   : > { %v16399_v56 = vadd.f32 %v12650_v18, %v12586_v8  ;;  %v12653_v16 = vadd.f32 %v12652_v20, %v12651_v49 }
 0x5c5   : > { %v16401_v24 = vadd.f32 %v12653_v16, %v12589_v1 }
 0x5c6   : > { %v12590_v48 = vpop.f32.mrb[236].mxu0 }
 0x5c7   : > { %v12654_v63 = vpop.f32.mrb[236].mxu1  ;;  %v12591_v7 = vpop.f32.mrb[237].mxu0 }
 0x5c8   : > { %v12592_v6 = vadd.f32 %v12591_v7, %v12590_v48  ;;  %v12655_v22 = vpop.f32.mrb[237].mxu1  ;;  %v12593_v38 = vpop.f32.mrb[238].mxu0 }
 0x5c9   : > { %v12656_v59 = vadd.f32 %v12655_v22, %v12654_v63  ;;  %v12657_v30 = vpop.f32.mrb[238].mxu1  ;;  %v12594_v34 = vpop.f32.mrb[239].mxu0 }
 0x5ca   : > { %v12595_v42 = vadd.f32 %v12594_v34, %v12593_v38  ;;  %v12658_v46 = vpop.f32.mrb[239].mxu1 }
 0x5cb   : > { %v16403_v43 = vadd.f32 %v12656_v59, %v12592_v6  ;;  %v12659_v17 = vadd.f32 %v12658_v46, %v12657_v30 }
 0x5cd   : > { %v16405_v23 = vadd.f32 %v12659_v17, %v12595_v42 }
 0x5ce   : > { %v12596_v39 = vpop.f32.mrb[240].mxu0 }
 0x5cf   : > { %v12660_v57 = vpop.f32.mrb[240].mxu1  ;;  %v12597_v15 = vpop.f32.mrb[241].mxu0 }
 0x5d0   : > { %v12598_v25 = vadd.f32 %v12597_v15, %v12596_v39  ;;  %v12661_v19 = vpop.f32.mrb[241].mxu1  ;;  %v12599_v0 = vpop.f32.mrb[242].mxu0 }
 0x5d1   : > { %v12662_v61 = vadd.f32 %v12661_v19, %v12660_v57  ;;  %v12663_v9 = vpop.f32.mrb[242].mxu1  ;;  %v12600_v54 = vpop.f32.mrb[243].mxu0  ;;  %v13738_v19 = vld [vmem:[#allocation10 + $0x80] sm:$0xff]  }
 0x5d2   : > { %v12601_v33 = vadd.f32 %v12600_v54, %v12599_v0  ;;  %v12664_v44 = vpop.f32.mrb[243].mxu1 }
 0x5d3   : > { %v16407_v21 = vadd.f32 %v12662_v61, %v12598_v25  ;;  %v12665_v60 = vadd.f32 %v12664_v44, %v12663_v9  ;;  %v14076_v9 = vmov 0.0  }
 0x5d4   : > { %12980 = vmatprep.subr.bf16.mxu1 %v14076_v9  ;;  %13000 = vmatprep.subr.bf16.mxu0 %v14076_v9 }
 0x5d5   : > { %v16409_v50 = vadd.f32 %v12665_v60, %v12601_v33  ;;  %12981 = vmatpush3.bf16.msra.mxu1 %v13738_v19  ;;  %12996 = vmatprep.mubr.msk.bf16.mxu1 %vm14077_vm12, %v14076_v9 }
 0x5d6   : > { %v12602_v36 = vpop.f32.mrb[244].mxu0  ;;  %12982 = vmatprep.subr.bf16.mxu1 %v14076_v9  ;;  %13016 = vmatprep.mubr.msk.bf16.mxu0 %vm14077_vm12, %v14076_v9 }
 0x5d7   : > { %v12666_v45 = vpop.f32.mrb[244].mxu1  ;;  %v12603_v14 = vpop.f32.mrb[245].mxu0 }
 0x5d8   : > { %v12604_v55 = vadd.f32 %v12603_v14, %v12602_v36  ;;  %v12667_v8 = vpop.f32.mrb[245].mxu1  ;;  %v12605_v47 = vpop.f32.mrb[246].mxu0 }
 0x5d9   : > { %v12668_v4 = vadd.f32 %v12667_v8, %v12666_v45  ;;  %v12669_v18 = vpop.f32.mrb[246].mxu1  ;;  %v12606_v49 = vpop.f32.mrb[247].mxu0 }
 0x5da   : > { %v12607_v13 = vadd.f32 %v12606_v49, %v12605_v47  ;;  %v12670_v1 = vpop.f32.mrb[247].mxu1 }
 0x5db   : > { %v16411_v20 = vadd.f32 %v12668_v4, %v12604_v55  ;;  %v12671_v16 = vadd.f32 %v12670_v1, %v12669_v18  ;;  %v13739_v1 = vld [vmem:[#allocation10 + $0x88] sm:$0xff]  }
 0x5dc   : > { %12983 = vmatpush3.bf16.msra.mxu1 %v13739_v1 }
 0x5dd   : > { %v16413_v48 = vadd.f32 %v12671_v16, %v12607_v13  ;;  %12984 = vmatprep.subr.bf16.mxu1 %v14076_v9 }
 0x5de   : > { %v12608_v63 = vpop.f32.mrb[248].mxu0 }
 0x5df   : > { %v12672_v7 = vpop.f32.mrb[248].mxu1  ;;  %v12609_v6 = vpop.f32.mrb[249].mxu0 }
 0x5e0   : > { %v12610_v22 = vadd.f32 %v12609_v6, %v12608_v63  ;;  %v12673_v38 = vpop.f32.mrb[249].mxu1  ;;  %v12611_v59 = vpop.f32.mrb[250].mxu0 }
 0x5e1   : > { %v12674_v30 = vadd.f32 %v12673_v38, %v12672_v7  ;;  %v12675_v34 = vpop.f32.mrb[250].mxu1  ;;  %v12612_v42 = vpop.f32.mrb[251].mxu0 }
 0x5e2   : > { %v12613_v46 = vadd.f32 %v12612_v42, %v12611_v59  ;;  %v12676_v17 = vpop.f32.mrb[251].mxu1 }
 0x5e3   : > { %v16415_v39 = vadd.f32 %v12674_v30, %v12610_v22  ;;  %v12677_v57 = vadd.f32 %v12676_v17, %v12675_v34 }
 0x5e5   : > { %v16417_v15 = vadd.f32 %v12677_v57, %v12613_v46 }
 0x5e6   : > { %v12614_v25 = vpop.f32.mrb[252].mxu0 }
 0x5e7   : > { %v12678_v0 = vpop.f32.mrb[252].mxu1  ;;  %v12615_v61 = vpop.f32.mrb[253].mxu0 }
 0x5e8   : > { %v12616_v54 = vadd.f32 %v12615_v61, %v12614_v25  ;;  %v12679_v33 = vpop.f32.mrb[253].mxu1  ;;  %v12617_v44 = vpop.f32.mrb[254].mxu0  ;;  %v13740_v61 = vld [vmem:[#allocation10 + $0x90] sm:$0xff]  }
 0x5e9   : > { %v12680_v60 = vadd.f32 %v12679_v33, %v12678_v0  ;;  %v12681_v36 = vpop.f32.mrb[254].mxu1  ;;  %v12618_v45 = vpop.f32.mrb[255].mxu0  ;;  %12985 = vmatpush3.bf16.msra.mxu1 %v13740_v61 }
 0x5ea   : > { %v12619_v14 = vadd.f32 %v12618_v45, %v12617_v44  ;;  %v12682_v55 = vpop.f32.mrb[255].mxu1  ;;  %12986 = vmatprep.subr.bf16.mxu1 %v14076_v9 }
 0x5eb   : > { %v16422_v8 = vadd.f32 %v12680_v60, %v12616_v54  ;;  %v12683_v47 = vadd.f32 %v12682_v55, %v12681_v36 }
 0x5ed   : > { %v16424_v4 = vadd.f32 %v12683_v47, %v12619_v14 }
 0x5ee   : > { %v12700_v18 = vpop.f32.mrb[0].mxu0 }
 0x5ef   : > { %v12764_v49 = vpop.f32.mrb[0].mxu1  ;;  %v12701_v13 = vpop.f32.mrb[1].mxu0 }
 0x5f0   : > { %v12702_v16 = vadd.f32 %v12701_v13, %v12700_v18  ;;  %v12765_v63 = vpop.f32.mrb[1].mxu1  ;;  %v12703_v7 = vpop.f32.mrb[2].mxu0 }
 0x5f1   : > { %v16426_v6 = vadd.f32 %v12765_v63, %v12764_v49  ;;  %v12767_v22 = vpop.f32.mrb[2].mxu1  ;;  %v12704_v38 = vpop.f32.mrb[3].mxu0  ;;  %v13741_v63 = vld [vmem:[#allocation10 + $0x98] sm:$0xff]  }
 0x5f2   : > { %v16429_v59 = vadd.f32 %v12702_v16, %v16391_v37  ;;  %v12705_v30 = vadd.f32 %v12704_v38, %v12703_v7  ;;  %v12768_v34 = vpop.f32.mrb[3].mxu1  ;;  %12987 = vmatpush3.bf16.msra.mxu1 %v13741_v63  ;;  %v13742_v63 = vld [vmem:[#allocation10 + $0xa0] sm:$0xff]  }
 0x5f3   : > { %v16432_v42 = vadd.f32 %v12768_v34, %v12767_v22  ;;  %12988 = vmatprep.subr.bf16.mxu1 %v14076_v9 }
 0x5f4   : > { %v8451_v46 = vadd.f32 %v12705_v30, %v16393_v53  ;;  %v8510_v17 = vrot.slane %v16429_v59, 3 }
 0x5f6   : > { %v8511_v57 = vrot.slane %v8451_v46, 3  ;;  %v12706_v25 = vpop.f32.mrb[4].mxu0  ;;  %12989 = vmatpush3.bf16.msra.mxu1 %v13742_v63  ;;  %v13745_v63 = vld [vmem:[#allocation10 + $0xb8] sm:$0xff]  }
 0x5f7   : > { %v12770_v19 = vpop.f32.mrb[4].mxu1  ;;  %v12707_v0 = vpop.f32.mrb[5].mxu0  ;;  %12990 = vmatprep.subr.bf16.mxu1 %v14076_v9 }
 0x5f8   : > { %v8540_v37 = vsel %vm5584_vm10, %v8510_v17, %v8511_v57  ;;  %v12708_v54 = vadd.f32 %v12707_v0, %v12706_v25  ;;  %v12771_v33 = vpop.f32.mrb[5].mxu1  ;;  %v12709_v44 = vpop.f32.mrb[6].mxu0 }
 0x5f9   : > { %v16441_v60 = vadd.f32 %v8540_v37, %v16281_v27  ;;  %v16443_v36 = vadd.f32 %v12771_v33, %v12770_v19  ;;  %v12773_v53 = vpop.f32.mrb[6].mxu1  ;;  %v12710_v45 = vpop.f32.mrb[7].mxu0 }
 0x5fa   : > { %v8456_v14 = vadd.f32 %v12708_v54, %v16395_v51  ;;  %v12711_v55 = vadd.f32 %v12710_v45, %v12709_v44  ;;  %v12774_v47 = vpop.f32.mrb[7].mxu1 }
 0x5fb   : > { %v16447_v18 = vadd.f32 %v12774_v47, %v12773_v53 }
 0x5fc   : > { %v8512_v49 = vrot.slane %v8456_v14, 3  ;;  %v8459_v13 = vadd.f32 %v12711_v55, %v16397_v35 }
 0x5fe   : > { %v8539_v27 = vsel %vm5584_vm10, %v8511_v57, %v8512_v49  ;;  %v8513_v1 = vrot.slane %v8459_v13, 3  ;;  %v12712_v16 = vpop.f32.mrb[8].mxu0 }
 0x5ff   : > { %v16453_v7 = vadd.f32 %v8539_v27, %v16291_v11  ;;  %v12776_v22 = vpop.f32.mrb[8].mxu1  ;;  %v12713_v51 = vpop.f32.mrb[9].mxu0 }
 0x600   : > { %v8538_v38 = vsel %vm5584_vm10, %v8512_v49, %v8513_v1  ;;  %v12714_v30 = vadd.f32 %v12713_v51, %v12712_v16  ;;  %v12777_v34 = vpop.f32.mrb[9].mxu1  ;;  %v12715_v46 = vpop.f32.mrb[10].mxu0 }
 0x601   : > { %v16458_v35 = vadd.f32 %v8538_v38, %v16297_v40  ;;  %v16460_v25 = vadd.f32 %v12777_v34, %v12776_v22  ;;  %v12779_v57 = vpop.f32.mrb[10].mxu1  ;;  %v12716_v19 = vpop.f32.mrb[11].mxu0 }
 0x602   : > { %v8464_v11 = vadd.f32 %v12714_v30, %v16399_v56  ;;  %v12717_v0 = vadd.f32 %v12716_v19, %v12715_v46  ;;  %v12780_v61 = vpop.f32.mrb[11].mxu1  ;;  %v13743_v30 = vld [vmem:[#allocation10 + $0xa8] sm:$0xff]  }
 0x603   : > { %v16464_v37 = vadd.f32 %v12780_v61, %v12779_v57  ;;  %v13747_v57 = vld [vmem:[#allocation13 + $0x8] sm:$0xff]   ;;  %12991 = vmatpush3.bf16.msra.mxu1 %v13743_v30 }
 0x604   : > { %v8514_v54 = vrot.slane %v8464_v11, 3  ;;  %v8467_v33 = vadd.f32 %v12717_v0, %v16401_v24  ;;  %12992 = vmatprep.subr.bf16.mxu1 %v14076_v9 }
 0x606   : > { %v8537_v44 = vsel %vm5584_vm10, %v8513_v1, %v8514_v54  ;;  %v8515_v40 = vrot.slane %v8467_v33, 3  ;;  %v12718_v53 = vpop.f32.mrb[12].mxu0  ;;  %v13744_v33 = vld [vmem:[#allocation10 + $0xb0] sm:$0xff]  }
 0x607   : > { %v16470_v45 = vadd.f32 %v8537_v44, %v16307_v3  ;;  %v12782_v14 = vpop.f32.mrb[12].mxu1  ;;  %v12719_v55 = vpop.f32.mrb[13].mxu0  ;;  %12993 = vmatpush3.bf16.msra.mxu1 %v13744_v33 }
 0x608   : > { %v8536_v56 = vsel %vm5584_vm10, %v8514_v54, %v8515_v40  ;;  %v12720_v47 = vadd.f32 %v12719_v55, %v12718_v53  ;;  %v12783_v49 = vpop.f32.mrb[13].mxu1  ;;  %v12721_v13 = vpop.f32.mrb[14].mxu0  ;;  %12994 = vmatprep.subr.bf16.mxu1 %v14076_v9 }
 0x609   : > { %v16475_v27 = vadd.f32 %v8536_v56, %v16313_v12  ;;  %v16477_v24 = vadd.f32 %v12783_v49, %v12782_v14  ;;  %v12785_v16 = vpop.f32.mrb[14].mxu1  ;;  %v12722_v1 = vpop.f32.mrb[15].mxu0  ;;  %v13746_v12 = vld [vmem:[#allocation13] sm:$0xff]  }
 0x60a   : > { %v8472_v22 = vadd.f32 %v12720_v47, %v16403_v43  ;;  %v12723_v3 = vadd.f32 %v12722_v1, %v12721_v13  ;;  %v12786_v51 = vpop.f32.mrb[15].mxu1  ;;  %13001 = vmatpush3.bf16.msra.mxu0 %v13746_v12  ;;  %v13748_v47 = vld [vmem:[#allocation13 + $0x10] sm:$0xff]  }
 0x60b   : > { %v16482_v38 = vadd.f32 %v12786_v51, %v12785_v16  ;;  %13002 = vmatprep.subr.bf16.mxu0 %v14076_v9  ;;  %12995 = vmatpush3.bf16.msra.mxu1 %v13745_v63 }
 0x60c   : > { %v8516_v34 = vrot.slane %v8472_v22, 3  ;;  %v8475_v46 = vadd.f32 %v12723_v3, %v16405_v23  ;;  %v13749_v3 = vld [vmem:[#allocation13 + $0x18] sm:$0xff]  }
 0x60e   : > { %v8535_v43 = vsel %vm5584_vm10, %v8515_v40, %v8516_v34  ;;  %v8517_v19 = vrot.slane %v8475_v46, 3  ;;  %v12724_v11 = vpop.f32.mrb[16].mxu0  ;;  %13003 = vmatpush3.bf16.msra.mxu0 %v13747_v57 }
 0x60f   : > { %v16490_v0 = vadd.f32 %v8535_v43, %v16323_v52  ;;  %v12788_v61 = vpop.f32.mrb[16].mxu1  ;;  %v12725_v54 = vpop.f32.mrb[17].mxu0  ;;  %13004 = vmatprep.subr.bf16.mxu0 %v14076_v9 }
 0x610   : > { %v8534_v23 = vsel %vm5584_vm10, %v8516_v34, %v8517_v19  ;;  %v12726_v44 = vadd.f32 %v12725_v54, %v12724_v11  ;;  %v12789_v53 = vpop.f32.mrb[17].mxu1  ;;  %v12727_v14 = vpop.f32.mrb[18].mxu0 }
 0x611   : > { %v16496_v40 = vadd.f32 %v8534_v23, %v16331_v10  ;;  %v16498_v55 = vadd.f32 %v12789_v53, %v12788_v61  ;;  %v12791_v56 = vpop.f32.mrb[18].mxu1  ;;  %v12728_v52 = vpop.f32.mrb[19].mxu0  ;;  %v13750_v23 = vld [vmem:[#allocation13 + $0x20] sm:$0xff]  }
 0x612   : > { %v8480_v49 = vadd.f32 %v12726_v44, %v16407_v21  ;;  %v12729_v13 = vadd.f32 %v12728_v52, %v12727_v14  ;;  %v12792_v16 = vpop.f32.mrb[19].mxu1  ;;  %13005 = vmatpush3.bf16.msra.mxu0 %v13748_v47 }
 0x613   : > { %v16502_v1 = vadd.f32 %v12792_v16, %v12791_v56  ;;  %13006 = vmatprep.subr.bf16.mxu0 %v14076_v9 }
 0x614   : > { %v8518_v22 = vrot.slane %v8480_v49, 3  ;;  %v8483_v10 = vadd.f32 %v12729_v13, %v16409_v50 }
 0x616   : > { %v8533_v51 = vsel %vm5584_vm10, %v8517_v19, %v8518_v22  ;;  %v8519_v30 = vrot.slane %v8483_v10, 3  ;;  %v12730_v21 = vpop.f32.mrb[20].mxu0  ;;  %13007 = vmatpush3.bf16.msra.mxu0 %v13749_v3 }
 0x617   : > { %v16510_v12 = vadd.f32 %v8533_v51, %v16339_v5  ;;  %v12794_v34 = vpop.f32.mrb[20].mxu1  ;;  %v12731_v46 = vpop.f32.mrb[21].mxu0  ;;  %13008 = vmatprep.subr.bf16.mxu0 %v14076_v9 }
 0x618   : > { %v8532_v50 = vsel %vm5584_vm10, %v8518_v22, %v8519_v30  ;;  %v12732_v57 = vadd.f32 %v12731_v46, %v12730_v21  ;;  %v12795_v43 = vpop.f32.mrb[21].mxu1  ;;  %v12733_v11 = vpop.f32.mrb[22].mxu0 }
 0x619   : > { %v16515_v61 = vadd.f32 %v8532_v50, %v16347_v31  ;;  %v16517_v19 = vadd.f32 %v12795_v43, %v12794_v34  ;;  %v12797_v54 = vpop.f32.mrb[22].mxu1  ;;  %v12734_v33 = vpop.f32.mrb[23].mxu0  ;;  %v13751_v31 = vld [vmem:[#allocation13 + $0x28] sm:$0xff]  }
 0x61a   : > { %v8488_v5 = vadd.f32 %v12732_v57, %v16411_v20  ;;  %v12735_v44 = vadd.f32 %v12734_v33, %v12733_v11  ;;  %v12798_v53 = vpop.f32.mrb[23].mxu1  ;;  %13009 = vmatpush3.bf16.msra.mxu0 %v13750_v23 }
 0x61b   : > { %v16521_v14 = vadd.f32 %v12798_v53, %v12797_v54  ;;  %13010 = vmatprep.subr.bf16.mxu0 %v14076_v9 }
 0x61c   : > { %v8520_v56 = vrot.slane %v8488_v5, 3  ;;  %v8491_v52 = vadd.f32 %v12735_v44, %v16413_v48 }
 0x61e   : > { %v8531_v47 = vsel %vm5584_vm10, %v8519_v30, %v8520_v56  ;;  %v8521_v49 = vrot.slane %v8491_v52, 3  ;;  %v12736_v13 = vpop.f32.mrb[24].mxu0  ;;  %13011 = vmatpush3.bf16.msra.mxu0 %v13751_v31 }
 0x61f   : > { %v16528_v20 = vadd.f32 %v8531_v47, %v16353_v62  ;;  %v12800_v16 = vpop.f32.mrb[24].mxu1  ;;  %v12737_v63 = vpop.f32.mrb[25].mxu0  ;;  %13012 = vmatprep.subr.bf16.mxu0 %v14076_v9 }
 0x620   : > { %v8530_v22 = vsel %vm5584_vm10, %v8520_v56, %v8521_v49  ;;  %v12738_v10 = vadd.f32 %v12737_v63, %v12736_v13  ;;  %v12801_v3 = vpop.f32.mrb[25].mxu1  ;;  %v12739_v48 = vpop.f32.mrb[26].mxu0 }
 0x621   : > { %v16533_v51 = vadd.f32 %v8530_v22, %v16359_v58  ;;  %v16535_v21 = vadd.f32 %v12801_v3, %v12800_v16  ;;  %v12803_v30 = vpop.f32.mrb[26].mxu1  ;;  %v12740_v34 = vpop.f32.mrb[27].mxu0 }
 0x622   : > { %v8496_v46 = vadd.f32 %v12738_v10, %v16415_v39  ;;  %v12741_v62 = vadd.f32 %v12740_v34, %v12739_v48  ;;  %v12804_v50 = vpop.f32.mrb[27].mxu1 }
 0x623   : > { %v16539_v57 = vadd.f32 %v12804_v50, %v12803_v30 }
 0x624   : > { %v8522_v43 = vrot.slane %v8496_v46, 3  ;;  %v8499_v11 = vadd.f32 %v12741_v62, %v16417_v15 }
 0x626   : > { %v8529_v58 = vsel %vm5584_vm10, %v8521_v49, %v8522_v43  ;;  %v8523_v54 = vrot.slane %v8499_v11, 3  ;;  %v12742_v33 = vpop.f32.mrb[28].mxu0 }
 0x627   : > { %v16545_v23 = vadd.f32 %v8529_v58, %v16365_v28  ;;  %v12806_v5 = vpop.f32.mrb[28].mxu1  ;;  %v12743_v44 = vpop.f32.mrb[29].mxu0 }
 0x628   : > { %v8528_v39 = vsel %vm5584_vm10, %v8522_v43, %v8523_v54  ;;  %v12744_v53 = vadd.f32 %v12743_v44, %v12742_v33  ;;  %v12807_v56 = vpop.f32.mrb[29].mxu1  ;;  %v12745_v52 = vpop.f32.mrb[30].mxu0 }
 0x629   : > { %v16550_v31 = vadd.f32 %v8528_v39, %v16371_v29  ;;  %v16552_v15 = vadd.f32 %v12807_v56, %v12806_v5  ;;  %v12809_v47 = vpop.f32.mrb[30].mxu1  ;;  %v12746_v49 = vpop.f32.mrb[31].mxu0 }
 0x62a   : > { %v8504_v13 = vadd.f32 %v12744_v53, %v16422_v8  ;;  %v12747_v16 = vadd.f32 %v12746_v49, %v12745_v52  ;;  %v12810_v28 = vpop.f32.mrb[31].mxu1 }
 0x62b   : > { %v16555_v63 = vadd.f32 %v12810_v28, %v12809_v47 }
 0x62c   : > { %v8524_v22 = vrot.slane %v8504_v13, 3  ;;  %v8507_v10 = vadd.f32 %v12747_v16, %v16424_v4 }
 0x62e   : > { %v8527_v3 = vsel %vm5584_vm10, %v8523_v54, %v8524_v22  ;;  %v8525_v48 = vrot.slane %v8507_v10, 3  ;;  %v12828_v30 = vpop.f32.mrb[32].mxu0 }
 0x62f   : > { %v16561_v29 = vadd.f32 %v8527_v3, %v16377_v26  ;;  %v12892_v34 = vpop.f32.mrb[32].mxu1  ;;  %v12829_v46 = vpop.f32.mrb[33].mxu0 }
 0x630   : > { %v8526_v8 = vsel %vm5584_vm10, %v8524_v22, %v8525_v48  ;;  %v8541_v62 = vsel %vm5584_vm10, %v8525_v48, %v8510_v17  ;;  %v12830_v50 = vadd.f32 %v12829_v46, %v12828_v30  ;;  %v12893_v4 = vpop.f32.mrb[33].mxu1  ;;  %v12831_v43 = vpop.f32.mrb[34].mxu0 }
 0x631   : > { %v16570_v11 = vadd.f32 %v8526_v8, %v16386_v2  ;;  %v16573_v58 = vadd.f32 %v8541_v62, %v16389_v41  ;;  %v12894_v26 = vadd.f32 %v12893_v4, %v12892_v34  ;;  %v12895_v54 = vpop.f32.mrb[34].mxu1  ;;  %v12832_v33 = vpop.f32.mrb[35].mxu0 }
 0x632   : > { %v9074_v5 = vadd.f32 %v12830_v50, %v16426_v6  ;;  %v12833_v44 = vadd.f32 %v12832_v33, %v12831_v43  ;;  %v12896_v39 = vpop.f32.mrb[35].mxu1 }
 0x633   : > { %v12897_v59 = vadd.f32 %v12896_v39, %v12895_v54 }
 0x634   : > { %v16576_v53 = vadd.f32 %v12894_v26, %v9074_v5  ;;  %v9077_v17 = vadd.f32 %v12833_v44, %v16432_v42  ;;  %v16588_v26 = vld [vmem:[#allocation8 + $0x2] ss:$0 sm:$0xff] }
 0x636   : > { %v9174_v56 = vadd.f32 %v12897_v59, %v9077_v17  ;;  %v12834_v52 = vpop.f32.mrb[36].mxu0  ;;  %v9233_v41 = vrot.slane %v16576_v53, 4 }
 0x637   : > { %v12898_v2 = vpop.f32.mrb[36].mxu1  ;;  %v12835_v47 = vpop.f32.mrb[37].mxu0 }
 0x638   : > { %v9234_v49 = vrot.slane %v9174_v56, 4  ;;  %v12836_v13 = vadd.f32 %v12835_v47, %v12834_v52  ;;  %v12899_v16 = vpop.f32.mrb[37].mxu1  ;;  %v12837_v28 = vpop.f32.mrb[38].mxu0 }
 0x639   : > { %v12900_v6 = vadd.f32 %v12899_v16, %v12898_v2  ;;  %v12901_v22 = vpop.f32.mrb[38].mxu1  ;;  %v12838_v10 = vpop.f32.mrb[39].mxu0 }
 0x63a   : > { %v9264_v42 = vsel %vm9249_vm13, %v9233_v41, %v9234_v49  ;;  %v9082_v3 = vadd.f32 %v12836_v13, %v16443_v36  ;;  %v12839_v48 = vadd.f32 %v12838_v10, %v12837_v28  ;;  %v12902_v30 = vpop.f32.mrb[39].mxu1 }
 0x63b   : > { %v9266_v34 = vadd.f32 %v9264_v42, %v16441_v60  ;;  %v12903_v46 = vadd.f32 %v12902_v30, %v12901_v22  ;;  %v17275_v22 = vld [vmem:[#allocation78_spill] sm:$0xff] }
 0x63c   : > { %v9179_v8 = vadd.f32 %v12900_v6, %v9082_v3  ;;  %v9085_v62 = vadd.f32 %v12839_v48, %v16447_v18  ;;  %vm9322_vm14 = vcmp.le.s32.totalorder %v17275_v22, 11 }
 0x63d   : > { %v9289_v18 = vadd.f32 %v16588_v26, %v9266_v34 }
 0x63e   : > { %v9235_v50 = vrot.slane %v9179_v8, 4  ;;  %v9182_v4 = vadd.f32 %v12903_v46, %v9085_v62  ;;  %v12840_v43 = vpop.f32.mrb[40].mxu0 }
 0x63f   : > { %v12904_v54 = vpop.f32.mrb[40].mxu1  ;;  %v12841_v33 = vpop.f32.mrb[41].mxu0  ;;  %v9305_v3 = vmax.f32 %v9289_v18, 0.0 }
 0x640   : > { %v9263_v5 = vsel %vm9249_vm13, %v9234_v49, %v9235_v50  ;;  %v9236_v44 = vrot.slane %v9182_v4, 4  ;;  %v12842_v36 = vadd.f32 %v12841_v33, %v12840_v43  ;;  %v12905_v39 = vpop.f32.mrb[41].mxu1  ;;  %v12843_v59 = vpop.f32.mrb[42].mxu0 }
 0x641   : > { %v9267_v60 = vadd.f32 %v9263_v5, %v16453_v7  ;;  %v12906_v17 = vadd.f32 %v12905_v39, %v12904_v54  ;;  %v12907_v56 = vpop.f32.mrb[42].mxu1  ;;  %v12844_v52 = vpop.f32.mrb[43].mxu0 }
 0x642   : > { %v9262_v2 = vsel %vm9249_vm13, %v9235_v50, %v9236_v44  ;;  %v9090_v47 = vadd.f32 %v12842_v36, %v16460_v25  ;;  %v12845_v13 = vadd.f32 %v12844_v52, %v12843_v59  ;;  %v12908_v16 = vpop.f32.mrb[43].mxu1 }
 0x643   : > { %v9290_v49 = vadd.f32 %v16588_v26, %v9267_v60  ;;  %v9268_v28 = vadd.f32 %v9262_v2, %v16458_v35  ;;  %v12909_v6 = vadd.f32 %v12908_v16, %v12907_v56 }
 0x644   : > { %v9187_v7 = vadd.f32 %v12906_v17, %v9090_v47  ;;  %v9093_v10 = vadd.f32 %v12845_v13, %v16464_v37 }
 0x645   : > { %v9306_v42 = vmax.f32 %v9290_v49, 0.0  ;;  %v9291_v37 = vadd.f32 %v16588_v26, %v9268_v28 }
 0x646   : > { %v9237_v48 = vrot.slane %v9187_v7, 4  ;;  %v9190_v30 = vadd.f32 %v12909_v6, %v9093_v10  ;;  %v12846_v34 = vpop.f32.mrb[44].mxu0 }
 0x647   : > { %v9324_v25 = vsel %vm9322_vm14, %v9306_v42, 0.0  ;;  %v12910_v46 = vpop.f32.mrb[44].mxu1  ;;  %v12847_v8 = vpop.f32.mrb[45].mxu0  ;;  %v9307_v28 = vmax.f32 %v9291_v37, 0.0 }
 0x648   : > { %v9339_v62 = vmax.f32 %v9305_v3, %v9324_v25  ;;  %v9261_v35 = vsel %vm9249_vm13, %v9236_v44, %v9237_v48  ;;  %v9238_v50 = vrot.slane %v9190_v30, 4  ;;  %v12848_v4 = vadd.f32 %v12847_v8, %v12846_v34  ;;  %v12911_v43 = vpop.f32.mrb[45].mxu1  ;;  %v12849_v54 = vpop.f32.mrb[46].mxu0 }
 0x649   : > { %v9269_v33 = vadd.f32 %v9261_v35, %v16470_v45  ;;  %v12912_v5 = vadd.f32 %v12911_v43, %v12910_v46  ;;  %v12913_v36 = vpop.f32.mrb[46].mxu1  ;;  %v12850_v39 = vpop.f32.mrb[47].mxu0 }
 0x64a   : > { %v9340_v59 = vrot.slane %v9339_v62, 4  ;;  %v9260_v60 = vsel %vm9249_vm13, %v9237_v48, %v9238_v50  ;;  %v9098_v17 = vadd.f32 %v12848_v4, %v16477_v24  ;;  %v12851_v56 = vadd.f32 %v12850_v39, %v12849_v54  ;;  %v12914_v52 = vpop.f32.mrb[47].mxu1 }
 0x64b   : > { %v9292_v44 = vadd.f32 %v16588_v26, %v9269_v33  ;;  %v9270_v18 = vadd.f32 %v9260_v60, %v16475_v27  ;;  %v12915_v2 = vadd.f32 %v12914_v52, %v12913_v36 }
 0x64c   : > { %v9341_v47 = vmax.f32 %v9339_v62, %v9340_v59  ;;  %v9195_v13 = vadd.f32 %v12912_v5, %v9098_v17  ;;  %v9101_v45 = vadd.f32 %v12851_v56, %v16482_v38 }
 0x64d   : > { %v9308_v16 = vmax.f32 %v9292_v44, 0.0  ;;  %v9293_v38 = vadd.f32 %v16588_v26, %v9270_v18 }
 0x64e   : > { %v9342_v49 = vrot.slane %v9341_v47, 2  ;;  %v9239_v6 = vrot.slane %v9195_v13, 4  ;;  %v9198_v7 = vadd.f32 %v12915_v2, %v9101_v45  ;;  %v12852_v10 = vpop.f32.mrb[48].mxu0 }
 0x64f   : > { %v9326_v24 = vsel %vm9322_vm14, %v9308_v16, 0.0  ;;  %v12916_v42 = vpop.f32.mrb[48].mxu1  ;;  %v12853_v3 = vpop.f32.mrb[49].mxu0  ;;  %v9309_v44 = vmax.f32 %v9293_v38, 0.0 }
 0x650   : > { %v9346_v48 = vmax.f32 %v9307_v28, %v9326_v24  ;;  %v9259_v27 = vsel %vm9249_vm13, %v9238_v50, %v9239_v6  ;;  %v9240_v30 = vrot.slane %v9198_v7, 4  ;;  %v12917_v34 = vpop.f32.mrb[49].mxu1  ;;  %v12855_v25 = vpop.f32.mrb[50].mxu0  ;;  %v12854_v8 = vadd.f32 %v12853_v3, %v12852_v10 }
 0x651   : > { %v9271_v46 = vadd.f32 %v9259_v27, %v16490_v0  ;;  %v12918_v62 = vadd.f32 %v12917_v34, %v12916_v42  ;;  %v12919_v35 = vpop.f32.mrb[50].mxu1  ;;  %v12856_v4 = vpop.f32.mrb[51].mxu0  ;;  %v9343_v43 = vmax.f32 %v9341_v47, %v9342_v49 }
 0x652   : > { %v9347_v54 = vrot.slane %v9346_v48, 4  ;;  %v9258_v37 = vsel %vm9249_vm13, %v9239_v6, %v9240_v30  ;;  %v12857_v33 = vadd.f32 %v12856_v4, %v12855_v25  ;;  %v12920_v5 = vpop.f32.mrb[51].mxu1  ;;  %v9106_v39 = vadd.f32 %v12854_v8, %v16498_v55 }
 0x653   : > { %v9294_v50 = vadd.f32 %v16588_v26, %v9271_v46  ;;  %v9272_v36 = vadd.f32 %v9258_v37, %v16496_v40  ;;  %v12921_v59 = vadd.f32 %v12920_v5, %v12919_v35  ;;  %v9344_v47 = vrot.slane %v9343_v43, 1 }
 0x654   : > { %v9348_v60 = vmax.f32 %v9346_v48, %v9347_v54  ;;  %v9109_v0 = vadd.f32 %v12857_v33, %v16502_v1  ;;  %v9203_v56 = vadd.f32 %v12918_v62, %v9106_v39 }
 0x655   : > { %v9310_v17 = vmax.f32 %v9294_v50, 0.0  ;;  %v9295_v1 = vadd.f32 %v16588_v26, %v9272_v36  ;;  %v9345_v54 = vmax.f32 %v9343_v43, %v9344_v47 }
 0x656   : > { %v9349_v52 = vrot.slane %v9348_v60, 2  ;;  %v9206_v18 = vadd.f32 %v12921_v59, %v9109_v0  ;;  %v12858_v2 = vpop.f32.mrb[52].mxu0  ;;  %v9241_v45 = vrot.slane %v9203_v56, 4 }
 0x657   : > { %v9328_v13 = vsel %vm9322_vm14, %v9310_v17, 0.0  ;;  %v12922_v16 = vpop.f32.mrb[52].mxu1  ;;  %v12859_v49 = vpop.f32.mrb[53].mxu0 }
 0x658   : > { %v9350_v40 = vmax.f32 %v9348_v60, %v9349_v52  ;;  %v9353_v28 = vmax.f32 %v9309_v44, %v9328_v13  ;;  %v9242_v55 = vrot.slane %v9206_v18, 4  ;;  %v12860_v6 = vadd.f32 %v12859_v49, %v12858_v2  ;;  %v12923_v7 = vpop.f32.mrb[53].mxu1  ;;  %v12861_v10 = vpop.f32.mrb[54].mxu0 }
 0x659   : > { %v9257_v24 = vsel %vm9249_vm13, %v9240_v30, %v9241_v45  ;;  %v12924_v42 = vadd.f32 %v12923_v7, %v12922_v16  ;;  %v12925_v3 = vpop.f32.mrb[54].mxu1  ;;  %v12862_v48 = vpop.f32.mrb[55].mxu0  ;;  %v9311_v60 = vmax.f32 %v9295_v1, 0.0 }
 0x65a   : > { %v9351_v27 = vrot.slane %v9350_v40, 1  ;;  %v9354_v34 = vrot.slane %v9353_v28, 4  ;;  %v9273_v25 = vadd.f32 %v9257_v24, %v16510_v12  ;;  %v9256_v38 = vsel %vm9249_vm13, %v9241_v45, %v9242_v55  ;;  %v12926_v46 = vpop.f32.mrb[55].mxu1 }
 0x65b   : > { %v9274_v8 = vadd.f32 %v9256_v38, %v16515_v61  ;;  %v9114_v62 = vadd.f32 %v12860_v6, %v16517_v19  ;;  %v12863_v35 = vadd.f32 %v12862_v48, %v12861_v10  ;;  %v12927_v4 = vadd.f32 %v12926_v46, %v12925_v3 }
 0x65c   : > { %v9352_v37 = vmax.f32 %v9350_v40, %v9351_v27  ;;  %v9355_v30 = vmax.f32 %v9353_v28, %v9354_v34  ;;  %v9296_v33 = vadd.f32 %v16588_v26, %v9273_v25 }
 0x65d   : > { %v9211_v5 = vadd.f32 %v12924_v42, %v9114_v62  ;;  %v9117_v50 = vadd.f32 %v12863_v35, %v16521_v14  ;;  %v9297_v1 = vadd.f32 %v16588_v26, %v9274_v8 }
 0x65e   : > { %v9442_v12 = vsel %vm9403_vm3, %v9352_v37, %v9345_v54  ;;  %v9356_v36 = vrot.slane %v9355_v30, 2  ;;  %v9312_v39 = vmax.f32 %v9296_v33, 0.0  ;;  %v12864_v59 = vpop.f32.mrb[56].mxu0 }
 0x65f   : > { %v9243_v0 = vrot.slane %v9211_v5, 4  ;;  %v9214_v61 = vadd.f32 %v12927_v4, %v9117_v50  ;;  %v12928_v17 = vpop.f32.mrb[56].mxu1  ;;  %v12865_v19 = vpop.f32.mrb[57].mxu0  ;;  %v9313_v8 = vmax.f32 %v9297_v1, 0.0 }
 0x660   : > { %v9357_v56 = vmax.f32 %v9355_v30, %v9356_v36  ;;  %v9330_v43 = vsel %vm9322_vm14, %v9312_v39, 0.0  ;;  %v12866_v52 = vadd.f32 %v12865_v19, %v12864_v59  ;;  %v12929_v44 = vpop.f32.mrb[57].mxu1  ;;  %v12867_v18 = vpop.f32.mrb[58].mxu0 }
 0x661   : > { %v9360_v2 = vmax.f32 %v9311_v60, %v9330_v43  ;;  %v9255_v14 = vsel %vm9249_vm13, %v9242_v55, %v9243_v0  ;;  %v9244_v47 = vrot.slane %v9214_v61, 4  ;;  %v12930_v13 = vadd.f32 %v12929_v44, %v12928_v17  ;;  %v12931_v45 = vpop.f32.mrb[58].mxu1  ;;  %v12868_v16 = vpop.f32.mrb[59].mxu0 }
 0x662   : > { %v9358_v49 = vrot.slane %v9357_v56, 1  ;;  %v9275_v40 = vadd.f32 %v9255_v14, %v16528_v20  ;;  %v9122_v28 = vadd.f32 %v12866_v52, %v16535_v21  ;;  %v12869_v6 = vadd.f32 %v12868_v16, %v12867_v18  ;;  %v12932_v7 = vpop.f32.mrb[59].mxu1 }
 0x663   : > { %v9361_v10 = vrot.slane %v9360_v2, 4  ;;  %v9254_v24 = vsel %vm9249_vm13, %v9243_v0, %v9244_v47  ;;  %v12933_v42 = vadd.f32 %v12932_v7, %v12931_v45 }
 0x664   : > { %v9359_v3 = vmax.f32 %v9357_v56, %v9358_v49  ;;  %v9298_v55 = vadd.f32 %v16588_v26, %v9275_v40  ;;  %v9276_v48 = vadd.f32 %v9254_v24, %v16533_v51  ;;  %v9219_v27 = vadd.f32 %v12930_v13, %v9122_v28 }
 0x665   : > { %v9362_v34 = vmax.f32 %v9360_v2, %v9361_v10  ;;  %v9125_v20 = vadd.f32 %v12869_v6, %v16539_v57 }
 0x666   : > { %v9443_v21 = vsel %vm9405_vm4, %v9359_v3, %v9442_v12  ;;  %v9314_v25 = vmax.f32 %v9298_v55, 0.0  ;;  %v9245_v38 = vrot.slane %v9219_v27, 4  ;;  %v12870_v46 = vpop.f32.mrb[60].mxu0  ;;  %v9299_v60 = vadd.f32 %v16588_v26, %v9276_v48 }
 0x667   : > { %v9363_v62 = vrot.slane %v9362_v34, 2  ;;  %v9222_v35 = vadd.f32 %v12933_v42, %v9125_v20  ;;  %v12934_v4 = vpop.f32.mrb[60].mxu1  ;;  %v12871_v54 = vpop.f32.mrb[61].mxu0 }
 0x668   : > { %v9332_v37 = vsel %vm9322_vm14, %v9314_v25, 0.0  ;;  %v9253_v51 = vsel %vm9249_vm13, %v9244_v47, %v9245_v38  ;;  %v12872_v30 = vadd.f32 %v12871_v54, %v12870_v46  ;;  %v12935_v33 = vpop.f32.mrb[61].mxu1  ;;  %v12873_v5 = vpop.f32.mrb[62].mxu0 }
 0x669   : > { %v9364_v57 = vmax.f32 %v9362_v34, %v9363_v62  ;;  %v9367_v50 = vmax.f32 %v9313_v8, %v9332_v37  ;;  %v9277_v12 = vadd.f32 %v9253_v51, %v16545_v23  ;;  %v9246_v36 = vrot.slane %v9222_v35, 4  ;;  %v12937_v39 = vpop.f32.mrb[62].mxu1  ;;  %v12874_v59 = vpop.f32.mrb[63].mxu0 }
 0x66a   : > { %v9130_v0 = vadd.f32 %v12872_v30, %v16552_v15  ;;  %v12936_v61 = vadd.f32 %v12935_v33, %v12934_v4  ;;  %v12875_v17 = vadd.f32 %v12874_v59, %v12873_v5  ;;  %v12938_v19 = vpop.f32.mrb[63].mxu1  ;;  %v9315_v15 = vmax.f32 %v9299_v60, 0.0 }
 0x66b   : > { %v9365_v56 = vrot.slane %v9364_v57, 1  ;;  %v9368_v43 = vrot.slane %v9367_v50, 4  ;;  %v9300_v52 = vadd.f32 %v16588_v26, %v9277_v12  ;;  %v9252_v44 = vsel %vm9249_vm13, %v9245_v38, %v9246_v36 }
 0x66c   : > { %v9278_v18 = vadd.f32 %v9252_v44, %v16550_v31  ;;  %v9227_v23 = vadd.f32 %v12936_v61, %v9130_v0  ;;  %v9133_v2 = vadd.f32 %v12875_v17, %v16555_v63  ;;  %v12939_v14 = vadd.f32 %v12938_v19, %v12937_v39 }
 0x66d   : > { %v9366_v47 = vmax.f32 %v9364_v57, %v9365_v56  ;;  %v9369_v13 = vmax.f32 %v9367_v50, %v9368_v43  ;;  %v9316_v45 = vmax.f32 %v9300_v52, 0.0 }
 0x66e   : > { %v9247_v16 = vrot.slane %v9227_v23, 4  ;;  %v9230_v49 = vadd.f32 %v12939_v14, %v9133_v2  ;;  %v12956_v40 = vpop.f32.mrb[64].mxu0  ;;  %v9301_v34 = vadd.f32 %v16588_v26, %v9278_v18  ;;  %v13752_v23 = vld [vmem:[#allocation13 + $0x30] sm:$0xff]   ;;  %v13753_v2 = vld [vmem:[#allocation13 + $0x38] sm:$0xff]  }
 0x66f   : > { %v9444_v28 = vsel %vm9407_vm5, %v9366_v47, %v9443_v21  ;;  %v9370_v6 = vrot.slane %v9369_v13, 2  ;;  %v9334_v7 = vsel %vm9322_vm14, %v9316_v45, 0.0  ;;  %v12957_v10 = vpop.f32.mrb[65].mxu0  ;;  %13013 = vmatpush3.bf16.msra.mxu0 %v13752_v23  ;;  %v10598_v14 = vld [vmem:[#allocation11] ss:$0 sm:$0xff] }
 0x670   : > { %v9374_v1 = vmax.f32 %v9315_v15, %v9334_v7  ;;  %v9251_v31 = vsel %vm9249_vm13, %v9246_v36, %v9247_v16  ;;  %v9248_v63 = vrot.slane %v9230_v49, 4  ;;  %v12959_v24 = vpop.f32.mrb[66].mxu0  ;;  %v12958_v55 = vadd.f32 %v12957_v10, %v12956_v40  ;;  %13014 = vmatprep.subr.bf16.mxu0 %v14076_v9 }
 0x671   : > { %v9371_v42 = vmax.f32 %v9369_v13, %v9370_v6  ;;  %v9279_v3 = vadd.f32 %v9251_v31, %v16561_v29  ;;  %v12960_v48 = vpop.f32.mrb[67].mxu0  ;;  %v9317_v51 = vmax.f32 %v9301_v34, 0.0  ;;  %v10623_v6 = vld [vmem:[#allocation14] ss:$0 sm:$0xff] }
 0x672   : > { %v9375_v27 = vrot.slane %v9374_v1, 4  ;;  %v9250_v20 = vsel %vm9249_vm13, %v9247_v16, %v9248_v63  ;;  %v9265_v21 = vsel %vm9249_vm13, %v9248_v63, %v9233_v41  ;;  %v9687_v47 = vadd.f32 %v12958_v55, %v10598_v14 }
 0x673   : > { %v9372_v25 = vrot.slane %v9371_v42, 1  ;;  %v9302_v38 = vadd.f32 %v16588_v26, %v9279_v3  ;;  %v9280_v46 = vadd.f32 %v9250_v20, %v16570_v11  ;;  %v9281_v29 = vadd.f32 %v9265_v21, %v16573_v58  ;;  %13015 = vmatpush3.bf16.msra.mxu0 %v13753_v2 }
 0x674   : > { %v9376_v62 = vmax.f32 %v9374_v1, %v9375_v27 }
 0x675   : > { %v9373_v8 = vmax.f32 %v9371_v42, %v9372_v25  ;;  %v9318_v35 = vmax.f32 %v9302_v38, 0.0  ;;  %v9303_v4 = vadd.f32 %v16588_v26, %v9280_v46  ;;  %v9304_v54 = vadd.f32 %v16588_v26, %v9281_v29 }
 0x676   : > { %v9377_v37 = vrot.slane %v9376_v62, 2 }
 0x677   : > { %v9445_v53 = vsel %vm9409_vm6, %v9373_v8, %v9444_v28  ;;  %v9336_v32 = vsel %vm9322_vm14, %v9318_v35, 0.0  ;;  %v9319_v41 = vmax.f32 %v9303_v4, 0.0  ;;  %v9320_v30 = vmax.f32 %v9304_v54, 0.0 }
 0x678   : > { %v9378_v33 = vmax.f32 %v9376_v62, %v9377_v37  ;;  %v9381_v11 = vmax.f32 %v9317_v51, %v9336_v32 }
 0x679   : > { %v9338_v58 = vsel %vm9322_vm14, %v9320_v30, 0.0 }
 0x67a   : > { %v9379_v5 = vrot.slane %v9378_v33, 1  ;;  %v9382_v57 = vrot.slane %v9381_v11, 4  ;;  %v9388_v50 = vmax.f32 %v9319_v41, %v9338_v58 }
 0x67c   : > { %v9380_v12 = vmax.f32 %v9378_v33, %v9379_v5  ;;  %v9383_v36 = vmax.f32 %v9381_v11, %v9382_v57  ;;  %v9389_v26 = vrot.slane %v9388_v50, 4 }
 0x67e   : > { %v9446_v39 = vsel %vm9411_vm7, %v9380_v12, %v9445_v53  ;;  %v9384_v59 = vrot.slane %v9383_v36, 2  ;;  %v9390_v60 = vmax.f32 %v9388_v50, %v9389_v26 }
 0x680   : > { %v9385_v0 = vmax.f32 %v9383_v36, %v9384_v59  ;;  %v9391_v61 = vrot.slane %v9390_v60, 2 }
 0x682   : > { %v9386_v17 = vrot.slane %v9385_v0, 1  ;;  %v9392_v19 = vmax.f32 %v9390_v60, %v9391_v61 }
 0x684   : > { %v9387_v56 = vmax.f32 %v9385_v0, %v9386_v17  ;;  %v9393_v43 = vrot.slane %v9392_v19, 1 }
 0x686   : > { %v9447_v52 = vsel %vm9413_vm8, %v9387_v56, %v9446_v39  ;;  %v9394_v22 = vmax.f32 %v9392_v19, %v9393_v43 }
 0x688   : > { %v9448_v44 = vsel %vm9415_vm9, %v9394_v22, %v9447_v52 }
 0x689   : > { %v9452_v18 = vpack.c.bf16 %v9448_v44, %v9448_v44 }
 0x68b   : > { %12997 = vmatmul.mubr.bf16.vlgmr.msra.gmra.mrb[64].mxu1 %v9452_v18 }
 0x75e   : > { %v9726_v13 = vpop.f32.mrb[64].mxu1 }
 0x75f   : > { %v9727_v45 = vadd.f32 %v9726_v13, %v9687_v47  ;;  %v12998_v15 = vpop.f32.mrb[65].mxu1 }
 0x760   : > { %v9729_v16 = vpop.f32.mrb[66].mxu1 }
 0x761   : > { %v9732_v49 = vmax.f32 %v9727_v45, 0.0  ;;  %v12999_v40 = vpop.f32.mrb[67].mxu1 }
 0x763   : > { %v9733_v28 = vpack.c.bf16 %v9732_v49, %v9732_v49 }
 0x765   : > { %13017 = vmatmul.mubr.bf16.vlgmr.msra.gmra.mrb[68].mxu0 %v9733_v28 }
 0x838   : > { %v9839_v7 = vpop.f32.mrb[68].mxu0 }
 0x839   : > { %v9840_v9 = vadd.f32 %v10623_v6, %v9839_v7  ;;  %v13018_v10 = vpop.f32.mrb[69].mxu0 }
 0x83a   : > { %v9842_v1 = vpop.f32.mrb[70].mxu0 }
 0x83b   : > { %9845 = vst [vmem:[%s418_s9] sm:$0xff] %v9840_v9  ;;  %v13019_v31 = vpop.f32.mrb[71].mxu0 }
 0x83c   : > { %13993 = shalt.err (!%p13990_p10)
}
 0x83d   : > { %s13994_s25 = scalar_lea.hbm %s16695_s20, 128  ;;  %s13998_s1 = scalar_lea.hbm %s16747_s8, 256 }
 0x83e   : > { %p13995_p11 = scmp.ne.s32.totalorder %s16695_s20, %s13994_s25  ;;  %p13999_p9 = scmp.lt.u32.totalorder %s16695_s20, %s16747_s8 }
 0x83f   : > { %p14000_p7 = scmp.lt.u32.totalorder %s13998_s1, %s13994_s25  ;;  %p14002_p12 = scmp.lt.u32.totalorder %s13994_s25, %s16695_s20 }
 0x840   : > { %p13996_p0 = pnand %p13995_p11, %p17276_p13 }
 0x841   : > { %p14001_p4 = por %p14000_p7, %p13999_p9 }
 0x842   : > { %p13997_p5 = pneg %p13996_p0 }
 0x843   : > { %p14003_p1 = por %p14002_p12, %p14001_p4 }
 0x845   : > { %p14004_p3 = pnand %p14003_p1, %p13997_p5 }
 0x847   : > { %14007 = shalt.err (!%p14004_p3)
}
 0x848   : > { %13053 = dma.vmem_to_hbm [thread:$0]  (%p17276_p13), %s16697_s16, 128, %s16695_s20, %s9847_s21  }
 0x849 PF: > { %s9872_s9 = sand.u32 1, %s14050_s27   ;;  %p17277_p2 = scmp.ne.s32.totalorder %s16965_s2, 0 }
 0x84a   : > { %p17278_p8 = scmp.ge.s32.totalorder %s14062_s30, 2  ;;  %s9873_s17 = scalar_lea.sflag [#allocation4], %s9872_s9 }
 0x84c   : > { %p13082_p6 = pnand %p17278_p8, %p17277_p2 }
 0x84e   : > { %14045 = dma.done.wait (!%p13082_p6), %s9873_s17, 128  }
 0x84f   : > { %14047 = vsyncadd (!%p13082_p6), %s9873_s17, 4294967168  ;;  %p25_p10 = scmp.ge.s32.totalorder %s14323_s15, 4   ;;  %s17279_s27 = smov %s14054_s28 }
 0x850   : > { %s17280_s28 = smov %s14058_s29  ;;  %s17281_s29 = smov %s14335_s13 }
 0x851   : > { %s17282_s30 = smov %s14323_s15  ;;  %27 = sbr.rel (!%p25_p10) target bundleno = 12 (0xc), region = 125 }
 0x858   :  { %9878 = vsyncpa [#allocation3], 1 }
 0x859   :  { %9880 = vsyncpa [#allocation3 + $0x1], 1 }
 0x85a   :  { %9881 = vsyncpa [#allocation6], 1 }
 0x85b   :  { %9882 = vsyncpa [#allocation9], 1 }
 0x85c   :  { %9883 = vsyncpa [#allocation12], 1 }
 0x85d   :  { %9884 = vsyncpa [#allocation15], 1 }
 0x85e   :  { %9885 = vsyncpa [#allocation4], 1 }
 0x85f   :  { %9887 = vsyncpa [#allocation4 + $0x1], 1 }

</bundles_post_ra>
